<compile_context>
chip_gen: v7x
topology: tpu7x:2x2x1
jax: 0.10.0
libtpu: 0.0.40
codegen_flags: <defaults>
</compile_context>

<pallas_src>
import math
from functools import partial

import jax
import jax.numpy as jnp
from jax import lax
from jax.experimental import pallas as pl
from jax.experimental.pallas import tpu as pltpu

WINDOW_SIZE = 11
SIGMA = 1.5
PAD = WINDOW_SIZE // 2
C1 = 0.01 ** 2
C2 = 0.03 ** 2


def _gaussian_weights():
    # Matches the PyTorch `gaussian()` (note: centred at window_size / 2 = 5.5).
    w = [math.exp(-((x - WINDOW_SIZE / 2.0) ** 2) / (2.0 * SIGMA ** 2))
         for x in range(WINDOW_SIZE)]
    s = sum(w)
    return [v / s for v in w]


_G1D = _gaussian_weights()


def _band(n, flip=False):
    """(n, n) banded Gaussian matrix, built in-kernel (iota + 11 selects).

    flip=False: B[r, c] = g[r - c + PAD].  Right-multiplying a (M, n) block by
    B implements the zero-padded 1-D cross-correlation along that axis,
    exactly like F.conv2d(padding=PAD) with the separable window.
    flip=True : B[r, c] = g[c - r + PAD] (left-multiply form, fallback path).
    """
    r = lax.broadcasted_iota(jnp.int32, (n, n), 0)
    c = lax.broadcasted_iota(jnp.int32, (n, n), 1)
    d = (c - r if flip else r - c) + PAD
    out = jnp.zeros((n, n), jnp.float32)
    for t, gt in enumerate(_G1D):
        out = jnp.where(d == t, jnp.float32(gt), out)
    return out


def _ssim_kernel(a_ref, b_ref, out_ref, *, TB, H, W, precision, transpose_vertical):
    """One grid step = TB (batch, channel) slices.

    a_ref, b_ref: (TB, H, W) image slices (VMEM, f32, unpadded).
    out_ref:      (1, 8, 128) lane-dense partial-sum slab for this step.
    """
    f32 = jnp.float32
    a = a_ref[...]
    b = b_ref[...]

    # Constant band matrices generated once per step; never DMA'd / buffered.
    gh = _band(W)                       # horizontal pass, right-multiply
    gvr = _band(H)                      # vertical pass on transposed planes
    gvl = None if transpose_vertical else _band(H, flip=True)

    def blur(x, n):
        # Horizontal (last-axis) blur: one tall 2-D MXU matmul over all planes.
        xh = jnp.dot(x.reshape(n * H, W), gh, precision=precision,
                     preferred_element_type=f32).reshape(n, H, W)
        if transpose_vertical:
            # Vertical blur: per-plane minor-dim transpose (XLU), then one
            # tall 2-D matmul.  Result stays in (n, W, H) transposed layout —
            # fine, the epilogue + sum are layout-agnostic.
            xt = pltpu.einshape("nhw->nwh", xh)                   # (n, W, H)
            return jnp.dot(xt.reshape(n * W, H), gvr, precision=precision,
                           preferred_element_type=f32).reshape(n, W, H)
        # Fallback (previously validated): batched matmul with broadcast LHS.
        gvb = jnp.broadcast_to(gvl, (n, H, H))
        return jnp.einsum('nik,nkw->niw', gvb, xh, precision=precision,
                          preferred_element_type=f32)             # (n, H, W)

    # No concatenate of a/b (they already live in VMEM); only the three
    # products — which must be materialized anyway — share one stack.
    mu1 = blur(a, TB)
    mu2 = blur(b, TB)
    prods = jnp.concatenate([a * a, b * b, a * b], axis=0)        # (3*TB, H, W)
    bp = blur(prods, 3 * TB)
    e11, e22, e12 = bp[:TB], bp[TB:2 * TB], bp[2 * TB:]

    mu1_sq = mu1 * mu1
    mu2_sq = mu2 * mu2
    mu1_mu2 = mu1 * mu2
    sigma1_sq = e11 - mu1_sq
    sigma2_sq = e22 - mu2_sq
    sigma12 = e12 - mu1_mu2

    num = (2.0 * mu1_mu2 + C1) * (2.0 * sigma12 + C2)
    den = (mu1_sq + mu2_sq + C1) * (sigma1_sq + sigma2_sq + C2)
    # EUP approximate reciprocal + one Newton step (~f32 accuracy, no divide).
    r = pl.reciprocal(den, approx=True)
    r = r * (2.0 - den * r)
    ssim_map = num * r

    # Lane-dense, unmasked full-vreg store; no cross-step read-modify-write.
    out_ref[...] = jnp.full((1, 8, 128), jnp.sum(ssim_map), dtype=f32)


def _vmem_bytes():
    """Physical VMEM per TensorCore; conservative v7x fallback (64 MiB)."""
    try:
        info = pltpu.get_tpu_info()
        cap = int(getattr(info, "vmem_capacity_bytes", 0) or 0)
        if cap > 0:
            return cap
    except Exception:
        pass
    return 64 * 1024 * 1024


def _pick_tile(bc, h, w):
    """Pick TB (divisor of bc) from a realistic VMEM model, and vmem_limit.

    Per-step footprint model (bytes):
      inputs a, b, double-buffered by the pipeline: 2 * 2 * TB*H*W*4
      in-kernel temporaries (products, qh, transposed, blurred, SSIM chain):
      ~20 planes * TB*H*W*4, plus the two band matrices 4*(H^2 + W^2).
    """
    phys = _vmem_bytes()
    vmem_limit = int(min(phys * 3 // 4, 100 * 1024 * 1024))   # 48 MiB on v7x, 96 MiB on v5e/v6e
    per_tb = 96 * h * w                                       # (16 + 80) * H*W bytes per TB unit
    fixed = 4 * (h * h + w * w) + (64 << 10)
    budget = int(vmem_limit * 0.8)
    cap = max(1, (budget - fixed) // per_tb)
    # Keep at least two grid steps so the "parallel" axis can be sharded
    # across both TensorCores on v7x.
    if bc >= 2:
        cap = min(cap, bc // 2)
    tb = 1
    for d in range(1, bc + 1):
        if bc % d == 0 and d <= cap:
            tb = d
    return tb, vmem_limit


# Config ladder: (matmul precision, use transpose-based vertical pass).
# The last entry is the previously-validated structure, so the script keeps
# running even if HIGH precision or the einshape transpose is rejected.
_CONFIGS = (
    (lax.Precision.HIGH, True),
    (lax.Precision.HIGHEST, True),
    (lax.Precision.HIGHEST, False),
)
_ACTIVE_CONFIG = None


def ssim(img1, img2):
    """SSIM with size_average=True (the module's default) -> scalar f32."""
    global _ACTIVE_CONFIG
    B, C, H, W = img1.shape
    BC = B * C
    a = img1.astype(jnp.float32).reshape(BC, H, W)
    b = img2.astype(jnp.float32).reshape(BC, H, W)

    TB, vmem_limit = _pick_tile(BC, H, W)
    G = BC // TB

    def build(precision, transpose_vertical):
        kernel = partial(_ssim_kernel, TB=TB, H=H, W=W,
                         precision=precision,
                         transpose_vertical=transpose_vertical)
        return pl.pallas_call(
            kernel,
            out_shape=jax.ShapeDtypeStruct((G, 8, 128), jnp.float32),
            grid_spec=pltpu.PrefetchScalarGridSpec(
                num_scalar_prefetch=0,
                grid=(G,),
                in_specs=[
                    pl.BlockSpec((TB, H, W), lambda i: (i, 0, 0)),
                    pl.BlockSpec((TB, H, W), lambda i: (i, 0, 0)),
                ],
                out_specs=pl.BlockSpec((1, 8, 128), lambda i: (i, 0, 0)),
            ),
            compiler_params=pltpu.CompilerParams(
                dimension_semantics=("parallel",),
                vmem_limit_bytes=vmem_limit,
            ),
        )

    candidates = (_ACTIVE_CONFIG,) if _ACTIVE_CONFIG is not None else _CONFIGS
    partial_sums = None
    last_err = None
    for cfg in candidates:
        try:
            partial_sums = jax.block_until_ready(build(*cfg)(a, b))
            _ACTIVE_CONFIG = cfg
            break
        except Exception as e:          # lowering/compile fallback only
            last_err = e
            partial_sums = None
    if partial_sums is None:
        raise last_err

    total = jnp.sum(partial_sums[:, 0, 0])
    return total / jnp.float32(BC * H * W)


def _ssim_reference(img1, img2):
    """Pure-JAX reference replicating torch F.conv2d depthwise path."""
    B, C, H, W = img1.shape
    g = jnp.asarray(_G1D, dtype=jnp.float32)
    w2d = jnp.outer(g, g)
    kern = jnp.broadcast_to(w2d, (C, 1, WINDOW_SIZE, WINDOW_SIZE))

    def conv(x):
        return lax.conv_general_dilated(
            x, kern, window_strides=(1, 1),
            padding=[(PAD, PAD), (PAD, PAD)],
            dimension_numbers=("NCHW", "OIHW", "NCHW"),
            feature_group_count=C,
            precision=lax.Precision.HIGHEST)

    mu1, mu2 = conv(img1), conv(img2)
    mu1_sq, mu2_sq, mu1_mu2 = mu1 * mu1, mu2 * mu2, mu1 * mu2
    sigma1_sq = conv(img1 * img1) - mu1_sq
    sigma2_sq = conv(img2 * img2) - mu2_sq
    sigma12 = conv(img1 * img2) - mu1_mu2
    ssim_map = ((2 * mu1_mu2 + C1) * (2 * sigma12 + C2)) / \
               ((mu1_sq + mu2_sq + C1) * (sigma1_sq + sigma2_sq + C2))
    return jnp.mean(ssim_map)


if __name__ == "__main__":
    key = jax.random.PRNGKey(0)
    k1, k2 = jax.random.split(key)
    B, C, H, W = 2, 4, 16, 16
    img1 = jax.random.uniform(k1, (B, C, H, W), dtype=jnp.float32)
    img2 = jax.random.uniform(k2, (B, C, H, W), dtype=jnp.float32)

    result = ssim(img1, img2)
    result = jax.block_until_ready(result)

    ref = _ssim_reference(img1, img2)
    ref = jax.block_until_ready(ref)
    assert jnp.allclose(result, ref, rtol=1e-4, atol=1e-4), (result, ref)

    print("KERNEL_OK")
</pallas_src>

<mosaic_0001>
module attributes {stable_mosaic.version = 11 : i64} {
  func.func @_ssim_kernel(%arg0: i32, %arg1: memref<4x16x16xf32, #tpu.memory_space<vmem>>, %arg2: memref<4x16x16xf32, #tpu.memory_space<vmem>>, %arg3: memref<1x8x128xf32, #tpu.memory_space<vmem>>) attributes {dimension_semantics = [#tpu.dimension_semantics<parallel>], iteration_bounds = array<i64: 2>, scalar_prefetch = 0 : i64, scratch_operands = 0 : i64, tpu.core_type = #tpu.core_type<tc>, window_params = [{transform_indices = @transform_0, window_bounds = array<i64: 4, 16, 16>}, {transform_indices = @transform_1, window_bounds = array<i64: 4, 16, 16>}, {transform_indices = @transform_2, window_bounds = array<i64: 1, 8, 128>}]} {
    %c0 = arith.constant 0 : index
    %c0_0 = arith.constant 0 : index
    %c0_1 = arith.constant 0 : index
    %0 = vector.load %arg1[%c0, %c0_0, %c0_1] : memref<4x16x16xf32, #tpu.memory_space<vmem>>, vector<4x16x16xf32>
    %c0_2 = arith.constant 0 : index
    %c0_3 = arith.constant 0 : index
    %c0_4 = arith.constant 0 : index
    %1 = vector.load %arg2[%c0_2, %c0_3, %c0_4] : memref<4x16x16xf32, #tpu.memory_space<vmem>>, vector<4x16x16xf32>
    %2 = tpu.iota {dimensions = array<i32: 0>} : vector<16x16xi32>
    %3 = tpu.iota {dimensions = array<i32: 1>} : vector<16x16xi32>
    %4 = arith.subi %2, %3 : vector<16x16xi32>
    %c5_i32 = arith.constant 5 : i32
    %5 = vector.broadcast %c5_i32 : i32 to vector<16x16xi32>
    %6 = arith.addi %4, %5 : vector<16x16xi32>
    %cst = arith.constant 0.000000e+00 : f32
    %7 = vector.broadcast %cst : f32 to vector<16x16xf32>
    %c0_i32 = arith.constant 0 : i32
    %8 = vector.broadcast %c0_i32 : i32 to vector<16x16xi32>
    %9 = arith.cmpi eq, %6, %8 : vector<16x16xi32>
    %cst_5 = arith.constant 3.20297899E-4 : f32
    %10 = vector.broadcast %cst_5 : f32 to vector<16x16xf32>
    %11 = arith.select %9, %10, %7 : vector<16x16xi1>, vector<16x16xf32>
    %c1_i32 = arith.constant 1 : i32
    %12 = vector.broadcast %c1_i32 : i32 to vector<16x16xi32>
    %13 = arith.cmpi eq, %6, %12 : vector<16x16xi32>
    %cst_6 = arith.constant 0.00295564951 : f32
    %14 = vector.broadcast %cst_6 : f32 to vector<16x16xf32>
    %15 = arith.select %13, %14, %11 : vector<16x16xi1>, vector<16x16xf32>
    %c2_i32 = arith.constant 2 : i32
    %16 = vector.broadcast %c2_i32 : i32 to vector<16x16xi32>
    %17 = arith.cmpi eq, %6, %16 : vector<16x16xi32>
    %cst_7 = arith.constant 0.0174876731 : f32
    %18 = vector.broadcast %cst_7 : f32 to vector<16x16xf32>
    %19 = arith.select %17, %18, %15 : vector<16x16xi1>, vector<16x16xf32>
    %c3_i32 = arith.constant 3 : i32
    %20 = vector.broadcast %c3_i32 : i32 to vector<16x16xi32>
    %21 = arith.cmpi eq, %6, %20 : vector<16x16xi32>
    %cst_8 = arith.constant 0.0663424209 : f32
    %22 = vector.broadcast %cst_8 : f32 to vector<16x16xf32>
    %23 = arith.select %21, %22, %19 : vector<16x16xi1>, vector<16x16xf32>
    %c4_i32 = arith.constant 4 : i32
    %24 = vector.broadcast %c4_i32 : i32 to vector<16x16xi32>
    %25 = arith.cmpi eq, %6, %24 : vector<16x16xi32>
    %cst_9 = arith.constant 0.161372989 : f32
    %26 = vector.broadcast %cst_9 : f32 to vector<16x16xf32>
    %27 = arith.select %25, %26, %23 : vector<16x16xi1>, vector<16x16xf32>
    %c5_i32_10 = arith.constant 5 : i32
    %28 = vector.broadcast %c5_i32_10 : i32 to vector<16x16xi32>
    %29 = arith.cmpi eq, %6, %28 : vector<16x16xi32>
    %cst_11 = arith.constant 0.251681119 : f32
    %30 = vector.broadcast %cst_11 : f32 to vector<16x16xf32>
    %31 = arith.select %29, %30, %27 : vector<16x16xi1>, vector<16x16xf32>
    %c6_i32 = arith.constant 6 : i32
    %32 = vector.broadcast %c6_i32 : i32 to vector<16x16xi32>
    %33 = arith.cmpi eq, %6, %32 : vector<16x16xi32>
    %cst_12 = arith.constant 0.251681119 : f32
    %34 = vector.broadcast %cst_12 : f32 to vector<16x16xf32>
    %35 = arith.select %33, %34, %31 : vector<16x16xi1>, vector<16x16xf32>
    %c7_i32 = arith.constant 7 : i32
    %36 = vector.broadcast %c7_i32 : i32 to vector<16x16xi32>
    %37 = arith.cmpi eq, %6, %36 : vector<16x16xi32>
    %cst_13 = arith.constant 0.161372989 : f32
    %38 = vector.broadcast %cst_13 : f32 to vector<16x16xf32>
    %39 = arith.select %37, %38, %35 : vector<16x16xi1>, vector<16x16xf32>
    %c8_i32 = arith.constant 8 : i32
    %40 = vector.broadcast %c8_i32 : i32 to vector<16x16xi32>
    %41 = arith.cmpi eq, %6, %40 : vector<16x16xi32>
    %cst_14 = arith.constant 0.0663424209 : f32
    %42 = vector.broadcast %cst_14 : f32 to vector<16x16xf32>
    %43 = arith.select %41, %42, %39 : vector<16x16xi1>, vector<16x16xf32>
    %c9_i32 = arith.constant 9 : i32
    %44 = vector.broadcast %c9_i32 : i32 to vector<16x16xi32>
    %45 = arith.cmpi eq, %6, %44 : vector<16x16xi32>
    %cst_15 = arith.constant 0.0174876731 : f32
    %46 = vector.broadcast %cst_15 : f32 to vector<16x16xf32>
    %47 = arith.select %45, %46, %43 : vector<16x16xi1>, vector<16x16xf32>
    %c10_i32 = arith.constant 10 : i32
    %48 = vector.broadcast %c10_i32 : i32 to vector<16x16xi32>
    %49 = arith.cmpi eq, %6, %48 : vector<16x16xi32>
    %cst_16 = arith.constant 0.00295564951 : f32
    %50 = vector.broadcast %cst_16 : f32 to vector<16x16xf32>
    %51 = arith.select %49, %50, %47 : vector<16x16xi1>, vector<16x16xf32>
    %52 = tpu.iota {dimensions = array<i32: 0>} : vector<16x16xi32>
    %53 = tpu.iota {dimensions = array<i32: 1>} : vector<16x16xi32>
    %54 = arith.subi %52, %53 : vector<16x16xi32>
    %c5_i32_17 = arith.constant 5 : i32
    %55 = vector.broadcast %c5_i32_17 : i32 to vector<16x16xi32>
    %56 = arith.addi %54, %55 : vector<16x16xi32>
    %cst_18 = arith.constant 0.000000e+00 : f32
    %57 = vector.broadcast %cst_18 : f32 to vector<16x16xf32>
    %c0_i32_19 = arith.constant 0 : i32
    %58 = vector.broadcast %c0_i32_19 : i32 to vector<16x16xi32>
    %59 = arith.cmpi eq, %56, %58 : vector<16x16xi32>
    %cst_20 = arith.constant 3.20297899E-4 : f32
    %60 = vector.broadcast %cst_20 : f32 to vector<16x16xf32>
    %61 = arith.select %59, %60, %57 : vector<16x16xi1>, vector<16x16xf32>
    %c1_i32_21 = arith.constant 1 : i32
    %62 = vector.broadcast %c1_i32_21 : i32 to vector<16x16xi32>
    %63 = arith.cmpi eq, %56, %62 : vector<16x16xi32>
    %cst_22 = arith.constant 0.00295564951 : f32
    %64 = vector.broadcast %cst_22 : f32 to vector<16x16xf32>
    %65 = arith.select %63, %64, %61 : vector<16x16xi1>, vector<16x16xf32>
    %c2_i32_23 = arith.constant 2 : i32
    %66 = vector.broadcast %c2_i32_23 : i32 to vector<16x16xi32>
    %67 = arith.cmpi eq, %56, %66 : vector<16x16xi32>
    %cst_24 = arith.constant 0.0174876731 : f32
    %68 = vector.broadcast %cst_24 : f32 to vector<16x16xf32>
    %69 = arith.select %67, %68, %65 : vector<16x16xi1>, vector<16x16xf32>
    %c3_i32_25 = arith.constant 3 : i32
    %70 = vector.broadcast %c3_i32_25 : i32 to vector<16x16xi32>
    %71 = arith.cmpi eq, %56, %70 : vector<16x16xi32>
    %cst_26 = arith.constant 0.0663424209 : f32
    %72 = vector.broadcast %cst_26 : f32 to vector<16x16xf32>
    %73 = arith.select %71, %72, %69 : vector<16x16xi1>, vector<16x16xf32>
    %c4_i32_27 = arith.constant 4 : i32
    %74 = vector.broadcast %c4_i32_27 : i32 to vector<16x16xi32>
    %75 = arith.cmpi eq, %56, %74 : vector<16x16xi32>
    %cst_28 = arith.constant 0.161372989 : f32
    %76 = vector.broadcast %cst_28 : f32 to vector<16x16xf32>
    %77 = arith.select %75, %76, %73 : vector<16x16xi1>, vector<16x16xf32>
    %c5_i32_29 = arith.constant 5 : i32
    %78 = vector.broadcast %c5_i32_29 : i32 to vector<16x16xi32>
    %79 = arith.cmpi eq, %56, %78 : vector<16x16xi32>
    %cst_30 = arith.constant 0.251681119 : f32
    %80 = vector.broadcast %cst_30 : f32 to vector<16x16xf32>
    %81 = arith.select %79, %80, %77 : vector<16x16xi1>, vector<16x16xf32>
    %c6_i32_31 = arith.constant 6 : i32
    %82 = vector.broadcast %c6_i32_31 : i32 to vector<16x16xi32>
    %83 = arith.cmpi eq, %56, %82 : vector<16x16xi32>
    %cst_32 = arith.constant 0.251681119 : f32
    %84 = vector.broadcast %cst_32 : f32 to vector<16x16xf32>
    %85 = arith.select %83, %84, %81 : vector<16x16xi1>, vector<16x16xf32>
    %c7_i32_33 = arith.constant 7 : i32
    %86 = vector.broadcast %c7_i32_33 : i32 to vector<16x16xi32>
    %87 = arith.cmpi eq, %56, %86 : vector<16x16xi32>
    %cst_34 = arith.constant 0.161372989 : f32
    %88 = vector.broadcast %cst_34 : f32 to vector<16x16xf32>
    %89 = arith.select %87, %88, %85 : vector<16x16xi1>, vector<16x16xf32>
    %c8_i32_35 = arith.constant 8 : i32
    %90 = vector.broadcast %c8_i32_35 : i32 to vector<16x16xi32>
    %91 = arith.cmpi eq, %56, %90 : vector<16x16xi32>
    %cst_36 = arith.constant 0.0663424209 : f32
    %92 = vector.broadcast %cst_36 : f32 to vector<16x16xf32>
    %93 = arith.select %91, %92, %89 : vector<16x16xi1>, vector<16x16xf32>
    %c9_i32_37 = arith.constant 9 : i32
    %94 = vector.broadcast %c9_i32_37 : i32 to vector<16x16xi32>
    %95 = arith.cmpi eq, %56, %94 : vector<16x16xi32>
    %cst_38 = arith.constant 0.0174876731 : f32
    %96 = vector.broadcast %cst_38 : f32 to vector<16x16xf32>
    %97 = arith.select %95, %96, %93 : vector<16x16xi1>, vector<16x16xf32>
    %c10_i32_39 = arith.constant 10 : i32
    %98 = vector.broadcast %c10_i32_39 : i32 to vector<16x16xi32>
    %99 = arith.cmpi eq, %56, %98 : vector<16x16xi32>
    %cst_40 = arith.constant 0.00295564951 : f32
    %100 = vector.broadcast %cst_40 : f32 to vector<16x16xf32>
    %101 = arith.select %99, %100, %97 : vector<16x16xi1>, vector<16x16xf32>
    %102 = vector.shape_cast %0 : vector<4x16x16xf32> to vector<64x16xf32>
    %cst_41 = arith.constant dense<0.000000e+00> : vector<64x16xf32>
    %103 = tpu.matmul %102, %51, %cst_41 {dimension_numbers = #tpu.dot_dimension_numbers<[1], [0], [0], [1], [0, 0, 1, 1], [], []>, precision = #tpu.contract_precision<fp32>} : vector<64x16xf32>, vector<16x16xf32>, vector<64x16xf32> -> vector<64x16xf32>
    %104 = vector.shape_cast %103 : vector<64x16xf32> to vector<4x16x16xf32>
    %105 = tpu.transpose %104, [0, 2, 1] : vector<4x16x16xf32> -> vector<4x16x16xf32>
    %106 = vector.shape_cast %105 : vector<4x16x16xf32> to vector<64x16xf32>
    %cst_42 = arith.constant dense<0.000000e+00> : vector<64x16xf32>
    %107 = tpu.matmul %106, %101, %cst_42 {dimension_numbers = #tpu.dot_dimension_numbers<[1], [0], [0], [1], [0, 0, 1, 1], [], []>, precision = #tpu.contract_precision<fp32>} : vector<64x16xf32>, vector<16x16xf32>, vector<64x16xf32> -> vector<64x16xf32>
    %108 = vector.shape_cast %107 : vector<64x16xf32> to vector<4x16x16xf32>
    %109 = vector.shape_cast %1 : vector<4x16x16xf32> to vector<64x16xf32>
    %cst_43 = arith.constant dense<0.000000e+00> : vector<64x16xf32>
    %110 = tpu.matmul %109, %51, %cst_43 {dimension_numbers = #tpu.dot_dimension_numbers<[1], [0], [0], [1], [0, 0, 1, 1], [], []>, precision = #tpu.contract_precision<fp32>} : vector<64x16xf32>, vector<16x16xf32>, vector<64x16xf32> -> vector<64x16xf32>
    %111 = vector.shape_cast %110 : vector<64x16xf32> to vector<4x16x16xf32>
    %112 = tpu.transpose %111, [0, 2, 1] : vector<4x16x16xf32> -> vector<4x16x16xf32>
    %113 = vector.shape_cast %112 : vector<4x16x16xf32> to vector<64x16xf32>
    %cst_44 = arith.constant dense<0.000000e+00> : vector<64x16xf32>
    %114 = tpu.matmul %113, %101, %cst_44 {dimension_numbers = #tpu.dot_dimension_numbers<[1], [0], [0], [1], [0, 0, 1, 1], [], []>, precision = #tpu.contract_precision<fp32>} : vector<64x16xf32>, vector<16x16xf32>, vector<64x16xf32> -> vector<64x16xf32>
    %115 = vector.shape_cast %114 : vector<64x16xf32> to vector<4x16x16xf32>
    %116 = arith.mulf %0, %0 : vector<4x16x16xf32>
    %117 = arith.mulf %1, %1 : vector<4x16x16xf32>
    %118 = arith.mulf %0, %1 : vector<4x16x16xf32>
    %119 = tpu.concatenate %116, %117, %118 in 0 : vector<4x16x16xf32>, vector<4x16x16xf32>, vector<4x16x16xf32> -> vector<12x16x16xf32>
    %120 = vector.shape_cast %119 : vector<12x16x16xf32> to vector<192x16xf32>
    %cst_45 = arith.constant dense<0.000000e+00> : vector<192x16xf32>
    %121 = tpu.matmul %120, %51, %cst_45 {dimension_numbers = #tpu.dot_dimension_numbers<[1], [0], [0], [1], [0, 0, 1, 1], [], []>, precision = #tpu.contract_precision<fp32>} : vector<192x16xf32>, vector<16x16xf32>, vector<192x16xf32> -> vector<192x16xf32>
    %122 = vector.shape_cast %121 : vector<192x16xf32> to vector<12x16x16xf32>
    %123 = tpu.transpose %122, [0, 2, 1] : vector<12x16x16xf32> -> vector<12x16x16xf32>
    %124 = vector.shape_cast %123 : vector<12x16x16xf32> to vector<192x16xf32>
    %cst_46 = arith.constant dense<0.000000e+00> : vector<192x16xf32>
    %125 = tpu.matmul %124, %101, %cst_46 {dimension_numbers = #tpu.dot_dimension_numbers<[1], [0], [0], [1], [0, 0, 1, 1], [], []>, precision = #tpu.contract_precision<fp32>} : vector<192x16xf32>, vector<16x16xf32>, vector<192x16xf32> -> vector<192x16xf32>
    %126 = vector.shape_cast %125 : vector<192x16xf32> to vector<12x16x16xf32>
    %127 = vector.extract_strided_slice %126 {offsets = [0, 0, 0], sizes = [4, 16, 16], strides = [1, 1, 1]} : vector<12x16x16xf32> to vector<4x16x16xf32>
    %128 = vector.extract_strided_slice %126 {offsets = [4, 0, 0], sizes = [4, 16, 16], strides = [1, 1, 1]} : vector<12x16x16xf32> to vector<4x16x16xf32>
    %129 = vector.extract_strided_slice %126 {offsets = [8, 0, 0], sizes = [4, 16, 16], strides = [1, 1, 1]} : vector<12x16x16xf32> to vector<4x16x16xf32>
    %130 = arith.mulf %108, %108 : vector<4x16x16xf32>
    %131 = arith.mulf %115, %115 : vector<4x16x16xf32>
    %132 = arith.mulf %108, %115 : vector<4x16x16xf32>
    %133 = arith.subf %127, %130 : vector<4x16x16xf32>
    %134 = arith.subf %128, %131 : vector<4x16x16xf32>
    %135 = arith.subf %129, %132 : vector<4x16x16xf32>
    %cst_47 = arith.constant 2.000000e+00 : f32
    %136 = vector.broadcast %cst_47 : f32 to vector<4x16x16xf32>
    %137 = arith.mulf %136, %132 : vector<4x16x16xf32>
    %cst_48 = arith.constant 9.99999974E-5 : f32
    %138 = vector.broadcast %cst_48 : f32 to vector<4x16x16xf32>
    %139 = arith.addf %137, %138 : vector<4x16x16xf32>
    %cst_49 = arith.constant 2.000000e+00 : f32
    %140 = vector.broadcast %cst_49 : f32 to vector<4x16x16xf32>
    %141 = arith.mulf %140, %135 : vector<4x16x16xf32>
    %cst_50 = arith.constant 8.99999984E-4 : f32
    %142 = vector.broadcast %cst_50 : f32 to vector<4x16x16xf32>
    %143 = arith.addf %141, %142 : vector<4x16x16xf32>
    %144 = arith.mulf %139, %143 : vector<4x16x16xf32>
    %145 = arith.addf %130, %131 : vector<4x16x16xf32>
    %cst_51 = arith.constant 9.99999974E-5 : f32
    %146 = vector.broadcast %cst_51 : f32 to vector<4x16x16xf32>
    %147 = arith.addf %145, %146 : vector<4x16x16xf32>
    %148 = arith.addf %133, %134 : vector<4x16x16xf32>
    %cst_52 = arith.constant 8.99999984E-4 : f32
    %149 = vector.broadcast %cst_52 : f32 to vector<4x16x16xf32>
    %150 = arith.addf %148, %149 : vector<4x16x16xf32>
    %151 = arith.mulf %147, %150 : vector<4x16x16xf32>
    %152 = tpu.reciprocal %151 {approx = true} : vector<4x16x16xf32> -> vector<4x16x16xf32>
    %153 = arith.mulf %151, %152 : vector<4x16x16xf32>
    %cst_53 = arith.constant 2.000000e+00 : f32
    %154 = vector.broadcast %cst_53 : f32 to vector<4x16x16xf32>
    %155 = arith.subf %154, %153 : vector<4x16x16xf32>
    %156 = arith.mulf %152, %155 : vector<4x16x16xf32>
    %157 = arith.mulf %144, %156 : vector<4x16x16xf32>
    %158 = vector.shape_cast %157 : vector<4x16x16xf32> to vector<1x4x16x16xf32>
    %cst_54 = arith.constant dense<0.000000e+00> : vector<1xf32>
    %159 = vector.multi_reduction <add>, %158, %cst_54 [1, 2, 3] : vector<1x4x16x16xf32> to vector<1xf32>
    %160 = vector.shape_cast %159 : vector<1xf32> to vector<1x1x1x1xf32>
    %161 = vector.extract %160[0, 0, 0, 0] : f32 from vector<1x1x1x1xf32>
    %162 = vector.broadcast %161 : f32 to vector<1x8x128xf32>
    %c0_55 = arith.constant 0 : index
    %c0_56 = arith.constant 0 : index
    %c0_57 = arith.constant 0 : index
    %163 = vector.load %arg3[%c0_55, %c0_56, %c0_57] : memref<1x8x128xf32, #tpu.memory_space<vmem>>, vector<1x8x128xf32>
    tpu.vector_store %arg3[%c0_55, %c0_56, %c0_57], %162 {strides = array<i32>} : memref<1x8x128xf32, #tpu.memory_space<vmem>>, vector<1x8x128xf32>,
    return
  }
  func.func @transform_0(%arg0: i32) -> (i32, i32, i32) {
    %c0_i32 = arith.constant 0 : i32
    %c0_i32_0 = arith.constant 0 : i32
    %c0_i32_1 = arith.constant 0 : i32
    return %arg0, %c0_i32, %c0_i32_0 : i32, i32, i32
  }
  func.func @transform_1(%arg0: i32) -> (i32, i32, i32) {
    %c0_i32 = arith.constant 0 : i32
    %c0_i32_0 = arith.constant 0 : i32
    %c0_i32_1 = arith.constant 0 : i32
    return %arg0, %c0_i32, %c0_i32_0 : i32, i32, i32
  }
  func.func @transform_2(%arg0: i32) -> (i32, i32, i32) {
    %c0_i32 = arith.constant 0 : i32
    %c0_i32_0 = arith.constant 0 : i32
    %c0_i32_1 = arith.constant 0 : i32
    return %arg0, %c0_i32, %c0_i32_0 : i32, i32, i32
  }
}

module attributes {stable_mosaic.version = 11 : i64} {
  func.func @_ssim_kernel(%arg0: i32, %arg1: memref<4x16x16xf32, #tpu.memory_space<vmem>>, %arg2: memref<4x16x16xf32, #tpu.memory_space<vmem>>, %arg3: memref<1x8x128xf32, #tpu.memory_space<vmem>>) attributes {dimension_semantics = [#tpu.dimension_semantics<parallel>], iteration_bounds = array<i64: 2>, scalar_prefetch = 0 : i64, scratch_operands = 0 : i64, tpu.core_type = #tpu.core_type<tc>, window_params = [{transform_indices = @transform_0, window_bounds = array<i64: 4, 16, 16>}, {transform_indices = @transform_1, window_bounds = array<i64: 4, 16, 16>}, {transform_indices = @transform_2, window_bounds = array<i64: 1, 8, 128>}]} {
    %c0 = arith.constant 0 : index
    %c0_0 = arith.constant 0 : index
    %c0_1 = arith.constant 0 : index
    %0 = vector.load %arg1[%c0, %c0_0, %c0_1] : memref<4x16x16xf32, #tpu.memory_space<vmem>>, vector<4x16x16xf32>
    %c0_2 = arith.constant 0 : index
    %c0_3 = arith.constant 0 : index
    %c0_4 = arith.constant 0 : index
    %1 = vector.load %arg2[%c0_2, %c0_3, %c0_4] : memref<4x16x16xf32, #tpu.memory_space<vmem>>, vector<4x16x16xf32>
    %2 = tpu.iota {dimensions = array<i32: 0>} : vector<16x16xi32>
    %3 = tpu.iota {dimensions = array<i32: 1>} : vector<16x16xi32>
    %4 = arith.subi %2, %3 : vector<16x16xi32>
    %c5_i32 = arith.constant 5 : i32
    %5 = vector.broadcast %c5_i32 : i32 to vector<16x16xi32>
    %6 = arith.addi %4, %5 : vector<16x16xi32>
    %cst = arith.constant 0.000000e+00 : f32
    %7 = vector.broadcast %cst : f32 to vector<16x16xf32>
    %c0_i32 = arith.constant 0 : i32
    %8 = vector.broadcast %c0_i32 : i32 to vector<16x16xi32>
    %9 = arith.cmpi eq, %6, %8 : vector<16x16xi32>
    %cst_5 = arith.constant 3.20297899E-4 : f32
    %10 = vector.broadcast %cst_5 : f32 to vector<16x16xf32>
    %11 = arith.select %9, %10, %7 : vector<16x16xi1>, vector<16x16xf32>
    %c1_i32 = arith.constant 1 : i32
    %12 = vector.broadcast %c1_i32 : i32 to vector<16x16xi32>
    %13 = arith.cmpi eq, %6, %12 : vector<16x16xi32>
    %cst_6 = arith.constant 0.00295564951 : f32
    %14 = vector.broadcast %cst_6 : f32 to vector<16x16xf32>
    %15 = arith.select %13, %14, %11 : vector<16x16xi1>, vector<16x16xf32>
    %c2_i32 = arith.constant 2 : i32
    %16 = vector.broadcast %c2_i32 : i32 to vector<16x16xi32>
    %17 = arith.cmpi eq, %6, %16 : vector<16x16xi32>
    %cst_7 = arith.constant 0.0174876731 : f32
    %18 = vector.broadcast %cst_7 : f32 to vector<16x16xf32>
    %19 = arith.select %17, %18, %15 : vector<16x16xi1>, vector<16x16xf32>
    %c3_i32 = arith.constant 3 : i32
    %20 = vector.broadcast %c3_i32 : i32 to vector<16x16xi32>
    %21 = arith.cmpi eq, %6, %20 : vector<16x16xi32>
    %cst_8 = arith.constant 0.0663424209 : f32
    %22 = vector.broadcast %cst_8 : f32 to vector<16x16xf32>
    %23 = arith.select %21, %22, %19 : vector<16x16xi1>, vector<16x16xf32>
    %c4_i32 = arith.constant 4 : i32
    %24 = vector.broadcast %c4_i32 : i32 to vector<16x16xi32>
    %25 = arith.cmpi eq, %6, %24 : vector<16x16xi32>
    %cst_9 = arith.constant 0.161372989 : f32
    %26 = vector.broadcast %cst_9 : f32 to vector<16x16xf32>
    %27 = arith.select %25, %26, %23 : vector<16x16xi1>, vector<16x16xf32>
    %c5_i32_10 = arith.constant 5 : i32
    %28 = vector.broadcast %c5_i32_10 : i32 to vector<16x16xi32>
    %29 = arith.cmpi eq, %6, %28 : vector<16x16xi32>
    %cst_11 = arith.constant 0.251681119 : f32
    %30 = vector.broadcast %cst_11 : f32 to vector<16x16xf32>
    %31 = arith.select %29, %30, %27 : vector<16x16xi1>, vector<16x16xf32>
    %c6_i32 = arith.constant 6 : i32
    %32 = vector.broadcast %c6_i32 : i32 to vector<16x16xi32>
    %33 = arith.cmpi eq, %6, %32 : vector<16x16xi32>
    %cst_12 = arith.constant 0.251681119 : f32
    %34 = vector.broadcast %cst_12 : f32 to vector<16x16xf32>
    %35 = arith.select %33, %34, %31 : vector<16x16xi1>, vector<16x16xf32>
    %c7_i32 = arith.constant 7 : i32
    %36 = vector.broadcast %c7_i32 : i32 to vector<16x16xi32>
    %37 = arith.cmpi eq, %6, %36 : vector<16x16xi32>
    %cst_13 = arith.constant 0.161372989 : f32
    %38 = vector.broadcast %cst_13 : f32 to vector<16x16xf32>
    %39 = arith.select %37, %38, %35 : vector<16x16xi1>, vector<16x16xf32>
    %c8_i32 = arith.constant 8 : i32
    %40 = vector.broadcast %c8_i32 : i32 to vector<16x16xi32>
    %41 = arith.cmpi eq, %6, %40 : vector<16x16xi32>
    %cst_14 = arith.constant 0.0663424209 : f32
    %42 = vector.broadcast %cst_14 : f32 to vector<16x16xf32>
    %43 = arith.select %41, %42, %39 : vector<16x16xi1>, vector<16x16xf32>
    %c9_i32 = arith.constant 9 : i32
    %44 = vector.broadcast %c9_i32 : i32 to vector<16x16xi32>
    %45 = arith.cmpi eq, %6, %44 : vector<16x16xi32>
    %cst_15 = arith.constant 0.0174876731 : f32
    %46 = vector.broadcast %cst_15 : f32 to vector<16x16xf32>
    %47 = arith.select %45, %46, %43 : vector<16x16xi1>, vector<16x16xf32>
    %c10_i32 = arith.constant 10 : i32
    %48 = vector.broadcast %c10_i32 : i32 to vector<16x16xi32>
    %49 = arith.cmpi eq, %6, %48 : vector<16x16xi32>
    %cst_16 = arith.constant 0.00295564951 : f32
    %50 = vector.broadcast %cst_16 : f32 to vector<16x16xf32>
    %51 = arith.select %49, %50, %47 : vector<16x16xi1>, vector<16x16xf32>
    %52 = tpu.iota {dimensions = array<i32: 0>} : vector<16x16xi32>
    %53 = tpu.iota {dimensions = array<i32: 1>} : vector<16x16xi32>
    %54 = arith.subi %53, %52 : vector<16x16xi32>
    %c5_i32_17 = arith.constant 5 : i32
    %55 = vector.broadcast %c5_i32_17 : i32 to vector<16x16xi32>
    %56 = arith.addi %54, %55 : vector<16x16xi32>
    %cst_18 = arith.constant 0.000000e+00 : f32
    %57 = vector.broadcast %cst_18 : f32 to vector<16x16xf32>
    %c0_i32_19 = arith.constant 0 : i32
    %58 = vector.broadcast %c0_i32_19 : i32 to vector<16x16xi32>
    %59 = arith.cmpi eq, %56, %58 : vector<16x16xi32>
    %cst_20 = arith.constant 3.20297899E-4 : f32
    %60 = vector.broadcast %cst_20 : f32 to vector<16x16xf32>
    %61 = arith.select %59, %60, %57 : vector<16x16xi1>, vector<16x16xf32>
    %c1_i32_21 = arith.constant 1 : i32
    %62 = vector.broadcast %c1_i32_21 : i32 to vector<16x16xi32>
    %63 = arith.cmpi eq, %56, %62 : vector<16x16xi32>
    %cst_22 = arith.constant 0.00295564951 : f32
    %64 = vector.broadcast %cst_22 : f32 to vector<16x16xf32>
    %65 = arith.select %63, %64, %61 : vector<16x16xi1>, vector<16x16xf32>
    %c2_i32_23 = arith.constant 2 : i32
    %66 = vector.broadcast %c2_i32_23 : i32 to vector<16x16xi32>
    %67 = arith.cmpi eq, %56, %66 : vector<16x16xi32>
    %cst_24 = arith.constant 0.0174876731 : f32
    %68 = vector.broadcast %cst_24 : f32 to vector<16x16xf32>
    %69 = arith.select %67, %68, %65 : vector<16x16xi1>, vector<16x16xf32>
    %c3_i32_25 = arith.constant 3 : i32
    %70 = vector.broadcast %c3_i32_25 : i32 to vector<16x16xi32>
    %71 = arith.cmpi eq, %56, %70 : vector<16x16xi32>
    %cst_26 = arith.constant 0.0663424209 : f32
    %72 = vector.broadcast %cst_26 : f32 to vector<16x16xf32>
    %73 = arith.select %71, %72, %69 : vector<16x16xi1>, vector<16x16xf32>
    %c4_i32_27 = arith.constant 4 : i32
    %74 = vector.broadcast %c4_i32_27 : i32 to vector<16x16xi32>
    %75 = arith.cmpi eq, %56, %74 : vector<16x16xi32>
    %cst_28 = arith.constant 0.161372989 : f32
    %76 = vector.broadcast %cst_28 : f32 to vector<16x16xf32>
    %77 = arith.select %75, %76, %73 : vector<16x16xi1>, vector<16x16xf32>
    %c5_i32_29 = arith.constant 5 : i32
    %78 = vector.broadcast %c5_i32_29 : i32 to vector<16x16xi32>
    %79 = arith.cmpi eq, %56, %78 : vector<16x16xi32>
    %cst_30 = arith.constant 0.251681119 : f32
    %80 = vector.broadcast %cst_30 : f32 to vector<16x16xf32>
    %81 = arith.select %79, %80, %77 : vector<16x16xi1>, vector<16x16xf32>
    %c6_i32_31 = arith.constant 6 : i32
    %82 = vector.broadcast %c6_i32_31 : i32 to vector<16x16xi32>
    %83 = arith.cmpi eq, %56, %82 : vector<16x16xi32>
    %cst_32 = arith.constant 0.251681119 : f32
    %84 = vector.broadcast %cst_32 : f32 to vector<16x16xf32>
    %85 = arith.select %83, %84, %81 : vector<16x16xi1>, vector<16x16xf32>
    %c7_i32_33 = arith.constant 7 : i32
    %86 = vector.broadcast %c7_i32_33 : i32 to vector<16x16xi32>
    %87 = arith.cmpi eq, %56, %86 : vector<16x16xi32>
    %cst_34 = arith.constant 0.161372989 : f32
    %88 = vector.broadcast %cst_34 : f32 to vector<16x16xf32>
    %89 = arith.select %87, %88, %85 : vector<16x16xi1>, vector<16x16xf32>
    %c8_i32_35 = arith.constant 8 : i32
    %90 = vector.broadcast %c8_i32_35 : i32 to vector<16x16xi32>
    %91 = arith.cmpi eq, %56, %90 : vector<16x16xi32>
    %cst_36 = arith.constant 0.0663424209 : f32
    %92 = vector.broadcast %cst_36 : f32 to vector<16x16xf32>
    %93 = arith.select %91, %92, %89 : vector<16x16xi1>, vector<16x16xf32>
    %c9_i32_37 = arith.constant 9 : i32
    %94 = vector.broadcast %c9_i32_37 : i32 to vector<16x16xi32>
    %95 = arith.cmpi eq, %56, %94 : vector<16x16xi32>
    %cst_38 = arith.constant 0.0174876731 : f32
    %96 = vector.broadcast %cst_38 : f32 to vector<16x16xf32>
    %97 = arith.select %95, %96, %93 : vector<16x16xi1>, vector<16x16xf32>
    %c10_i32_39 = arith.constant 10 : i32
    %98 = vector.broadcast %c10_i32_39 : i32 to vector<16x16xi32>
    %99 = arith.cmpi eq, %56, %98 : vector<16x16xi32>
    %cst_40 = arith.constant 0.00295564951 : f32
    %100 = vector.broadcast %cst_40 : f32 to vector<16x16xf32>
    %101 = arith.select %99, %100, %97 : vector<16x16xi1>, vector<16x16xf32>
    %102 = vector.shape_cast %0 : vector<4x16x16xf32> to vector<64x16xf32>
    %cst_41 = arith.constant dense<0.000000e+00> : vector<64x16xf32>
    %103 = tpu.matmul %102, %51, %cst_41 {dimension_numbers = #tpu.dot_dimension_numbers<[1], [0], [0], [1], [0, 0, 1, 1], [], []>, precision = #tpu.contract_precision<fp32>} : vector<64x16xf32>, vector<16x16xf32>, vector<64x16xf32> -> vector<64x16xf32>
    %104 = vector.shape_cast %103 : vector<64x16xf32> to vector<4x16x16xf32>
    %105 = vector.shape_cast %101 : vector<16x16xf32> to vector<1x16x16xf32>
    %106 = vector.broadcast %105 : vector<1x16x16xf32> to vector<4x16x16xf32>
    "tpu.trace_start"() <{level = 10 : i32, message = "nik,nkw->niw"}> : () -> ()
    %cst_42 = arith.constant dense<0.000000e+00> : vector<4x16x16xf32>
    %107 = tpu.matmul %106, %104, %cst_42 {dimension_numbers = #tpu.dot_dimension_numbers<[2], [1], [1], [2], [0, 0, 0, 1, 1, 2], [0], [0]>, precision = #tpu.contract_precision<fp32>} : vector<4x16x16xf32>, vector<4x16x16xf32>, vector<4x16x16xf32> -> vector<4x16x16xf32>
    "tpu.trace_stop"() : () -> ()
    %108 = vector.shape_cast %1 : vector<4x16x16xf32> to vector<64x16xf32>
    %cst_43 = arith.constant dense<0.000000e+00> : vector<64x16xf32>
    %109 = tpu.matmul %108, %51, %cst_43 {dimension_numbers = #tpu.dot_dimension_numbers<[1], [0], [0], [1], [0, 0, 1, 1], [], []>, precision = #tpu.contract_precision<fp32>} : vector<64x16xf32>, vector<16x16xf32>, vector<64x16xf32> -> vector<64x16xf32>
    %110 = vector.shape_cast %109 : vector<64x16xf32> to vector<4x16x16xf32>
    %111 = vector.shape_cast %101 : vector<16x16xf32> to vector<1x16x16xf32>
    %112 = vector.broadcast %111 : vector<1x16x16xf32> to vector<4x16x16xf32>
    "tpu.trace_start"() <{level = 10 : i32, message = "nik,nkw->niw"}> : () -> ()
    %cst_44 = arith.constant dense<0.000000e+00> : vector<4x16x16xf32>
    %113 = tpu.matmul %112, %110, %cst_44 {dimension_numbers = #tpu.dot_dimension_numbers<[2], [1], [1], [2], [0, 0, 0, 1, 1, 2], [0], [0]>, precision = #tpu.contract_precision<fp32>} : vector<4x16x16xf32>, vector<4x16x16xf32>, vector<4x16x16xf32> -> vector<4x16x16xf32>
    "tpu.trace_stop"() : () -> ()
    %114 = arith.mulf %0, %0 : vector<4x16x16xf32>
    %115 = arith.mulf %1, %1 : vector<4x16x16xf32>
    %116 = arith.mulf %0, %1 : vector<4x16x16xf32>
    %117 = tpu.concatenate %114, %115, %116 in 0 : vector<4x16x16xf32>, vector<4x16x16xf32>, vector<4x16x16xf32> -> vector<12x16x16xf32>
    %118 = vector.shape_cast %117 : vector<12x16x16xf32> to vector<192x16xf32>
    %cst_45 = arith.constant dense<0.000000e+00> : vector<192x16xf32>
    %119 = tpu.matmul %118, %51, %cst_45 {dimension_numbers = #tpu.dot_dimension_numbers<[1], [0], [0], [1], [0, 0, 1, 1], [], []>, precision = #tpu.contract_precision<fp32>} : vector<192x16xf32>, vector<16x16xf32>, vector<192x16xf32> -> vector<192x16xf32>
    %120 = vector.shape_cast %119 : vector<192x16xf32> to vector<12x16x16xf32>
    %121 = vector.shape_cast %101 : vector<16x16xf32> to vector<1x16x16xf32>
    %122 = vector.broadcast %121 : vector<1x16x16xf32> to vector<12x16x16xf32>
    "tpu.trace_start"() <{level = 10 : i32, message = "nik,nkw->niw"}> : () -> ()
    %cst_46 = arith.constant dense<0.000000e+00> : vector<12x16x16xf32>
    %123 = tpu.matmul %122, %120, %cst_46 {dimension_numbers = #tpu.dot_dimension_numbers<[2], [1], [1], [2], [0, 0, 0, 1, 1, 2], [0], [0]>, precision = #tpu.contract_precision<fp32>} : vector<12x16x16xf32>, vector<12x16x16xf32>, vector<12x16x16xf32> -> vector<12x16x16xf32>
    "tpu.trace_stop"() : () -> ()
    %124 = vector.extract_strided_slice %123 {offsets = [0, 0, 0], sizes = [4, 16, 16], strides = [1, 1, 1]} : vector<12x16x16xf32> to vector<4x16x16xf32>
    %125 = vector.extract_strided_slice %123 {offsets = [4, 0, 0], sizes = [4, 16, 16], strides = [1, 1, 1]} : vector<12x16x16xf32> to vector<4x16x16xf32>
    %126 = vector.extract_strided_slice %123 {offsets = [8, 0, 0], sizes = [4, 16, 16], strides = [1, 1, 1]} : vector<12x16x16xf32> to vector<4x16x16xf32>
    %127 = arith.mulf %107, %107 : vector<4x16x16xf32>
    %128 = arith.mulf %113, %113 : vector<4x16x16xf32>
    %129 = arith.mulf %107, %113 : vector<4x16x16xf32>
    %130 = arith.subf %124, %127 : vector<4x16x16xf32>
    %131 = arith.subf %125, %128 : vector<4x16x16xf32>
    %132 = arith.subf %126, %129 : vector<4x16x16xf32>
    %cst_47 = arith.constant 2.000000e+00 : f32
    %133 = vector.broadcast %cst_47 : f32 to vector<4x16x16xf32>
    %134 = arith.mulf %133, %129 : vector<4x16x16xf32>
    %cst_48 = arith.constant 9.99999974E-5 : f32
    %135 = vector.broadcast %cst_48 : f32 to vector<4x16x16xf32>
    %136 = arith.addf %134, %135 : vector<4x16x16xf32>
    %cst_49 = arith.constant 2.000000e+00 : f32
    %137 = vector.broadcast %cst_49 : f32 to vector<4x16x16xf32>
    %138 = arith.mulf %137, %132 : vector<4x16x16xf32>
    %cst_50 = arith.constant 8.99999984E-4 : f32
    %139 = vector.broadcast %cst_50 : f32 to vector<4x16x16xf32>
    %140 = arith.addf %138, %139 : vector<4x16x16xf32>
    %141 = arith.mulf %136, %140 : vector<4x16x16xf32>
    %142 = arith.addf %127, %128 : vector<4x16x16xf32>
    %cst_51 = arith.constant 9.99999974E-5 : f32
    %143 = vector.broadcast %cst_51 : f32 to vector<4x16x16xf32>
    %144 = arith.addf %142, %143 : vector<4x16x16xf32>
    %145 = arith.addf %130, %131 : vector<4x16x16xf32>
    %cst_52 = arith.constant 8.99999984E-4 : f32
    %146 = vector.broadcast %cst_52 : f32 to vector<4x16x16xf32>
    %147 = arith.addf %145, %146 : vector<4x16x16xf32>
    %148 = arith.mulf %144, %147 : vector<4x16x16xf32>
    %149 = tpu.reciprocal %148 {approx = true} : vector<4x16x16xf32> -> vector<4x16x16xf32>
    %150 = arith.mulf %148, %149 : vector<4x16x16xf32>
    %cst_53 = arith.constant 2.000000e+00 : f32
    %151 = vector.broadcast %cst_53 : f32 to vector<4x16x16xf32>
    %152 = arith.subf %151, %150 : vector<4x16x16xf32>
    %153 = arith.mulf %149, %152 : vector<4x16x16xf32>
    %154 = arith.mulf %141, %153 : vector<4x16x16xf32>
    %155 = vector.shape_cast %154 : vector<4x16x16xf32> to vector<1x4x16x16xf32>
    %cst_54 = arith.constant dense<0.000000e+00> : vector<1xf32>
    %156 = vector.multi_reduction <add>, %155, %cst_54 [1, 2, 3] : vector<1x4x16x16xf32> to vector<1xf32>
    %157 = vector.shape_cast %156 : vector<1xf32> to vector<1x1x1x1xf32>
    %158 = vector.extract %157[0, 0, 0, 0] : f32 from vector<1x1x1x1xf32>
    %159 = vector.broadcast %158 : f32 to vector<1x8x128xf32>
    %c0_55 = arith.constant 0 : index
    %c0_56 = arith.constant 0 : index
    %c0_57 = arith.constant 0 : index
    %160 = vector.load %arg3[%c0_55, %c0_56, %c0_57] : memref<1x8x128xf32, #tpu.memory_space<vmem>>, vector<1x8x128xf32>
    tpu.vector_store %arg3[%c0_55, %c0_56, %c0_57], %159 {strides = array<i32>} : memref<1x8x128xf32, #tpu.memory_space<vmem>>, vector<1x8x128xf32>,
    return
  }
  func.func @transform_0(%arg0: i32) -> (i32, i32, i32) {
    %c0_i32 = arith.constant 0 : i32
    %c0_i32_0 = arith.constant 0 : i32
    %c0_i32_1 = arith.constant 0 : i32
    return %arg0, %c0_i32, %c0_i32_0 : i32, i32, i32
  }
  func.func @transform_1(%arg0: i32) -> (i32, i32, i32) {
    %c0_i32 = arith.constant 0 : i32
    %c0_i32_0 = arith.constant 0 : i32
    %c0_i32_1 = arith.constant 0 : i32
    return %arg0, %c0_i32, %c0_i32_0 : i32, i32, i32
  }
  func.func @transform_2(%arg0: i32) -> (i32, i32, i32) {
    %c0_i32 = arith.constant 0 : i32
    %c0_i32_0 = arith.constant 0 : i32
    %c0_i32_1 = arith.constant 0 : i32
    return %arg0, %c0_i32, %c0_i32_0 : i32, i32, i32
  }
}

</mosaic_0001>

<bundles_post_ra>
// kernel: tpu_custom_call.1
= control target key start
LH: loop header
LB: loop body
LE: loop exit
PB: predicated region body
PF: predicated region fallthrough
CT: control target
= control target key end

     0   :  { %7 = vsyncpa [#allocation3], 0  ;;  %s11409_s0 = inlined_call_operand.hbm [shape: f32[8,16,16], index: 0, kind: input, shape index: {}]   ;;  %s11410_s1 = inlined_call_operand.hbm [shape: f32[8,16,16], index: 1, kind: input, shape index: {}]   ;;  %s11411_s2 = inlined_call_operand.hbm [shape: f32[2,8,128], index: 2, kind: output, shape index: {}]  }
   0x1   :  { %9 = vsyncpa [#allocation3 + $0x1], 0 }
   0x2   :  { %10 = vsyncpa [#allocation6], 0 }
   0x3   :  { %12 = vsyncpa [#allocation6 + $0x1], 0 }
   0x4   :  { %13 = vsyncpa [#allocation4], 0 }
   0x5   :  { %15 = vsyncpa [#allocation4 + $0x1], 0  ;;  %s9625_s9 = smov 0   ;;  %s9627_s10 = smov 0  }
   0x6   :  { %s9629_s11 = smov 0   ;;  %s9631_s12 = smov 0  }
   0x7 LB: > { %s9646_s13 = sadd.s32 4294967295, %s9602_s12   ;;  %s7417_s14 = sadd.s32 4294967294, %s9602_s12   ;;  %s9602_s12 = sphi %s9631_s12, %s11631_s12   ;;  %s9598_s11 = sphi %s9629_s11, %s11630_s11   ;;  %s9594_s10 = sphi %s9627_s10, %s11629_s10   ;;  %s9590_s9 = sphi %s9625_s9, %s11628_s9  }
   0x8   : > { %s9650_s15 = sadd.s32 1, %s9602_s12   ;;  %s28_s16 = sadd.s32 1, %s9598_s11 }
   0x9   : > { %s25_s17 = ssub.s32 %s9602_s12, %s9650_s15  ;;  %p35_p0 = scmp.ne.s32.totalorder %s9598_s11, %s9594_s10 }
   0xa   : > { %p26_p1 = scmp.eq.s32.totalorder %s25_s17, 0  ;;  %p36_p2 = scmp.eq.s32.totalorder %s9602_s12, 0 }
   0xb   : > { %p41_p3 = scmp.ne.s32.totalorder %s9594_s10, %s9590_s9  ;;  %p42_p4 = scmp.eq.s32.totalorder %s9646_s13, 0 }
   0xc   : > { %s9662_s18 = scalar_select %p26_p1, %s9598_s11, %s28_s16  }
   0xd   : > { %p9664_p5 = por %p36_p2, %p35_p0  ;;  %p9668_p6 = por %p42_p4, %p41_p3 }
   0xe   : > { %p91_p7 = scmp.eq.s32.totalorder %s9646_s13, 1  ;;  %p97_p8 = scmp.eq.s32.totalorder %s7417_s14, 1 }
   0xf   : > { %s11501_s20 = scalar_select %p9668_p6, 1, 0 }
  0x10   : > { %p9419_p10 = scmp.lt.s32.totalorder %s9602_s12, 2  ;;  %p9675_p11 = por %p91_p7, %p35_p0 }
  0x11   : > { %p9679_p12 = por %p97_p8, %p41_p3  ;;  %s9684_s23 = sand.u32 1, %s9598_s11  }
  0x12   : > { %s11502_s21 = scalar_select %p9675_p11, 1, 0 }
  0x13   : > { %s11503_s22 = scalar_select %p9679_p12, 1, 0 }
  0x14   : > { %s7437_s24 = sshll.u32 %s9602_s12, 10  ;;  %s7420_s25 = sshll.u32 %s9684_s23, 6 }
  0x15   : > { %s9693_s28 = scalar_lea.hbm %s11409_s0, %s7437_s24  ;;  %s121_s29 = scalar_lea.vmem [#allocation2], %s7420_s25 }
  0x16   : > { %s129_s30 = sshll.u32 %s121_s29, 4  ;;  %p9699_p13 = pnand %p9419_p10, %p9664_p5  ;;  %s9703_s30 = int_to_ptr.vmem [resolvable:$true] %s129_s30 }
  0x17   : > { %s118_s4 = scalar_lea.sflag [#allocation3], %s9684_s23  ;;  %s9472_s5 = scalar_lea.hbm %s9693_s28, 1024 }
  0x18   : > { %p9473_p0 = scmp.ne.s32.totalorder %s9693_s28, %s9472_s5  ;;  %p9474_p1 = pneg %p9699_p13 }
  0x19   : > { %s9477_s8 = scalar_lea.hbm %s11409_s0, 2048  ;;  %p9478_p4 = scmp.lt.u32.totalorder %s9693_s28, %s11409_s0 }
  0x1a   : > { %p9475_p2 = pnand %p9474_p1, %p9473_p0  ;;  %p9479_p5 = scmp.lt.u32.totalorder %s9477_s8, %s9472_s5 }
  0x1b   : > { %p9481_p8 = scmp.lt.u32.totalorder %s9472_s5, %s9693_s28 }
  0x1c   : > { %p9476_p3 = pneg %p9475_p2  ;;  %p9480_p7 = por %p9479_p5, %p9478_p4 }
  0x1e   : > { %p9482_p10 = por %p9481_p8, %p9480_p7 }
  0x20   : > { %p9483_p9 = pnand %p9482_p10, %p9476_p3 }
  0x22   : > { %9486 = shalt.err (!%p9483_p9)
}
  0x23   : > { %s9487_s17 = scalar_lea.vmem %s9703_s30, 1024  ;;  %s9604_s19 = smov [#allocation2]  }
  0x24   : > { %p9488_p0 = scmp.ne.s32.totalorder %s9703_s30, %s9487_s17  ;;  %s9492_s26 = sshll.u32 %s9604_s19, 4  ;;  %s9493_s26 = int_to_ptr.vmem [resolvable:$false] %s9492_s26 }
  0x25   : > { %s9494_s27 = scalar_lea.vmem %s9493_s26, 2048  ;;  %p9495_p11 = scmp.lt.s32.totalorder %s9703_s30, %s9493_s26 }
  0x26   : > { %p9490_p2 = pnand %p9488_p0, %p9474_p1  ;;  %p9496_p4 = scmp.lt.s32.totalorder %s9494_s27, %s9487_s17 }
  0x28   : > { %p9491_p12 = pneg %p9490_p2  ;;  %p9497_p5 = por %p9496_p4, %p9495_p11 }
  0x2a   : > { %p9498_p7 = pnand %p9497_p5, %p9491_p12 }
  0x2c   : > { %9501 = shalt.err (!%p9498_p7)
}
  0x2d   : > { %s9605_s29 = smov 128   ;;  %s9606_s5 = smov 8  }
  0x2e   : > { %9411 = dma.hbm_to_vmem [thread:$0]  (!%p9699_p13), %s9693_s28, 1024, %s9703_s30, %s118_s4, %s9605_s29, %s9605_s29, %s9606_s5  }
  0x2f   : > { %p7428_p9 = scmp.ge.s32.totalorder %s9602_s12, 1  ;;  %p159_p11 = scmp.lt.s32.totalorder %s9602_s12, 3 }
  0x30   : > { %s9747_s14 = scalar_lea.hbm %s11410_s1, %s7437_s24  ;;  %s143_s16 = scalar_lea.vmem [#allocation5], %s7420_s25 }
  0x31   : > { %p9738_p12 = pnand %p7428_p9, %p159_p11  ;;  %s151_s17 = sshll.u32 %s143_s16, 4  ;;  %s9751_s17 = int_to_ptr.vmem [resolvable:$true] %s151_s17 }
  0x32   : > { %s140_s28 = scalar_lea.sflag [#allocation6], %s9684_s23  ;;  %s9502_s30 = scalar_lea.hbm %s9747_s14, 1024 }
  0x33   : > { %p9503_p3 = scmp.ne.s32.totalorder %s9747_s14, %s9502_s30  ;;  %s9507_s24 = scalar_lea.hbm %s11410_s1, 2048 }
  0x34   : > { %p9508_p0 = scmp.lt.u32.totalorder %s9747_s14, %s11410_s1  ;;  %p9509_p2 = scmp.lt.u32.totalorder %s9507_s24, %s9502_s30 }
  0x35   : > { %p9505_p8 = pnand %p9503_p3, %p9474_p1  ;;  %p9511_p5 = scmp.lt.u32.totalorder %s9502_s30, %s9747_s14 }
  0x36   : > { %p9510_p4 = por %p9509_p2, %p9508_p0 }
  0x37   : > { %p9506_p10 = pneg %p9505_p8 }
  0x38   : > { %p9512_p7 = por %p9511_p5, %p9510_p4 }
  0x3a   : > { %p9513_p9 = pnand %p9512_p7, %p9506_p10 }
  0x3c   : > { %9516 = shalt.err (!%p9513_p9)
}
  0x3d   : > { %s9517_s25 = scalar_lea.vmem %s9751_s17, 1024  ;;  %s9607_s7 = smov [#allocation5]  }
  0x3e   : > { %p9518_p11 = scmp.ne.s32.totalorder %s9751_s17, %s9517_s25  ;;  %s9522_s8 = sshll.u32 %s9607_s7, 4  ;;  %s9523_s8 = int_to_ptr.vmem [resolvable:$false] %s9522_s8 }
  0x3f   : > { %s9524_s16 = scalar_lea.vmem %s9523_s8, 2048  ;;  %p9525_p6 = scmp.lt.s32.totalorder %s9751_s17, %s9523_s8 }
  0x40   : > { %p9520_p3 = pnand %p9518_p11, %p9474_p1  ;;  %p9526_p0 = scmp.lt.s32.totalorder %s9524_s16, %s9517_s25 }
  0x42   : > { %p9521_p8 = pneg %p9520_p3  ;;  %p9527_p2 = por %p9526_p0, %p9525_p6 }
  0x44   : > { %p9528_p4 = pnand %p9527_p2, %p9521_p8 }
  0x46   : > { %9531 = shalt.err (!%p9528_p4)
}
  0x47   : > { %9414 = dma.hbm_to_vmem [thread:$0]  (!%p9699_p13), %s9747_s14, 1024, %s9751_s17, %s140_s28, %s9605_s29, %s9605_s29, %s9606_s5  }
  0x48   : > { %163 = sbr.rel (%p9738_p12) target bundleno = 1641 (0x669), region = 28 }
  0x4f   : > { %s9785_s30 = sand.u32 1, %s9594_s10   ;;  %p11506_p6 = scmp.ne.s32.totalorder %s11501_s20, 0 }
  0x50   : > { %s7429_s4 = sshll.u32 %s9785_s30, 6  ;;  %s166_s19 = scalar_lea.sflag [#allocation3], %s9785_s30 }
  0x51   : > { %s9789_s3 = scalar_lea.vmem [#allocation2], %s7429_s4 }
  0x52   : > { %9577 = dma.done.wait (%p11506_p6), %s166_s19, 1024  }
  0x53   : > { %9579 = vsyncadd (%p11506_p6), %s166_s19, 4294966272  ;;  %s175_s23 = scalar_lea.sflag [#allocation6], %s9785_s30  ;;  %s9796_s29 = scalar_lea.vmem [#allocation5], %s7429_s4 }
  0x54   : > { %9581 = dma.done.wait (%p11506_p6), %s175_s23, 1024  }
  0x55   : > { %9583 = vsyncadd (%p11506_p6), %s175_s23, 4294966272  ;;  %v222_v0 = vlaneseq  ;;  %v9608_v8 = vmov 0.0   ;;  %vm275_vm5 = vcmask 130048   ;;  %v9803_v15 = vld [vmem:[%s9789_s3] sm:$0xff]  ;;  %v9807_v20 = vld [vmem:[%s9789_s3 + $0x8] sm:$0xff]  ;;  %s7431_s20 = sshll.u32 %s9785_s30, 3 }
  0x56   : > { %v9810_v25 = vld [vmem:[%s9789_s3 + $0x10] sm:$0xff]  ;;  %v9813_v26 = vld [vmem:[%s9789_s3 + $0x18] sm:$0xff]  ;;  %v277_v29 = vsel %vm275_vm5, %v9803_v15, 0  ;;  %v280_v35 = vsel %vm275_vm5, %v9807_v20, 0  ;;  %v9827_v40 = vld [vmem:[%s9789_s3 + $0x20] sm:$0xff]  ;;  %s203_s5 = scalar_lea.vmem [#allocation7], %s7431_s20 }
  0x57   : > { %v223_v1 = vshrl.u32 %v222_v0, 7  ;;  %v226_v2 = vand.u32 127, %v222_v0  ;;  %v9817_v32 = vand.u32 4294901760, %v277_v29  ;;  %v9824_v39 = vand.u32 4294901760, %v280_v35  ;;  %v9846_v51 = vld [vmem:[%s9789_s3 + $0x28] sm:$0xff]  ;;  %v9864_v59 = vld [vmem:[%s9789_s3 + $0x30] sm:$0xff] }
  0x58   : > { %v283_v42 = vsel %vm275_vm5, %v9810_v25, 0  ;;  %v286_v43 = vsel %vm275_vm5, %v9813_v26, 0  ;;  %v289_v50 = vsel %vm275_vm5, %v9827_v40, 0  ;;  %v292_v63 = vsel %vm275_vm5, %v9846_v51, 0  ;;  %s7324_s6 = sshll.u32 %s203_s5, 4  ;;  %s7433_s14 = sshll.u32 %s9646_s13, 7  ;;  %s11362_s6 = int_to_ptr.vmem [resolvable:$true] %s7324_s6 }
  0x59   : > { %v224_v3 = vadd.s32 8, %v223_v1  ;;  %v227_v4 = vsub.s32 %v223_v1, %v226_v2  ;;  %v9822_v38 = vsub.f32 %v277_v29, %v9817_v32  ;;  %v9835_v46 = vsub.f32 %v280_v35, %v9824_v39  ;;  %s11367_s26 = scalar_lea.hbm %s11411_s2, %s7433_s14  ;;  %s7311_s27 = scalar_lea.sflag [#allocation4], %s9785_s30 }
  0x5a   : > { %v9837_v47 = vand.u32 4294901760, %v283_v42  ;;  %v9839_v48 = vand.u32 4294901760, %v286_v43  ;;  %v9870_v62 = vand.u32 4294901760, %v289_v50  ;;  %s9532_s25 = scalar_lea.vmem %s11362_s6, 128  ;;  %p11625_p1 = scmp.ne.s32.totalorder %s11502_s21, 0 }
  0x5b   : > { %v228_v5 = vsub.s32 %v224_v3, %v226_v2  ;;  %v229_v6 = vadd.s32 5, %v227_v4  ;;  %v369_v45 = vand.u32 4294901760, %v9822_v38  ;;  %v379_v54 = vand.u32 4294901760, %v9835_v46  ;;  %v9883_v4 = vld [vmem:[%s9789_s3 + $0x38] sm:$0xff]  ;;  %p9533_p13 = scmp.ne.s32.totalorder %s11362_s6, %s9532_s25  ;;  %s9609_s13 = smov [#allocation7]  }
  0x5c   : > { %v9855_v55 = vsub.f32 %v283_v42, %v9837_v47  ;;  %v9858_v56 = vsub.f32 %v286_v43, %v9839_v48  ;;  %s9536_s7 = sshll.u32 %s9609_s13, 4  ;;  %s9537_s7 = int_to_ptr.vmem [resolvable:$false] %s9536_s7 }
  0x5d   : > { %v230_v7 = vadd.s32 5, %v228_v5  ;;  %vm231_vm0 = vcmp.eq.s32.totalorder %v229_v6, 0  ;;  %vm235_vm1 = vcmp.eq.s32.totalorder %v229_v6, 1  ;;  %vm239_vm2 = vcmp.eq.s32.totalorder %v229_v6, 2  ;;  %p9534_p12 = pnand %p9533_p13, %p11625_p1  ;;  %s9538_s8 = scalar_lea.vmem %s9537_s7, 256 }
  0x5e   : > { %v233_v9 = vsel %vm231_vm0, 0.0003202979, %v9608_v8  ;;  %vm243_vm3 = vcmp.eq.s32.totalorder %v229_v6, 3  ;;  %vm247_vm4 = vcmp.eq.s32.totalorder %v229_v6, 4  ;;  %vm251_vm10 = vcmp.eq.s32.totalorder %v229_v6, 5  ;;  %p9539_p5 = scmp.lt.s32.totalorder %s11362_s6, %s9537_s7  ;;  %p9540_p7 = scmp.lt.s32.totalorder %s9538_s8, %s9532_s25 }
  0x5f   : > { %vm232_vm6 = vcmp.eq.s32.totalorder %v230_v7, 0  ;;  %vm236_vm7 = vcmp.eq.s32.totalorder %v230_v7, 1  ;;  %v237_v10 = vsel %vm235_vm1, 0.0029556495, %v233_v9  ;;  %vm240_vm8 = vcmp.eq.s32.totalorder %v230_v7, 2  ;;  %p9535_p10 = pneg %p9534_p12 }
  0x60   : > { %v234_v11 = vsel %vm232_vm6, 0.0003202979, %v9608_v8  ;;  %v241_v12 = vsel %vm239_vm2, 0.017487673, %v237_v10  ;;  %vm244_vm9 = vcmp.eq.s32.totalorder %v230_v7, 3  ;;  %vm248_vm11 = vcmp.eq.s32.totalorder %v230_v7, 4  ;;  %p9541_p9 = por %p9540_p7, %p9539_p5 }
  0x61   : > { %v238_v13 = vsel %vm236_vm7, 0.0029556495, %v234_v11  ;;  %v245_v14 = vsel %vm243_vm3, 0.06634242, %v241_v12  ;;  %vm255_vm12 = vcmp.eq.s32.totalorder %v229_v6, 6  ;;  %vm252_vm13 = vcmp.eq.s32.totalorder %v230_v7, 5 }
  0x62   : > { %v242_v16 = vsel %vm240_vm8, 0.017487673, %v238_v13  ;;  %v249_v17 = vsel %vm247_vm4, 0.16137299, %v245_v14  ;;  %vm259_vm14 = vcmp.eq.s32.totalorder %v229_v6, 7  ;;  %vm256_vm15 = vcmp.eq.s32.totalorder %v230_v7, 6  ;;  %p9542_p11 = pnand %p9541_p9, %p9535_p10 }
  0x63   : > { %v246_v18 = vsel %vm244_vm9, 0.06634242, %v242_v16  ;;  %v253_v19 = vsel %vm251_vm10, 0.25168112, %v249_v17  ;;  %vm263_vm0 = vcmp.eq.s32.totalorder %v229_v6, 8  ;;  %vm260_vm1 = vcmp.eq.s32.totalorder %v230_v7, 7 }
  0x64   : > { %v250_v21 = vsel %vm248_vm11, 0.16137299, %v246_v18  ;;  %v257_v22 = vsel %vm255_vm12, 0.25168112, %v253_v19  ;;  %vm267_vm2 = vcmp.eq.s32.totalorder %v229_v6, 9  ;;  %vm264_vm3 = vcmp.eq.s32.totalorder %v230_v7, 8 }
  0x65   : > { %v254_v23 = vsel %vm252_vm13, 0.25168112, %v250_v21  ;;  %v261_v24 = vsel %vm259_vm14, 0.16137299, %v257_v22  ;;  %vm271_vm6 = vcmp.eq.s32.totalorder %v229_v6, 10  ;;  %vm268_vm4 = vcmp.eq.s32.totalorder %v230_v7, 9 }
  0x66   : > { %v258_v27 = vsel %vm256_vm15, 0.25168112, %v254_v23  ;;  %v265_v28 = vsel %vm263_vm0, 0.06634242, %v261_v24  ;;  %vm272_vm7 = vcmp.eq.s32.totalorder %v230_v7, 10  ;;  %v370_v53 = vsub.f32 %v9822_v38, %v369_v45 }
  0x67   : > { %v262_v30 = vsel %vm260_vm1, 0.16137299, %v258_v27  ;;  %v269_v31 = vsel %vm267_vm2, 0.017487673, %v265_v28  ;;  %v380_v61 = vsub.f32 %v9835_v46, %v379_v54  ;;  %v389_v0 = vand.u32 4294901760, %v9855_v55 }
  0x68   : > { %v266_v33 = vsel %vm264_vm3, 0.06634242, %v262_v30  ;;  %v273_v34 = vsel %vm271_vm6, 0.0029556495, %v269_v31  ;;  %v371_v60 = vand.u32 4294901760, %v370_v53  ;;  %v399_v1 = vand.u32 4294901760, %v9858_v56 }
  0x69   : > { %v270_v36 = vsel %vm268_vm4, 0.017487673, %v266_v33  ;;  %v301_v37 = vand.u32 4294901760, %v273_v34  ;;  %v381_v5 = vand.u32 4294901760, %v380_v61  ;;  %v9887_v6 = vsub.f32 %v289_v50, %v9870_v62 }
  0x6a   : > { %v274_v41 = vsel %vm272_vm7, 0.0029556495, %v270_v36  ;;  %7996 = vmatprep.mubr.f32.mxu0 %v371_v60  ;;  %v9889_v7 = vand.u32 4294901760, %v292_v63  ;;  %v295_v8 = vsel %vm275_vm5, %v9864_v59, 0  ;;  %v390_v9 = vsub.f32 %v9855_v55, %v389_v0 }
  0x6b   : > { %v304_v44 = vand.u32 4294901760, %v274_v41  ;;  %v9841_v49 = vsub.f32 %v273_v34, %v301_v37  ;;  %v400_v10 = vsub.f32 %v9858_v56, %v399_v1  ;;  %v409_v13 = vand.u32 4294901760, %v9887_v6 }
  0x6c   : > { %v418_v14 = vsub.f32 %v292_v63, %v9889_v7  ;;  %v9902_v16 = vand.u32 4294901760, %v295_v8  ;;  %v298_v17 = vsel %vm275_vm5, %v9883_v4, 0  ;;  %v391_v18 = vand.u32 4294901760, %v390_v9  ;;  %v10023_v9 = vld [vmem:[%s9796_s29 + $0x38] sm:$0xff] }
  0x6d   : > { %v9848_v52 = vpack.c.bf16 %v304_v44, %v301_v37  ;;  %v450_v57 = vand.u32 4294901760, %v9841_v49  ;;  %v9861_v58 = vsub.f32 %v274_v41, %v304_v44  ;;  %v401_v19 = vand.u32 4294901760, %v400_v10 }
  0x6e   : > { %v9906_v22 = vand.u32 4294901760, %v298_v17  ;;  %v410_v23 = vsub.f32 %v9887_v6, %v409_v13  ;;  %v419_v24 = vand.u32 4294901760, %v418_v14  ;;  %v428_v27 = vsub.f32 %v295_v8, %v9902_v16 }
  0x6f   : > { %8857 = vmatprep.subr.bf16.mxu0 %v9848_v52  ;;  %8881 = vmatprep.subr.bf16.mxu1 %v9848_v52  ;;  %v451_v2 = vsub.f32 %v9841_v49, %v450_v57  ;;  %v457_v3 = vand.u32 4294901760, %v9861_v58  ;;  %v9915_v30 = vpack.c.bf16 %v9861_v58, %v9841_v49  ;;  %v9968_v49 = vld [vmem:[%s9796_s29 + $0x10] sm:$0xff] }
  0x70   : > { %8859 = vmatpush3.bf16.msra.mxu0 %v9848_v52  ;;  %8883 = vmatpush3.bf16.msra.mxu1 %v9848_v52  ;;  %v438_v29 = vsub.f32 %v298_v17, %v9906_v22  ;;  %v411_v31 = vand.u32 4294901760, %v410_v23  ;;  %v420_v33 = vsub.f32 %v418_v14, %v419_v24  ;;  %v429_v34 = vand.u32 4294901760, %v428_v27 }
  0x71   : > { %v452_v11 = vand.u32 4294901760, %v451_v2  ;;  %v458_v12 = vsub.f32 %v9861_v58, %v457_v3  ;;  %v9934_v44 = vpack.c.bf16 %v457_v3, %v450_v57 }
  0x72   : > { %v439_v35 = vand.u32 4294901760, %v438_v29  ;;  %v421_v36 = vand.u32 4294901760, %v420_v33  ;;  %v430_v37 = vsub.f32 %v428_v27, %v429_v34 }
  0x73   : > { %7997 = vmatmul.mubr.f32.vlgmr.msra.gmra.mrb[0].mxu0 %v381_v5  ;;  %v459_v21 = vand.u32 4294901760, %v458_v12 }
  0x74   : > { %7999 = vmatprep.mubr.f32.mxu0 %v391_v18  ;;  %v440_v41 = vsub.f32 %v438_v29, %v439_v35  ;;  %v431_v42 = vand.u32 4294901760, %v430_v37 }
  0x75   : > { %v9910_v28 = vpack.c.bf16 %v459_v21, %v452_v11 }
  0x76   : > { %v441_v43 = vand.u32 4294901760, %v440_v41 }
  0x77   : > { %11507 = vst [vmem:[#allocation11_spill] sm:$0xff] %v9910_v28  ;;  %8000 = vmatmul.mubr.f32.gmra.mrb[2].mxu0 %v401_v19  ;;  %8861 = vmatprep.subr.bf16.mxu0 %v9910_v28 }
  0x78   : > { %8885 = vmatprep.subr.bf16.mxu1 %v9910_v28  ;;  %8863 = vmatpush3.bf16.msra.mxu0 %v9910_v28 }
  0x79   : > { %8002 = vmatprep.mubr.f32.mxu0 %v411_v31  ;;  %8865 = vmatprep.subr.bf16.mxu0 %v9915_v30 }
  0x7b   : > { %8003 = vmatmul.mubr.f32.gmra.mrb[4].mxu0 %v421_v36 }
  0x7c   : > { %8005 = vmatprep.mubr.f32.mxu0 %v431_v42 }
  0x7f   : > { %8006 = vmatmul.mubr.f32.gmra.mrb[6].mxu0 %v441_v43 }
  0x80   : > { %8012 = vmatprep.mubr.f32.mxu0 %v9817_v32 }
  0x83   : > { %8013 = vmatmul.mubr.f32.vlgmr.msra.gmra.mrb[0].mxu0 %v9824_v39 }
  0x84   : > { %8015 = vmatprep.mubr.f32.mxu0 %v9837_v47  ;;  %8867 = vmatpush3.bf16.msra.mxu0 %v9915_v30 }
  0x85   : > { %8869 = vmatprep.subr.bf16.mxu0 %v9848_v52 }
  0x87   : > { %8016 = vmatmul.mubr.f32.gmra.mrb[2].mxu0 %v9839_v48 }
  0x88   : > { %8018 = vmatprep.mubr.f32.mxu0 %v9870_v62 }
  0x8b   : > { %8019 = vmatmul.mubr.f32.gmra.mrb[4].mxu0 %v9889_v7 }
  0x8c   : > { %8021 = vmatprep.mubr.f32.mxu0 %v9902_v16 }
  0x8f   : > { %8022 = vmatmul.mubr.f32.gmra.mrb[6].mxu0 %v9906_v22 }
  0x90   : > { %8028 = vmatprep.mubr.f32.mxu0 %v9822_v38  ;;  %v9957_v38 = vld [vmem:[%s9796_s29] sm:$0xff] }
  0x93   : > { %8029 = vmatmul.mubr.f32.vlgmr.msra.gmra.mrb[0].mxu0 %v9835_v46  ;;  %v9965_v46 = vld [vmem:[%s9796_s29 + $0x8] sm:$0xff] }
  0x94   : > { %8031 = vmatprep.mubr.f32.mxu0 %v9855_v55  ;;  %8871 = vmatpush3.bf16.msra.mxu0 %v9848_v52  ;;  %v1976_v53 = vsel %vm275_vm5, %v9965_v46, 0  ;;  %v9979_v55 = vld [vmem:[%s9796_s29 + $0x18] sm:$0xff] }
  0x95   : > { %8873 = vmatprep.subr.bf16.mxu0 %v9934_v44  ;;  %v9988_v58 = vand.u32 4294901760, %v1976_v53  ;;  %v1982_v61 = vsel %vm275_vm5, %v9979_v55, 0 }
  0x97   : > { %8032 = vmatmul.mubr.f32.gmra.mrb[2].mxu0 %v9858_v56  ;;  %v9982_v56 = vld [vmem:[%s9796_s29 + $0x20] sm:$0xff]  ;;  %v10006_v3 = vsub.f32 %v1976_v53, %v9988_v58 }
  0x98   : > { %8034 = vmatprep.mubr.f32.mxu0 %v9887_v6  ;;  %v1985_v63 = vsel %vm275_vm5, %v9982_v56, 0 }
  0x99   : > { %v10015_v6 = vand.u32 4294901760, %v1985_v63  ;;  %v2075_v10 = vand.u32 4294901760, %v10006_v3 }
  0x9b   : > { %8035 = vmatmul.mubr.f32.gmra.mrb[4].mxu0 %v418_v14  ;;  %v10038_v14 = vsub.f32 %v1985_v63, %v10015_v6  ;;  %v2076_v18 = vsub.f32 %v10006_v3, %v2075_v10  ;;  %v3669_v63 = vmul.f32 %v9807_v20, %v9807_v20 }
  0x9c   : > { %8037 = vmatprep.mubr.f32.mxu0 %v428_v27 }
  0x9d   : > { %v2105_v27 = vand.u32 4294901760, %v10038_v14 }
  0x9f   : > { %8038 = vmatmul.mubr.f32.gmra.mrb[6].mxu0 %v438_v29  ;;  %v2106_v36 = vsub.f32 %v10038_v14, %v2105_v27 }
  0xa0   : > { %8044 = vmatprep.mubr.f32.mxu0 %v369_v45  ;;  %v1973_v45 = vsel %vm275_vm5, %v9957_v38, 0 }
  0xa1   : > { %v9971_v50 = vand.u32 4294901760, %v1973_v45  ;;  %v2107_v43 = vand.u32 4294901760, %v2106_v36 }
  0xa3   : > { %8045 = vmatmul.mubr.f32.vlgmr.msra.gmra.mrb[0].mxu0 %v379_v54  ;;  %v1979_v54 = vsel %vm275_vm5, %v9968_v49, 0  ;;  %v9986_v57 = vsub.f32 %v1973_v45, %v9971_v50 }
  0xa4   : > { %8047 = vmatprep.mubr.f32.mxu0 %v389_v0  ;;  %8875 = vmatpush3.bf16.msra.mxu0 %v9934_v44  ;;  %v9991_v60 = vand.u32 4294901760, %v1979_v54  ;;  %v9998_v0 = vld [vmem:[%s9796_s29 + $0x28] sm:$0xff] }
  0xa5   : > { %8877 = vmatprep.subr.bf16.mxu0 %v9848_v52  ;;  %v2065_v2 = vand.u32 4294901760, %v9986_v57  ;;  %v1988_v8 = vsel %vm275_vm5, %v9998_v0, 0 }
  0xa6   : > { %v10013_v5 = vsub.f32 %v1979_v54, %v9991_v60  ;;  %v10033_v12 = vand.u32 4294901760, %v1988_v8 }
  0xa7   : > { %8048 = vmatmul.mubr.f32.gmra.mrb[2].mxu0 %v399_v1  ;;  %v10001_v1 = vld [vmem:[%s9796_s29 + $0x30] sm:$0xff] }
  0xa8   : > { %8050 = vmatprep.mubr.f32.mxu0 %v409_v13  ;;  %v2085_v13 = vand.u32 4294901760, %v10013_v5 }
  0xab   : > { %8051 = vmatmul.mubr.f32.gmra.mrb[4].mxu0 %v419_v24  ;;  %v2086_v24 = vsub.f32 %v10013_v5, %v2085_v13 }
  0xac   : > { %8053 = vmatprep.mubr.f32.mxu0 %v429_v34 }
  0xaf   : > { %8054 = vmatmul.mubr.f32.gmra.mrb[6].mxu0 %v439_v35  ;;  %v2087_v35 = vand.u32 4294901760, %v2086_v24 }
  0xb0   : > { %8060 = vmatprep.mubr.f32.mxu0 %v9817_v32 }
  0xb3   : > { %8061 = vmatmul.mubr.f32.vlgmr.msra.gmra.mrb[0].mxu0 %v9824_v39 }
  0xb4   : > { %8063 = vmatprep.mubr.f32.mxu0 %v9837_v47  ;;  %8879 = vmatpush3.bf16.msra.mxu0 %v9848_v52 }
  0xb5   : > { %8905 = vmatprep.subr.bf16.mxu0 %v9848_v52 }
  0xb7   : > { %8064 = vmatmul.mubr.f32.gmra.mrb[2].mxu0 %v9839_v48 }
  0xb8   : > { %8066 = vmatprep.mubr.f32.mxu0 %v9870_v62 }
  0xbb   : > { %8067 = vmatmul.mubr.f32.gmra.mrb[4].mxu0 %v9889_v7 }
  0xbc   : > { %8069 = vmatprep.mubr.f32.mxu0 %v9902_v16 }
  0xbf   : > { %8070 = vmatmul.mubr.f32.gmra.mrb[6].mxu0 %v9906_v22 }
  0xc0   : > { %8076 = vmatprep.mubr.f32.mxu0 %v9817_v32  ;;  %v10008_v32 = vand.u32 4294901760, %v1982_v61 }
  0xc2   : > { %v10031_v11 = vsub.f32 %v1982_v61, %v10008_v32 }
  0xc3   : > { %8077 = vmatmul.mubr.f32.vlgmr.msra.gmra.mrb[0].mxu0 %v9824_v39  ;;  %v1991_v39 = vsel %vm275_vm5, %v10001_v1, 0 }
  0xc4   : > { %8079 = vmatprep.mubr.f32.mxu0 %v9837_v47  ;;  %8907 = vmatpush3.bf16.msra.mxu0 %v9848_v52  ;;  %v2066_v47 = vsub.f32 %v9986_v57, %v2065_v2  ;;  %v10040_v17 = vand.u32 4294901760, %v1991_v39  ;;  %v2095_v19 = vand.u32 4294901760, %v10031_v11 }
  0xc5   : > { %8909 = vmatprep.subr.bf16.mxu0 %v9910_v28 }
  0xc6   : > { %v2067_v23 = vand.u32 4294901760, %v2066_v47  ;;  %v2124_v29 = vsub.f32 %v1991_v39, %v10040_v17  ;;  %v2096_v31 = vsub.f32 %v10031_v11, %v2095_v19 }
  0xc7   : > { %8080 = vmatmul.mubr.f32.gmra.mrb[2].mxu0 %v9839_v48  ;;  %v1994_v48 = vsel %vm275_vm5, %v10023_v9, 0 }
  0xc8   : > { %8082 = vmatprep.mubr.f32.mxu0 %v9870_v62  ;;  %v2114_v62 = vsub.f32 %v1988_v8, %v10033_v12  ;;  %v10050_v21 = vand.u32 4294901760, %v1994_v48  ;;  %v2097_v37 = vand.u32 4294901760, %v2096_v31  ;;  %v3696_v8 = vsel %vm275_vm5, %v3669_v63, 0 }
  0xca   : > { %v2115_v33 = vand.u32 4294901760, %v2114_v62  ;;  %v2134_v34 = vsub.f32 %v1994_v48, %v10050_v21 }
  0xcb   : > { %8083 = vmatmul.mubr.f32.gmra.mrb[4].mxu0 %v9889_v7  ;;  %v2077_v7 = vand.u32 4294901760, %v2076_v18  ;;  %v3674_v18 = vmul.f32 %v9864_v59, %v9864_v59 }
  0xcc   : > { %8085 = vmatprep.mubr.f32.mxu0 %v9902_v16  ;;  %v2125_v16 = vand.u32 4294901760, %v2124_v29  ;;  %v2116_v41 = vsub.f32 %v2114_v62, %v2115_v33  ;;  %v2135_v42 = vand.u32 4294901760, %v2134_v34 }
  0xce   : > { %v2117_v45 = vand.u32 4294901760, %v2116_v41  ;;  %v2136_v53 = vsub.f32 %v2134_v34, %v2135_v42  ;;  %v3677_v41 = vmul.f32 %v9965_v46, %v9965_v46 }
  0xcf   : > { %8086 = vmatmul.mubr.f32.gmra.mrb[6].mxu0 %v9906_v22  ;;  %v2126_v22 = vsub.f32 %v2124_v29, %v2125_v16 }
  0xd0   : > { %8188 = vmatprep.mubr.f32.mxu0 %v2067_v23  ;;  %v2137_v61 = vand.u32 4294901760, %v2136_v53  ;;  %v3678_v53 = vmul.f32 %v9968_v49, %v9968_v49  ;;  %v3720_v63 = vsel %vm275_vm5, %v3677_v41, 0 }
  0xd1   : > { %v2127_v54 = vand.u32 4294901760, %v2126_v22 }
  0xd3   : > { %8189 = vmatmul.mubr.f32.vlgmr.msra.gmra.mrb[8].mxu0 %v2077_v7  ;;  %v3711_v7 = vsel %vm275_vm5, %v3674_v18, 0 }
  0xd4   : > { %8191 = vmatprep.mubr.f32.mxu0 %v2087_v35  ;;  %8911 = vmatpush3.bf16.msra.mxu0 %v9910_v28  ;;  %v3676_v35 = vmul.f32 %v9957_v38, %v9957_v38 }
  0xd5   : > { %8913 = vmatprep.subr.bf16.mxu0 %v9915_v30 }
  0xd7   : > { %8192 = vmatmul.mubr.f32.gmra.mrb[10].mxu0 %v2097_v37 }
  0xd8   : > { %8194 = vmatprep.mubr.f32.mxu0 %v2107_v43 }
  0xdb   : > { %8195 = vmatmul.mubr.f32.gmra.mrb[12].mxu0 %v2117_v45  ;;  %v3717_v45 = vsel %vm275_vm5, %v3676_v35, 0  ;;  %v3682_v35 = vmul.f32 %v10001_v1, %v10001_v1 }
  0xdc   : > { %8197 = vmatprep.mubr.f32.mxu0 %v2127_v54 }
  0xdf   : > { %8198 = vmatmul.mubr.f32.gmra.mrb[14].mxu0 %v2137_v61 }
  0xe0   : > { %8204 = vmatprep.mubr.f32.mxu0 %v9971_v50 }
  0xe3   : > { %8205 = vmatmul.mubr.f32.vlgmr.msra.gmra.mrb[8].mxu0 %v9988_v58 }
  0xe4   : > { %8207 = vmatprep.mubr.f32.mxu0 %v9991_v60  ;;  %8915 = vmatpush3.bf16.msra.mxu0 %v9915_v30 }
  0xe5   : > { %8917 = vmatprep.subr.bf16.mxu0 %v9848_v52 }
  0xe7   : > { %8208 = vmatmul.mubr.f32.gmra.mrb[10].mxu0 %v10008_v32 }
  0xe8   : > { %8210 = vmatprep.mubr.f32.mxu0 %v10015_v6 }
  0xeb   : > { %8211 = vmatmul.mubr.f32.gmra.mrb[12].mxu0 %v10033_v12 }
  0xec   : > { %8213 = vmatprep.mubr.f32.mxu0 %v10040_v17 }
  0xef   : > { %8214 = vmatmul.mubr.f32.gmra.mrb[14].mxu0 %v10050_v21 }
  0xf0   : > { %8220 = vmatprep.mubr.f32.mxu0 %v9986_v57  ;;  %v3668_v57 = vmul.f32 %v9803_v15, %v9803_v15 }
  0xf3   : > { %8221 = vmatmul.mubr.f32.vlgmr.msra.gmra.mrb[8].mxu0 %v10006_v3  ;;  %v3693_v3 = vsel %vm275_vm5, %v3668_v57, 0 }
  0xf4   : > { %8223 = vmatprep.mubr.f32.mxu0 %v10013_v5  ;;  %8919 = vmatpush3.bf16.msra.mxu0 %v9848_v52  ;;  %v3671_v5 = vmul.f32 %v9813_v26, %v9813_v26  ;;  %v10104_v39 = vand.u32 4294901760, %v3693_v3 }
  0xf5   : > { %8921 = vmatprep.subr.bf16.mxu0 %v9934_v44 }
  0xf7   : > { %8224 = vmatmul.mubr.f32.gmra.mrb[10].mxu0 %v10031_v11  ;;  %v10109_v11 = vand.u32 4294901760, %v3696_v8 }
  0xf8   : > { %8226 = vmatprep.mubr.f32.mxu0 %v10038_v14  ;;  %v3673_v14 = vmul.f32 %v9846_v51, %v9846_v51 }
  0xf9   : > { %v10127_v24 = vsub.f32 %v3696_v8, %v10109_v11  ;;  %v10189_v8 = vand.u32 4294901760, %v3717_v45 }
  0xfb   : > { %8227 = vmatmul.mubr.f32.gmra.mrb[12].mxu0 %v2114_v62  ;;  %v11420_v36 = vand.u32 4294901760, %v10127_v24 }
  0xfc   : > { %8229 = vmatprep.mubr.f32.mxu0 %v2124_v29 }
  0xff   : > { %8230 = vmatmul.mubr.f32.gmra.mrb[14].mxu0 %v2134_v34 }
 0x100   : > { %8236 = vmatprep.mubr.f32.mxu0 %v2065_v2  ;;  %v3670_v2 = vmul.f32 %v9810_v25, %v9810_v25 }
 0x102   : > { %v3699_v47 = vsel %vm275_vm5, %v3670_v2, 0  ;;  %v3679_v2 = vmul.f32 %v9979_v55, %v9979_v55 }
 0x103   : > { %8237 = vmatmul.mubr.f32.vlgmr.msra.gmra.mrb[8].mxu0 %v2075_v10  ;;  %v3672_v10 = vmul.f32 %v9827_v40, %v9827_v40  ;;  %v10115_v48 = vand.u32 4294901760, %v3699_v47 }
 0x104   : > { %8239 = vmatprep.mubr.f32.mxu0 %v2085_v13  ;;  %8923 = vmatpush3.bf16.msra.mxu0 %v9934_v44  ;;  %v3702_v13 = vsel %vm275_vm5, %v3671_v5, 0 }
 0x105   : > { %8925 = vmatprep.subr.bf16.mxu0 %v9848_v52  ;;  %v10123_v62 = vand.u32 4294901760, %v3702_v13  ;;  %v3705_v23 = vsel %vm275_vm5, %v3672_v10, 0  ;;  %v10132_v29 = vsub.f32 %v3699_v47, %v10115_v48  ;;  %v3680_v47 = vmul.f32 %v9982_v56, %v9982_v56 }
 0x107   : > { %8240 = vmatmul.mubr.f32.gmra.mrb[10].mxu0 %v2095_v19  ;;  %v10121_v19 = vsub.f32 %v3693_v3, %v10104_v39  ;;  %v10143_v34 = vsub.f32 %v3702_v13, %v10123_v62  ;;  %v3723_v13 = vsel %vm275_vm5, %v3678_v53, 0 }
 0x108   : > { %8242 = vmatprep.mubr.f32.mxu0 %v2105_v27  ;;  %v3708_v27 = vsel %vm275_vm5, %v3673_v14, 0 }
 0x109   : > { %v11421_v31 = vand.u32 4294901760, %v10121_v19  ;;  %v11417_v22 = vand.u32 4294901760, %v10143_v34 }
 0x10b   : > { %8243 = vmatmul.mubr.f32.gmra.mrb[12].mxu0 %v2115_v33  ;;  %v10140_v33 = vand.u32 4294901760, %v3705_v23 }
 0x10c   : > { %8245 = vmatprep.mubr.f32.mxu0 %v2125_v16  ;;  %v10151_v16 = vand.u32 4294901760, %v3711_v7 }
 0x10d   : > { %v10163_v43 = vsub.f32 %v3705_v23, %v10140_v33  ;;  %v10202_v23 = vand.u32 4294901760, %v3720_v63 }
 0x10e   : > { %v10176_v54 = vsub.f32 %v3711_v7, %v10151_v16  ;;  %v3726_v7 = vsel %vm275_vm5, %v3679_v2, 0 }
 0x10f   : > { %8246 = vmatmul.mubr.f32.gmra.mrb[14].mxu0 %v2135_v42  ;;  %v3834_v42 = vsub.f32 %v10121_v19, %v11421_v31  ;;  %v11414_v5 = vand.u32 4294901760, %v10163_v43 }
 0x110   : > { %8252 = vmatprep.mubr.f32.mxu0 %v9971_v50  ;;  %v11416_v18 = vand.u32 4294901760, %v10176_v54 }
 0x111   : > { %v3835_v3 = vand.u32 4294901760, %v3834_v42  ;;  %v3874_v41 = vsub.f32 %v10163_v43, %v11414_v5  ;;  %v10216_v42 = vand.u32 4294901760, %v3723_v13 }
 0x113   : > { %8253 = vmatmul.mubr.f32.vlgmr.msra.gmra.mrb[8].mxu0 %v9988_v58 }
 0x114   : > { %8255 = vmatprep.mubr.f32.mxu0 %v9991_v60  ;;  %8927 = vmatpush3.bf16.msra.mxu0 %v9848_v52 }
 0x115   : > { %8953 = vmatprep.subr.bf16.mxu0 %v9848_v52 }
 0x117   : > { %8256 = vmatmul.mubr.f32.gmra.mrb[10].mxu0 %v10008_v32 }
 0x118   : > { %8258 = vmatprep.mubr.f32.mxu0 %v10015_v6 }
 0x11b   : > { %8259 = vmatmul.mubr.f32.gmra.mrb[12].mxu0 %v10033_v12 }
 0x11c   : > { %8261 = vmatprep.mubr.f32.mxu0 %v10040_v17 }
 0x11f   : > { %8262 = vmatmul.mubr.f32.gmra.mrb[14].mxu0 %v10050_v21 }
 0x120   : > { %8268 = vmatprep.mubr.f32.mxu0 %v9971_v50  ;;  %v3675_v50 = vmul.f32 %v9883_v4, %v9883_v4 }
 0x122   : > { %v3714_v37 = vsel %vm275_vm5, %v3675_v50, 0  ;;  %v3681_v50 = vmul.f32 %v9998_v0, %v9998_v0 }
 0x123   : > { %8269 = vmatmul.mubr.f32.vlgmr.msra.gmra.mrb[8].mxu0 %v9988_v58  ;;  %v10146_v58 = vand.u32 4294901760, %v3708_v27  ;;  %v10178_v61 = vand.u32 4294901760, %v3714_v37 }
 0x124   : > { %8271 = vmatprep.mubr.f32.mxu0 %v9991_v60  ;;  %8955 = vmatpush3.bf16.msra.mxu0 %v9848_v52  ;;  %v11418_v60 = vand.u32 4294901760, %v10132_v29 }
 0x125   : > { %8957 = vmatprep.subr.bf16.mxu0 %v9910_v28 }
 0x126   : > { %v3854_v57 = vsub.f32 %v10132_v29, %v11418_v60 }
 0x127   : > { %8272 = vmatmul.mubr.f32.gmra.mrb[10].mxu0 %v10008_v32  ;;  %v10167_v32 = vsub.f32 %v3708_v27, %v10146_v58 }
 0x128   : > { %8274 = vmatprep.mubr.f32.mxu0 %v10015_v6  ;;  %v3844_v6 = vsub.f32 %v10127_v24, %v11420_v36  ;;  %v3855_v27 = vand.u32 4294901760, %v3854_v57  ;;  %v3894_v57 = vsub.f32 %v10176_v54, %v11416_v18  ;;  %v3684_v18 = vmul.f32 %v9957_v38, %v9803_v15 }
 0x129   : > { %v11415_v10 = vand.u32 4294901760, %v10167_v32 }
 0x12a   : > { %v3845_v14 = vand.u32 4294901760, %v3844_v6  ;;  %v3741_v36 = vsel %vm275_vm5, %v3684_v18, 0 }
 0x12b   : > { %8275 = vmatmul.mubr.f32.gmra.mrb[12].mxu0 %v10033_v12  ;;  %v3864_v12 = vsub.f32 %v10143_v34, %v11417_v22  ;;  %v3884_v6 = vsub.f32 %v10167_v32, %v11415_v10  ;;  %v3683_v10 = vmul.f32 %v10023_v9, %v10023_v9 }
 0x12c   : > { %8277 = vmatprep.mubr.f32.mxu0 %v10040_v17  ;;  %v10200_v17 = vsub.f32 %v3714_v37, %v10178_v61  ;;  %v10214_v37 = vsub.f32 %v3717_v45, %v10189_v8  ;;  %v10229_v45 = vand.u32 4294901760, %v3726_v7 }
 0x12d   : > { %v3865_v53 = vand.u32 4294901760, %v3864_v12  ;;  %v3735_v12 = vsel %vm275_vm5, %v3682_v35, 0  ;;  %v3885_v60 = vand.u32 4294901760, %v3884_v6  ;;  %v3738_v6 = vsel %vm275_vm5, %v3683_v10, 0 }
 0x12e   : > { %v11419_v2 = vand.u32 4294901760, %v10200_v17  ;;  %v11422_v22 = vand.u32 4294901760, %v10214_v37  ;;  %v10249_v35 = vsub.f32 %v3726_v7, %v10229_v45  ;;  %v10253_v38 = vand.u32 4294901760, %v3735_v12 }
 0x12f   : > { %8278 = vmatmul.mubr.f32.gmra.mrb[14].mxu0 %v10050_v21  ;;  %v3729_v21 = vsel %vm275_vm5, %v3680_v47, 0  ;;  %v3732_v47 = vsel %vm275_vm5, %v3681_v50, 0 }
 0x130   : > { %8380 = vmatprep.mubr.f32.mxu0 %v3835_v3  ;;  %v10227_v3 = vsub.f32 %v3720_v63, %v10202_v23  ;;  %v10231_v5 = vand.u32 4294901760, %v3729_v21  ;;  %v3875_v63 = vand.u32 4294901760, %v3874_v41  ;;  %v3904_v50 = vsub.f32 %v10200_v17, %v11419_v2 }
 0x131   : > { %v10251_v15 = vand.u32 4294901760, %v3732_v47  ;;  %v3914_v2 = vsub.f32 %v10214_v37, %v11422_v22  ;;  %v10274_v10 = vsub.f32 %v3735_v12, %v10253_v38 }
 0x132   : > { %v11423_v41 = vand.u32 4294901760, %v10227_v3  ;;  %v3905_v22 = vand.u32 4294901760, %v3904_v50  ;;  %v3688_v50 = vmul.f32 %v9982_v56, %v9827_v40 }
 0x133   : > { %8381 = vmatmul.mubr.f32.vlgmr.msra.gmra.mrb[16].mxu0 %v3845_v14  ;;  %v10242_v14 = vsub.f32 %v3723_v13, %v10216_v42  ;;  %v10257_v13 = vsub.f32 %v3729_v21, %v10231_v5  ;;  %v11425_v21 = vand.u32 4294901760, %v10249_v35  ;;  %v10271_v31 = vsub.f32 %v3732_v47, %v10251_v15 }
 0x134   : > { %8383 = vmatprep.mubr.f32.mxu0 %v3855_v27  ;;  %8959 = vmatpush3.bf16.msra.mxu0 %v9910_v28  ;;  %v3895_v27 = vand.u32 4294901760, %v3894_v57  ;;  %v3686_v57 = vmul.f32 %v9968_v49, %v9810_v25  ;;  %v3924_v18 = vsub.f32 %v10227_v3, %v11423_v41  ;;  %v3915_v25 = vand.u32 4294901760, %v3914_v2 }
 0x135   : > { %8961 = vmatprep.subr.bf16.mxu0 %v9915_v30  ;;  %v11424_v7 = vand.u32 4294901760, %v10242_v14  ;;  %v3944_v41 = vsub.f32 %v10249_v35, %v11425_v21  ;;  %v11428_v2 = vand.u32 4294901760, %v10271_v31 }
 0x136   : > { %v3747_v12 = vsel %vm275_vm5, %v3686_v57, 0 }
 0x137   : > { %8384 = vmatmul.mubr.f32.gmra.mrb[18].mxu0 %v3865_v53  ;;  %v3685_v53 = vmul.f32 %v9965_v46, %v9807_v20  ;;  %v11426_v20 = vand.u32 4294901760, %v10257_v13  ;;  %v10282_v46 = vand.u32 4294901760, %v3741_v36  ;;  %v3934_v49 = vsub.f32 %v10242_v14, %v11424_v7 }
 0x138   : > { %8386 = vmatprep.mubr.f32.mxu0 %v3875_v63  ;;  %v10276_v63 = vand.u32 4294901760, %v3738_v6  ;;  %v10309_v57 = vand.u32 4294901760, %v3747_v12 }
 0x139   : > { %v3744_v47 = vsel %vm275_vm5, %v3685_v53, 0  ;;  %v3925_v53 = vand.u32 4294901760, %v3924_v18  ;;  %v3935_v56 = vand.u32 4294901760, %v3934_v49  ;;  %v3690_v18 = vmul.f32 %v10001_v1, %v9864_v59 }
 0x13a   : > { %v10299_v7 = vsub.f32 %v3738_v6, %v10276_v63  ;;  %v10307_v40 = vand.u32 4294901760, %v3744_v47  ;;  %v3689_v6 = vmul.f32 %v9998_v0, %v9846_v51  ;;  %v10331_v59 = vsub.f32 %v3747_v12, %v10309_v57 }
 0x13b   : > { %8387 = vmatmul.mubr.f32.gmra.mrb[20].mxu0 %v3885_v60  ;;  %v3687_v60 = vmul.f32 %v9979_v55, %v9813_v26  ;;  %v3954_v26 = vsub.f32 %v10257_v13, %v11426_v20  ;;  %v10305_v55 = vsub.f32 %v3741_v36, %v10282_v46  ;;  %v3945_v20 = vand.u32 4294901760, %v3944_v41 }
 0x13c   : > { %8389 = vmatprep.mubr.f32.mxu0 %v3895_v27  ;;  %v11427_v27 = vand.u32 4294901760, %v10274_v10  ;;  %v3964_v36 = vsub.f32 %v10271_v31, %v11428_v2  ;;  %v11432_v49 = vand.u32 4294901760, %v10299_v7  ;;  %v10326_v0 = vsub.f32 %v3744_v47, %v10307_v40 }
 0x13d   : > { %v3750_v21 = vsel %vm275_vm5, %v3687_v60, 0  ;;  %v3955_v60 = vand.u32 4294901760, %v3954_v26  ;;  %v11431_v51 = vand.u32 4294901760, %v10305_v55  ;;  %v3756_v41 = vsel %vm275_vm5, %v3689_v6, 0 }
 0x13e   : > { %v3965_v26 = vand.u32 4294901760, %v3964_v36  ;;  %v3984_v47 = vsub.f32 %v10299_v7, %v11432_v49  ;;  %v10349_v28 = vand.u32 4294901760, %v3756_v41 }
 0x13f   : > { %8390 = vmatmul.mubr.f32.gmra.mrb[22].mxu0 %v3905_v22  ;;  %v3753_v22 = vsel %vm275_vm5, %v3688_v50, 0  ;;  %v10328_v50 = vand.u32 4294901760, %v3750_v21  ;;  %v3994_v12 = vsub.f32 %v10305_v55, %v11431_v51 }
 0x140   : > { %8392 = vmatprep.mubr.f32.mxu0 %v3915_v25  ;;  %v3974_v25 = vsub.f32 %v10274_v10, %v11427_v27  ;;  %v10333_v1 = vand.u32 4294901760, %v3753_v22  ;;  %v3691_v27 = vmul.f32 %v10023_v9, %v9883_v4  ;;  %v11434_v4 = vand.u32 4294901760, %v10331_v59 }
 0x141   : > { %v10347_v6 = vsub.f32 %v3750_v21, %v10328_v50  ;;  %v3985_v36 = vand.u32 4294901760, %v3984_v47  ;;  %v10363_v51 = vsub.f32 %v3756_v41, %v10349_v28 }
 0x142   : > { %v3975_v2 = vand.u32 4294901760, %v3974_v25  ;;  %v10353_v9 = vsub.f32 %v3753_v22, %v10333_v1  ;;  %v3995_v22 = vand.u32 4294901760, %v3994_v12  ;;  %v4014_v49 = vsub.f32 %v10331_v59, %v11434_v4 }
 0x143   : > { %8393 = vmatmul.mubr.f32.gmra.mrb[24].mxu0 %v3925_v53  ;;  %v3759_v53 = vsel %vm275_vm5, %v3690_v18, 0  ;;  %11508 = vst [vmem:[#allocation12_spill] sm:$0xff] %v10347_v6  ;;  %v11435_v21 = vand.u32 4294901760, %v10347_v6 }
 0x144   : > { %8395 = vmatprep.mubr.f32.mxu0 %v3935_v56  ;;  %v11433_v56 = vand.u32 4294901760, %v10326_v0  ;;  %v10355_v18 = vand.u32 4294901760, %v3759_v53  ;;  %v4015_v12 = vand.u32 4294901760, %v4014_v49 }
 0x145   : > { %v4024_v41 = vsub.f32 %v10347_v6, %v11435_v21 }
 0x146   : > { %v4004_v25 = vsub.f32 %v10326_v0, %v11433_v56  ;;  %v4043_v56 = vand.u32 4294901760, %v10363_v51 }
 0x147   : > { %8396 = vmatmul.mubr.f32.gmra.mrb[26].mxu0 %v3945_v20  ;;  %v3762_v20 = vsel %vm275_vm5, %v3691_v27, 0  ;;  %v4033_v27 = vand.u32 4294901760, %v10353_v9 }
 0x148   : > { %8398 = vmatprep.mubr.f32.mxu0 %v3955_v60  ;;  %v10365_v60 = vand.u32 4294901760, %v3762_v20  ;;  %v4005_v47 = vand.u32 4294901760, %v4004_v25  ;;  %v4044_v25 = vsub.f32 %v10363_v51, %v4043_v56 }
 0x149   : > { %v4034_v4 = vsub.f32 %v10353_v9, %v4033_v27 }
 0x14b   : > { %8399 = vmatmul.mubr.f32.gmra.mrb[28].mxu0 %v3965_v26  ;;  %v10372_v26 = vsub.f32 %v3759_v53, %v10355_v18  ;;  %v4035_v6 = vand.u32 4294901760, %v4034_v4 }
 0x14c   : > { %8401 = vmatprep.mubr.f32.mxu0 %v3975_v2  ;;  %v10379_v2 = vsub.f32 %v3762_v20, %v10365_v60  ;;  %v4045_v20 = vand.u32 4294901760, %v4044_v25 }
 0x14d   : > { %v4053_v53 = vand.u32 4294901760, %v10372_v26 }
 0x14e   : > { %v4063_v21 = vand.u32 4294901760, %v10379_v2 }
 0x14f   : > { %8402 = vmatmul.mubr.f32.gmra.mrb[30].mxu0 %v3985_v36  ;;  %v4025_v36 = vand.u32 4294901760, %v4024_v41  ;;  %v4054_v49 = vsub.f32 %v10372_v26, %v4053_v53 }
 0x150   : > { %8404 = vmatprep.mubr.f32.mxu0 %v3995_v22  ;;  %v4064_v22 = vsub.f32 %v10379_v2, %v4063_v21 }
 0x152   : > { %v4065_v41 = vand.u32 4294901760, %v4064_v22 }
 0x153   : > { %8405 = vmatmul.mubr.f32.gmra.mrb[32].mxu0 %v4005_v47  ;;  %v4055_v47 = vand.u32 4294901760, %v4054_v49 }
 0x154   : > { %8407 = vmatprep.mubr.f32.mxu0 %v4015_v12 }
 0x157   : > { %8408 = vmatmul.mubr.f32.gmra.mrb[34].mxu0 %v4025_v36 }
 0x158   : > { %8410 = vmatprep.mubr.f32.mxu0 %v4035_v6 }
 0x15b   : > { %8411 = vmatmul.mubr.f32.gmra.mrb[36].mxu0 %v4045_v20 }
 0x15c   : > { %8413 = vmatprep.mubr.f32.mxu0 %v4055_v47  ;;  %v11509_v47 = vld [vmem:[#allocation12_spill] sm:$0xff] }
 0x15f   : > { %8414 = vmatmul.mubr.f32.gmra.mrb[38].mxu0 %v4065_v41  ;;  %v11510_v41 = vand.u32 4294901760, %v10121_v19 }
 0x160   : > { %8420 = vmatprep.mubr.f32.mxu0 %v10104_v39 }
 0x163   : > { %8421 = vmatmul.mubr.f32.vlgmr.msra.gmra.mrb[16].mxu0 %v10109_v11 }
 0x164   : > { %8423 = vmatprep.mubr.f32.mxu0 %v10115_v48  ;;  %8963 = vmatpush3.bf16.msra.mxu0 %v9915_v30 }
 0x165   : > { %8965 = vmatprep.subr.bf16.mxu0 %v9848_v52 }
 0x167   : > { %8424 = vmatmul.mubr.f32.gmra.mrb[18].mxu0 %v10123_v62 }
 0x168   : > { %8426 = vmatprep.mubr.f32.mxu0 %v10140_v33 }
 0x16b   : > { %8427 = vmatmul.mubr.f32.gmra.mrb[20].mxu0 %v10146_v58 }
 0x16c   : > { %8429 = vmatprep.mubr.f32.mxu0 %v10151_v16 }
 0x16f   : > { %8430 = vmatmul.mubr.f32.gmra.mrb[22].mxu0 %v10178_v61 }
 0x170   : > { %8432 = vmatprep.mubr.f32.mxu0 %v10189_v8 }
 0x173   : > { %8433 = vmatmul.mubr.f32.gmra.mrb[24].mxu0 %v10202_v23 }
 0x174   : > { %8435 = vmatprep.mubr.f32.mxu0 %v10216_v42 }
 0x177   : > { %8436 = vmatmul.mubr.f32.gmra.mrb[26].mxu0 %v10229_v45 }
 0x178   : > { %8438 = vmatprep.mubr.f32.mxu0 %v10231_v5 }
 0x17b   : > { %8439 = vmatmul.mubr.f32.gmra.mrb[28].mxu0 %v10251_v15 }
 0x17c   : > { %8441 = vmatprep.mubr.f32.mxu0 %v10253_v38 }
 0x17f   : > { %8442 = vmatmul.mubr.f32.gmra.mrb[30].mxu0 %v10276_v63 }
 0x180   : > { %8444 = vmatprep.mubr.f32.mxu0 %v10282_v46 }
 0x183   : > { %8445 = vmatmul.mubr.f32.gmra.mrb[32].mxu0 %v10307_v40 }
 0x184   : > { %8447 = vmatprep.mubr.f32.mxu0 %v10309_v57 }
 0x187   : > { %8448 = vmatmul.mubr.f32.gmra.mrb[34].mxu0 %v10328_v50 }
 0x188   : > { %8450 = vmatprep.mubr.f32.mxu0 %v10333_v1 }
 0x18b   : > { %8451 = vmatmul.mubr.f32.gmra.mrb[36].mxu0 %v10349_v28 }
 0x18c   : > { %8453 = vmatprep.mubr.f32.mxu0 %v10355_v18 }
 0x18f   : > { %8454 = vmatmul.mubr.f32.gmra.mrb[38].mxu0 %v10365_v60 }
 0x190   : > { %8460 = vmatprep.mubr.f32.mxu0 %v10121_v19  ;;  %v11516_v19 = vand.u32 4294901760, %v10176_v54 }
 0x193   : > { %8461 = vmatmul.mubr.f32.vlgmr.msra.gmra.mrb[16].mxu0 %v10127_v24 }
 0x194   : > { %8463 = vmatprep.mubr.f32.mxu0 %v10132_v29  ;;  %8967 = vmatpush3.bf16.msra.mxu0 %v9848_v52 }
 0x195   : > { %8969 = vmatprep.subr.bf16.mxu0 %v9934_v44 }
 0x196   : > { %v8078_v6 = vpop.f32.mrb[0].mxu0 }
 0x197   : > { %v1014_v4 = vpop.f32.mrb[1].mxu0  ;;  %8464 = vmatmul.mubr.f32.gmra.mrb[18].mxu0 %v10143_v34 }
 0x198   : > { %1060 = vxpose.xlu0.b32.start [1/2] (short) (narrow) %v1014_v4, 16  ;;  %8466 = vmatprep.mubr.f32.mxu0 %v10163_v43  ;;  %v11512_v4 = vand.u32 4294901760, %v10132_v29  ;;  %v11518_v29 = vand.u32 4294901760, %v10214_v37 }
 0x19a   : > { %v8081_v12 = vpop.f32.mrb[2].mxu0 }
 0x19b   : > { %v1026_v36 = vpop.f32.mrb[3].mxu0  ;;  %8467 = vmatmul.mubr.f32.gmra.mrb[20].mxu0 %v10167_v32 }
 0x19c   : > { %1061 = vxpose.xlu0.b32.end [2/2] (short) (narrow) %v8078_v6, 16  ;;  %1092 = vxpose.xlu1.b32.start [1/2] (short) (narrow) %v1026_v36, 16  ;;  %v11511_v6 = vand.u32 4294901760, %v10127_v24  ;;  %v11514_v36 = vand.u32 4294901760, %v10163_v43  ;;  %v11517_v24 = vand.u32 4294901760, %v10200_v17  ;;  %v11521_v43 = vand.u32 4294901760, %v10249_v35 }
 0x19d   : > { %8469 = vmatprep.mubr.f32.mxu0 %v10176_v54  ;;  %v11523_v54 = vand.u32 4294901760, %v10271_v31 }
 0x19e   : > { %v8084_v25 = vpop.f32.mrb[4].mxu0 }
 0x19f   : > { %v1038_v49 = vpop.f32.mrb[5].mxu0  ;;  %8470 = vmatmul.mubr.f32.gmra.mrb[22].mxu0 %v10200_v17  ;;  %v11524_v17 = vand.u32 4294901760, %v10274_v10 }
 0x1a0   : > { %1093 = vxpose.xlu1.b32.end [2/2] (short) (narrow) %v8081_v12, 16  ;;  %1124 = vxpose.xlu0.b32.start [1/2] (short) (narrow) %v1038_v49, 16  ;;  %v11513_v12 = vand.u32 4294901760, %v10143_v34  ;;  %v11519_v49 = vand.u32 4294901760, %v10227_v3  ;;  %v11520_v34 = vand.u32 4294901760, %v10242_v14 }
 0x1a1   : > { %8472 = vmatprep.mubr.f32.mxu0 %v10214_v37  ;;  %v11525_v37 = vand.u32 4294901760, %v10299_v7 }
 0x1a2   : > { %v8087_v20 = vpop.f32.mrb[6].mxu0 }
 0x1a3   : > { %v1050_v22 = vpop.f32.mrb[7].mxu0  ;;  %8473 = vmatmul.mubr.f32.gmra.mrb[24].mxu0 %v10227_v3  ;;  %v11526_v3 = vand.u32 4294901760, %v10305_v55 }
 0x1a4   : > { %1125 = vxpose.xlu0.b32.end [2/2] (short) (narrow) %v8084_v25, 16  ;;  %1156 = vxpose.xlu1.b32.start [1/2] (short) (narrow) %v1050_v22, 16  ;;  %v11515_v25 = vand.u32 4294901760, %v10167_v32  ;;  %v11522_v32 = vand.u32 4294901760, %v10257_v13 }
 0x1a5   : > { %8475 = vmatprep.mubr.f32.mxu0 %v10242_v14  ;;  %v11527_v14 = vand.u32 4294901760, %v10326_v0 }
 0x1a7   : > { %8476 = vmatmul.mubr.f32.gmra.mrb[26].mxu0 %v10249_v35  ;;  %v11528_v35 = vand.u32 4294901760, %v10331_v59 }
 0x1a8   : > { %1157 = vxpose.xlu1.b32.end [2/2] (short) (narrow) %v8087_v20, 16  ;;  %8478 = vmatprep.mubr.f32.mxu0 %v10257_v13  ;;  %v11529_v13 = vand.u32 4294901760, %v11509_v47 }
 0x1ab   : > { %8479 = vmatmul.mubr.f32.gmra.mrb[28].mxu0 %v10271_v31 }
 0x1ac   : > { %8481 = vmatprep.mubr.f32.mxu0 %v10274_v10 }
 0x1af   : > { %8482 = vmatmul.mubr.f32.gmra.mrb[30].mxu0 %v10299_v7 }
 0x1b0   : > { %8484 = vmatprep.mubr.f32.mxu0 %v10305_v55 }
 0x1b3   : > { %8485 = vmatmul.mubr.f32.gmra.mrb[32].mxu0 %v10326_v0 }
 0x1b4   : > { %8487 = vmatprep.mubr.f32.mxu0 %v10331_v59 }
 0x1b7   : > { %8488 = vmatmul.mubr.f32.gmra.mrb[34].mxu0 %v11509_v47 }
 0x1b8   : > { %8490 = vmatprep.mubr.f32.mxu0 %v10353_v9 }
 0x1bb   : > { %8491 = vmatmul.mubr.f32.gmra.mrb[36].mxu0 %v10363_v51 }
 0x1bc   : > { %8493 = vmatprep.mubr.f32.mxu0 %v10372_v26 }
 0x1bf   : > { %8494 = vmatmul.mubr.f32.gmra.mrb[38].mxu0 %v10379_v2 }
 0x1c0   : > { %8500 = vmatprep.mubr.f32.mxu0 %v11510_v41 }
 0x1c3   : > { %8501 = vmatmul.mubr.f32.vlgmr.msra.gmra.mrb[16].mxu0 %v11511_v6 }
 0x1c4   : > { %8503 = vmatprep.mubr.f32.mxu0 %v11512_v4  ;;  %8971 = vmatpush3.bf16.msra.mxu0 %v9934_v44 }
 0x1c5   : > { %8973 = vmatprep.subr.bf16.mxu0 %v9848_v52 }
 0x1c7   : > { %8504 = vmatmul.mubr.f32.gmra.mrb[18].mxu0 %v11513_v12 }
 0x1c8   : > { %8506 = vmatprep.mubr.f32.mxu0 %v11514_v36 }
 0x1cb   : > { %8507 = vmatmul.mubr.f32.gmra.mrb[20].mxu0 %v11515_v25 }
 0x1cc   : > { %8509 = vmatprep.mubr.f32.mxu0 %v11516_v19 }
 0x1cf   : > { %8510 = vmatmul.mubr.f32.gmra.mrb[22].mxu0 %v11517_v24 }
 0x1d0   : > { %8512 = vmatprep.mubr.f32.mxu0 %v11518_v29 }
 0x1d3   : > { %8513 = vmatmul.mubr.f32.gmra.mrb[24].mxu0 %v11519_v49 }
 0x1d4   : > { %8515 = vmatprep.mubr.f32.mxu0 %v11520_v34 }
 0x1d7   : > { %8516 = vmatmul.mubr.f32.gmra.mrb[26].mxu0 %v11521_v43 }
 0x1d8   : > { %8518 = vmatprep.mubr.f32.mxu0 %v11522_v32 }
 0x1db   : > { %8519 = vmatmul.mubr.f32.gmra.mrb[28].mxu0 %v11523_v54 }
 0x1dc   : > { %8521 = vmatprep.mubr.f32.mxu0 %v11524_v17 }
 0x1df   : > { %8522 = vmatmul.mubr.f32.gmra.mrb[30].mxu0 %v11525_v37 }
 0x1e0   : > { %8524 = vmatprep.mubr.f32.mxu0 %v11526_v3 }
 0x1e3   : > { %8525 = vmatmul.mubr.f32.gmra.mrb[32].mxu0 %v11527_v14 }
 0x1e4   : > { %8527 = vmatprep.mubr.f32.mxu0 %v11528_v35 }
 0x1e7   : > { %8528 = vmatmul.mubr.f32.gmra.mrb[34].mxu0 %v11529_v13 }
 0x1e8   : > { %8530 = vmatprep.mubr.f32.mxu0 %v4033_v27 }
 0x1eb   : > { %8531 = vmatmul.mubr.f32.gmra.mrb[36].mxu0 %v4043_v56 }
 0x1ec   : > { %8533 = vmatprep.mubr.f32.mxu0 %v4053_v53 }
 0x1ef   : > { %8534 = vmatmul.mubr.f32.gmra.mrb[38].mxu0 %v4063_v21 }
 0x1f0   : > { %8540 = vmatprep.mubr.f32.mxu0 %v10104_v39 }
 0x1f3   : > { %8541 = vmatmul.mubr.f32.vlgmr.msra.gmra.mrb[16].mxu0 %v10109_v11 }
 0x1f4   : > { %8543 = vmatprep.mubr.f32.mxu0 %v10115_v48  ;;  %8975 = vmatpush3.bf16.msra.mxu0 %v9848_v52 }
 0x1f6   : > { %v8270_v31 = vpop.f32.mrb[8].mxu0 }
 0x1f7   : > { %v2710_v7 = vpop.f32.mrb[9].mxu0  ;;  %8544 = vmatmul.mubr.f32.gmra.mrb[18].mxu0 %v10123_v62 }
 0x1f8   : > { %2756 = vxpose.xlu0.b32.start [1/2] (short) (narrow) %v2710_v7, 16  ;;  %8546 = vmatprep.mubr.f32.mxu0 %v10140_v33 }
 0x1fa   : > { %v8273_v10 = vpop.f32.mrb[10].mxu0 }
 0x1fb   : > { %v2722_v55 = vpop.f32.mrb[11].mxu0  ;;  %8547 = vmatmul.mubr.f32.gmra.mrb[20].mxu0 %v10146_v58 }
 0x1fc   : > { %2757 = vxpose.xlu0.b32.end [2/2] (short) (narrow) %v8270_v31, 16  ;;  %2788 = vxpose.xlu1.b32.start [1/2] (short) (narrow) %v2722_v55, 16 }
 0x1fd   : > { %8549 = vmatprep.mubr.f32.mxu0 %v10151_v16 }
 0x1fe   : > { %v8276_v51 = vpop.f32.mrb[12].mxu0 }
 0x1ff   : > { %v2734_v0 = vpop.f32.mrb[13].mxu0  ;;  %8550 = vmatmul.mubr.f32.gmra.mrb[22].mxu0 %v10178_v61 }
 0x200   : > { %2789 = vxpose.xlu1.b32.end [2/2] (short) (narrow) %v8273_v10, 16  ;;  %2820 = vxpose.xlu0.b32.start [1/2] (short) (narrow) %v2734_v0, 16 }
 0x201   : > { %8552 = vmatprep.mubr.f32.mxu0 %v10189_v8 }
 0x202   : > { %v8279_v59 = vpop.f32.mrb[14].mxu0 }
 0x203   : > { %v2746_v56 = vpop.f32.mrb[15].mxu0  ;;  %8553 = vmatmul.mubr.f32.gmra.mrb[24].mxu0 %v10202_v23 }
 0x204   : > { %2821 = vxpose.xlu0.b32.end [2/2] (short) (narrow) %v8276_v51, 16  ;;  %2852 = vxpose.xlu1.b32.start [1/2] (short) (narrow) %v2746_v56, 16 }
 0x205   : > { %8555 = vmatprep.mubr.f32.mxu0 %v10216_v42 }
 0x207   : > { %8556 = vmatmul.mubr.f32.gmra.mrb[26].mxu0 %v10229_v45 }
 0x208   : > { %2853 = vxpose.xlu1.b32.end [2/2] (short) (narrow) %v8279_v59, 16  ;;  %8558 = vmatprep.mubr.f32.mxu0 %v10231_v5 }
 0x20b   : > { %8559 = vmatmul.mubr.f32.gmra.mrb[28].mxu0 %v10251_v15 }
 0x20c   : > { %8561 = vmatprep.mubr.f32.mxu0 %v10253_v38 }
 0x20f   : > { %8562 = vmatmul.mubr.f32.gmra.mrb[30].mxu0 %v10276_v63 }
 0x210   : > { %8564 = vmatprep.mubr.f32.mxu0 %v10282_v46 }
 0x213   : > { %8565 = vmatmul.mubr.f32.gmra.mrb[32].mxu0 %v10307_v40 }
 0x214   : > { %8567 = vmatprep.mubr.f32.mxu0 %v10309_v57 }
 0x217   : > { %8568 = vmatmul.mubr.f32.gmra.mrb[34].mxu0 %v10328_v50 }
 0x218   : > { %v1076_v9 = vpop.trf.xlu0  ;;  %8570 = vmatprep.mubr.f32.mxu0 %v10333_v1 }
 0x219   : > { %v1189_v21 = vsel %vm275_vm5, %v1076_v9, 0 }
 0x21a   : > { %v10520_v27 = vand.u32 4294901760, %v1189_v21 }
 0x21b   : > { %8571 = vmatmul.mubr.f32.gmra.mrb[36].mxu0 %v10349_v28 }
 0x21c   : > { %v10524_v26 = vsub.f32 %v1189_v21, %v10520_v27  ;;  %v1077_v2 = vpop.trf.xlu0  ;;  %v1108_v53 = vpop.trf.xlu1  ;;  %8573 = vmatprep.mubr.f32.mxu0 %v10355_v18 }
 0x21d   : > { %v1192_v20 = vsel %vm275_vm5, %v1077_v2, 0  ;;  %v1195_v22 = vsel %vm275_vm5, %v1108_v53, 0 }
 0x21e   : > { %v10529_v47 = vand.u32 4294901760, %v1192_v20  ;;  %v10531_v41 = vand.u32 4294901760, %v1195_v22  ;;  %v1281_v6 = vand.u32 4294901760, %v10524_v26 }
 0x21f   : > { %8574 = vmatmul.mubr.f32.gmra.mrb[38].mxu0 %v10365_v60 }
 0x220   : > { %v10536_v4 = vsub.f32 %v1192_v20, %v10529_v47  ;;  %v10539_v12 = vsub.f32 %v1195_v22, %v10531_v41  ;;  %v1109_v36 = vpop.trf.xlu1  ;;  %v1140_v25 = vpop.trf.xlu0  ;;  %8580 = vmatprep.mubr.f32.mxu0 %v10104_v39  ;;  %v1282_v19 = vsub.f32 %v10524_v26, %v1281_v6 }
 0x221   : > { %v1198_v24 = vsel %vm275_vm5, %v1109_v36, 0  ;;  %v1201_v29 = vsel %vm275_vm5, %v1140_v25, 0 }
 0x222   : > { %v1291_v49 = vand.u32 4294901760, %v10536_v4  ;;  %v1301_v34 = vand.u32 4294901760, %v10539_v12  ;;  %v10549_v43 = vand.u32 4294901760, %v1198_v24  ;;  %v10551_v32 = vand.u32 4294901760, %v1201_v29 }
 0x223   : > { %8581 = vmatmul.mubr.f32.vlgmr.msra.gmra.mrb[16].mxu0 %v10109_v11  ;;  %v1283_v54 = vand.u32 4294901760, %v1282_v19 }
 0x224   : > { %v10555_v39 = vsub.f32 %v1198_v24, %v10549_v43  ;;  %v10558_v17 = vsub.f32 %v1201_v29, %v10551_v32  ;;  %v1141_v37 = vpop.trf.xlu0  ;;  %v1172_v3 = vpop.trf.xlu1  ;;  %8583 = vmatprep.mubr.f32.mxu0 %v10115_v48  ;;  %v1292_v14 = vsub.f32 %v10536_v4, %v1291_v49  ;;  %v1302_v35 = vsub.f32 %v10539_v12, %v1301_v34 }
 0x225   : > { %v1204_v11 = vsel %vm275_vm5, %v1141_v37, 0  ;;  %v1207_v13 = vsel %vm275_vm5, %v1172_v3, 0  ;;  %8092 = vmatprep.mubr.f32.mxu1 %v1283_v54 }
 0x226   : > { %v1311_v31 = vand.u32 4294901760, %v10555_v39  ;;  %v1321_v7 = vand.u32 4294901760, %v10558_v17  ;;  %v10571_v10 = vand.u32 4294901760, %v1204_v11  ;;  %v10573_v48 = vand.u32 4294901760, %v1207_v13 }
 0x227   : > { %8584 = vmatmul.mubr.f32.gmra.mrb[18].mxu0 %v10123_v62  ;;  %v1293_v55 = vand.u32 4294901760, %v1292_v14  ;;  %v1303_v51 = vand.u32 4294901760, %v1302_v35 }
 0x228   : > { %v10577_v0 = vsub.f32 %v1204_v11, %v10571_v10  ;;  %v10580_v59 = vsub.f32 %v1207_v13, %v10573_v48  ;;  %v1173_v56 = vpop.trf.xlu1  ;;  %8586 = vmatprep.mubr.f32.mxu0 %v10140_v33  ;;  %v1312_v9 = vsub.f32 %v10555_v39, %v1311_v31  ;;  %v1322_v21 = vsub.f32 %v10558_v17, %v1321_v7  ;;  %v11530_v33 = vld [vmem:[#allocation11_spill] sm:$0xff] }
 0x229   : > { %8093 = vmatmul.mubr.f32.vlgmr.msra.gmra.mrb[0].mxu1 %v1293_v55  ;;  %v1210_v62 = vsel %vm275_vm5, %v1173_v56, 0 }
 0x22a   : > { %v1331_v2 = vand.u32 4294901760, %v10577_v0  ;;  %v1341_v53 = vand.u32 4294901760, %v10580_v59  ;;  %v10592_v20 = vand.u32 4294901760, %v1210_v62  ;;  %8095 = vmatprep.mubr.f32.mxu1 %v1303_v51  ;;  %v1313_v22 = vand.u32 4294901760, %v1312_v9  ;;  %8887 = vmatpush3.bf16.msra.mxu1 %v11530_v33 }
 0x22b   : > { %8587 = vmatmul.mubr.f32.gmra.mrb[20].mxu0 %v10146_v58  ;;  %v1323_v36 = vand.u32 4294901760, %v1322_v21  ;;  %8889 = vmatprep.subr.bf16.mxu1 %v9915_v30 }
 0x22c   : > { %v1350_v25 = vsub.f32 %v1210_v62, %v10592_v20  ;;  %8589 = vmatprep.mubr.f32.mxu0 %v10151_v16  ;;  %v1332_v19 = vsub.f32 %v10577_v0, %v1331_v2  ;;  %v1342_v24 = vsub.f32 %v10580_v59, %v1341_v53 }
 0x22d   : > { %8096 = vmatmul.mubr.f32.gmra.mrb[2].mxu1 %v1313_v22 }
 0x22e   : > { %v1351_v29 = vand.u32 4294901760, %v1350_v25  ;;  %8098 = vmatprep.mubr.f32.mxu1 %v1323_v36  ;;  %v1333_v54 = vand.u32 4294901760, %v1332_v19  ;;  %v1343_v58 = vand.u32 4294901760, %v1342_v24 }
 0x22f   : > { %8590 = vmatmul.mubr.f32.gmra.mrb[22].mxu0 %v10178_v61 }
 0x230   : > { %8592 = vmatprep.mubr.f32.mxu0 %v10189_v8  ;;  %v1352_v37 = vsub.f32 %v1350_v25, %v1351_v29 }
 0x231   : > { %8099 = vmatmul.mubr.f32.gmra.mrb[4].mxu1 %v1333_v54 }
 0x232   : > { %8101 = vmatprep.mubr.f32.mxu1 %v1343_v58  ;;  %v1353_v16 = vand.u32 4294901760, %v1352_v37 }
 0x233   : > { %8593 = vmatmul.mubr.f32.gmra.mrb[24].mxu0 %v10202_v23 }
 0x234   : > { %8595 = vmatprep.mubr.f32.mxu0 %v10216_v42 }
 0x235   : > { %8102 = vmatmul.mubr.f32.gmra.mrb[6].mxu1 %v1353_v16 }
 0x236   : > { %8108 = vmatprep.mubr.f32.mxu1 %v10520_v27 }
 0x237   : > { %8596 = vmatmul.mubr.f32.gmra.mrb[26].mxu0 %v10229_v45 }
 0x238   : > { %8598 = vmatprep.mubr.f32.mxu0 %v10231_v5 }
 0x239   : > { %8109 = vmatmul.mubr.f32.vlgmr.msra.gmra.mrb[0].mxu1 %v10529_v47 }
 0x23a   : > { %8111 = vmatprep.mubr.f32.mxu1 %v10531_v41  ;;  %8891 = vmatpush3.bf16.msra.mxu1 %v9915_v30 }
 0x23b   : > { %8599 = vmatmul.mubr.f32.gmra.mrb[28].mxu0 %v10251_v15  ;;  %8893 = vmatprep.subr.bf16.mxu1 %v9848_v52 }
 0x23c   : > { %8601 = vmatprep.mubr.f32.mxu0 %v10253_v38 }
 0x23d   : > { %8112 = vmatmul.mubr.f32.gmra.mrb[2].mxu1 %v10549_v43 }
 0x23e   : > { %8114 = vmatprep.mubr.f32.mxu1 %v10551_v32 }
 0x23f   : > { %8602 = vmatmul.mubr.f32.gmra.mrb[30].mxu0 %v10276_v63 }
 0x240   : > { %8604 = vmatprep.mubr.f32.mxu0 %v10282_v46 }
 0x241   : > { %8115 = vmatmul.mubr.f32.gmra.mrb[4].mxu1 %v10571_v10 }
 0x242   : > { %8117 = vmatprep.mubr.f32.mxu1 %v10573_v48 }
 0x243   : > { %8605 = vmatmul.mubr.f32.gmra.mrb[32].mxu0 %v10307_v40 }
 0x244   : > { %8607 = vmatprep.mubr.f32.mxu0 %v10309_v57 }
 0x245   : > { %8118 = vmatmul.mubr.f32.gmra.mrb[6].mxu1 %v10592_v20 }
 0x246   : > { %8124 = vmatprep.mubr.f32.mxu1 %v10524_v26 }
 0x247   : > { %8608 = vmatmul.mubr.f32.gmra.mrb[34].mxu0 %v10328_v50 }
 0x248   : > { %8610 = vmatprep.mubr.f32.mxu0 %v10333_v1 }
 0x249   : > { %8125 = vmatmul.mubr.f32.vlgmr.msra.gmra.mrb[0].mxu1 %v10536_v4 }
 0x24a   : > { %8127 = vmatprep.mubr.f32.mxu1 %v10539_v12  ;;  %8895 = vmatpush3.bf16.msra.mxu1 %v9848_v52 }
 0x24b   : > { %8611 = vmatmul.mubr.f32.gmra.mrb[36].mxu0 %v10349_v28  ;;  %8897 = vmatprep.subr.bf16.mxu1 %v9934_v44 }
 0x24c   : > { %8613 = vmatprep.mubr.f32.mxu0 %v10355_v18 }
 0x24d   : > { %8128 = vmatmul.mubr.f32.gmra.mrb[2].mxu1 %v10555_v39 }
 0x24e   : > { %8130 = vmatprep.mubr.f32.mxu1 %v10558_v17 }
 0x24f   : > { %8614 = vmatmul.mubr.f32.gmra.mrb[38].mxu0 %v10365_v60 }
 0x251   : > { %8131 = vmatmul.mubr.f32.gmra.mrb[4].mxu1 %v10577_v0 }
 0x252   : > { %8133 = vmatprep.mubr.f32.mxu1 %v10580_v59 }
 0x255   : > { %8134 = vmatmul.mubr.f32.gmra.mrb[6].mxu1 %v1350_v25 }
 0x256   : > { %8140 = vmatprep.mubr.f32.mxu1 %v1281_v6 }
 0x259   : > { %8141 = vmatmul.mubr.f32.vlgmr.msra.gmra.mrb[0].mxu1 %v1291_v49 }
 0x25a   : > { %8143 = vmatprep.mubr.f32.mxu1 %v1301_v34  ;;  %8899 = vmatpush3.bf16.msra.mxu1 %v9934_v44 }
 0x25b   : > { %8901 = vmatprep.subr.bf16.mxu1 %v9848_v52 }
 0x25d   : > { %8144 = vmatmul.mubr.f32.gmra.mrb[2].mxu1 %v1311_v31 }
 0x25e   : > { %8146 = vmatprep.mubr.f32.mxu1 %v1321_v7 }
 0x261   : > { %8147 = vmatmul.mubr.f32.gmra.mrb[4].mxu1 %v1331_v2 }
 0x262   : > { %8149 = vmatprep.mubr.f32.mxu1 %v1341_v53 }
 0x265   : > { %8150 = vmatmul.mubr.f32.gmra.mrb[6].mxu1 %v1351_v29 }
 0x266   : > { %8156 = vmatprep.mubr.f32.mxu1 %v10520_v27 }
 0x269   : > { %8157 = vmatmul.mubr.f32.vlgmr.msra.gmra.mrb[0].mxu1 %v10529_v47 }
 0x26a   : > { %8159 = vmatprep.mubr.f32.mxu1 %v10531_v41  ;;  %8903 = vmatpush3.bf16.msra.mxu1 %v9848_v52 }
 0x26b   : > { %8929 = vmatprep.subr.bf16.mxu1 %v9848_v52 }
 0x26d   : > { %8160 = vmatmul.mubr.f32.gmra.mrb[2].mxu1 %v10549_v43 }
 0x26e   : > { %8162 = vmatprep.mubr.f32.mxu1 %v10551_v32 }
 0x271   : > { %8163 = vmatmul.mubr.f32.gmra.mrb[4].mxu1 %v10571_v10 }
 0x272   : > { %8165 = vmatprep.mubr.f32.mxu1 %v10573_v48 }
 0x275   : > { %8166 = vmatmul.mubr.f32.gmra.mrb[6].mxu1 %v10592_v20 }
 0x276   : > { %8172 = vmatprep.mubr.f32.mxu1 %v10520_v27 }
 0x278   : > { %v2772_v28 = vpop.trf.xlu0 }
 0x279   : > { %8173 = vmatmul.mubr.f32.vlgmr.msra.gmra.mrb[0].mxu1 %v10529_v47  ;;  %v2885_v61 = vsel %vm275_vm5, %v2772_v28, 0 }
 0x27a   : > { %v10670_v5 = vand.u32 4294901760, %v2885_v61  ;;  %8175 = vmatprep.mubr.f32.mxu1 %v10531_v41  ;;  %8931 = vmatpush3.bf16.msra.mxu1 %v9848_v52 }
 0x27b   : > { %8933 = vmatprep.subr.bf16.mxu1 %v11530_v33 }
 0x27c   : > { %v10676_v8 = vsub.f32 %v2885_v61, %v10670_v5  ;;  %v2773_v23 = vpop.trf.xlu0  ;;  %v2804_v42 = vpop.trf.xlu1 }
 0x27d   : > { %8176 = vmatmul.mubr.f32.gmra.mrb[2].mxu1 %v10549_v43  ;;  %v2888_v45 = vsel %vm275_vm5, %v2773_v23, 0  ;;  %v2891_v15 = vsel %vm275_vm5, %v2804_v42, 0 }
 0x27e   : > { %v2977_v38 = vand.u32 4294901760, %v10676_v8  ;;  %v10682_v63 = vand.u32 4294901760, %v2888_v45  ;;  %v10684_v46 = vand.u32 4294901760, %v2891_v15  ;;  %8178 = vmatprep.mubr.f32.mxu1 %v10551_v32 }
 0x280   : > { %v10688_v40 = vsub.f32 %v2888_v45, %v10682_v63  ;;  %v10691_v57 = vsub.f32 %v2891_v15, %v10684_v46  ;;  %v2805_v50 = vpop.trf.xlu1  ;;  %v2836_v1 = vpop.trf.xlu0  ;;  %v2978_v18 = vsub.f32 %v10676_v8, %v2977_v38 }
 0x281   : > { %8179 = vmatmul.mubr.f32.gmra.mrb[4].mxu1 %v10571_v10  ;;  %v2894_v60 = vsel %vm275_vm5, %v2805_v50, 0  ;;  %v2897_v27 = vsel %vm275_vm5, %v2836_v1, 0 }
 0x282   : > { %v2987_v26 = vand.u32 4294901760, %v10688_v40  ;;  %v2997_v47 = vand.u32 4294901760, %v10691_v57  ;;  %v10701_v41 = vand.u32 4294901760, %v2894_v60  ;;  %v10703_v6 = vand.u32 4294901760, %v2897_v27  ;;  %8181 = vmatprep.mubr.f32.mxu1 %v10573_v48 }
 0x283   : > { %v2979_v4 = vand.u32 4294901760, %v2978_v18 }
 0x284   : > { %v2988_v12 = vsub.f32 %v10688_v40, %v2987_v26  ;;  %v10710_v49 = vsub.f32 %v2894_v60, %v10701_v41  ;;  %v10713_v34 = vsub.f32 %v2897_v27, %v10703_v6  ;;  %v2837_v43 = vpop.trf.xlu0  ;;  %v2868_v32 = vpop.trf.xlu1  ;;  %v2998_v39 = vsub.f32 %v10691_v57, %v2997_v47 }
 0x285   : > { %8182 = vmatmul.mubr.f32.gmra.mrb[6].mxu1 %v10592_v20  ;;  %v2900_v17 = vsel %vm275_vm5, %v2837_v43, 0  ;;  %v2903_v3 = vsel %vm275_vm5, %v2868_v32, 0 }
 0x286   : > { %v2989_v14 = vand.u32 4294901760, %v2988_v12  ;;  %v3007_v35 = vand.u32 4294901760, %v10710_v49  ;;  %v3017_v11 = vand.u32 4294901760, %v10713_v34  ;;  %v10723_v13 = vand.u32 4294901760, %v2900_v17  ;;  %8284 = vmatprep.mubr.f32.mxu1 %v2979_v4 }
 0x287   : > { %v10725_v31 = vand.u32 4294901760, %v2903_v3  ;;  %v2999_v7 = vand.u32 4294901760, %v2998_v39 }
 0x288   : > { %v3026_v10 = vsub.f32 %v2900_v17, %v10723_v13  ;;  %v2869_v48 = vpop.trf.xlu1  ;;  %v3008_v55 = vsub.f32 %v10710_v49, %v3007_v35  ;;  %v3018_v51 = vsub.f32 %v10713_v34, %v3017_v11 }
 0x289   : > { %v3036_v0 = vsub.f32 %v2903_v3, %v10725_v31  ;;  %8285 = vmatmul.mubr.f32.vlgmr.msra.gmra.mrb[8].mxu1 %v2989_v14  ;;  %v2906_v59 = vsel %vm275_vm5, %v2869_v48, 0 }
 0x28a   : > { %v3027_v56 = vand.u32 4294901760, %v3026_v10  ;;  %v10732_v9 = vand.u32 4294901760, %v2906_v59  ;;  %8287 = vmatprep.mubr.f32.mxu1 %v2999_v7  ;;  %v3009_v21 = vand.u32 4294901760, %v3008_v55  ;;  %v3019_v62 = vand.u32 4294901760, %v3018_v51  ;;  %8935 = vmatpush3.bf16.msra.mxu1 %v11530_v33 }
 0x28b   : > { %v3037_v2 = vand.u32 4294901760, %v3036_v0  ;;  %8937 = vmatprep.subr.bf16.mxu1 %v9915_v30 }
 0x28c   : > { %v3046_v53 = vsub.f32 %v2906_v59, %v10732_v9  ;;  %v3028_v20 = vsub.f32 %v3026_v10, %v3027_v56 }
 0x28d   : > { %8288 = vmatmul.mubr.f32.gmra.mrb[10].mxu1 %v3009_v21  ;;  %v3038_v22 = vsub.f32 %v3036_v0, %v3037_v2 }
 0x28e   : > { %v3047_v36 = vand.u32 4294901760, %v3046_v53  ;;  %8290 = vmatprep.mubr.f32.mxu1 %v3019_v62  ;;  %v3029_v25 = vand.u32 4294901760, %v3028_v20 }
 0x28f   : > { %v3039_v19 = vand.u32 4294901760, %v3038_v22 }
 0x290   : > { %v3048_v24 = vsub.f32 %v3046_v53, %v3047_v36 }
 0x291   : > { %8291 = vmatmul.mubr.f32.gmra.mrb[12].mxu1 %v3029_v25 }
 0x292   : > { %8293 = vmatprep.mubr.f32.mxu1 %v3039_v19  ;;  %v3049_v29 = vand.u32 4294901760, %v3048_v24 }
 0x295   : > { %8294 = vmatmul.mubr.f32.gmra.mrb[14].mxu1 %v3049_v29 }
 0x296   : > { %8300 = vmatprep.mubr.f32.mxu1 %v10670_v5 }
 0x299   : > { %8301 = vmatmul.mubr.f32.vlgmr.msra.gmra.mrb[8].mxu1 %v10682_v63 }
 0x29a   : > { %8303 = vmatprep.mubr.f32.mxu1 %v10684_v46  ;;  %8939 = vmatpush3.bf16.msra.mxu1 %v9915_v30 }
 0x29b   : > { %8941 = vmatprep.subr.bf16.mxu1 %v9848_v52 }
 0x29d   : > { %8304 = vmatmul.mubr.f32.gmra.mrb[10].mxu1 %v10701_v41 }
 0x29e   : > { %8306 = vmatprep.mubr.f32.mxu1 %v10703_v6 }
 0x2a1   : > { %8307 = vmatmul.mubr.f32.gmra.mrb[12].mxu1 %v10723_v13 }
 0x2a2   : > { %8309 = vmatprep.mubr.f32.mxu1 %v10725_v31 }
 0x2a5   : > { %8310 = vmatmul.mubr.f32.gmra.mrb[14].mxu1 %v10732_v9 }
 0x2a6   : > { %8316 = vmatprep.mubr.f32.mxu1 %v10676_v8 }
 0x2a9   : > { %8317 = vmatmul.mubr.f32.vlgmr.msra.gmra.mrb[8].mxu1 %v10688_v40 }
 0x2aa   : > { %8319 = vmatprep.mubr.f32.mxu1 %v10691_v57  ;;  %8943 = vmatpush3.bf16.msra.mxu1 %v9848_v52 }
 0x2ab   : > { %8945 = vmatprep.subr.bf16.mxu1 %v9934_v44 }
 0x2ad   : > { %8320 = vmatmul.mubr.f32.gmra.mrb[10].mxu1 %v10710_v49 }
 0x2ae   : > { %8322 = vmatprep.mubr.f32.mxu1 %v10713_v34 }
 0x2b1   : > { %8323 = vmatmul.mubr.f32.gmra.mrb[12].mxu1 %v3026_v10 }
 0x2b2   : > { %8325 = vmatprep.mubr.f32.mxu1 %v3036_v0 }
 0x2b5   : > { %8326 = vmatmul.mubr.f32.gmra.mrb[14].mxu1 %v3046_v53 }
 0x2b6   : > { %8332 = vmatprep.mubr.f32.mxu1 %v2977_v38 }
 0x2b9   : > { %8333 = vmatmul.mubr.f32.vlgmr.msra.gmra.mrb[8].mxu1 %v2987_v26 }
 0x2ba   : > { %8335 = vmatprep.mubr.f32.mxu1 %v2997_v47  ;;  %8947 = vmatpush3.bf16.msra.mxu1 %v9934_v44 }
 0x2bb   : > { %8949 = vmatprep.subr.bf16.mxu1 %v9848_v52 }
 0x2bd   : > { %8336 = vmatmul.mubr.f32.gmra.mrb[10].mxu1 %v3007_v35 }
 0x2be   : > { %8338 = vmatprep.mubr.f32.mxu1 %v3017_v11 }
 0x2c1   : > { %8339 = vmatmul.mubr.f32.gmra.mrb[12].mxu1 %v3027_v56 }
 0x2c2   : > { %8341 = vmatprep.mubr.f32.mxu1 %v3037_v2 }
 0x2c5   : > { %8342 = vmatmul.mubr.f32.gmra.mrb[14].mxu1 %v3047_v36 }
 0x2c6   : > { %8348 = vmatprep.mubr.f32.mxu1 %v10670_v5 }
 0x2c9   : > { %8349 = vmatmul.mubr.f32.vlgmr.msra.gmra.mrb[8].mxu1 %v10682_v63 }
 0x2ca   : > { %8351 = vmatprep.mubr.f32.mxu1 %v10684_v46  ;;  %8951 = vmatpush3.bf16.msra.mxu1 %v9848_v52 }
 0x2cb   : > { %8977 = vmatprep.subr.bf16.mxu1 %v9848_v52 }
 0x2cd   : > { %8352 = vmatmul.mubr.f32.gmra.mrb[10].mxu1 %v10701_v41 }
 0x2ce   : > { %8354 = vmatprep.mubr.f32.mxu1 %v10703_v6 }
 0x2d1   : > { %8355 = vmatmul.mubr.f32.gmra.mrb[12].mxu1 %v10723_v13 }
 0x2d2   : > { %8357 = vmatprep.mubr.f32.mxu1 %v10725_v31 }
 0x2d5   : > { %8358 = vmatmul.mubr.f32.gmra.mrb[14].mxu1 %v10732_v9 }
 0x2d6   : > { %8364 = vmatprep.mubr.f32.mxu1 %v10670_v5 }
 0x2d9   : > { %8365 = vmatmul.mubr.f32.vlgmr.msra.gmra.mrb[8].mxu1 %v10682_v63 }
 0x2da   : > { %8367 = vmatprep.mubr.f32.mxu1 %v10684_v46  ;;  %8979 = vmatpush3.bf16.msra.mxu1 %v9848_v52 }
 0x2db   : > { %8981 = vmatprep.subr.bf16.mxu1 %v11530_v33 }
 0x2dd   : > { %8368 = vmatmul.mubr.f32.gmra.mrb[10].mxu1 %v10701_v41 }
 0x2de   : > { %8370 = vmatprep.mubr.f32.mxu1 %v10703_v6 }
 0x2e1   : > { %8371 = vmatmul.mubr.f32.gmra.mrb[12].mxu1 %v10723_v13 }
 0x2e2   : > { %8373 = vmatprep.mubr.f32.mxu1 %v10725_v31 }
 0x2e5   : > { %8374 = vmatmul.mubr.f32.gmra.mrb[14].mxu1 %v10732_v9 }
 0x2f6   : > { %v8582_v54 = vpop.f32.mrb[16].mxu0 }
 0x2f7   : > { %v5070_v58 = vpop.f32.mrb[17].mxu0 }
 0x2f8   : > { %5212 = vxpose.xlu0.b32.start [1/2] (short) (narrow) %v5070_v58, 16 }
 0x2fa   : > { %v8585_v37 = vpop.f32.mrb[18].mxu0 }
 0x2fb   : > { %v5082_v16 = vpop.f32.mrb[19].mxu0 }
 0x2fc   : > { %5213 = vxpose.xlu0.b32.end [2/2] (short) (narrow) %v8582_v54, 16  ;;  %5244 = vxpose.xlu1.b32.start [1/2] (short) (narrow) %v5082_v16, 16 }
 0x2fe   : > { %v8588_v28 = vpop.f32.mrb[20].mxu0 }
 0x2ff   : > { %v5094_v61 = vpop.f32.mrb[21].mxu0 }
 0x300   : > { %5245 = vxpose.xlu1.b32.end [2/2] (short) (narrow) %v8585_v37, 16  ;;  %5276 = vxpose.xlu0.b32.start [1/2] (short) (narrow) %v5094_v61, 16 }
 0x302   : > { %v8591_v5 = vpop.f32.mrb[22].mxu0 }
 0x303   : > { %v5106_v8 = vpop.f32.mrb[23].mxu0 }
 0x304   : > { %5277 = vxpose.xlu0.b32.end [2/2] (short) (narrow) %v8588_v28, 16  ;;  %5308 = vxpose.xlu1.b32.start [1/2] (short) (narrow) %v5106_v8, 16 }
 0x306   : > { %v8594_v23 = vpop.f32.mrb[24].mxu0 }
 0x307   : > { %v5118_v42 = vpop.f32.mrb[25].mxu0 }
 0x308   : > { %5309 = vxpose.xlu1.b32.end [2/2] (short) (narrow) %v8591_v5, 16  ;;  %5340 = vxpose.xlu0.b32.start [1/2] (short) (narrow) %v5118_v42, 16 }
 0x30a   : > { %v8597_v45 = vpop.f32.mrb[26].mxu0 }
 0x30b   : > { %v5130_v15 = vpop.f32.mrb[27].mxu0 }
 0x30c   : > { %5341 = vxpose.xlu0.b32.end [2/2] (short) (narrow) %v8594_v23, 16  ;;  %5372 = vxpose.xlu1.b32.start [1/2] (short) (narrow) %v5130_v15, 16 }
 0x30e   : > { %v8600_v38 = vpop.f32.mrb[28].mxu0 }
 0x30f   : > { %v5142_v63 = vpop.f32.mrb[29].mxu0 }
 0x310   : > { %5373 = vxpose.xlu1.b32.end [2/2] (short) (narrow) %v8597_v45, 16  ;;  %5404 = vxpose.xlu0.b32.start [1/2] (short) (narrow) %v5142_v63, 16 }
 0x312   : > { %v8603_v46 = vpop.f32.mrb[30].mxu0 }
 0x313   : > { %v5154_v40 = vpop.f32.mrb[31].mxu0 }
 0x314   : > { %5405 = vxpose.xlu0.b32.end [2/2] (short) (narrow) %v8600_v38, 16  ;;  %5436 = vxpose.xlu1.b32.start [1/2] (short) (narrow) %v5154_v40, 16 }
 0x316   : > { %v8606_v57 = vpop.f32.mrb[32].mxu0 }
 0x317   : > { %v5166_v50 = vpop.f32.mrb[33].mxu0 }
 0x318   : > { %5437 = vxpose.xlu1.b32.end [2/2] (short) (narrow) %v8603_v46, 16  ;;  %5468 = vxpose.xlu0.b32.start [1/2] (short) (narrow) %v5166_v50, 16 }
 0x31a   : > { %v8609_v1 = vpop.f32.mrb[34].mxu0 }
 0x31b   : > { %v5178_v18 = vpop.f32.mrb[35].mxu0 }
 0x31c   : > { %5469 = vxpose.xlu0.b32.end [2/2] (short) (narrow) %v8606_v57, 16  ;;  %5500 = vxpose.xlu1.b32.start [1/2] (short) (narrow) %v5178_v18, 16 }
 0x31e   : > { %v8612_v60 = vpop.f32.mrb[36].mxu0 }
 0x31f   : > { %v5190_v27 = vpop.f32.mrb[37].mxu0 }
 0x320   : > { %5501 = vxpose.xlu1.b32.end [2/2] (short) (narrow) %v8609_v1, 16  ;;  %5532 = vxpose.xlu0.b32.start [1/2] (short) (narrow) %v5190_v27, 16 }
 0x322   : > { %v8615_v26 = vpop.f32.mrb[38].mxu0 }
 0x323   : > { %v5202_v47 = vpop.f32.mrb[39].mxu0 }
 0x324   : > { %5533 = vxpose.xlu0.b32.end [2/2] (short) (narrow) %v8612_v60, 16  ;;  %5564 = vxpose.xlu1.b32.start [1/2] (short) (narrow) %v5202_v47, 16 }
 0x328   : > { %5565 = vxpose.xlu1.b32.end [2/2] (short) (narrow) %v8615_v26, 16 }
 0x34c   : > { %v10782_v41 = vpop.f32.mrb[0].mxu1 }
 0x34d   : > { %v10784_v6 = vpop.f32.mrb[1].mxu1 }
 0x350   : > { %v10786_v4 = vpop.f32.mrb[2].mxu1 }
 0x351   : > { %v10788_v12 = vpop.f32.mrb[3].mxu1 }
 0x354   : > { %v10790_v49 = vpop.f32.mrb[4].mxu1 }
 0x355   : > { %v10792_v34 = vpop.f32.mrb[5].mxu1 }
 0x358   : > { %v10794_v43 = vpop.f32.mrb[6].mxu1 }
 0x359   : > { %v10796_v32 = vpop.f32.mrb[7].mxu1 }
 0x378   : > { %v5228_v39 = vpop.trf.xlu0 }
 0x379   : > { %v5597_v17 = vsel %vm275_vm5, %v5228_v39, 0 }
 0x37a   : > { %v10799_v3 = vand.u32 4294901760, %v5597_v17 }
 0x37c   : > { %v10802_v14 = vsub.f32 %v5597_v17, %v10799_v3  ;;  %v5229_v35 = vpop.trf.xlu0  ;;  %v5260_v11 = vpop.trf.xlu1 }
 0x37d   : > { %v5600_v13 = vsel %vm275_vm5, %v5229_v35, 0  ;;  %v5603_v31 = vsel %vm275_vm5, %v5260_v11, 0 }
 0x37e   : > { %v11452_v7 = vand.u32 4294901760, %v10802_v14  ;;  %v10807_v10 = vand.u32 4294901760, %v5600_v13  ;;  %v10809_v48 = vand.u32 4294901760, %v5603_v31 }
 0x380   : > { %v10812_v55 = vsub.f32 %v5600_v13, %v10807_v10  ;;  %v10815_v51 = vsub.f32 %v5603_v31, %v10809_v48  ;;  %v5261_v0 = vpop.trf.xlu1  ;;  %v5292_v59 = vpop.trf.xlu0  ;;  %v5738_v56 = vsub.f32 %v10802_v14, %v11452_v7 }
 0x381   : > { %v5606_v9 = vsel %vm275_vm5, %v5261_v0, 0  ;;  %v5609_v21 = vsel %vm275_vm5, %v5292_v59, 0 }
 0x382   : > { %v11451_v62 = vand.u32 4294901760, %v10812_v55  ;;  %v11450_v2 = vand.u32 4294901760, %v10815_v51  ;;  %v10824_v53 = vand.u32 4294901760, %v5606_v9  ;;  %v10826_v20 = vand.u32 4294901760, %v5609_v21 }
 0x383   : > { %v5739_v22 = vand.u32 4294901760, %v5738_v56 }
 0x384   : > { %v5748_v36 = vsub.f32 %v10812_v55, %v11451_v62  ;;  %v10832_v25 = vsub.f32 %v5606_v9, %v10824_v53  ;;  %v10835_v19 = vsub.f32 %v5609_v21, %v10826_v20  ;;  %v5293_v24 = vpop.trf.xlu0  ;;  %v5324_v29 = vpop.trf.xlu1  ;;  %v5758_v54 = vsub.f32 %v10815_v51, %v11450_v2 }
 0x385   : > { %v5612_v58 = vsel %vm275_vm5, %v5293_v24, 0  ;;  %v5615_v37 = vsel %vm275_vm5, %v5324_v29, 0  ;;  %8620 = vmatprep.mubr.f32.mxu1 %v5739_v22 }
 0x386   : > { %v5749_v16 = vand.u32 4294901760, %v5748_v36  ;;  %v11448_v28 = vand.u32 4294901760, %v10832_v25  ;;  %v11446_v61 = vand.u32 4294901760, %v10835_v19  ;;  %v10844_v5 = vand.u32 4294901760, %v5612_v58 }
 0x387   : > { %v10846_v8 = vand.u32 4294901760, %v5615_v37  ;;  %v5759_v23 = vand.u32 4294901760, %v5758_v54 }
 0x388   : > { %v10849_v42 = vsub.f32 %v5612_v58, %v10844_v5  ;;  %8621 = vmatmul.mubr.f32.vlgmr.msra.gmra.mrb[16].mxu1 %v5749_v16  ;;  %v5325_v45 = vpop.trf.xlu1  ;;  %v5356_v15 = vpop.trf.xlu0  ;;  %v5768_v38 = vsub.f32 %v10832_v25, %v11448_v28  ;;  %v5778_v63 = vsub.f32 %v10835_v19, %v11446_v61 }
 0x389   : > { %v10858_v46 = vsub.f32 %v5615_v37, %v10846_v8  ;;  %v5618_v40 = vsel %vm275_vm5, %v5325_v45, 0  ;;  %v5621_v57 = vsel %vm275_vm5, %v5356_v15, 0  ;;  %8623 = vmatprep.mubr.f32.mxu1 %v5759_v23  ;;  %8983 = vmatpush3.bf16.msra.mxu1 %v11530_v33 }
 0x38a   : > { %v11445_v50 = vand.u32 4294901760, %v10849_v42  ;;  %v10864_v1 = vand.u32 4294901760, %v5618_v40  ;;  %v10866_v18 = vand.u32 4294901760, %v5621_v57  ;;  %v5769_v60 = vand.u32 4294901760, %v5768_v38  ;;  %8985 = vmatprep.subr.bf16.mxu1 %v9915_v30 }
 0x38b   : > { %v11444_v27 = vand.u32 4294901760, %v10858_v46  ;;  %v5779_v26 = vand.u32 4294901760, %v5778_v63 }
 0x38c   : > { %v10871_v47 = vsub.f32 %v5618_v40, %v10864_v1  ;;  %v10874_v39 = vsub.f32 %v5621_v57, %v10866_v18  ;;  %8624 = vmatmul.mubr.f32.gmra.mrb[18].mxu1 %v5769_v60  ;;  %v5357_v33 = vpop.trf.xlu0  ;;  %v5388_v17 = vpop.trf.xlu1  ;;  %v5788_v35 = vsub.f32 %v10849_v42, %v11445_v50 }
 0x38d   : > { %v5624_v11 = vsel %vm275_vm5, %v5357_v33, 0  ;;  %v5627_v13 = vsel %vm275_vm5, %v5388_v17, 0  ;;  %8626 = vmatprep.mubr.f32.mxu1 %v5779_v26  ;;  %v5798_v31 = vsub.f32 %v10858_v46, %v11444_v27 }
 0x38e   : > { %v11442_v0 = vand.u32 4294901760, %v10871_v47  ;;  %v11440_v59 = vand.u32 4294901760, %v10874_v39  ;;  %v10886_v56 = vand.u32 4294901760, %v5624_v11  ;;  %v10888_v9 = vand.u32 4294901760, %v5627_v13 }
 0x38f   : > { %v5789_v21 = vand.u32 4294901760, %v5788_v35  ;;  %v5799_v22 = vand.u32 4294901760, %v5798_v31 }
 0x390   : > { %v10891_v36 = vsub.f32 %v5624_v11, %v10886_v56  ;;  %v10894_v24 = vsub.f32 %v5627_v13, %v10888_v9  ;;  %v5389_v29 = vpop.trf.xlu1  ;;  %v5420_v54 = vpop.trf.xlu0  ;;  %v5808_v58 = vsub.f32 %v10871_v47, %v11442_v0  ;;  %v5818_v37 = vsub.f32 %v10874_v39, %v11440_v59 }
 0x391   : > { %8627 = vmatmul.mubr.f32.gmra.mrb[20].mxu1 %v5789_v21  ;;  %v5630_v16 = vsel %vm275_vm5, %v5389_v29, 0  ;;  %v5633_v23 = vsel %vm275_vm5, %v5420_v54, 0 }
 0x392   : > { %v11439_v45 = vand.u32 4294901760, %v10891_v36  ;;  %v11438_v15 = vand.u32 4294901760, %v10894_v24  ;;  %v10906_v38 = vand.u32 4294901760, %v5630_v16  ;;  %v10908_v63 = vand.u32 4294901760, %v5633_v23  ;;  %8629 = vmatprep.mubr.f32.mxu1 %v5799_v22 }
 0x393   : > { %v5809_v40 = vand.u32 4294901760, %v5808_v58  ;;  %v5819_v57 = vand.u32 4294901760, %v5818_v37 }
 0x394   : > { %v10911_v60 = vsub.f32 %v5630_v16, %v10906_v38  ;;  %v10914_v26 = vsub.f32 %v5633_v23, %v10908_v63  ;;  %v5421_v33 = vpop.trf.xlu0  ;;  %v5452_v17 = vpop.trf.xlu1  ;;  %v5828_v35 = vsub.f32 %v10891_v36, %v11439_v45  ;;  %v5838_v11 = vsub.f32 %v10894_v24, %v11438_v15 }
 0x395   : > { %8630 = vmatmul.mubr.f32.gmra.mrb[22].mxu1 %v5809_v40  ;;  %v5636_v13 = vsel %vm275_vm5, %v5421_v33, 0  ;;  %v5639_v31 = vsel %vm275_vm5, %v5452_v17, 0 }
 0x396   : > { %11531 = vst [vmem:[#allocation12_spill] sm:$0xff] %v10914_v26  ;;  %v11441_v21 = vand.u32 4294901760, %v10911_v60  ;;  %v11443_v22 = vand.u32 4294901760, %v10914_v26  ;;  %v10926_v29 = vand.u32 4294901760, %v5636_v13  ;;  %v10928_v54 = vand.u32 4294901760, %v5639_v31  ;;  %8632 = vmatprep.mubr.f32.mxu1 %v5819_v57 }
 0x397   : > { %v5829_v58 = vand.u32 4294901760, %v5828_v35  ;;  %v5839_v37 = vand.u32 4294901760, %v5838_v11 }
 0x398   : > { %v10931_v16 = vsub.f32 %v5636_v13, %v10926_v29  ;;  %v10934_v23 = vsub.f32 %v5639_v31, %v10928_v54  ;;  %v5453_v40 = vpop.trf.xlu1  ;;  %v5484_v33 = vpop.trf.xlu0  ;;  %v5848_v17 = vsub.f32 %v10911_v60, %v11441_v21  ;;  %v5858_v15 = vsub.f32 %v10914_v26, %v11443_v22 }
 0x399   : > { %8633 = vmatmul.mubr.f32.gmra.mrb[24].mxu1 %v5829_v58  ;;  %v5642_v57 = vsel %vm275_vm5, %v5453_v40, 0  ;;  %v5645_v35 = vsel %vm275_vm5, %v5484_v33, 0 }
 0x39a   : > { %11532 = vst [vmem:[#allocation11_spill] sm:$0xff] %v10931_v16  ;;  %11533 = vst [vmem:[#allocation13_spill] sm:$0xff] %v10934_v23  ;;  %v11447_v11 = vand.u32 4294901760, %v10931_v16  ;;  %v11449_v13 = vand.u32 4294901760, %v10934_v23  ;;  %v10946_v31 = vand.u32 4294901760, %v5642_v57  ;;  %v10948_v45 = vand.u32 4294901760, %v5645_v35  ;;  %8635 = vmatprep.mubr.f32.mxu1 %v5839_v37 }
 0x39b   : > { %v5849_v59 = vand.u32 4294901760, %v5848_v17  ;;  %v5859_v21 = vand.u32 4294901760, %v5858_v15 }
 0x39c   : > { %v10951_v0 = vsub.f32 %v5642_v57, %v10946_v31  ;;  %v10954_v58 = vsub.f32 %v5645_v35, %v10948_v45  ;;  %v5485_v40 = vpop.trf.xlu0  ;;  %v5516_v22 = vpop.trf.xlu1  ;;  %v5868_v33 = vsub.f32 %v10931_v16, %v11447_v11  ;;  %v5878_v27 = vsub.f32 %v10934_v23, %v11449_v13 }
 0x39d   : > { %8636 = vmatmul.mubr.f32.gmra.mrb[26].mxu1 %v5849_v59  ;;  %v5648_v37 = vsel %vm275_vm5, %v5485_v40, 0  ;;  %v5651_v15 = vsel %vm275_vm5, %v5516_v22, 0 }
 0x39e   : > { %11534 = vst [vmem:[#allocation14_spill] sm:$0xff] %v10951_v0  ;;  %11535 = vst [vmem:[#allocation15_spill] sm:$0xff] %v10954_v58  ;;  %v11453_v17 = vand.u32 4294901760, %v10951_v0  ;;  %v11456_v57 = vand.u32 4294901760, %v10954_v58  ;;  %v10966_v35 = vand.u32 4294901760, %v5648_v37  ;;  %v10968_v50 = vand.u32 4294901760, %v5651_v15  ;;  %8638 = vmatprep.mubr.f32.mxu1 %v5859_v21 }
 0x39f   : > { %v5869_v61 = vand.u32 4294901760, %v5868_v33  ;;  %v5879_v11 = vand.u32 4294901760, %v5878_v27 }
 0x3a0   : > { %v10971_v28 = vsub.f32 %v5648_v37, %v10966_v35  ;;  %v10974_v59 = vsub.f32 %v5651_v15, %v10968_v50  ;;  %v5517_v40 = vpop.trf.xlu1  ;;  %v5548_v13 = vpop.trf.xlu0  ;;  %v5888_v22 = vsub.f32 %v10951_v0, %v11453_v17  ;;  %v5898_v2 = vsub.f32 %v10954_v58, %v11456_v57 }
 0x3a1   : > { %8639 = vmatmul.mubr.f32.gmra.mrb[28].mxu1 %v5869_v61  ;;  %v5654_v21 = vsel %vm275_vm5, %v5517_v40, 0  ;;  %v5657_v27 = vsel %vm275_vm5, %v5548_v13, 0 }
 0x3a2   : > { %11536 = vst [vmem:[#allocation16_spill] sm:$0xff] %v10971_v28  ;;  %11537 = vst [vmem:[#allocation17_spill] sm:$0xff] %v10974_v59  ;;  %v11463_v33 = vand.u32 4294901760, %v10971_v28  ;;  %v11466_v37 = vand.u32 4294901760, %v10974_v59  ;;  %v10986_v15 = vand.u32 4294901760, %v5654_v21  ;;  %v10988_v62 = vand.u32 4294901760, %v5657_v27  ;;  %8641 = vmatprep.mubr.f32.mxu1 %v5879_v11 }
 0x3a3   : > { %v5889_v7 = vand.u32 4294901760, %v5888_v22  ;;  %v5899_v17 = vand.u32 4294901760, %v5898_v2 }
 0x3a4   : > { %v10991_v0 = vsub.f32 %v5654_v21, %v10986_v15  ;;  %v10994_v61 = vsub.f32 %v5657_v27, %v10988_v62  ;;  %v5549_v40 = vpop.trf.xlu0  ;;  %v5580_v57 = vpop.trf.xlu1  ;;  %v5908_v13 = vsub.f32 %v10971_v28, %v11463_v33  ;;  %v5918_v58 = vsub.f32 %v10974_v59, %v11466_v37 }
 0x3a5   : > { %8642 = vmatmul.mubr.f32.gmra.mrb[30].mxu1 %v5889_v7  ;;  %v5660_v11 = vsel %vm275_vm5, %v5549_v40, 0  ;;  %v5663_v2 = vsel %vm275_vm5, %v5580_v57, 0 }
 0x3a6   : > { %11538 = vst [vmem:[#allocation18_spill] sm:$0xff] %v10991_v0  ;;  %11539 = vst [vmem:[#allocation19_spill] sm:$0xff] %v10994_v61  ;;  %v11471_v22 = vand.u32 4294901760, %v10991_v0  ;;  %v11472_v21 = vand.u32 4294901760, %v10994_v61  ;;  %v11006_v27 = vand.u32 4294901760, %v5660_v11  ;;  %v11008_v23 = vand.u32 4294901760, %v5663_v2  ;;  %8644 = vmatprep.mubr.f32.mxu1 %v5899_v17 }
 0x3a7   : > { %v5909_v16 = vand.u32 4294901760, %v5908_v13  ;;  %v5919_v33 = vand.u32 4294901760, %v5918_v58 }
 0x3a8   : > { %v11011_v28 = vsub.f32 %v5660_v11, %v11006_v27  ;;  %v11014_v7 = vsub.f32 %v5663_v2, %v11008_v23  ;;  %v5581_v40 = vpop.trf.xlu1  ;;  %v5928_v57 = vsub.f32 %v10991_v0, %v11471_v22  ;;  %v5938_v37 = vsub.f32 %v10994_v61, %v11472_v21 }
 0x3a9   : > { %8645 = vmatmul.mubr.f32.gmra.mrb[32].mxu1 %v5909_v16  ;;  %v5666_v17 = vsel %vm275_vm5, %v5581_v40, 0  ;;  %v11038_v40 = vmul.f32 %v10782_v41, %v10782_v41 }
 0x3aa   : > { %11540 = vst [vmem:[#allocation20_spill] sm:$0xff] %v11011_v28  ;;  %11541 = vst [vmem:[#allocation21_spill] sm:$0xff] %v11014_v7  ;;  %v11473_v58 = vand.u32 4294901760, %v11011_v28  ;;  %v11476_v13 = vand.u32 4294901760, %v11014_v7  ;;  %v11025_v11 = vand.u32 4294901760, %v5666_v17  ;;  %8647 = vmatprep.mubr.f32.mxu1 %v5919_v33  ;;  %v5929_v2 = vand.u32 4294901760, %v5928_v57 }
 0x3ab   : > { %v5939_v59 = vand.u32 4294901760, %v5938_v37  ;;  %v11042_v33 = vmul.f32 %v10784_v6, %v10784_v6 }
 0x3ac   : > { %v11028_v26 = vsub.f32 %v5666_v17, %v11025_v11  ;;  %v8366_v22 = vpop.f32.mrb[8].mxu1  ;;  %v5948_v21 = vsub.f32 %v11011_v28, %v11473_v58  ;;  %v5958_v16 = vsub.f32 %v11014_v7, %v11476_v13 }
 0x3ad   : > { %v11044_v37 = vmul.f32 %v8366_v22, %v8366_v22  ;;  %v11047_v57 = vmul.f32 %v8366_v22, %v10782_v41  ;;  %v3622_v17 = vpop.f32.mrb[9].mxu1  ;;  %8648 = vmatmul.mubr.f32.gmra.mrb[34].mxu1 %v5929_v2 }
 0x3ae   : > { %v11485_v58 = vand.u32 4294901760, %v11028_v26  ;;  %v11050_v28 = vmul.f32 %v3622_v17, %v3622_v17  ;;  %v11053_v13 = vmul.f32 %v3622_v17, %v10784_v6  ;;  %8650 = vmatprep.mubr.f32.mxu1 %v5939_v59  ;;  %v5949_v7 = vand.u32 4294901760, %v5948_v21 }
 0x3af   : > { %11542 = vst [vmem:[#allocation22_spill] sm:$0xff] %v11044_v37  ;;  %11543 = vst [vmem:[#allocation23_spill] sm:$0xff] %v11047_v57  ;;  %v11057_v61 = vadd.f32 %v11044_v37, %v11038_v40  ;;  %v5959_v0 = vand.u32 4294901760, %v5958_v16  ;;  %v11068_v6 = vmul.f32 %v10786_v4, %v10786_v4  ;;  %v11077_v16 = vmul.f32 %v10788_v12, %v10788_v12 }
 0x3b0   : > { %11544 = vst [vmem:[#allocation24_spill] sm:$0xff] %v11050_v28  ;;  %11545 = vst [vmem:[#allocation25_spill] sm:$0xff] %v11053_v13  ;;  %v11061_v41 = vadd.f32 %v11050_v28, %v11042_v33  ;;  %v8369_v22 = vpop.f32.mrb[10].mxu1  ;;  %v5968_v2 = vsub.f32 %v11028_v26, %v11485_v58  ;;  %v11581_v28 = vand.u32 4294901760, %v10835_v19  ;;  %v11582_v37 = vand.u32 4294901760, %v10849_v42 }
 0x3b1   : > { %11546 = vst [vmem:[#allocation26_spill] sm:$0xff] %v11057_v61  ;;  %v11070_v59 = vmul.f32 %v8369_v22, %v8369_v22  ;;  %v11073_v21 = vmul.f32 %v8369_v22, %v10786_v4  ;;  %v3634_v17 = vpop.f32.mrb[11].mxu1  ;;  %8651 = vmatmul.mubr.f32.gmra.mrb[36].mxu1 %v5949_v7  ;;  %v11094_v22 = vmul.f32 %v10790_v49, %v10790_v49  ;;  %v11580_v61 = vand.u32 4294901760, %v10832_v25 }
 0x3b2   : > { %11547 = vst [vmem:[#allocation27_spill] sm:$0xff] %v11061_v41  ;;  %v11079_v13 = vmul.f32 %v3634_v17, %v3634_v17  ;;  %v11082_v57 = vmul.f32 %v3634_v17, %v10788_v12  ;;  %8653 = vmatprep.mubr.f32.mxu1 %v5959_v0  ;;  %v5969_v41 = vand.u32 4294901760, %v5968_v2  ;;  %v11103_v17 = vmul.f32 %v10792_v34, %v10792_v34 }
 0x3b3   : > { %11548 = vst [vmem:[#allocation28_spill] sm:$0xff] %v11070_v59  ;;  %11549 = vst [vmem:[#allocation29_spill] sm:$0xff] %v11073_v21  ;;  %v11086_v58 = vadd.f32 %v11070_v59, %v11068_v6  ;;  %v11579_v59 = vand.u32 4294901760, %v10815_v51 }
 0x3b4   : > { %11550 = vst [vmem:[#allocation30_spill] sm:$0xff] %v11079_v13  ;;  %11551 = vst [vmem:[#allocation31_spill] sm:$0xff] %v11082_v57  ;;  %v11090_v4 = vadd.f32 %v11079_v13, %v11077_v16  ;;  %v8372_v7 = vpop.f32.mrb[12].mxu1  ;;  %v11578_v13 = vand.u32 4294901760, %v10812_v55 }
 0x3b5   : > { %11552 = vst [vmem:[#allocation32_spill] sm:$0xff] %v11086_v58  ;;  %v11096_v21 = vmul.f32 %v8372_v7, %v8372_v7  ;;  %v11099_v12 = vmul.f32 %v8372_v7, %v10790_v49  ;;  %v3646_v0 = vpop.f32.mrb[13].mxu1  ;;  %8654 = vmatmul.mubr.f32.gmra.mrb[38].mxu1 %v5969_v41  ;;  %v11121_v7 = vmul.f32 %v10794_v43, %v10794_v43  ;;  %v11577_v58 = vand.u32 4294901760, %v10802_v14 }
 0x3b6   : > { %11553 = vst [vmem:[#allocation33_spill] sm:$0xff] %v11090_v4  ;;  %v11105_v2 = vmul.f32 %v3646_v0, %v3646_v0  ;;  %v11108_v57 = vmul.f32 %v3646_v0, %v10792_v34  ;;  %8660 = vmatprep.mubr.f32.mxu1 %v10799_v3 }
 0x3b7   : > { %11554 = vst [vmem:[#allocation34_spill] sm:$0xff] %v11096_v21  ;;  %11555 = vst [vmem:[#allocation35_spill] sm:$0xff] %v11099_v12  ;;  %v11113_v4 = vadd.f32 %v11096_v21, %v11094_v22  ;;  %v11576_v21 = vld [vmem:[#allocation21_spill] sm:$0xff] }
 0x3b8   : > { %11556 = vst [vmem:[#allocation36_spill] sm:$0xff] %v11105_v2  ;;  %11557 = vst [vmem:[#allocation37_spill] sm:$0xff] %v11108_v57  ;;  %v11117_v49 = vadd.f32 %v11105_v2, %v11103_v17  ;;  %v8375_v41 = vpop.f32.mrb[14].mxu1  ;;  %v11131_v57 = vmul.f32 %v10796_v32, %v10796_v32  ;;  %v11575_v2 = vld [vmem:[#allocation20_spill] sm:$0xff] }
 0x3b9   : > { %11558 = vst [vmem:[#allocation38_spill] sm:$0xff] %v11113_v4  ;;  %v11123_v12 = vmul.f32 %v8375_v41, %v8375_v41  ;;  %v11126_v34 = vmul.f32 %v8375_v41, %v10794_v43  ;;  %v3658_v0 = vpop.f32.mrb[15].mxu1  ;;  %8661 = vmatmul.mubr.f32.vlgmr.msra.gmra.mrb[16].mxu1 %v10807_v10 }
 0x3ba   : > { %11559 = vst [vmem:[#allocation39_spill] sm:$0xff] %v11117_v49  ;;  %v11133_v4 = vmul.f32 %v3658_v0, %v3658_v0  ;;  %v11136_v49 = vmul.f32 %v3658_v0, %v10796_v32  ;;  %8663 = vmatprep.mubr.f32.mxu1 %v10809_v48  ;;  %8987 = vmatpush3.bf16.msra.mxu1 %v9915_v30  ;;  %v11566_v30 = vld [vmem:[#allocation12_spill] sm:$0xff]  ;;  %v11567_v32 = vld [vmem:[#allocation11_spill] sm:$0xff]  ;;  %v11568_v0 = vld [vmem:[#allocation13_spill] sm:$0xff] }
 0x3bb   : > { %11560 = vst [vmem:[#allocation40_spill] sm:$0xff] %v11123_v12  ;;  %11561 = vst [vmem:[#allocation41_spill] sm:$0xff] %v11126_v34  ;;  %v11142_v43 = vadd.f32 %v11123_v12, %v11121_v7  ;;  %8989 = vmatprep.subr.bf16.mxu1 %v9848_v52  ;;  %v11570_v34 = vld [vmem:[#allocation15_spill] sm:$0xff] }
 0x3bc   : > { %11562 = vst [vmem:[#allocation42_spill] sm:$0xff] %v11133_v4  ;;  %11563 = vst [vmem:[#allocation43_spill] sm:$0xff] %v11136_v49  ;;  %v11147_v41 = vadd.f32 %v11133_v4, %v11131_v57  ;;  %v11569_v49 = vld [vmem:[#allocation14_spill] sm:$0xff]  ;;  %v11574_v12 = vld [vmem:[#allocation19_spill] sm:$0xff] }
 0x3bd   : > { %11564 = vst [vmem:[#allocation44_spill] sm:$0xff] %v11142_v43  ;;  %8664 = vmatmul.mubr.f32.gmra.mrb[18].mxu1 %v10824_v53  ;;  %v11572_v43 = vld [vmem:[#allocation17_spill] sm:$0xff]  ;;  %v11573_v4 = vld [vmem:[#allocation18_spill] sm:$0xff] }
 0x3be   : > { %11565 = vst [vmem:[#allocation45_spill] sm:$0xff] %v11147_v41  ;;  %8666 = vmatprep.mubr.f32.mxu1 %v10826_v20  ;;  %v11571_v41 = vld [vmem:[#allocation16_spill] sm:$0xff] }
 0x3c1   : > { %8667 = vmatmul.mubr.f32.gmra.mrb[20].mxu1 %v10844_v5 }
 0x3c2   : > { %8669 = vmatprep.mubr.f32.mxu1 %v10846_v8 }
 0x3c5   : > { %8670 = vmatmul.mubr.f32.gmra.mrb[22].mxu1 %v10864_v1 }
 0x3c6   : > { %8672 = vmatprep.mubr.f32.mxu1 %v10866_v18 }
 0x3c9   : > { %8673 = vmatmul.mubr.f32.gmra.mrb[24].mxu1 %v10886_v56 }
 0x3ca   : > { %8675 = vmatprep.mubr.f32.mxu1 %v10888_v9 }
 0x3cd   : > { %8676 = vmatmul.mubr.f32.gmra.mrb[26].mxu1 %v10906_v38 }
 0x3ce   : > { %8678 = vmatprep.mubr.f32.mxu1 %v10908_v63 }
 0x3d1   : > { %8679 = vmatmul.mubr.f32.gmra.mrb[28].mxu1 %v10926_v29 }
 0x3d2   : > { %8681 = vmatprep.mubr.f32.mxu1 %v10928_v54 }
 0x3d5   : > { %8682 = vmatmul.mubr.f32.gmra.mrb[30].mxu1 %v10946_v31 }
 0x3d6   : > { %8684 = vmatprep.mubr.f32.mxu1 %v10948_v45 }
 0x3d9   : > { %8685 = vmatmul.mubr.f32.gmra.mrb[32].mxu1 %v10966_v35 }
 0x3da   : > { %8687 = vmatprep.mubr.f32.mxu1 %v10968_v50 }
 0x3dd   : > { %8688 = vmatmul.mubr.f32.gmra.mrb[34].mxu1 %v10986_v15 }
 0x3de   : > { %8690 = vmatprep.mubr.f32.mxu1 %v10988_v62 }
 0x3e1   : > { %8691 = vmatmul.mubr.f32.gmra.mrb[36].mxu1 %v11006_v27 }
 0x3e2   : > { %8693 = vmatprep.mubr.f32.mxu1 %v11008_v23 }
 0x3e5   : > { %8694 = vmatmul.mubr.f32.gmra.mrb[38].mxu1 %v11025_v11 }
 0x3e6   : > { %8700 = vmatprep.mubr.f32.mxu1 %v10802_v14  ;;  %v11583_v14 = vand.u32 4294901760, %v10858_v46 }
 0x3e9   : > { %8701 = vmatmul.mubr.f32.vlgmr.msra.gmra.mrb[16].mxu1 %v10812_v55  ;;  %v11584_v55 = vand.u32 4294901760, %v10871_v47 }
 0x3ea   : > { %8703 = vmatprep.mubr.f32.mxu1 %v10815_v51  ;;  %8991 = vmatpush3.bf16.msra.mxu1 %v9848_v52  ;;  %v11585_v51 = vand.u32 4294901760, %v10874_v39 }
 0x3eb   : > { %8993 = vmatprep.subr.bf16.mxu1 %v9934_v44 }
 0x3ed   : > { %8704 = vmatmul.mubr.f32.gmra.mrb[18].mxu1 %v10832_v25  ;;  %v11587_v25 = vand.u32 4294901760, %v10894_v24 }
 0x3ee   : > { %8706 = vmatprep.mubr.f32.mxu1 %v10835_v19  ;;  %v11588_v19 = vand.u32 4294901760, %v10911_v60 }
 0x3f1   : > { %8707 = vmatmul.mubr.f32.gmra.mrb[20].mxu1 %v10849_v42  ;;  %v11590_v42 = vand.u32 4294901760, %v11567_v32 }
 0x3f2   : > { %8709 = vmatprep.mubr.f32.mxu1 %v10858_v46  ;;  %v11591_v46 = vand.u32 4294901760, %v11568_v0 }
 0x3f5   : > { %8710 = vmatmul.mubr.f32.gmra.mrb[22].mxu1 %v10871_v47  ;;  %v11592_v47 = vand.u32 4294901760, %v11569_v49 }
 0x3f6   : > { %8712 = vmatprep.mubr.f32.mxu1 %v10874_v39  ;;  %v11593_v39 = vand.u32 4294901760, %v11570_v34 }
 0x3f9   : > { %8713 = vmatmul.mubr.f32.gmra.mrb[24].mxu1 %v10891_v36 }
 0x3fa   : > { %8715 = vmatprep.mubr.f32.mxu1 %v10894_v24  ;;  %v11595_v24 = vand.u32 4294901760, %v11572_v43 }
 0x3fd   : > { %8716 = vmatmul.mubr.f32.gmra.mrb[26].mxu1 %v10911_v60  ;;  %v11596_v60 = vand.u32 4294901760, %v11573_v4 }
 0x3fe   : > { %8718 = vmatprep.mubr.f32.mxu1 %v11566_v30 }
 0x401   : > { %8719 = vmatmul.mubr.f32.gmra.mrb[28].mxu1 %v11567_v32 }
 0x402   : > { %8721 = vmatprep.mubr.f32.mxu1 %v11568_v0  ;;  %v11609_v0 = vld [vmem:[#allocation32_spill] sm:$0xff] }
 0x405   : > { %8722 = vmatmul.mubr.f32.gmra.mrb[30].mxu1 %v11569_v49  ;;  %v11608_v49 = vld [vmem:[#allocation25_spill] sm:$0xff] }
 0x406   : > { %8724 = vmatprep.mubr.f32.mxu1 %v11570_v34 }
 0x409   : > { %8725 = vmatmul.mubr.f32.gmra.mrb[32].mxu1 %v11571_v41 }
 0x40a   : > { %8727 = vmatprep.mubr.f32.mxu1 %v11572_v43 }
 0x40d   : > { %8728 = vmatmul.mubr.f32.gmra.mrb[34].mxu1 %v11573_v4 }
 0x40e   : > { %8730 = vmatprep.mubr.f32.mxu1 %v11574_v12 }
 0x411   : > { %8731 = vmatmul.mubr.f32.gmra.mrb[36].mxu1 %v11575_v2 }
 0x412   : > { %8733 = vmatprep.mubr.f32.mxu1 %v11576_v21 }
 0x415   : > { %8734 = vmatmul.mubr.f32.gmra.mrb[38].mxu1 %v11028_v26 }
 0x416   : > { %8740 = vmatprep.mubr.f32.mxu1 %v11577_v58  ;;  %v11598_v58 = vand.u32 4294901760, %v11575_v2 }
 0x419   : > { %8741 = vmatmul.mubr.f32.vlgmr.msra.gmra.mrb[16].mxu1 %v11578_v13  ;;  %v11599_v13 = vand.u32 4294901760, %v11576_v21 }
 0x41a   : > { %8743 = vmatprep.mubr.f32.mxu1 %v11579_v59  ;;  %8995 = vmatpush3.bf16.msra.mxu1 %v9934_v44  ;;  %v11586_v44 = vand.u32 4294901760, %v10891_v36  ;;  %v11594_v36 = vand.u32 4294901760, %v11571_v41 }
 0x41b   : > { %8997 = vmatprep.subr.bf16.mxu1 %v9848_v52 }
 0x41d   : > { %8744 = vmatmul.mubr.f32.gmra.mrb[18].mxu1 %v11580_v61  ;;  %v11597_v61 = vand.u32 4294901760, %v11574_v12  ;;  %v11606_v12 = vld [vmem:[#allocation30_spill] sm:$0xff] }
 0x41e   : > { %8746 = vmatprep.mubr.f32.mxu1 %v11581_v28  ;;  %v11589_v28 = vand.u32 4294901760, %v11566_v30 }
 0x421   : > { %8747 = vmatmul.mubr.f32.gmra.mrb[20].mxu1 %v11582_v37  ;;  %v11600_v37 = vand.u32 4294901760, %v11028_v26  ;;  %v11601_v26 = vld [vmem:[#allocation22_spill] sm:$0xff] }
 0x422   : > { %8749 = vmatprep.mubr.f32.mxu1 %v11583_v14  ;;  %v7215_v14 = vadd.f32 0.0001, %v11609_v0 }
 0x425   : > { %8750 = vmatmul.mubr.f32.gmra.mrb[22].mxu1 %v11584_v55 }
 0x426   : > { %8752 = vmatprep.mubr.f32.mxu1 %v11585_v51  ;;  %v11610_v51 = vld [vmem:[#allocation34_spill] sm:$0xff] }
 0x429   : > { %8753 = vmatmul.mubr.f32.gmra.mrb[24].mxu1 %v11586_v44 }
 0x42a   : > { %8755 = vmatprep.mubr.f32.mxu1 %v11587_v25 }
 0x42d   : > { %8756 = vmatmul.mubr.f32.gmra.mrb[26].mxu1 %v11588_v19  ;;  %v11611_v19 = vld [vmem:[#allocation33_spill] sm:$0xff] }
 0x42e   : > { %8758 = vmatprep.mubr.f32.mxu1 %v11589_v28  ;;  %v7214_v28 = vadd.f32 0.0001, %v11611_v19 }
 0x431   : > { %8759 = vmatmul.mubr.f32.gmra.mrb[28].mxu1 %v11590_v42 }
 0x432   : > { %8761 = vmatprep.mubr.f32.mxu1 %v11591_v46  ;;  %v11612_v46 = vld [vmem:[#allocation36_spill] sm:$0xff] }
 0x435   : > { %8762 = vmatmul.mubr.f32.gmra.mrb[30].mxu1 %v11592_v47 }
 0x436   : > { %8764 = vmatprep.mubr.f32.mxu1 %v11593_v39 }
 0x439   : > { %8765 = vmatmul.mubr.f32.gmra.mrb[32].mxu1 %v11594_v36 }
 0x43a   : > { %8767 = vmatprep.mubr.f32.mxu1 %v11595_v24 }
 0x43d   : > { %8768 = vmatmul.mubr.f32.gmra.mrb[34].mxu1 %v11596_v60 }
 0x43e   : > { %8770 = vmatprep.mubr.f32.mxu1 %v11597_v61  ;;  %v11613_v61 = vld [vmem:[#allocation29_spill] sm:$0xff] }
 0x441   : > { %8771 = vmatmul.mubr.f32.gmra.mrb[36].mxu1 %v11598_v58  ;;  %v7167_v58 = vmul.f32 2.0, %v11613_v61 }
 0x442   : > { %8773 = vmatprep.mubr.f32.mxu1 %v11599_v13  ;;  %v11614_v13 = vld [vmem:[#allocation31_spill] sm:$0xff] }
 0x445   : > { %8774 = vmatmul.mubr.f32.gmra.mrb[38].mxu1 %v11600_v37  ;;  %v7166_v37 = vmul.f32 2.0, %v11614_v13 }
 0x446   : > { %8780 = vmatprep.mubr.f32.mxu1 %v10799_v3 }
 0x449   : > { %8781 = vmatmul.mubr.f32.vlgmr.msra.gmra.mrb[16].mxu1 %v10807_v10 }
 0x44a   : > { %8783 = vmatprep.mubr.f32.mxu1 %v10809_v48  ;;  %8999 = vmatpush3.bf16.msra.mxu1 %v9848_v52 }
 0x44d   : > { %8784 = vmatmul.mubr.f32.gmra.mrb[18].mxu1 %v10824_v53 }
 0x44e   : > { %8786 = vmatprep.mubr.f32.mxu1 %v10826_v20 }
 0x451   : > { %8787 = vmatmul.mubr.f32.gmra.mrb[20].mxu1 %v10844_v5 }
 0x452   : > { %8789 = vmatprep.mubr.f32.mxu1 %v10846_v8 }
 0x455   : > { %8790 = vmatmul.mubr.f32.gmra.mrb[22].mxu1 %v10864_v1 }
 0x456   : > { %8792 = vmatprep.mubr.f32.mxu1 %v10866_v18 }
 0x459   : > { %8793 = vmatmul.mubr.f32.gmra.mrb[24].mxu1 %v10886_v56 }
 0x45a   : > { %8795 = vmatprep.mubr.f32.mxu1 %v10888_v9 }
 0x45d   : > { %8796 = vmatmul.mubr.f32.gmra.mrb[26].mxu1 %v10906_v38 }
 0x45e   : > { %8798 = vmatprep.mubr.f32.mxu1 %v10908_v63 }
 0x461   : > { %8799 = vmatmul.mubr.f32.gmra.mrb[28].mxu1 %v10926_v29 }
 0x462   : > { %8801 = vmatprep.mubr.f32.mxu1 %v10928_v54 }
 0x465   : > { %8802 = vmatmul.mubr.f32.gmra.mrb[30].mxu1 %v10946_v31 }
 0x466   : > { %8804 = vmatprep.mubr.f32.mxu1 %v10948_v45 }
 0x469   : > { %8805 = vmatmul.mubr.f32.gmra.mrb[32].mxu1 %v10966_v35 }
 0x46a   : > { %8807 = vmatprep.mubr.f32.mxu1 %v10968_v50 }
 0x46d   : > { %8808 = vmatmul.mubr.f32.gmra.mrb[34].mxu1 %v10986_v15 }
 0x46e   : > { %8810 = vmatprep.mubr.f32.mxu1 %v10988_v62 }
 0x471   : > { %8811 = vmatmul.mubr.f32.gmra.mrb[36].mxu1 %v11006_v27 }
 0x472   : > { %8813 = vmatprep.mubr.f32.mxu1 %v11008_v23 }
 0x475   : > { %8814 = vmatmul.mubr.f32.gmra.mrb[38].mxu1 %v11025_v11 }
 0x476   : > { %8820 = vmatprep.mubr.f32.mxu1 %v10799_v3 }
 0x479   : > { %8821 = vmatmul.mubr.f32.vlgmr.msra.gmra.mrb[16].mxu1 %v10807_v10 }
 0x47a   : > { %8823 = vmatprep.mubr.f32.mxu1 %v10809_v48 }
 0x47d   : > { %8824 = vmatmul.mubr.f32.gmra.mrb[18].mxu1 %v10824_v53 }
 0x47e   : > { %8826 = vmatprep.mubr.f32.mxu1 %v10826_v20 }
 0x481   : > { %8827 = vmatmul.mubr.f32.gmra.mrb[20].mxu1 %v10844_v5 }
 0x482   : > { %8829 = vmatprep.mubr.f32.mxu1 %v10846_v8 }
 0x485   : > { %8830 = vmatmul.mubr.f32.gmra.mrb[22].mxu1 %v10864_v1 }
 0x486   : > { %8832 = vmatprep.mubr.f32.mxu1 %v10866_v18 }
 0x489   : > { %8833 = vmatmul.mubr.f32.gmra.mrb[24].mxu1 %v10886_v56 }
 0x48a   : > { %8835 = vmatprep.mubr.f32.mxu1 %v10888_v9 }
 0x48d   : > { %8836 = vmatmul.mubr.f32.gmra.mrb[26].mxu1 %v10906_v38 }
 0x48e   : > { %8838 = vmatprep.mubr.f32.mxu1 %v10908_v63 }
 0x491   : > { %8839 = vmatmul.mubr.f32.gmra.mrb[28].mxu1 %v10926_v29 }
 0x492   : > { %8841 = vmatprep.mubr.f32.mxu1 %v10928_v54 }
 0x495   : > { %8842 = vmatmul.mubr.f32.gmra.mrb[30].mxu1 %v10946_v31 }
 0x496   : > { %8844 = vmatprep.mubr.f32.mxu1 %v10948_v45 }
 0x499   : > { %8845 = vmatmul.mubr.f32.gmra.mrb[32].mxu1 %v10966_v35 }
 0x49a   : > { %8847 = vmatprep.mubr.f32.mxu1 %v10968_v50 }
 0x49d   : > { %8848 = vmatmul.mubr.f32.gmra.mrb[34].mxu1 %v10986_v15 }
 0x49e   : > { %8850 = vmatprep.mubr.f32.mxu1 %v10988_v62 }
 0x4a1   : > { %8851 = vmatmul.mubr.f32.gmra.mrb[36].mxu1 %v11006_v27 }
 0x4a2   : > { %8853 = vmatprep.mubr.f32.mxu1 %v11008_v23  ;;  %v11602_v23 = vld [vmem:[#allocation24_spill] sm:$0xff] }
 0x4a5   : > { %8854 = vmatmul.mubr.f32.gmra.mrb[38].mxu1 %v11025_v11  ;;  %v11603_v11 = vld [vmem:[#allocation26_spill] sm:$0xff] }
 0x54c   : > { %v8822_v52 = vpop.f32.mrb[16].mxu1 }
 0x54d   : > { %v7141_v3 = vsub.f32 %v8822_v52, %v11038_v40  ;;  %v6974_v10 = vpop.f32.mrb[17].mxu1  ;;  %v7213_v40 = vadd.f32 0.0001, %v11603_v11 }
 0x54e   : > { %v7140_v48 = vsub.f32 %v6974_v10, %v11042_v33 }
 0x550   : > { %v8825_v53 = vpop.f32.mrb[18].mxu1 }
 0x551   : > { %v7143_v20 = vsub.f32 %v8825_v53, %v11068_v6  ;;  %v6986_v5 = vpop.f32.mrb[19].mxu1  ;;  %v11604_v6 = vld [vmem:[#allocation28_spill] sm:$0xff] }
 0x552   : > { %v7142_v8 = vsub.f32 %v6986_v5, %v11077_v16  ;;  %v11605_v16 = vld [vmem:[#allocation27_spill] sm:$0xff]  ;;  %v11616_v5 = vld [vmem:[#allocation40_spill] sm:$0xff] }
 0x553   : > { %v7212_v4 = vadd.f32 0.0001, %v11605_v16 }
 0x554   : > { %v8828_v50 = vpop.f32.mrb[20].mxu1 }
 0x555   : > { %v7145_v62 = vsub.f32 %v8828_v50, %v11094_v22  ;;  %v6998_v1 = vpop.f32.mrb[21].mxu1 }
 0x556   : > { %v7144_v18 = vsub.f32 %v6998_v1, %v11103_v17  ;;  %v11607_v17 = vld [vmem:[#allocation23_spill] sm:$0xff] }
 0x557   : > { %v7165_v2 = vmul.f32 2.0, %v11607_v17  ;;  %v11617_v1 = vld [vmem:[#allocation39_spill] sm:$0xff] }
 0x558   : > { %v8831_v56 = vpop.f32.mrb[22].mxu1 }
 0x559   : > { %v7147_v9 = vsub.f32 %v8831_v56, %v11121_v7  ;;  %v7010_v45 = vpop.f32.mrb[23].mxu1  ;;  %v7164_v7 = vmul.f32 2.0, %v11608_v49  ;;  %v7173_v39 = vadd.f32 0.0001, %v7165_v2  ;;  %v7216_v56 = vadd.f32 0.0001, %v11617_v1 }
 0x55a   : > { %v7146_v38 = vsub.f32 %v7010_v45, %v11131_v57 }
 0x55b   : > { %v11315_v36 = vadd.f32 0.0001, %v7164_v7 }
 0x55c   : > { %v8834_v63 = vpop.f32.mrb[24].mxu1 }
 0x55d   : > { %v7149_v29 = vsub.f32 %v8834_v63, %v11601_v26  ;;  %v7022_v54 = vpop.f32.mrb[25].mxu1  ;;  %v11618_v63 = vld [vmem:[#allocation42_spill] sm:$0xff]  ;;  %v11619_v26 = vld [vmem:[#allocation35_spill] sm:$0xff] }
 0x55e   : > { %v7148_v31 = vsub.f32 %v7022_v54, %v11602_v23  ;;  %v11620_v54 = vld [vmem:[#allocation37_spill] sm:$0xff] }
 0x55f   : > { %v7221_v35 = vadd.f32 %v7149_v29, %v7141_v3  ;;  %v7169_v29 = vmul.f32 2.0, %v11619_v26  ;;  %v7168_v23 = vmul.f32 2.0, %v11620_v54 }
 0x560   : > { %v7220_v15 = vadd.f32 %v7148_v31, %v7140_v48  ;;  %v8837_v27 = vpop.f32.mrb[26].mxu1  ;;  %v11615_v48 = vld [vmem:[#allocation38_spill] sm:$0xff] }
 0x561   : > { %v7229_v33 = vadd.f32 0.0009, %v7221_v35  ;;  %v7151_v59 = vsub.f32 %v8837_v27, %v11604_v6  ;;  %v7034_v21 = vpop.f32.mrb[27].mxu1  ;;  %v7217_v53 = vadd.f32 0.0001, %v11615_v48 }
 0x562   : > { %v7228_v22 = vadd.f32 0.0009, %v7220_v15  ;;  %v7150_v57 = vsub.f32 %v7034_v21, %v11606_v12  ;;  %v7175_v35 = vadd.f32 0.0001, %v7167_v58  ;;  %v7174_v15 = vadd.f32 0.0001, %v7166_v37 }
 0x563   : > { %v7237_v34 = vmul.f32 %v7229_v33, %v7213_v40  ;;  %v7223_v43 = vadd.f32 %v7151_v59, %v7143_v20  ;;  %v11621_v33 = vld [vmem:[#allocation44_spill] sm:$0xff]  ;;  %v7177_v2 = vadd.f32 0.0001, %v7169_v29  ;;  %v11332_v7 = vadd.f32 0.0001, %v7168_v23 }
 0x564   : > { %v7236_v41 = vmul.f32 %v7228_v22, %v7212_v4  ;;  %v7222_v30 = vadd.f32 %v7150_v57, %v7142_v8  ;;  %v8840_v32 = vpop.f32.mrb[28].mxu1  ;;  %v7219_v6 = vadd.f32 0.0001, %v11621_v33  ;;  %v11622_v4 = vld [vmem:[#allocation45_spill] sm:$0xff] }
 0x565   : > { %9456 = vrcp.f32 %v7237_v34  ;;  %v7231_v55 = vadd.f32 0.0009, %v7223_v43  ;;  %v7153_v44 = vsub.f32 %v8840_v32, %v11610_v51  ;;  %v7046_v25 = vpop.f32.mrb[29].mxu1  ;;  %v7218_v22 = vadd.f32 0.0001, %v11622_v4  ;;  %v11623_v32 = vld [vmem:[#allocation41_spill] sm:$0xff] }
 0x566   : > { %9458 = vrcp.f32 %v7236_v41  ;;  %v7230_v42 = vadd.f32 0.0009, %v7222_v30  ;;  %v7152_v47 = vsub.f32 %v7046_v25, %v11612_v46  ;;  %v7171_v0 = vmul.f32 2.0, %v11623_v32 }
 0x567   : > { %v7239_v24 = vmul.f32 %v7231_v55, %v7215_v14  ;;  %v7225_v60 = vadd.f32 %v7153_v44, %v7145_v62 }
 0x568   : > { %v7238_v52 = vmul.f32 %v7230_v42, %v7214_v28  ;;  %v7224_v3 = vadd.f32 %v7152_v47, %v7144_v18  ;;  %v8843_v10 = vpop.f32.mrb[30].mxu1 }
 0x569   : > { %9460 = vrcp.f32 %v7239_v24  ;;  %v7233_v20 = vadd.f32 0.0009, %v7225_v60  ;;  %v7155_v8 = vsub.f32 %v8843_v10, %v11616_v5  ;;  %v7058_v50 = vpop.f32.mrb[31].mxu1  ;;  %v11624_v60 = vld [vmem:[#allocation43_spill] sm:$0xff] }
 0x56a   : > { %9462 = vrcp.f32 %v7238_v52  ;;  %v7232_v45 = vadd.f32 0.0009, %v7224_v3  ;;  %v7154_v62 = vsub.f32 %v7058_v50, %v11618_v63  ;;  %v11341_v58 = vmul.f32 2.0, %v11624_v60 }
 0x56b   : > { %v7241_v31 = vmul.f32 %v7233_v20, %v7217_v53  ;;  %v7227_v18 = vadd.f32 %v7155_v8, %v7147_v9 }
 0x56c   : > { %v11325_v27 = vmul.f32 %v7232_v45, %v7216_v56  ;;  %v7226_v11 = vadd.f32 %v7154_v62, %v7146_v38  ;;  %v8846_v40 = vpop.f32.mrb[32].mxu1 }
 0x56d   : > { %9464 = vrcp.f32 %v7241_v31  ;;  %v7235_v59 = vadd.f32 0.0009, %v7227_v18  ;;  %v7157_v21 = vsub.f32 %v8846_v40, %v11607_v17  ;;  %v7070_v16 = vpop.f32.mrb[33].mxu1 }
 0x56e   : > { %9466 = vrcp.f32 %v11325_v27  ;;  %v7234_v12 = vadd.f32 0.0009, %v7226_v11  ;;  %v7156_v9 = vsub.f32 %v7070_v16, %v11608_v49 }
 0x56f   : > { %v9457_v57 = vpop.eup %9456  ;;  %v11334_v38 = vmul.f32 %v7235_v59, %v7219_v6  ;;  %v7181_v43 = vmul.f32 2.0, %v7157_v21 }
 0x570   : > { %v9459_v30 = vpop.eup %9458  ;;  %v7253_v14 = vmul.f32 %v9457_v57, %v7237_v34  ;;  %v7242_v17 = vmul.f32 %v7234_v12, %v7218_v22  ;;  %v7180_v55 = vmul.f32 2.0, %v7156_v9  ;;  %v8849_v51 = vpop.f32.mrb[34].mxu1 }
 0x571   : > { %v7252_v44 = vmul.f32 %v9459_v30, %v7236_v41  ;;  %9468 = vrcp.f32 %v11334_v38  ;;  %v7189_v25 = vadd.f32 0.0009, %v7181_v43  ;;  %v7159_v49 = vsub.f32 %v8849_v51, %v11613_v61  ;;  %v7082_v19 = vpop.f32.mrb[35].mxu1 }
 0x572   : > { %v7261_v28 = vsub.f32 2.0, %v7253_v14  ;;  %9470 = vrcp.f32 %v7242_v17  ;;  %v7188_v42 = vadd.f32 0.0009, %v7180_v55  ;;  %v7158_v46 = vsub.f32 %v7082_v19, %v11614_v13 }
 0x573   : > { %v9461_v47 = vpop.eup %9460  ;;  %v7260_v34 = vsub.f32 2.0, %v7252_v44  ;;  %v7197_v37 = vmul.f32 %v7189_v25, %v7173_v39  ;;  %v7183_v3 = vmul.f32 2.0, %v7159_v49 }
 0x574   : > { %v9463_v10 = vpop.eup %9462  ;;  %v7255_v41 = vmul.f32 %v9461_v47, %v7239_v24  ;;  %v7269_v48 = vmul.f32 %v9457_v57, %v7261_v28  ;;  %v7196_v53 = vmul.f32 %v7188_v42, %v11315_v36  ;;  %v7182_v20 = vmul.f32 2.0, %v7158_v46  ;;  %v8852_v61 = vpop.f32.mrb[36].mxu1 }
 0x575   : > { %v7254_v5 = vmul.f32 %v9463_v10, %v7238_v52  ;;  %v7268_v8 = vmul.f32 %v9459_v30, %v7260_v34  ;;  %v7191_v50 = vadd.f32 0.0009, %v7183_v3  ;;  %v7161_v1 = vsub.f32 %v8852_v61, %v11619_v26  ;;  %v7094_v13 = vpop.f32.mrb[37].mxu1 }
 0x576   : > { %v7263_v56 = vsub.f32 2.0, %v7255_v41  ;;  %v7277_v45 = vmul.f32 %v7269_v48, %v7197_v37  ;;  %v7190_v63 = vadd.f32 0.0009, %v7182_v20  ;;  %v7160_v62 = vsub.f32 %v7094_v13, %v11620_v54 }
 0x577   : > { %v9465_v39 = vpop.eup %9464  ;;  %v7262_v29 = vsub.f32 2.0, %v7254_v5  ;;  %v7276_v23 = vmul.f32 %v7268_v8, %v7196_v53  ;;  %v7199_v24 = vmul.f32 %v7191_v50, %v7175_v35  ;;  %v7185_v18 = vmul.f32 2.0, %v7161_v1 }
 0x578   : > { %v9467_v11 = vpop.eup %9466  ;;  %v7257_v36 = vmul.f32 %v9465_v39, %v7241_v31  ;;  %v7285_v40 = vsel %vm275_vm5, %v7277_v45, 0.0  ;;  %v7271_v52 = vmul.f32 %v9461_v47, %v7263_v56  ;;  %v7198_v33 = vmul.f32 %v7190_v63, %v7174_v15  ;;  %v8855_v6 = vpop.f32.mrb[38].mxu1 }
 0x579   : > { %v7256_v26 = vmul.f32 %v9467_v11, %v11325_v27  ;;  %v7284_v59 = vsel %vm275_vm5, %v7276_v23, 0.0  ;;  %v7270_v21 = vmul.f32 %v9463_v10, %v7262_v29  ;;  %v7193_v16 = vadd.f32 0.0009, %v7185_v18  ;;  %v7106_v4 = vpop.f32.mrb[39].mxu1 }
 0x57a   : > { %v7265_v54 = vsub.f32 2.0, %v7257_v36  ;;  %v7286_v22 = vadd.f32 %v7285_v40, %v7284_v59  ;;  %v7279_v12 = vmul.f32 %v7271_v52, %v7199_v24  ;;  %v7184_v9 = vmul.f32 2.0, %v7160_v62 }
 0x57b   : > { %v9469_v35 = vpop.eup %9468  ;;  %v7264_v57 = vsub.f32 2.0, %v7256_v26  ;;  %v7278_v43 = vmul.f32 %v7270_v21, %v7198_v33  ;;  %v7201_v31 = vmul.f32 %v7193_v16, %v7177_v2  ;;  %v7163_v30 = vsub.f32 %v8855_v6, %v11623_v32 }
 0x57c   : > { %v9471_v14 = vpop.eup %9470  ;;  %v7179_v15 = vadd.f32 0.0001, %v7171_v0  ;;  %v7259_v55 = vmul.f32 %v9469_v35, %v11334_v38  ;;  %v7273_v27 = vmul.f32 %v9465_v39, %v7265_v54  ;;  %v7192_v51 = vadd.f32 0.0009, %v7184_v9 }
 0x57d   : > { %v7258_v44 = vmul.f32 %v9471_v14, %v7242_v17  ;;  %v7287_v25 = vsel %vm275_vm5, %v7278_v43, 0.0  ;;  %v7272_v49 = vmul.f32 %v9467_v11, %v7264_v57  ;;  %v7187_v19 = vmul.f32 2.0, %v7163_v30 }
 0x57e   : > { %v7267_v28 = vsub.f32 2.0, %v7259_v55  ;;  %v7288_v42 = vadd.f32 %v7287_v25, %v7286_v22  ;;  %v7281_v46 = vmul.f32 %v7273_v27, %v7201_v31  ;;  %v7200_v47 = vmul.f32 %v7192_v51, %v11332_v7 }
 0x57f   : > { %v7266_v34 = vsub.f32 2.0, %v7258_v44  ;;  %v7289_v2 = vsel %vm275_vm5, %v7279_v12, 0.0  ;;  %v7195_v32 = vadd.f32 0.0009, %v7187_v19  ;;  %v7162_v0 = vsub.f32 %v7106_v4, %v11624_v60 }
 0x580   : > { %v7280_v37 = vmul.f32 %v7272_v49, %v7200_v47  ;;  %v7275_v38 = vmul.f32 %v9469_v35, %v7267_v28  ;;  %v7290_v3 = vadd.f32 %v7289_v2, %v7288_v42  ;;  %v7178_v41 = vadd.f32 0.0001, %v11341_v58 }
 0x581   : > { %v7203_v10 = vmul.f32 %v7195_v32, %v7179_v15  ;;  %v7186_v17 = vmul.f32 2.0, %v7162_v0  ;;  %v7274_v20 = vmul.f32 %v9471_v14, %v7266_v34  ;;  %v7293_v7 = vsel %vm275_vm5, %v7281_v46, 0.0 }
 0x582   : > { %v7291_v48 = vsel %vm275_vm5, %v7280_v37, 0.0 }
 0x583   : > { %v7194_v53 = vadd.f32 0.0009, %v7186_v17  ;;  %v7283_v61 = vmul.f32 %v7275_v38, %v7203_v10  ;;  %v7292_v5 = vadd.f32 %v7291_v48, %v7290_v3 }
 0x585   : > { %v7202_v8 = vmul.f32 %v7194_v53, %v7178_v41  ;;  %v7294_v50 = vadd.f32 %v7293_v7, %v7292_v5  ;;  %v7297_v56 = vsel %vm275_vm5, %v7283_v61, 0.0 }
 0x587   : > { %v7282_v1 = vmul.f32 %v7274_v20, %v7202_v8 }
 0x589   : > { %v7295_v60 = vsel %vm275_vm5, %v7282_v1, 0.0 }
 0x58a   : > { %v7296_v13 = vadd.f32 %v7295_v60, %v7294_v50 }
 0x58c   : > { %v7298_v45 = vadd.f32 %v7297_v56, %v7296_v13 }
 0x58e   : > { %7299 = vadd.xlane.f32.xlu0 %v7298_v45 }
 0x61b   : > { %v7300_v58 = vpop.xlane.xlu0 %7299 }
 0x61c   : > { %v7301_v63 = vrot.slane %v7300_v58, 4 }
 0x61e   : > { %v7302_v62 = vadd.f32 %v7301_v63, %v7300_v58 }
 0x620   : > { %v7303_v39 = vrot.slane %v7302_v62, 2 }
 0x622   : > { %v7304_v29 = vadd.f32 %v7303_v39, %v7302_v62 }
 0x624   : > { %v7305_v23 = vrot.slane %v7304_v29, 1 }
 0x626   : > { %v7306_v24 = vadd.f32 %v7305_v23, %v7304_v29 }
 0x628   : > { %9400 = vpush %v7306_v24 }
 0x659   : > { %s9401_s17 = spop %9400 }
 0x65a   : > { %v7308_v18 = vstv %s9401_s17 }
 0x65b   : > { %7309 = vst [vmem:[%s203_s5] sm:$0xff] %v7308_v18 }
 0x65c   : > { %9545 = shalt.err (!%p9542_p11)
}
 0x65d   : > { %s9546_s16 = scalar_lea.hbm %s11367_s26, 128  ;;  %s9550_s19 = scalar_lea.hbm %s11411_s2, 256 }
 0x65e   : > { %p9547_p3 = scmp.ne.s32.totalorder %s11367_s26, %s9546_s16  ;;  %p9551_p2 = scmp.lt.u32.totalorder %s11367_s26, %s11411_s2 }
 0x65f   : > { %p9552_p4 = scmp.lt.u32.totalorder %s9550_s19, %s9546_s16  ;;  %p9554_p13 = scmp.lt.u32.totalorder %s9546_s16, %s11367_s26 }
 0x660   : > { %p9548_p8 = pnand %p9547_p3, %p11625_p1 }
 0x661   : > { %p9553_p6 = por %p9552_p4, %p9551_p2 }
 0x662   : > { %p9549_p0 = pneg %p9548_p8 }
 0x663   : > { %p9555_p12 = por %p9554_p13, %p9553_p6 }
 0x665   : > { %p9556_p10 = pnand %p9555_p12, %p9549_p0 }
 0x667   : > { %9559 = shalt.err (!%p9556_p10)
}
 0x668   : > { %9406 = dma.vmem_to_hbm [thread:$0]  (%p11625_p1), %s11362_s6, 128, %s11367_s26, %s7311_s27  }
 0x669 PF: > { %s7336_s29 = sand.u32 1, %s9590_s9   ;;  %p11626_p5 = scmp.ne.s32.totalorder %s11503_s22, 0 }
 0x66a   : > { %p11627_p7 = scmp.ge.s32.totalorder %s9602_s12, 2  ;;  %s7337_s20 = scalar_lea.sflag [#allocation4], %s7336_s29 }
 0x66c   : > { %p9416_p9 = pnand %p11627_p7, %p11626_p5 }
 0x66e   : > { %9585 = dma.done.wait (!%p9416_p9), %s7337_s20, 128  }
 0x66f   : > { %9587 = vsyncadd (!%p9416_p9), %s7337_s20, 4294967168  ;;  %p18_p11 = scmp.ge.s32.totalorder %s9650_s15, 4   ;;  %s11628_s9 = smov %s9594_s10 }
 0x670   : > { %s11629_s10 = smov %s9598_s11  ;;  %s11630_s11 = smov %s9662_s18 }
 0x671   : > { %s11631_s12 = smov %s9650_s15  ;;  %20 = sbr.rel (!%p18_p11) target bundleno = 7 (0x7), region = 86 }
 0x678   :  { %7342 = vsyncpa [#allocation3], 1 }
 0x679   :  { %7344 = vsyncpa [#allocation3 + $0x1], 1 }
 0x67a   :  { %7345 = vsyncpa [#allocation6], 1 }
 0x67b   :  { %7347 = vsyncpa [#allocation6 + $0x1], 1 }
 0x67c   :  { %7348 = vsyncpa [#allocation4], 1 }
 0x67d   :  { %7350 = vsyncpa [#allocation4 + $0x1], 1 }

// kernel: tpu_custom_call.1
= control target key start
LH: loop header
LB: loop body
LE: loop exit
PB: predicated region body
PF: predicated region fallthrough
CT: control target
= control target key end

     0   :  { %7 = vsyncpa [#allocation3], 0  ;;  %s18895_s0 = inlined_call_operand.hbm [shape: f32[8,16,16], index: 0, kind: input, shape index: {}]   ;;  %s18896_s1 = inlined_call_operand.hbm [shape: f32[8,16,16], index: 1, kind: input, shape index: {}]   ;;  %s18897_s2 = inlined_call_operand.hbm [shape: f32[2,8,128], index: 2, kind: output, shape index: {}]  }
   0x1   :  { %9 = vsyncpa [#allocation3 + $0x1], 0 }
   0x2   :  { %10 = vsyncpa [#allocation6], 0 }
   0x3   :  { %12 = vsyncpa [#allocation6 + $0x1], 0 }
   0x4   :  { %13 = vsyncpa [#allocation4], 0 }
   0x5   :  { %15 = vsyncpa [#allocation4 + $0x1], 0  ;;  %s17011_s9 = smov 0   ;;  %s17013_s10 = smov 0  }
   0x6   :  { %s17015_s11 = smov 0   ;;  %s17017_s12 = smov 0  }
   0x7 LB: > { %s17032_s13 = sadd.s32 4294967295, %s16988_s12   ;;  %s13783_s14 = sadd.s32 4294967294, %s16988_s12   ;;  %s16988_s12 = sphi %s17017_s12, %s19108_s12   ;;  %s16984_s11 = sphi %s17015_s11, %s19107_s11   ;;  %s16980_s10 = sphi %s17013_s10, %s19106_s10   ;;  %s16976_s9 = sphi %s17011_s9, %s19105_s9  }
   0x8   : > { %s17036_s15 = sadd.s32 1, %s16988_s12   ;;  %s28_s16 = sadd.s32 1, %s16984_s11 }
   0x9   : > { %s25_s17 = ssub.s32 %s16988_s12, %s17036_s15  ;;  %p35_p0 = scmp.ne.s32.totalorder %s16984_s11, %s16980_s10 }
   0xa   : > { %p26_p1 = scmp.eq.s32.totalorder %s25_s17, 0  ;;  %p36_p2 = scmp.eq.s32.totalorder %s16988_s12, 0 }
   0xb   : > { %p41_p3 = scmp.ne.s32.totalorder %s16980_s10, %s16976_s9  ;;  %p42_p4 = scmp.eq.s32.totalorder %s17032_s13, 0 }
   0xc   : > { %s17048_s18 = scalar_select %p26_p1, %s16984_s11, %s28_s16  }
   0xd   : > { %p17050_p5 = por %p36_p2, %p35_p0  ;;  %p17054_p6 = por %p42_p4, %p41_p3 }
   0xe   : > { %p91_p7 = scmp.eq.s32.totalorder %s17032_s13, 1  ;;  %p97_p8 = scmp.eq.s32.totalorder %s13783_s14, 1 }
   0xf   : > { %s18983_s20 = scalar_select %p17054_p6, 1, 0 }
  0x10   : > { %p16805_p10 = scmp.lt.s32.totalorder %s16988_s12, 2  ;;  %p17061_p11 = por %p91_p7, %p35_p0 }
  0x11   : > { %p17065_p12 = por %p97_p8, %p41_p3  ;;  %s17070_s23 = sand.u32 1, %s16984_s11  }
  0x12   : > { %s18984_s21 = scalar_select %p17061_p11, 1, 0 }
  0x13   : > { %s18985_s22 = scalar_select %p17065_p12, 1, 0 }
  0x14   : > { %s13803_s24 = sshll.u32 %s16988_s12, 10  ;;  %s13786_s25 = sshll.u32 %s17070_s23, 6 }
  0x15   : > { %s17079_s28 = scalar_lea.hbm %s18895_s0, %s13803_s24  ;;  %s121_s29 = scalar_lea.vmem [#allocation2], %s13786_s25 }
  0x16   : > { %s129_s30 = sshll.u32 %s121_s29, 4  ;;  %p17085_p13 = pnand %p16805_p10, %p17050_p5  ;;  %s17089_s30 = int_to_ptr.vmem [resolvable:$true] %s129_s30 }
  0x17   : > { %s118_s4 = scalar_lea.sflag [#allocation3], %s17070_s23  ;;  %s16858_s5 = scalar_lea.hbm %s17079_s28, 1024 }
  0x18   : > { %p16859_p0 = scmp.ne.s32.totalorder %s17079_s28, %s16858_s5  ;;  %p16860_p1 = pneg %p17085_p13 }
  0x19   : > { %s16863_s8 = scalar_lea.hbm %s18895_s0, 2048  ;;  %p16864_p4 = scmp.lt.u32.totalorder %s17079_s28, %s18895_s0 }
  0x1a   : > { %p16861_p2 = pnand %p16860_p1, %p16859_p0  ;;  %p16865_p5 = scmp.lt.u32.totalorder %s16863_s8, %s16858_s5 }
  0x1b   : > { %p16867_p8 = scmp.lt.u32.totalorder %s16858_s5, %s17079_s28 }
  0x1c   : > { %p16862_p3 = pneg %p16861_p2  ;;  %p16866_p7 = por %p16865_p5, %p16864_p4 }
  0x1e   : > { %p16868_p10 = por %p16867_p8, %p16866_p7 }
  0x20   : > { %p16869_p9 = pnand %p16868_p10, %p16862_p3 }
  0x22   : > { %16872 = shalt.err (!%p16869_p9)
}
  0x23   : > { %s16873_s17 = scalar_lea.vmem %s17089_s30, 1024  ;;  %s16990_s19 = smov [#allocation2]  }
  0x24   : > { %p16874_p0 = scmp.ne.s32.totalorder %s17089_s30, %s16873_s17  ;;  %s16878_s26 = sshll.u32 %s16990_s19, 4  ;;  %s16879_s26 = int_to_ptr.vmem [resolvable:$false] %s16878_s26 }
  0x25   : > { %s16880_s27 = scalar_lea.vmem %s16879_s26, 2048  ;;  %p16881_p11 = scmp.lt.s32.totalorder %s17089_s30, %s16879_s26 }
  0x26   : > { %p16876_p2 = pnand %p16874_p0, %p16860_p1  ;;  %p16882_p4 = scmp.lt.s32.totalorder %s16880_s27, %s16873_s17 }
  0x28   : > { %p16877_p12 = pneg %p16876_p2  ;;  %p16883_p5 = por %p16882_p4, %p16881_p11 }
  0x2a   : > { %p16884_p7 = pnand %p16883_p5, %p16877_p12 }
  0x2c   : > { %16887 = shalt.err (!%p16884_p7)
}
  0x2d   : > { %s16991_s29 = smov 128   ;;  %s16992_s5 = smov 8  }
  0x2e   : > { %16797 = dma.hbm_to_vmem [thread:$0]  (!%p17085_p13), %s17079_s28, 1024, %s17089_s30, %s118_s4, %s16991_s29, %s16991_s29, %s16992_s5  }
  0x2f   : > { %p13794_p9 = scmp.ge.s32.totalorder %s16988_s12, 1  ;;  %p159_p11 = scmp.lt.s32.totalorder %s16988_s12, 3 }
  0x30   : > { %s17133_s14 = scalar_lea.hbm %s18896_s1, %s13803_s24  ;;  %s143_s16 = scalar_lea.vmem [#allocation5], %s13786_s25 }
  0x31   : > { %p17124_p12 = pnand %p13794_p9, %p159_p11  ;;  %s151_s17 = sshll.u32 %s143_s16, 4  ;;  %s17137_s17 = int_to_ptr.vmem [resolvable:$true] %s151_s17 }
  0x32   : > { %s140_s28 = scalar_lea.sflag [#allocation6], %s17070_s23  ;;  %s16888_s30 = scalar_lea.hbm %s17133_s14, 1024 }
  0x33   : > { %p16889_p3 = scmp.ne.s32.totalorder %s17133_s14, %s16888_s30  ;;  %s16893_s24 = scalar_lea.hbm %s18896_s1, 2048 }
  0x34   : > { %p16894_p0 = scmp.lt.u32.totalorder %s17133_s14, %s18896_s1  ;;  %p16895_p2 = scmp.lt.u32.totalorder %s16893_s24, %s16888_s30 }
  0x35   : > { %p16891_p8 = pnand %p16889_p3, %p16860_p1  ;;  %p16897_p5 = scmp.lt.u32.totalorder %s16888_s30, %s17133_s14 }
  0x36   : > { %p16896_p4 = por %p16895_p2, %p16894_p0 }
  0x37   : > { %p16892_p10 = pneg %p16891_p8 }
  0x38   : > { %p16898_p7 = por %p16897_p5, %p16896_p4 }
  0x3a   : > { %p16899_p9 = pnand %p16898_p7, %p16892_p10 }
  0x3c   : > { %16902 = shalt.err (!%p16899_p9)
}
  0x3d   : > { %s16903_s25 = scalar_lea.vmem %s17137_s17, 1024  ;;  %s16993_s7 = smov [#allocation5]  }
  0x3e   : > { %p16904_p11 = scmp.ne.s32.totalorder %s17137_s17, %s16903_s25  ;;  %s16908_s8 = sshll.u32 %s16993_s7, 4  ;;  %s16909_s8 = int_to_ptr.vmem [resolvable:$false] %s16908_s8 }
  0x3f   : > { %s16910_s16 = scalar_lea.vmem %s16909_s8, 2048  ;;  %p16911_p6 = scmp.lt.s32.totalorder %s17137_s17, %s16909_s8 }
  0x40   : > { %p16906_p3 = pnand %p16904_p11, %p16860_p1  ;;  %p16912_p0 = scmp.lt.s32.totalorder %s16910_s16, %s16903_s25 }
  0x42   : > { %p16907_p8 = pneg %p16906_p3  ;;  %p16913_p2 = por %p16912_p0, %p16911_p6 }
  0x44   : > { %p16914_p4 = pnand %p16913_p2, %p16907_p8 }
  0x46   : > { %16917 = shalt.err (!%p16914_p4)
}
  0x47   : > { %16800 = dma.hbm_to_vmem [thread:$0]  (!%p17085_p13), %s17133_s14, 1024, %s17137_s17, %s140_s28, %s16991_s29, %s16991_s29, %s16992_s5  }
  0x48   : > { %163 = sbr.rel (%p17124_p12) target bundleno = 1752 (0x6d8), region = 28 }
  0x4f   : > { %s17171_s30 = sand.u32 1, %s16980_s10   ;;  %p18988_p6 = scmp.ne.s32.totalorder %s18983_s20, 0 }
  0x50   : > { %s13795_s4 = sshll.u32 %s17171_s30, 6  ;;  %s166_s19 = scalar_lea.sflag [#allocation3], %s17171_s30 }
  0x51   : > { %s17175_s3 = scalar_lea.vmem [#allocation2], %s13795_s4 }
  0x52   : > { %16963 = dma.done.wait (%p18988_p6), %s166_s19, 1024  }
  0x53   : > { %16965 = vsyncadd (%p18988_p6), %s166_s19, 4294966272  ;;  %s175_s23 = scalar_lea.sflag [#allocation6], %s17171_s30  ;;  %s17182_s29 = scalar_lea.vmem [#allocation5], %s13795_s4 }
  0x54   : > { %16967 = dma.done.wait (%p18988_p6), %s175_s23, 1024  }
  0x55   : > { %16969 = vsyncadd (%p18988_p6), %s175_s23, 4294966272  ;;  %v222_v0 = vlaneseq  ;;  %v16994_v11 = vmov 0.0   ;;  %v17202_v47 = vld [vmem:[%s17175_s3] sm:$0xff]  ;;  %v17205_v48 = vld [vmem:[%s17175_s3 + $0x8] sm:$0xff]  ;;  %s13797_s20 = sshll.u32 %s17171_s30, 3  ;;  %s13799_s14 = sshll.u32 %s17032_s13, 7 }
  0x56   : > { %v17211_v55 = vld [vmem:[%s17175_s3 + $0x10] sm:$0xff]  ;;  %v17214_v56 = vld [vmem:[%s17175_s3 + $0x18] sm:$0xff]  ;;  %s203_s5 = scalar_lea.vmem [#allocation7], %s13797_s20  ;;  %s18853_s26 = scalar_lea.hbm %s18897_s2, %s13799_s14 }
  0x57   : > { %v223_v1 = vshrl.u32 %v222_v0, 7  ;;  %v226_v2 = vand.u32 127, %v222_v0  ;;  %s13690_s6 = sshll.u32 %s203_s5, 4  ;;  %s13677_s27 = scalar_lea.sflag [#allocation4], %s17171_s30  ;;  %s18848_s6 = int_to_ptr.vmem [resolvable:$true] %s13690_s6 }
  0x58   : > { %s16918_s25 = scalar_lea.vmem %s18848_s6, 128  ;;  %p19102_p1 = scmp.ne.s32.totalorder %s18984_s21, 0 }
  0x59   : > { %v224_v3 = vadd.s32 8, %v223_v1  ;;  %v227_v4 = vsub.s32 %v223_v1, %v226_v2  ;;  %v275_v5 = vsub.s32 %v226_v2, %v223_v1  ;;  %p16919_p13 = scmp.ne.s32.totalorder %s18848_s6, %s16918_s25  ;;  %s16995_s13 = smov [#allocation7]  }
  0x5a   : > { %s16922_s7 = sshll.u32 %s16995_s13, 4  ;;  %s16923_s7 = int_to_ptr.vmem [resolvable:$false] %s16922_s7 }
  0x5b   : > { %v228_v6 = vsub.s32 %v224_v3, %v226_v2  ;;  %v229_v7 = vadd.s32 5, %v227_v4  ;;  %v276_v8 = vsub.s32 %v226_v2, %v224_v3  ;;  %v17188_v9 = vadd.s32 5, %v275_v5  ;;  %p16920_p12 = pnand %p16919_p13, %p19102_p1  ;;  %s16924_s8 = scalar_lea.vmem %s16923_s7, 256 }
  0x5c   : > { %p16925_p5 = scmp.lt.s32.totalorder %s18848_s6, %s16923_s7  ;;  %p16926_p7 = scmp.lt.s32.totalorder %s16924_s8, %s16918_s25 }
  0x5d   : > { %v230_v10 = vadd.s32 5, %v228_v6  ;;  %vm231_vm0 = vcmp.eq.s32.totalorder %v229_v7, 0  ;;  %vm235_vm1 = vcmp.eq.s32.totalorder %v229_v7, 1  ;;  %vm239_vm2 = vcmp.eq.s32.totalorder %v229_v7, 2  ;;  %p16921_p10 = pneg %p16920_p12 }
  0x5e   : > { %v233_v12 = vsel %vm231_vm0, 0.0003202979, %v16994_v11  ;;  %vm243_vm3 = vcmp.eq.s32.totalorder %v229_v7, 3  ;;  %vm247_vm4 = vcmp.eq.s32.totalorder %v229_v7, 4  ;;  %vm251_vm5 = vcmp.eq.s32.totalorder %v229_v7, 5  ;;  %p16927_p9 = por %p16926_p7, %p16925_p5 }
  0x5f   : > { %vm232_vm6 = vcmp.eq.s32.totalorder %v230_v10, 0  ;;  %vm236_vm7 = vcmp.eq.s32.totalorder %v230_v10, 1  ;;  %v237_v13 = vsel %vm235_vm1, 0.0029556495, %v233_v12  ;;  %vm240_vm8 = vcmp.eq.s32.totalorder %v230_v10, 2 }
  0x60   : > { %v234_v14 = vsel %vm232_vm6, 0.0003202979, %v16994_v11  ;;  %v241_v15 = vsel %vm239_vm2, 0.017487673, %v237_v13  ;;  %vm244_vm9 = vcmp.eq.s32.totalorder %v230_v10, 3  ;;  %vm248_vm10 = vcmp.eq.s32.totalorder %v230_v10, 4  ;;  %p16928_p11 = pnand %p16927_p9, %p16921_p10 }
  0x61   : > { %v238_v16 = vsel %vm236_vm7, 0.0029556495, %v234_v14  ;;  %v245_v17 = vsel %vm243_vm3, 0.06634242, %v241_v15  ;;  %vm252_vm11 = vcmp.eq.s32.totalorder %v230_v10, 5  ;;  %vm255_vm12 = vcmp.eq.s32.totalorder %v229_v7, 6 }
  0x62   : > { %v242_v18 = vsel %vm240_vm8, 0.017487673, %v238_v16  ;;  %v249_v19 = vsel %vm247_vm4, 0.16137299, %v245_v17  ;;  %vm256_vm13 = vcmp.eq.s32.totalorder %v230_v10, 6  ;;  %vm259_vm14 = vcmp.eq.s32.totalorder %v229_v7, 7 }
  0x63   : > { %v246_v20 = vsel %vm244_vm9, 0.06634242, %v242_v18  ;;  %v253_v21 = vsel %vm251_vm5, 0.25168112, %v249_v19  ;;  %vm260_vm15 = vcmp.eq.s32.totalorder %v230_v10, 7  ;;  %vm263_vm0 = vcmp.eq.s32.totalorder %v229_v7, 8 }
  0x64   : > { %v250_v22 = vsel %vm248_vm10, 0.16137299, %v246_v20  ;;  %v257_v23 = vsel %vm255_vm12, 0.25168112, %v253_v21  ;;  %vm264_vm1 = vcmp.eq.s32.totalorder %v230_v10, 8  ;;  %vm267_vm6 = vcmp.eq.s32.totalorder %v229_v7, 9 }
  0x65   : > { %v254_v24 = vsel %vm252_vm11, 0.25168112, %v250_v22  ;;  %v261_v25 = vsel %vm259_vm14, 0.16137299, %v257_v23  ;;  %vm268_vm2 = vcmp.eq.s32.totalorder %v230_v10, 9  ;;  %vm271_vm7 = vcmp.eq.s32.totalorder %v229_v7, 10 }
  0x66   : > { %v258_v26 = vsel %vm256_vm13, 0.25168112, %v254_v24  ;;  %v265_v27 = vsel %vm263_vm0, 0.06634242, %v261_v25  ;;  %vm272_vm3 = vcmp.eq.s32.totalorder %v230_v10, 10  ;;  %v278_v28 = vadd.s32 5, %v276_v8 }
  0x67   : > { %v262_v29 = vsel %vm260_vm15, 0.16137299, %v258_v26  ;;  %v269_v30 = vsel %vm267_vm6, 0.017487673, %v265_v27  ;;  %vm279_vm4 = vcmp.eq.s32.totalorder %v17188_v9, 0  ;;  %vm283_vm5 = vcmp.eq.s32.totalorder %v17188_v9, 1 }
  0x68   : > { %v266_v31 = vsel %vm264_vm1, 0.06634242, %v262_v29  ;;  %v273_v32 = vsel %vm271_vm7, 0.0029556495, %v269_v30  ;;  %vm280_vm8 = vcmp.eq.s32.totalorder %v278_v28, 0  ;;  %vm284_vm9 = vcmp.eq.s32.totalorder %v278_v28, 1 }
  0x69   : > { %v270_v33 = vsel %vm268_vm2, 0.017487673, %v266_v31  ;;  %v281_v34 = vsel %vm279_vm4, 0.0003202979, %v16994_v11  ;;  %v282_v35 = vsel %vm280_vm8, 0.0003202979, %v16994_v11 }
  0x6a   : > { %vm323_vm10 = vcmask 130048   ;;  %v17193_v36 = vsel %vm272_vm3, 0.0029556495, %v270_v33  ;;  %v285_v37 = vsel %vm283_vm5, 0.0029556495, %v281_v34  ;;  %vm287_vm11 = vcmp.eq.s32.totalorder %v17188_v9, 2 }
  0x6b   : > { %v286_v38 = vsel %vm284_vm9, 0.0029556495, %v282_v35  ;;  %vm288_vm12 = vcmp.eq.s32.totalorder %v278_v28, 2  ;;  %vm291_vm13 = vcmp.eq.s32.totalorder %v17188_v9, 3  ;;  %vm292_vm14 = vcmp.eq.s32.totalorder %v278_v28, 3  ;;  %v17242_v8 = vld [vmem:[%s17175_s3 + $0x20] sm:$0xff] }
  0x6c   : > { %v289_v39 = vsel %vm287_vm11, 0.017487673, %v285_v37  ;;  %v290_v40 = vsel %vm288_vm12, 0.017487673, %v286_v38  ;;  %vm295_vm15 = vcmp.eq.s32.totalorder %v17188_v9, 4  ;;  %vm296_vm0 = vcmp.eq.s32.totalorder %v278_v28, 4 }
  0x6d   : > { %v293_v41 = vsel %vm291_vm13, 0.06634242, %v289_v39  ;;  %v294_v42 = vsel %vm292_vm14, 0.06634242, %v290_v40  ;;  %vm299_vm1 = vcmp.eq.s32.totalorder %v17188_v9, 5  ;;  %vm300_vm6 = vcmp.eq.s32.totalorder %v278_v28, 5 }
  0x6e   : > { %v297_v43 = vsel %vm295_vm15, 0.16137299, %v293_v41  ;;  %v298_v44 = vsel %vm296_vm0, 0.16137299, %v294_v42  ;;  %vm303_vm2 = vcmp.eq.s32.totalorder %v17188_v9, 6  ;;  %vm304_vm7 = vcmp.eq.s32.totalorder %v278_v28, 6 }
  0x6f   : > { %v301_v45 = vsel %vm299_vm1, 0.25168112, %v297_v43  ;;  %v302_v46 = vsel %vm300_vm6, 0.25168112, %v298_v44  ;;  %vm307_vm3 = vcmp.eq.s32.totalorder %v17188_v9, 7  ;;  %vm308_vm4 = vcmp.eq.s32.totalorder %v278_v28, 7 }
  0x70   : > { %v305_v49 = vsel %vm303_vm2, 0.25168112, %v301_v45  ;;  %v306_v50 = vsel %vm304_vm7, 0.25168112, %v302_v46  ;;  %vm311_vm5 = vcmp.eq.s32.totalorder %v17188_v9, 8  ;;  %vm312_vm8 = vcmp.eq.s32.totalorder %v278_v28, 8 }
  0x71   : > { %v309_v51 = vsel %vm307_vm3, 0.16137299, %v305_v49  ;;  %v310_v52 = vsel %vm308_vm4, 0.16137299, %v306_v50  ;;  %vm315_vm9 = vcmp.eq.s32.totalorder %v17188_v9, 9  ;;  %vm316_vm11 = vcmp.eq.s32.totalorder %v278_v28, 9 }
  0x72   : > { %v313_v53 = vsel %vm311_vm5, 0.06634242, %v309_v51  ;;  %v314_v54 = vsel %vm312_vm8, 0.06634242, %v310_v52  ;;  %vm319_vm12 = vcmp.eq.s32.totalorder %v17188_v9, 10  ;;  %vm320_vm13 = vcmp.eq.s32.totalorder %v278_v28, 10 }
  0x73   : > { %v317_v57 = vsel %vm315_vm9, 0.017487673, %v313_v53  ;;  %v318_v58 = vsel %vm316_vm11, 0.017487673, %v314_v54  ;;  %v349_v59 = vand.u32 4294901760, %v273_v32  ;;  %v352_v60 = vand.u32 4294901760, %v17193_v36 }
  0x74   : > { %v17217_v61 = vsel %vm319_vm12, 0.0029556495, %v317_v57  ;;  %v17219_v62 = vsel %vm320_vm13, 0.0029556495, %v318_v58  ;;  %v325_v63 = vsel %vm323_vm10, %v17202_v47, 0  ;;  %v328_v0 = vsel %vm323_vm10, %v17205_v48, 0 }
  0x75   : > { %v17225_v1 = vpack.c.bf16 %v352_v60, %v349_v59  ;;  %v17227_v2 = vand.u32 4294901760, %v325_v63  ;;  %v17229_v3 = vand.u32 4294901760, %v328_v0  ;;  %v331_v5 = vsel %vm323_vm10, %v17211_v55, 0  ;;  %v17254_v13 = vld [vmem:[%s17175_s3 + $0x28] sm:$0xff]  ;;  %v17284_v26 = vld [vmem:[%s17175_s3 + $0x30] sm:$0xff]  ;;  %v17292_v31 = vld [vmem:[%s17175_s3 + $0x38] sm:$0xff] }
  0x76   : > { %v334_v6 = vsel %vm323_vm10, %v17214_v56, 0  ;;  %v17239_v7 = vsub.f32 %v273_v32, %v349_v59  ;;  %v17249_v11 = vand.u32 4294901760, %v331_v5  ;;  %v17259_v16 = vsub.f32 %v17193_v36, %v352_v60 }
  0x77   : > { %15835 = vmatprep.subr.bf16.mxu0 %v17225_v1  ;;  %v17233_v4 = vsub.f32 %v325_v63, %v17227_v2  ;;  %v17246_v9 = vsub.f32 %v328_v0, %v17229_v3  ;;  %v17251_v12 = vand.u32 4294901760, %v334_v6  ;;  %v337_v17 = vsel %vm323_vm10, %v17242_v8, 0 }
  0x78   : > { %15837 = vmatpush3.bf16.msra.mxu0 %v17225_v1  ;;  %v498_v15 = vand.u32 4294901760, %v17239_v7  ;;  %v17267_v19 = vsub.f32 %v331_v5, %v17249_v11  ;;  %v17272_v21 = vand.u32 4294901760, %v337_v17  ;;  %v505_v24 = vand.u32 4294901760, %v17259_v16 }
  0x79   : > { %v417_v10 = vand.u32 4294901760, %v17233_v4  ;;  %v427_v14 = vand.u32 4294901760, %v17246_v9  ;;  %v17270_v20 = vsub.f32 %v334_v6, %v17251_v12  ;;  %v340_v25 = vsel %vm323_vm10, %v17254_v13, 0 }
  0x7a   : > { %v499_v23 = vsub.f32 %v17239_v7, %v498_v15  ;;  %v437_v28 = vand.u32 4294901760, %v17267_v19  ;;  %v17289_v30 = vsub.f32 %v337_v17, %v17272_v21  ;;  %v506_v34 = vsub.f32 %v17259_v16, %v505_v24 }
  0x7b   : > { %v418_v18 = vsub.f32 %v17233_v4, %v417_v10  ;;  %v428_v22 = vsub.f32 %v17246_v9, %v427_v14  ;;  %v447_v29 = vand.u32 4294901760, %v17270_v20  ;;  %v17295_v35 = vand.u32 4294901760, %v340_v25 }
  0x7c   : > { %v500_v33 = vand.u32 4294901760, %v499_v23  ;;  %v438_v36 = vsub.f32 %v17267_v19, %v437_v28  ;;  %v457_v38 = vand.u32 4294901760, %v17289_v30  ;;  %v343_v39 = vsel %vm323_vm10, %v17284_v26, 0 }
  0x7d   : > { %v419_v27 = vand.u32 4294901760, %v418_v18  ;;  %v429_v32 = vand.u32 4294901760, %v428_v22  ;;  %v448_v37 = vsub.f32 %v17270_v20, %v447_v29  ;;  %v507_v40 = vand.u32 4294901760, %v506_v34 }
  0x7e   : > { %v466_v41 = vsub.f32 %v340_v25, %v17295_v35  ;;  %v17307_v42 = vand.u32 4294901760, %v343_v39  ;;  %v346_v43 = vsel %vm323_vm10, %v17292_v31, 0  ;;  %v439_v44 = vand.u32 4294901760, %v438_v36 }
  0x7f   : > { %14566 = vmatprep.mubr.f32.mxu0 %v419_v27  ;;  %v449_v45 = vand.u32 4294901760, %v448_v37  ;;  %v458_v46 = vsub.f32 %v17289_v30, %v457_v38  ;;  %v17312_v49 = vand.u32 4294901760, %v346_v43  ;;  %v17314_v50 = vpack.c.bf16 %v507_v40, %v500_v33  ;;  %v17427_v37 = vld [vmem:[%s17182_s29 + $0x38] sm:$0xff] }
  0x80   : > { %14567 = vmatmul.mubr.f32.vlgmr.msra.gmra.mrb[0].mxu0 %v429_v32  ;;  %v467_v51 = vand.u32 4294901760, %v466_v41  ;;  %v476_v52 = vsub.f32 %v343_v39, %v17307_v42  ;;  %v17319_v53 = vpack.c.bf16 %v17259_v16, %v17239_v7  ;;  %v17338_v17 = vpack.c.bf16 %v505_v24, %v498_v15 }
  0x81   : > { %14569 = vmatprep.mubr.f32.mxu0 %v439_v44  ;;  %v459_v54 = vand.u32 4294901760, %v458_v46  ;;  %v486_v57 = vsub.f32 %v346_v43, %v17312_v49  ;;  %15839 = vmatprep.subr.bf16.mxu0 %v17314_v50 }
  0x82   : > { %v468_v58 = vsub.f32 %v466_v41, %v467_v51  ;;  %v477_v59 = vand.u32 4294901760, %v476_v52  ;;  %15841 = vmatpush3.bf16.msra.mxu0 %v17314_v50 }
  0x83   : > { %v487_v60 = vand.u32 4294901760, %v486_v57  ;;  %15843 = vmatprep.subr.bf16.mxu0 %v17319_v53 }
  0x84   : > { %14570 = vmatmul.mubr.f32.gmra.mrb[2].mxu0 %v449_v45  ;;  %v469_v63 = vand.u32 4294901760, %v468_v58  ;;  %v478_v0 = vsub.f32 %v476_v52, %v477_v59 }
  0x85   : > { %14572 = vmatprep.mubr.f32.mxu0 %v459_v54  ;;  %v488_v5 = vsub.f32 %v486_v57, %v487_v60 }
  0x86   : > { %v479_v6 = vand.u32 4294901760, %v478_v0 }
  0x87   : > { %v489_v16 = vand.u32 4294901760, %v488_v5 }
  0x88   : > { %14573 = vmatmul.mubr.f32.gmra.mrb[4].mxu0 %v469_v63 }
  0x89   : > { %14575 = vmatprep.mubr.f32.mxu0 %v479_v6 }
  0x8c   : > { %14576 = vmatmul.mubr.f32.gmra.mrb[6].mxu0 %v489_v16 }
  0x8d   : > { %14582 = vmatprep.mubr.f32.mxu0 %v17227_v2 }
  0x90   : > { %14583 = vmatmul.mubr.f32.vlgmr.msra.gmra.mrb[0].mxu0 %v17229_v3 }
  0x91   : > { %14585 = vmatprep.mubr.f32.mxu0 %v17249_v11  ;;  %15845 = vmatpush3.bf16.msra.mxu0 %v17319_v53 }
  0x92   : > { %15847 = vmatprep.subr.bf16.mxu0 %v17225_v1 }
  0x94   : > { %14586 = vmatmul.mubr.f32.gmra.mrb[2].mxu0 %v17251_v12 }
  0x95   : > { %14588 = vmatprep.mubr.f32.mxu0 %v17272_v21 }
  0x98   : > { %14589 = vmatmul.mubr.f32.gmra.mrb[4].mxu0 %v17295_v35 }
  0x99   : > { %14591 = vmatprep.mubr.f32.mxu0 %v17307_v42 }
  0x9c   : > { %14592 = vmatmul.mubr.f32.gmra.mrb[6].mxu0 %v17312_v49 }
  0x9d   : > { %14598 = vmatprep.mubr.f32.mxu0 %v17233_v4  ;;  %v17361_v4 = vld [vmem:[%s17182_s29] sm:$0xff] }
  0x9e   : > { %v3123_v7 = vsel %vm323_vm10, %v17361_v4, 0 }
  0xa0   : > { %14599 = vmatmul.mubr.f32.vlgmr.msra.gmra.mrb[0].mxu0 %v17246_v9  ;;  %v17369_v9 = vld [vmem:[%s17182_s29 + $0x8] sm:$0xff] }
  0xa1   : > { %14601 = vmatprep.mubr.f32.mxu0 %v17267_v19  ;;  %15849 = vmatpush3.bf16.msra.mxu0 %v17225_v1  ;;  %v3126_v15 = vsel %vm323_vm10, %v17369_v9, 0  ;;  %v17383_v19 = vld [vmem:[%s17182_s29 + $0x18] sm:$0xff] }
  0xa2   : > { %15851 = vmatprep.subr.bf16.mxu0 %v17338_v17  ;;  %v17392_v23 = vand.u32 4294901760, %v3126_v15  ;;  %v3132_v25 = vsel %vm323_vm10, %v17383_v19, 0 }
  0xa4   : > { %14602 = vmatmul.mubr.f32.gmra.mrb[2].mxu0 %v17270_v20  ;;  %v17386_v20 = vld [vmem:[%s17182_s29 + $0x20] sm:$0xff]  ;;  %v17410_v32 = vsub.f32 %v3126_v15, %v17392_v23 }
  0xa5   : > { %14604 = vmatprep.mubr.f32.mxu0 %v17289_v30  ;;  %v3135_v27 = vsel %vm323_vm10, %v17386_v20, 0 }
  0xa6   : > { %v17419_v34 = vand.u32 4294901760, %v3135_v27 }
  0xa8   : > { %14605 = vmatmul.mubr.f32.gmra.mrb[4].mxu0 %v466_v41  ;;  %v17442_v43 = vsub.f32 %v3135_v27, %v17419_v34 }
  0xa9   : > { %14607 = vmatprep.mubr.f32.mxu0 %v476_v52 }
  0xac   : > { %14608 = vmatmul.mubr.f32.gmra.mrb[6].mxu0 %v486_v57  ;;  %v3255_v57 = vand.u32 4294901760, %v17442_v43 }
  0xad   : > { %14614 = vmatprep.mubr.f32.mxu0 %v417_v10  ;;  %v17372_v10 = vld [vmem:[%s17182_s29 + $0x10] sm:$0xff] }
  0xae   : > { %v3129_v18 = vsel %vm323_vm10, %v17372_v10, 0  ;;  %v3256_v5 = vsub.f32 %v17442_v43, %v3255_v57 }
  0xaf   : > { %v17395_v24 = vand.u32 4294901760, %v3129_v18 }
  0xb0   : > { %14615 = vmatmul.mubr.f32.vlgmr.msra.gmra.mrb[0].mxu0 %v427_v14  ;;  %v17375_v14 = vand.u32 4294901760, %v3123_v7  ;;  %v3257_v15 = vand.u32 4294901760, %v3256_v5 }
  0xb1   : > { %14617 = vmatprep.mubr.f32.mxu0 %v437_v28  ;;  %15853 = vmatpush3.bf16.msra.mxu0 %v17338_v17  ;;  %v17402_v28 = vld [vmem:[%s17182_s29 + $0x28] sm:$0xff]  ;;  %v17417_v33 = vsub.f32 %v3129_v18, %v17395_v24 }
  0xb2   : > { %15855 = vmatprep.subr.bf16.mxu0 %v17225_v1  ;;  %v17390_v22 = vsub.f32 %v3123_v7, %v17375_v14  ;;  %v3138_v36 = vsel %vm323_vm10, %v17402_v28, 0 }
  0xb3   : > { %v17437_v40 = vand.u32 4294901760, %v3138_v36  ;;  %v3235_v41 = vand.u32 4294901760, %v17417_v33 }
  0xb4   : > { %14618 = vmatmul.mubr.f32.gmra.mrb[2].mxu0 %v447_v29  ;;  %v17405_v29 = vld [vmem:[%s17182_s29 + $0x30] sm:$0xff]  ;;  %v3215_v30 = vand.u32 4294901760, %v17390_v22 }
  0xb5   : > { %14620 = vmatprep.mubr.f32.mxu0 %v457_v38  ;;  %v3225_v38 = vand.u32 4294901760, %v17410_v32  ;;  %v3236_v54 = vsub.f32 %v17417_v33, %v3235_v41 }
  0xb7   : > { %v3226_v45 = vsub.f32 %v17410_v32, %v3225_v38  ;;  %v3237_v0 = vand.u32 4294901760, %v3236_v54 }
  0xb8   : > { %14621 = vmatmul.mubr.f32.gmra.mrb[4].mxu0 %v467_v51 }
  0xb9   : > { %14623 = vmatprep.mubr.f32.mxu0 %v477_v59 }
  0xbc   : > { %14624 = vmatmul.mubr.f32.gmra.mrb[6].mxu0 %v487_v60 }
  0xbd   : > { %14630 = vmatprep.mubr.f32.mxu0 %v17227_v2 }
  0xc0   : > { %14631 = vmatmul.mubr.f32.vlgmr.msra.gmra.mrb[0].mxu0 %v17229_v3 }
  0xc1   : > { %14633 = vmatprep.mubr.f32.mxu0 %v17249_v11  ;;  %15857 = vmatpush3.bf16.msra.mxu0 %v17225_v1 }
  0xc2   : > { %15955 = vmatprep.subr.bf16.mxu0 %v17225_v1 }
  0xc4   : > { %14634 = vmatmul.mubr.f32.gmra.mrb[2].mxu0 %v17251_v12 }
  0xc5   : > { %14636 = vmatprep.mubr.f32.mxu0 %v17272_v21 }
  0xc8   : > { %14637 = vmatmul.mubr.f32.gmra.mrb[4].mxu0 %v17295_v35 }
  0xc9   : > { %14639 = vmatprep.mubr.f32.mxu0 %v17307_v42 }
  0xcc   : > { %14640 = vmatmul.mubr.f32.gmra.mrb[6].mxu0 %v17312_v49 }
  0xcd   : > { %14646 = vmatprep.mubr.f32.mxu0 %v17227_v2  ;;  %v17412_v2 = vand.u32 4294901760, %v3132_v25 }
  0xcf   : > { %v17435_v39 = vsub.f32 %v3132_v25, %v17412_v2 }
  0xd0   : > { %14647 = vmatmul.mubr.f32.vlgmr.msra.gmra.mrb[0].mxu0 %v17229_v3  ;;  %v3141_v3 = vsel %vm323_vm10, %v17405_v29, 0 }
  0xd1   : > { %14649 = vmatprep.mubr.f32.mxu0 %v17249_v11  ;;  %15957 = vmatpush3.bf16.msra.mxu0 %v17225_v1  ;;  %v3216_v11 = vsub.f32 %v17390_v22, %v3215_v30  ;;  %v17444_v44 = vand.u32 4294901760, %v3141_v3  ;;  %v3245_v46 = vand.u32 4294901760, %v17435_v39 }
  0xd2   : > { %15959 = vmatprep.subr.bf16.mxu0 %v17314_v50 }
  0xd3   : > { %v3217_v52 = vand.u32 4294901760, %v3216_v11  ;;  %v3274_v58 = vsub.f32 %v3141_v3, %v17444_v44  ;;  %v3246_v59 = vsub.f32 %v17435_v39, %v3245_v46  ;;  %v5916_v3 = vmul.f32 %v17211_v55, %v17211_v55 }
  0xd4   : > { %14650 = vmatmul.mubr.f32.gmra.mrb[2].mxu0 %v17251_v12  ;;  %v3144_v12 = vsel %vm323_vm10, %v17427_v37, 0 }
  0xd5   : > { %14652 = vmatprep.mubr.f32.mxu0 %v17272_v21  ;;  %v3264_v21 = vsub.f32 %v3138_v36, %v17437_v40  ;;  %v17454_v51 = vand.u32 4294901760, %v3144_v12  ;;  %v3247_v6 = vand.u32 4294901760, %v3246_v59 }
  0xd7   : > { %v3265_v60 = vand.u32 4294901760, %v3264_v21  ;;  %v3284_v63 = vsub.f32 %v3144_v12, %v17454_v51 }
  0xd8   : > { %14653 = vmatmul.mubr.f32.gmra.mrb[4].mxu0 %v17295_v35  ;;  %v3227_v35 = vand.u32 4294901760, %v3226_v45  ;;  %v5945_v45 = vsel %vm323_vm10, %v5916_v3, 0 }
  0xd9   : > { %14655 = vmatprep.mubr.f32.mxu0 %v17307_v42  ;;  %v3275_v42 = vand.u32 4294901760, %v3274_v58  ;;  %v3266_v16 = vsub.f32 %v3264_v21, %v3265_v60  ;;  %v3285_v7 = vand.u32 4294901760, %v3284_v63 }
  0xdb   : > { %v3267_v18 = vand.u32 4294901760, %v3266_v16  ;;  %v3286_v25 = vsub.f32 %v3284_v63, %v3285_v7 }
  0xdc   : > { %14656 = vmatmul.mubr.f32.gmra.mrb[6].mxu0 %v17312_v49  ;;  %v3276_v49 = vsub.f32 %v3274_v58, %v3275_v42 }
  0xdd   : > { %14830 = vmatprep.mubr.f32.mxu0 %v3217_v52  ;;  %v3287_v36 = vand.u32 4294901760, %v3286_v25 }
  0xde   : > { %v3277_v27 = vand.u32 4294901760, %v3276_v49  ;;  %v5922_v49 = vmul.f32 %v17361_v4, %v17361_v4 }
  0xe0   : > { %14831 = vmatmul.mubr.f32.vlgmr.msra.gmra.mrb[8].mxu0 %v3227_v35  ;;  %v5920_v35 = vmul.f32 %v17284_v26, %v17284_v26  ;;  %v5963_v3 = vsel %vm323_vm10, %v5922_v49, 0 }
  0xe1   : > { %14833 = vmatprep.mubr.f32.mxu0 %v3237_v0  ;;  %15961 = vmatpush3.bf16.msra.mxu0 %v17314_v50 }
  0xe2   : > { %15963 = vmatprep.subr.bf16.mxu0 %v17319_v53 }
  0xe4   : > { %14834 = vmatmul.mubr.f32.gmra.mrb[10].mxu0 %v3247_v6  ;;  %v5957_v6 = vsel %vm323_vm10, %v5920_v35, 0  ;;  %v17608_v35 = vand.u32 4294901760, %v5963_v3 }
  0xe5   : > { %14836 = vmatprep.mubr.f32.mxu0 %v3257_v15  ;;  %v17570_v25 = vand.u32 4294901760, %v5957_v6 }
  0xe6   : > { %18994 = vst [vmem:[#allocation16_spill] sm:$0xff] %v17608_v35 }
  0xe7   : > { %18992 = vst [vmem:[#allocation14_spill] sm:$0xff] %v17570_v25 }
  0xe8   : > { %14837 = vmatmul.mubr.f32.gmra.mrb[12].mxu0 %v3267_v18 }
  0xe9   : > { %14839 = vmatprep.mubr.f32.mxu0 %v3277_v27 }
  0xec   : > { %14840 = vmatmul.mubr.f32.gmra.mrb[14].mxu0 %v3287_v36  ;;  %v5923_v36 = vmul.f32 %v17369_v9, %v17369_v9 }
  0xed   : > { %14846 = vmatprep.mubr.f32.mxu0 %v17375_v14 }
  0xf0   : > { %14847 = vmatmul.mubr.f32.vlgmr.msra.gmra.mrb[8].mxu0 %v17392_v23 }
  0xf1   : > { %14849 = vmatprep.mubr.f32.mxu0 %v17395_v24  ;;  %15965 = vmatpush3.bf16.msra.mxu0 %v17319_v53 }
  0xf2   : > { %15967 = vmatprep.subr.bf16.mxu0 %v17225_v1 }
  0xf4   : > { %14850 = vmatmul.mubr.f32.gmra.mrb[10].mxu0 %v17412_v2 }
  0xf5   : > { %14852 = vmatprep.mubr.f32.mxu0 %v17419_v34 }
  0xf8   : > { %14853 = vmatmul.mubr.f32.gmra.mrb[12].mxu0 %v17437_v40 }
  0xf9   : > { %14855 = vmatprep.mubr.f32.mxu0 %v17444_v44 }
  0xfc   : > { %14856 = vmatmul.mubr.f32.gmra.mrb[14].mxu0 %v17454_v51 }
  0xfd   : > { %14862 = vmatprep.mubr.f32.mxu0 %v17390_v22 }
 0x100   : > { %14863 = vmatmul.mubr.f32.vlgmr.msra.gmra.mrb[8].mxu0 %v17410_v32  ;;  %v5914_v32 = vmul.f32 %v17202_v47, %v17202_v47 }
 0x101   : > { %14865 = vmatprep.mubr.f32.mxu0 %v17417_v33  ;;  %15969 = vmatpush3.bf16.msra.mxu0 %v17225_v1  ;;  %v1109_v33 = vsel %vm323_vm10, %v17217_v61, 0  ;;  %v5915_v61 = vmul.f32 %v17205_v48, %v17205_v48 }
 0x102   : > { %15971 = vmatprep.subr.bf16.mxu0 %v17338_v17  ;;  %v17492_v22 = vand.u32 4294901760, %v1109_v33  ;;  %v5939_v11 = vsel %vm323_vm10, %v5914_v32, 0 }
 0x103   : > { %v17520_v12 = vand.u32 4294901760, %v5939_v11 }
 0x104   : > { %14866 = vmatmul.mubr.f32.gmra.mrb[10].mxu0 %v17435_v39  ;;  %v5917_v39 = vmul.f32 %v17214_v56, %v17214_v56 }
 0x105   : > { %14868 = vmatprep.mubr.f32.mxu0 %v17442_v43  ;;  %v17540_v59 = vsub.f32 %v5939_v11, %v17520_v12  ;;  %v5924_v11 = vmul.f32 %v17372_v10, %v17372_v10 }
 0x106   : > { %v5948_v54 = vsel %vm323_vm10, %v5917_v39, 0  ;;  %v17595_v39 = vsub.f32 %v5957_v6, %v17570_v25 }
 0x107   : > { %v18903_v16 = vand.u32 4294901760, %v17540_v59  ;;  %v5969_v6 = vsel %vm323_vm10, %v5924_v11, 0 }
 0x108   : > { %14869 = vmatmul.mubr.f32.gmra.mrb[12].mxu0 %v3264_v21  ;;  %v18908_v49 = vand.u32 4294901760, %v17595_v39 }
 0x109   : > { %14871 = vmatprep.mubr.f32.mxu0 %v3274_v58  ;;  %v17533_v58 = vand.u32 4294901760, %v5945_v45 }
 0x10c   : > { %14872 = vmatmul.mubr.f32.gmra.mrb[14].mxu0 %v3284_v63 }
 0x10d   : > { %14878 = vmatprep.mubr.f32.mxu0 %v3215_v30  ;;  %v17498_v30 = vsub.f32 %v1109_v33, %v17492_v22  ;;  %v6080_v33 = vsub.f32 %v17540_v59, %v18903_v16 }
 0x10f   : > { %18989 = vst [vmem:[#allocation11_spill] sm:$0xff] %v17498_v30 }
 0x110   : > { %14879 = vmatmul.mubr.f32.vlgmr.msra.gmra.mrb[8].mxu0 %v3225_v38  ;;  %v17511_v38 = vand.u32 4294901760, %v17498_v30 }
 0x111   : > { %14881 = vmatprep.mubr.f32.mxu0 %v3235_v41  ;;  %15973 = vmatpush3.bf16.msra.mxu0 %v17338_v17  ;;  %v5942_v41 = vsel %vm323_vm10, %v5915_v61, 0 }
 0x112   : > { %15975 = vmatprep.subr.bf16.mxu0 %v17225_v1  ;;  %18990 = vst [vmem:[#allocation12_spill] sm:$0xff] %v17511_v38  ;;  %v1184_v43 = vsub.f32 %v17498_v30, %v17511_v38  ;;  %v17527_v52 = vand.u32 4294901760, %v5942_v41 }
 0x114   : > { %14882 = vmatmul.mubr.f32.gmra.mrb[10].mxu0 %v3245_v46  ;;  %v5918_v46 = vmul.f32 %v17242_v8, %v17242_v8  ;;  %v17525_v21 = vand.u32 4294901760, %v1184_v43  ;;  %v17546_v0 = vsub.f32 %v5942_v41, %v17527_v52 }
 0x115   : > { %14884 = vmatprep.mubr.f32.mxu0 %v3255_v57  ;;  %v5919_v57 = vmul.f32 %v17254_v13, %v17254_v13 }
 0x116   : > { %18991 = vst [vmem:[#allocation13_spill] sm:$0xff] %v17525_v21  ;;  %14662 = vmatprep.mubr.f32.mxu1 %v17525_v21  ;;  %v5951_v63 = vsel %vm323_vm10, %v5918_v46, 0  ;;  %v18902_v18 = vand.u32 4294901760, %v17546_v0  ;;  %v5925_v46 = vmul.f32 %v17383_v19, %v17383_v19 }
 0x117   : > { %v5954_v5 = vsel %vm323_vm10, %v5919_v57, 0 }
 0x118   : > { %14885 = vmatmul.mubr.f32.gmra.mrb[12].mxu0 %v3265_v60  ;;  %v17542_v60 = vand.u32 4294901760, %v5948_v54 }
 0x119   : > { %14887 = vmatprep.mubr.f32.mxu0 %v3275_v42  ;;  %v17551_v42 = vsub.f32 %v5945_v45, %v17533_v58  ;;  %v5966_v45 = vsel %vm323_vm10, %v5923_v36, 0 }
 0x11a   : > { %v17562_v15 = vsub.f32 %v5948_v54, %v17542_v60  ;;  %v6081_v54 = vand.u32 4294901760, %v6080_v33  ;;  %v17621_v36 = vand.u32 4294901760, %v5966_v45 }
 0x11c   : > { %14888 = vmatmul.mubr.f32.gmra.mrb[14].mxu0 %v3285_v7  ;;  %v17559_v7 = vand.u32 4294901760, %v5951_v63  ;;  %v18901_v61 = vand.u32 4294901760, %v17562_v15  ;;  %18995 = vst [vmem:[#allocation17_spill] sm:$0xff] %v17621_v36 }
 0x11d   : > { %14894 = vmatprep.mubr.f32.mxu0 %v17375_v14 }
 0x11e   : > { %v17582_v32 = vsub.f32 %v5951_v63, %v17559_v7  ;;  %v5926_v63 = vmul.f32 %v17386_v20, %v17386_v20 }
 0x120   : > { %14895 = vmatmul.mubr.f32.vlgmr.msra.gmra.mrb[8].mxu0 %v17392_v23  ;;  %v18904_v57 = vand.u32 4294901760, %v17582_v32 }
 0x121   : > { %14897 = vmatprep.mubr.f32.mxu0 %v17395_v24  ;;  %15977 = vmatpush3.bf16.msra.mxu0 %v17225_v1 }
 0x122   : > { %16075 = vmatprep.subr.bf16.mxu0 %v17225_v1  ;;  %v6120_v11 = vsub.f32 %v17582_v32, %v18904_v57  ;;  %v17646_v57 = vsub.f32 %v5966_v45, %v17621_v36 }
 0x124   : > { %14898 = vmatmul.mubr.f32.gmra.mrb[10].mxu0 %v17412_v2  ;;  %v6121_v45 = vand.u32 4294901760, %v6120_v11 }
 0x125   : > { %14900 = vmatprep.mubr.f32.mxu0 %v17419_v34 }
 0x128   : > { %14901 = vmatmul.mubr.f32.gmra.mrb[12].mxu0 %v17437_v40 }
 0x129   : > { %14903 = vmatprep.mubr.f32.mxu0 %v17444_v44 }
 0x12c   : > { %14904 = vmatmul.mubr.f32.gmra.mrb[14].mxu0 %v17454_v51 }
 0x12d   : > { %14910 = vmatprep.mubr.f32.mxu0 %v17375_v14  ;;  %v5921_v14 = vmul.f32 %v17292_v31, %v17292_v31 }
 0x12f   : > { %v5960_v27 = vsel %vm323_vm10, %v5921_v14, 0 }
 0x130   : > { %14911 = vmatmul.mubr.f32.vlgmr.msra.gmra.mrb[8].mxu0 %v17392_v23  ;;  %v17565_v23 = vand.u32 4294901760, %v5954_v5  ;;  %v17597_v41 = vand.u32 4294901760, %v5960_v27 }
 0x131   : > { %14913 = vmatprep.mubr.f32.mxu0 %v17395_v24  ;;  %16077 = vmatpush3.bf16.msra.mxu0 %v17225_v1  ;;  %v18900_v24 = vand.u32 4294901760, %v17551_v42 }
 0x132   : > { %16079 = vmatprep.subr.bf16.mxu0 %v17314_v50  ;;  %18993 = vst [vmem:[#allocation15_spill] sm:$0xff] %v17597_v41 }
 0x133   : > { %v6100_v43 = vsub.f32 %v17551_v42, %v18900_v24  ;;  %v5972_v24 = vsel %vm323_vm10, %v5925_v46, 0 }
 0x134   : > { %14914 = vmatmul.mubr.f32.gmra.mrb[10].mxu0 %v17412_v2  ;;  %v17586_v2 = vsub.f32 %v5954_v5, %v17565_v23 }
 0x135   : > { %14916 = vmatprep.mubr.f32.mxu0 %v17419_v34  ;;  %v6090_v34 = vsub.f32 %v17546_v0, %v18902_v18  ;;  %v6101_v33 = vand.u32 4294901760, %v6100_v43  ;;  %v5928_v18 = vmul.f32 %v17405_v29, %v17405_v29 }
 0x136   : > { %v18907_v5 = vand.u32 4294901760, %v17586_v2 }
 0x137   : > { %v6091_v14 = vand.u32 4294901760, %v6090_v34  ;;  %v17635_v34 = vand.u32 4294901760, %v5969_v6 }
 0x138   : > { %14917 = vmatmul.mubr.f32.gmra.mrb[12].mxu0 %v17437_v40  ;;  %v6110_v40 = vsub.f32 %v17562_v15, %v18901_v61  ;;  %v5927_v61 = vmul.f32 %v17402_v28, %v17402_v28  ;;  %v6130_v46 = vsub.f32 %v17586_v2, %v18907_v5  ;;  %v5929_v5 = vmul.f32 %v17427_v37, %v17427_v37 }
 0x139   : > { %14919 = vmatprep.mubr.f32.mxu0 %v17444_v44  ;;  %v17619_v44 = vsub.f32 %v5960_v27, %v17597_v41  ;;  %v17633_v27 = vsub.f32 %v5963_v3, %v17608_v35  ;;  %18996 = vst [vmem:[#allocation18_spill] sm:$0xff] %v17635_v34  ;;  %v17648_v3 = vand.u32 4294901760, %v5972_v24 }
 0x13a   : > { %v6111_v43 = vand.u32 4294901760, %v6110_v40  ;;  %v5981_v40 = vsel %vm323_vm10, %v5928_v18, 0  ;;  %v6131_v38 = vand.u32 4294901760, %v6130_v46  ;;  %v5984_v11 = vsel %vm323_vm10, %v5929_v5, 0 }
 0x13b   : > { %18997 = vst [vmem:[#allocation19_spill] sm:$0xff] %v17648_v3  ;;  %v18913_v16 = vand.u32 4294901760, %v17633_v27  ;;  %v18999_v18 = vand.u32 4294901760, %v17619_v44  ;;  %v17668_v30 = vsub.f32 %v5972_v24, %v17648_v3 }
 0x13c   : > { %14920 = vmatmul.mubr.f32.gmra.mrb[14].mxu0 %v17454_v51  ;;  %v5975_v51 = vsel %vm323_vm10, %v5926_v63, 0  ;;  %v5978_v63 = vsel %vm323_vm10, %v5927_v61, 0 }
 0x13d   : > { %15094 = vmatprep.mubr.f32.mxu0 %v6081_v54  ;;  %v6140_v54 = vsub.f32 %v17595_v39, %v18908_v49  ;;  %v17650_v21 = vand.u32 4294901760, %v5975_v51  ;;  %v5930_v49 = vmul.f32 %v17361_v4, %v17202_v47  ;;  %v6150_v61 = vsub.f32 %v17619_v44, %v18999_v18 }
 0x13e   : > { %v17670_v47 = vand.u32 4294901760, %v5978_v63  ;;  %v17672_v4 = vand.u32 4294901760, %v5981_v40  ;;  %v6160_v46 = vsub.f32 %v17633_v27, %v18913_v16 }
 0x13f   : > { %18998 = vst [vmem:[#allocation20_spill] sm:$0xff] %v17650_v21  ;;  %v5987_v18 = vsel %vm323_vm10, %v5930_v49, 0  ;;  %v6151_v16 = vand.u32 4294901760, %v6150_v61  ;;  %v19005_v49 = vand.u32 4294901760, %v17646_v57 }
 0x140   : > { %15095 = vmatmul.mubr.f32.vlgmr.msra.gmra.mrb[16].mxu0 %v6091_v14  ;;  %v17661_v14 = vsub.f32 %v5969_v6, %v17635_v34  ;;  %19000 = vst [vmem:[#allocation21_spill] sm:$0xff] %v17670_v47  ;;  %19001 = vst [vmem:[#allocation22_spill] sm:$0xff] %v17672_v4  ;;  %v17676_v6 = vsub.f32 %v5975_v51, %v17650_v21  ;;  %v18914_v51 = vand.u32 4294901760, %v17668_v30 }
 0x141   : > { %15097 = vmatprep.mubr.f32.mxu0 %v6101_v33  ;;  %16081 = vmatpush3.bf16.msra.mxu0 %v17314_v50  ;;  %v6141_v50 = vand.u32 4294901760, %v6140_v54  ;;  %v5932_v54 = vmul.f32 %v17372_v10, %v17211_v55  ;;  %v17690_v33 = vsub.f32 %v5978_v63, %v17670_v47  ;;  %v17693_v5 = vsub.f32 %v5981_v40, %v17672_v4 }
 0x142   : > { %16083 = vmatprep.subr.bf16.mxu0 %v17319_v53  ;;  %19002 = vst [vmem:[#allocation23_spill] sm:$0xff] %v17676_v6  ;;  %v6170_v24 = vsub.f32 %v17646_v57, %v19005_v49  ;;  %v6161_v55 = vand.u32 4294901760, %v6160_v46  ;;  %v19007_v10 = vand.u32 4294901760, %v17661_v14  ;;  %v5934_v49 = vmul.f32 %v17386_v20, %v17242_v8 }
 0x143   : > { %19003 = vst [vmem:[#allocation24_spill] sm:$0xff] %v17693_v5  ;;  %v5993_v61 = vsel %vm323_vm10, %v5932_v54, 0 }
 0x144   : > { %15098 = vmatmul.mubr.f32.gmra.mrb[18].mxu0 %v6111_v43  ;;  %v5931_v43 = vmul.f32 %v17369_v9, %v17205_v48  ;;  %v17701_v9 = vand.u32 4294901760, %v5987_v18  ;;  %v6180_v63 = vsub.f32 %v17661_v14, %v19007_v10  ;;  %v6190_v48 = vsub.f32 %v17668_v30, %v18914_v51 }
 0x145   : > { %15100 = vmatprep.mubr.f32.mxu0 %v6121_v45  ;;  %v17695_v45 = vand.u32 4294901760, %v5984_v11  ;;  %v17728_v51 = vand.u32 4294901760, %v5993_v61 }
 0x146   : > { %19006 = vst [vmem:[#allocation26_spill] sm:$0xff] %v17701_v9  ;;  %v5990_v40 = vsel %vm323_vm10, %v5931_v43, 0  ;;  %v6171_v43 = vand.u32 4294901760, %v6170_v24  ;;  %v17724_v54 = vsub.f32 %v5987_v18, %v17701_v9  ;;  %v6181_v20 = vand.u32 4294901760, %v6180_v63 }
 0x147   : > { %19004 = vst [vmem:[#allocation25_spill] sm:$0xff] %v17695_v45  ;;  %v17718_v10 = vsub.f32 %v5984_v11, %v17695_v45  ;;  %v17726_v8 = vand.u32 4294901760, %v5990_v40  ;;  %19010 = vst [vmem:[#allocation28_spill] sm:$0xff] %v17728_v51  ;;  %v5935_v11 = vmul.f32 %v17402_v28, %v17254_v13  ;;  %v5936_v24 = vmul.f32 %v17405_v29, %v17284_v26 }
 0x148   : > { %15101 = vmatmul.mubr.f32.gmra.mrb[20].mxu0 %v6131_v38  ;;  %v5933_v38 = vmul.f32 %v17383_v19, %v17214_v56  ;;  %v19008_v56 = vand.u32 4294901760, %v17676_v6  ;;  %v18920_v13 = vand.u32 4294901760, %v17724_v54  ;;  %v17750_v26 = vsub.f32 %v5993_v61, %v17728_v51 }
 0x149   : > { %15103 = vmatprep.mubr.f32.mxu0 %v6141_v50  ;;  %v18917_v50 = vand.u32 4294901760, %v17690_v33  ;;  %19009 = vst [vmem:[#allocation27_spill] sm:$0xff] %v17726_v8  ;;  %v17745_v28 = vsub.f32 %v5990_v40, %v17726_v8 }
 0x14a   : > { %v6200_v19 = vsub.f32 %v17676_v6, %v19008_v56  ;;  %v5996_v46 = vsel %vm323_vm10, %v5933_v38, 0  ;;  %v6191_v56 = vand.u32 4294901760, %v6190_v48  ;;  %v18921_v6 = vand.u32 4294901760, %v17718_v10 }
 0x14b   : > { %v6210_v18 = vsub.f32 %v17690_v33, %v18917_v50  ;;  %v6002_v48 = vsel %vm323_vm10, %v5935_v11, 0  ;;  %v6240_v61 = vsub.f32 %v17724_v54, %v18920_v13 }
 0x14c   : > { %15104 = vmatmul.mubr.f32.gmra.mrb[22].mxu0 %v6151_v16  ;;  %v5999_v16 = vsel %vm323_vm10, %v5934_v49, 0  ;;  %v6201_v38 = vand.u32 4294901760, %v6200_v19  ;;  %v17747_v49 = vand.u32 4294901760, %v5996_v46  ;;  %v6230_v40 = vsub.f32 %v17718_v10, %v18921_v6 }
 0x14d   : > { %15106 = vmatprep.mubr.f32.mxu0 %v6161_v55  ;;  %v19011_v55 = vand.u32 4294901760, %v17693_v5  ;;  %v17752_v29 = vand.u32 4294901760, %v5999_v16  ;;  %v6211_v19 = vand.u32 4294901760, %v6210_v18 }
 0x14e   : > { %19012 = vst [vmem:[#allocation29_spill] sm:$0xff] %v17747_v49  ;;  %v17766_v11 = vsub.f32 %v5996_v46, %v17747_v49  ;;  %v6231_v18 = vand.u32 4294901760, %v6230_v40 }
 0x14f   : > { %v6220_v63 = vsub.f32 %v17693_v5, %v19011_v55  ;;  %19013 = vst [vmem:[#allocation30_spill] sm:$0xff] %v17752_v29  ;;  %v5937_v55 = vmul.f32 %v17427_v37, %v17292_v31  ;;  %v17768_v5 = vand.u32 4294901760, %v6002_v48  ;;  %v18923_v31 = vand.u32 4294901760, %v17750_v26 }
 0x150   : > { %15107 = vmatmul.mubr.f32.gmra.mrb[24].mxu0 %v6171_v43  ;;  %v6005_v43 = vsel %vm323_vm10, %v5936_v24, 0  ;;  %19014 = vst [vmem:[#allocation31_spill] sm:$0xff] %v17766_v11  ;;  %v17772_v37 = vsub.f32 %v5999_v16, %v17752_v29  ;;  %v18924_v46 = vand.u32 4294901760, %v17766_v11  ;;  %v6241_v16 = vand.u32 4294901760, %v6240_v61 }
 0x151   : > { %15109 = vmatprep.mubr.f32.mxu0 %v6181_v20  ;;  %v6221_v50 = vand.u32 4294901760, %v6220_v63  ;;  %v18922_v20 = vand.u32 4294901760, %v17745_v28  ;;  %19015 = vst [vmem:[#allocation32_spill] sm:$0xff] %v17768_v5  ;;  %v17774_v24 = vand.u32 4294901760, %v6005_v43  ;;  %v17782_v13 = vsub.f32 %v6002_v48, %v17768_v5 }
 0x152   : > { %v6260_v6 = vsub.f32 %v17750_v26, %v18923_v31  ;;  %v6270_v48 = vsub.f32 %v17766_v11, %v18924_v46 }
 0x153   : > { %19016 = vst [vmem:[#allocation33_spill] sm:$0xff] %v17774_v24  ;;  %v6250_v63 = vsub.f32 %v17745_v28, %v18922_v20  ;;  %v18929_v20 = vand.u32 4294901760, %v17782_v13 }
 0x154   : > { %15110 = vmatmul.mubr.f32.gmra.mrb[26].mxu0 %v6191_v56  ;;  %v6008_v56 = vsel %vm323_vm10, %v5937_v55, 0  ;;  %v18930_v55 = vand.u32 4294901760, %v17772_v37  ;;  %v6261_v61 = vand.u32 4294901760, %v6260_v6 }
 0x155   : > { %15112 = vmatprep.mubr.f32.mxu0 %v6201_v38  ;;  %v17784_v38 = vand.u32 4294901760, %v6008_v56  ;;  %v6251_v40 = vand.u32 4294901760, %v6250_v63  ;;  %v6290_v63 = vsub.f32 %v17782_v13, %v18929_v20 }
 0x156   : > { %v6280_v31 = vsub.f32 %v17772_v37, %v18930_v55 }
 0x157   : > { %19017 = vst [vmem:[#allocation34_spill] sm:$0xff] %v17784_v38 }
 0x158   : > { %15113 = vmatmul.mubr.f32.gmra.mrb[28].mxu0 %v6211_v19  ;;  %v17791_v19 = vsub.f32 %v6005_v43, %v17774_v24  ;;  %v6281_v11 = vand.u32 4294901760, %v6280_v31 }
 0x159   : > { %15115 = vmatprep.mubr.f32.mxu0 %v6221_v50  ;;  %v17798_v50 = vsub.f32 %v6008_v56, %v17784_v38  ;;  %v6291_v56 = vand.u32 4294901760, %v6290_v63 }
 0x15a   : > { %v18928_v43 = vand.u32 4294901760, %v17791_v19 }
 0x15b   : > { %v18927_v46 = vand.u32 4294901760, %v17798_v50 }
 0x15c   : > { %15116 = vmatmul.mubr.f32.gmra.mrb[30].mxu0 %v6231_v18  ;;  %v6271_v18 = vand.u32 4294901760, %v6270_v48  ;;  %v6300_v6 = vsub.f32 %v17791_v19, %v18928_v43 }
 0x15d   : > { %15118 = vmatprep.mubr.f32.mxu0 %v6241_v16  ;;  %v6310_v16 = vsub.f32 %v17798_v50, %v18927_v46 }
 0x15f   : > { %v6311_v48 = vand.u32 4294901760, %v6310_v16 }
 0x160   : > { %15119 = vmatmul.mubr.f32.gmra.mrb[32].mxu0 %v6251_v40  ;;  %v6301_v40 = vand.u32 4294901760, %v6300_v6 }
 0x161   : > { %15121 = vmatprep.mubr.f32.mxu0 %v6261_v61 }
 0x164   : > { %15122 = vmatmul.mubr.f32.gmra.mrb[34].mxu0 %v6271_v18 }
 0x165   : > { %15124 = vmatprep.mubr.f32.mxu0 %v6281_v11 }
 0x168   : > { %15125 = vmatmul.mubr.f32.gmra.mrb[36].mxu0 %v6291_v56 }
 0x169   : > { %15127 = vmatprep.mubr.f32.mxu0 %v6301_v40 }
 0x16c   : > { %15128 = vmatmul.mubr.f32.gmra.mrb[38].mxu0 %v6311_v48 }
 0x16d   : > { %15134 = vmatprep.mubr.f32.mxu0 %v17520_v12 }
 0x170   : > { %15135 = vmatmul.mubr.f32.vlgmr.msra.gmra.mrb[16].mxu0 %v17527_v52 }
 0x171   : > { %15137 = vmatprep.mubr.f32.mxu0 %v17533_v58  ;;  %16085 = vmatpush3.bf16.msra.mxu0 %v17319_v53  ;;  %v1112_v53 = vsel %vm323_vm10, %v17219_v62, 0 }
 0x172   : > { %16087 = vmatprep.subr.bf16.mxu0 %v17225_v1  ;;  %v17840_v11 = vand.u32 4294901760, %v1112_v53 }
 0x174   : > { %15138 = vmatmul.mubr.f32.gmra.mrb[18].mxu0 %v17542_v60  ;;  %v17845_v31 = vsub.f32 %v1112_v53, %v17840_v11 }
 0x175   : > { %15140 = vmatprep.mubr.f32.mxu0 %v17559_v7 }
 0x176   : > { %v17852_v62 = vand.u32 4294901760, %v17845_v31 }
 0x178   : > { %15141 = vmatmul.mubr.f32.gmra.mrb[20].mxu0 %v17565_v23  ;;  %v1194_v56 = vsub.f32 %v17845_v31, %v17852_v62 }
 0x179   : > { %15143 = vmatprep.mubr.f32.mxu0 %v17570_v25 }
 0x17c   : > { %15144 = vmatmul.mubr.f32.gmra.mrb[22].mxu0 %v17597_v41 }
 0x17d   : > { %15146 = vmatprep.mubr.f32.mxu0 %v17608_v35 }
 0x180   : > { %15147 = vmatmul.mubr.f32.gmra.mrb[24].mxu0 %v17621_v36 }
 0x181   : > { %15149 = vmatprep.mubr.f32.mxu0 %v17635_v34 }
 0x184   : > { %15150 = vmatmul.mubr.f32.gmra.mrb[26].mxu0 %v17648_v3 }
 0x185   : > { %15152 = vmatprep.mubr.f32.mxu0 %v17650_v21 }
 0x188   : > { %15153 = vmatmul.mubr.f32.gmra.mrb[28].mxu0 %v17670_v47 }
 0x189   : > { %15155 = vmatprep.mubr.f32.mxu0 %v17672_v4 }
 0x18c   : > { %15156 = vmatmul.mubr.f32.gmra.mrb[30].mxu0 %v17695_v45 }
 0x18d   : > { %15158 = vmatprep.mubr.f32.mxu0 %v17701_v9 }
 0x190   : > { %15159 = vmatmul.mubr.f32.gmra.mrb[32].mxu0 %v17726_v8 }
 0x191   : > { %15161 = vmatprep.mubr.f32.mxu0 %v17728_v51 }
 0x194   : > { %15162 = vmatmul.mubr.f32.gmra.mrb[34].mxu0 %v17747_v49 }
 0x195   : > { %15164 = vmatprep.mubr.f32.mxu0 %v17752_v29 }
 0x198   : > { %15165 = vmatmul.mubr.f32.gmra.mrb[36].mxu0 %v17768_v5 }
 0x199   : > { %15167 = vmatprep.mubr.f32.mxu0 %v17774_v24  ;;  %v17864_v24 = vand.u32 4294901760, %v1194_v56 }
 0x19c   : > { %15168 = vmatmul.mubr.f32.gmra.mrb[38].mxu0 %v17784_v38 }
 0x19d   : > { %15174 = vmatprep.mubr.f32.mxu0 %v17540_v59 }
 0x1a0   : > { %15175 = vmatmul.mubr.f32.vlgmr.msra.gmra.mrb[16].mxu0 %v17546_v0 }
 0x1a1   : > { %15177 = vmatprep.mubr.f32.mxu0 %v17551_v42  ;;  %16089 = vmatpush3.bf16.msra.mxu0 %v17225_v1 }
 0x1a2   : > { %16091 = vmatprep.subr.bf16.mxu0 %v17338_v17 }
 0x1a3   : > { %v14648_v61 = vpop.f32.mrb[0].mxu0 }
 0x1a4   : > { %v1118_v18 = vand.u32 4294901760, %v14648_v61  ;;  %v1062_v63 = vpop.f32.mrb[1].mxu0  ;;  %15178 = vmatmul.mubr.f32.gmra.mrb[18].mxu0 %v17562_v15 }
 0x1a5   : > { %v1115_v6 = vand.u32 4294901760, %v1062_v63  ;;  %15180 = vmatprep.mubr.f32.mxu0 %v17582_v32 }
 0x1a6   : > { %v1210_v16 = vsub.f32 %v14648_v61, %v1118_v18 }
 0x1a7   : > { %v17859_v40 = vpack.c.bf16 %v1118_v18, %v1115_v6  ;;  %v1203_v48 = vsub.f32 %v1062_v63, %v1115_v6  ;;  %v14651_v53 = vpop.f32.mrb[2].mxu0 }
 0x1a8   : > { %v1211_v46 = vand.u32 4294901760, %v1210_v16  ;;  %v1620_v43 = vand.u32 4294901760, %v14651_v53  ;;  %v1074_v20 = vpop.f32.mrb[3].mxu0  ;;  %15181 = vmatmul.mubr.f32.gmra.mrb[20].mxu0 %v17586_v2 }
 0x1a9   : > { %v1204_v55 = vand.u32 4294901760, %v1203_v48  ;;  %v1617_v38 = vand.u32 4294901760, %v1074_v20  ;;  %15859 = vmatprep.subr.bf16.mxu1 %v17859_v40  ;;  %15183 = vmatprep.mubr.f32.mxu0 %v17595_v39  ;;  %v15866_v5 = vpack.c.bf16 %v1210_v16, %v1203_v48 }
 0x1aa   : > { %v1212_v29 = vsub.f32 %v1210_v16, %v1211_v46  ;;  %v1712_v61 = vsub.f32 %v14651_v53, %v1620_v43  ;;  %15861 = vmatpush3.bf16.msra.mxu1 %v17859_v40 }
 0x1ab   : > { %v1205_v18 = vsub.f32 %v1203_v48, %v1204_v55  ;;  %v17867_v63 = vpack.c.bf16 %v1620_v43, %v1617_v38  ;;  %v1705_v6 = vsub.f32 %v1074_v20, %v1617_v38  ;;  %v14654_v49 = vpop.f32.mrb[4].mxu0  ;;  %v17869_v51 = vpack.c.bf16 %v1211_v46, %v1204_v55 }
 0x1ac   : > { %v1713_v8 = vand.u32 4294901760, %v1712_v61  ;;  %v2122_v9 = vand.u32 4294901760, %v14654_v49  ;;  %v1086_v45 = vpop.f32.mrb[5].mxu0  ;;  %15184 = vmatmul.mubr.f32.gmra.mrb[22].mxu0 %v17619_v44  ;;  %v1213_v4 = vand.u32 4294901760, %v1212_v29 }
 0x1ad   : > { %v1706_v56 = vand.u32 4294901760, %v1705_v6  ;;  %v2119_v47 = vand.u32 4294901760, %v1086_v45  ;;  %14663 = vmatmul.mubr.f32.vlgmr.msra.gmra.mrb[0].mxu1 %v17864_v24  ;;  %15186 = vmatprep.mubr.f32.mxu0 %v17633_v27  ;;  %v1206_v16 = vand.u32 4294901760, %v1205_v18  ;;  %v17874_v48 = vpack.c.bf16 %v1712_v61, %v1705_v6 }
 0x1ae   : > { %v1714_v43 = vsub.f32 %v1712_v61, %v1713_v8  ;;  %v2214_v20 = vsub.f32 %v14654_v49, %v2122_v9  ;;  %14669 = vmatprep.mubr.f32.mxu1 %v17492_v22 }
 0x1af   : > { %v1707_v46 = vsub.f32 %v1705_v6, %v1706_v56  ;;  %v17877_v38 = vpack.c.bf16 %v2122_v9, %v2119_v47  ;;  %v2207_v55 = vsub.f32 %v1086_v45, %v2119_v47  ;;  %v14657_v53 = vpop.f32.mrb[6].mxu0  ;;  %v15862_v21 = vpack.c.bf16 %v1213_v4, %v1206_v16 }
 0x1b0   : > { %v2215_v29 = vand.u32 4294901760, %v2214_v20  ;;  %v2624_v3 = vand.u32 4294901760, %v14657_v53  ;;  %v1098_v34 = vpop.f32.mrb[7].mxu0  ;;  %15187 = vmatmul.mubr.f32.gmra.mrb[24].mxu0 %v17646_v57  ;;  %v1715_v36 = vand.u32 4294901760, %v1714_v43  ;;  %v17880_v35 = vpack.c.bf16 %v1713_v8, %v1706_v56 }
 0x1b1   : > { %v2208_v18 = vand.u32 4294901760, %v2207_v55  ;;  %v2621_v41 = vand.u32 4294901760, %v1098_v34  ;;  %15863 = vmatprep.subr.bf16.mxu1 %v15862_v21  ;;  %15189 = vmatprep.mubr.f32.mxu0 %v17661_v14  ;;  %v1708_v49 = vand.u32 4294901760, %v1707_v46  ;;  %v17883_v61 = vpack.c.bf16 %v2214_v20, %v2207_v55  ;;  %v19018_v46 = vld [vmem:[#allocation23_spill] sm:$0xff] }
 0x1b2   : > { %v2216_v9 = vsub.f32 %v2214_v20, %v2215_v29  ;;  %v2716_v47 = vsub.f32 %v14657_v53, %v2624_v3  ;;  %15865 = vmatpush3.bf16.msra.mxu1 %v15862_v21 }
 0x1b3   : > { %v2209_v4 = vsub.f32 %v2207_v55, %v2208_v18  ;;  %v17885_v45 = vpack.c.bf16 %v2624_v3, %v2621_v41  ;;  %v2709_v6 = vsub.f32 %v1098_v34, %v2621_v41  ;;  %15867 = vmatprep.subr.bf16.mxu1 %v15866_v5  ;;  %v15886_v16 = vpack.c.bf16 %v1715_v36, %v1708_v49  ;;  %v19019_v3 = vld [vmem:[#allocation11_spill] sm:$0xff] }
 0x1b4   : > { %v2717_v43 = vand.u32 4294901760, %v2716_v47  ;;  %15190 = vmatmul.mubr.f32.gmra.mrb[26].mxu0 %v17668_v30  ;;  %v2217_v8 = vand.u32 4294901760, %v2216_v9  ;;  %v17888_v56 = vpack.c.bf16 %v2215_v29, %v2208_v18  ;;  %v19020_v29 = vld [vmem:[#allocation24_spill] sm:$0xff]  ;;  %v19023_v9 = vand.u32 4294901760, %v17540_v59 }
 0x1b5   : > { %v2710_v25 = vand.u32 4294901760, %v2709_v6  ;;  %14670 = vmatmul.mubr.f32.vlgmr.msra.gmra.mrb[0].mxu1 %v17840_v11  ;;  %15192 = vmatprep.mubr.f32.mxu0 %v19018_v46  ;;  %v2210_v20 = vand.u32 4294901760, %v2209_v4  ;;  %v17892_v53 = vpack.c.bf16 %v2716_v47, %v2709_v6  ;;  %v19026_v4 = vand.u32 4294901760, %v17562_v15 }
 0x1b6   : > { %v2718_v21 = vsub.f32 %v2716_v47, %v2717_v43  ;;  %15869 = vmatpush3.bf16.msra.mxu1 %v15866_v5  ;;  %14676 = vmatprep.mubr.f32.mxu1 %v19019_v3  ;;  %v19021_v5 = vld [vmem:[#allocation12_spill] sm:$0xff]  ;;  %v19025_v47 = vand.u32 4294901760, %v17551_v42  ;;  %v19027_v59 = vand.u32 4294901760, %v17582_v32  ;;  %v19031_v42 = vand.u32 4294901760, %v17619_v44 }
 0x1b7   : > { %v2711_v41 = vsub.f32 %v2709_v6, %v2710_v25  ;;  %15871 = vmatprep.subr.bf16.mxu1 %v17859_v40  ;;  %v17896_v36 = vpack.c.bf16 %v2217_v8, %v2210_v20  ;;  %v17898_v34 = vpack.c.bf16 %v2717_v43, %v2710_v25  ;;  %v19022_v25 = vld [vmem:[#allocation31_spill] sm:$0xff]  ;;  %v19032_v15 = vand.u32 4294901760, %v17633_v27 }
 0x1b8   : > { %15193 = vmatmul.mubr.f32.gmra.mrb[28].mxu0 %v17690_v33  ;;  %v2719_v55 = vand.u32 4294901760, %v2718_v21  ;;  %v19033_v32 = vand.u32 4294901760, %v17646_v57  ;;  %v19036_v44 = vand.u32 4294901760, %v19018_v46  ;;  %v19037_v57 = vand.u32 4294901760, %v17690_v33 }
 0x1b9   : > { %15195 = vmatprep.mubr.f32.mxu0 %v19020_v29  ;;  %v2712_v18 = vand.u32 4294901760, %v2711_v41  ;;  %v19038_v27 = vand.u32 4294901760, %v19020_v29  ;;  %v19041_v33 = vand.u32 4294901760, %v17745_v28  ;;  %v19048_v41 = vld [vmem:[#allocation14_spill] sm:$0xff] }
 0x1bb   : > { %v17902_v49 = vpack.c.bf16 %v2719_v55, %v2712_v18 }
 0x1bc   : > { %15196 = vmatmul.mubr.f32.gmra.mrb[30].mxu0 %v17718_v10 }
 0x1bd   : > { %14677 = vmatmul.mubr.f32.vlgmr.msra.gmra.mrb[0].mxu1 %v17845_v31  ;;  %15198 = vmatprep.mubr.f32.mxu0 %v17724_v54 }
 0x1be   : > { %15873 = vmatpush3.bf16.msra.mxu1 %v17859_v40  ;;  %14683 = vmatprep.mubr.f32.mxu1 %v19021_v5 }
 0x1bf   : > { %15875 = vmatprep.subr.bf16.mxu1 %v17869_v51 }
 0x1c0   : > { %15199 = vmatmul.mubr.f32.gmra.mrb[32].mxu0 %v17745_v28  ;;  %v19045_v28 = vand.u32 4294901760, %v17782_v13 }
 0x1c1   : > { %15201 = vmatprep.mubr.f32.mxu0 %v17750_v26 }
 0x1c4   : > { %15202 = vmatmul.mubr.f32.gmra.mrb[34].mxu0 %v19022_v25 }
 0x1c5   : > { %14684 = vmatmul.mubr.f32.vlgmr.msra.gmra.mrb[0].mxu1 %v17852_v62  ;;  %15204 = vmatprep.mubr.f32.mxu0 %v17772_v37 }
 0x1c6   : > { %15877 = vmatpush3.bf16.msra.mxu1 %v17869_v51  ;;  %14690 = vmatprep.mubr.f32.mxu1 %v17492_v22  ;;  %v19024_v51 = vand.u32 4294901760, %v17546_v0  ;;  %v19029_v0 = vand.u32 4294901760, %v17586_v2  ;;  %v19034_v2 = vand.u32 4294901760, %v17661_v14  ;;  %v19040_v14 = vand.u32 4294901760, %v17724_v54 }
 0x1c7   : > { %15879 = vmatprep.subr.bf16.mxu1 %v17859_v40  ;;  %v19044_v54 = vand.u32 4294901760, %v17772_v37 }
 0x1c8   : > { %15205 = vmatmul.mubr.f32.gmra.mrb[36].mxu0 %v17782_v13 }
 0x1c9   : > { %15207 = vmatprep.mubr.f32.mxu0 %v17791_v19 }
 0x1cc   : > { %15208 = vmatmul.mubr.f32.gmra.mrb[38].mxu0 %v17798_v50 }
 0x1cd   : > { %14691 = vmatmul.mubr.f32.vlgmr.msra.gmra.mrb[0].mxu1 %v17840_v11  ;;  %15214 = vmatprep.mubr.f32.mxu0 %v19023_v9 }
 0x1ce   : > { %15881 = vmatpush3.bf16.msra.mxu1 %v17859_v40  ;;  %14697 = vmatprep.mubr.f32.mxu1 %v17492_v22  ;;  %v19028_v40 = vld [vmem:[#allocation13_spill] sm:$0xff] }
 0x1cf   : > { %15883 = vmatprep.subr.bf16.mxu1 %v17867_v63 }
 0x1d0   : > { %15215 = vmatmul.mubr.f32.vlgmr.msra.gmra.mrb[16].mxu0 %v19024_v51 }
 0x1d1   : > { %15217 = vmatprep.mubr.f32.mxu0 %v19025_v47  ;;  %16093 = vmatpush3.bf16.msra.mxu0 %v17338_v17  ;;  %v19030_v17 = vand.u32 4294901760, %v17595_v39  ;;  %v19035_v39 = vand.u32 4294901760, %v17668_v30  ;;  %v19039_v30 = vand.u32 4294901760, %v17718_v10  ;;  %v19043_v10 = vand.u32 4294901760, %v19022_v25 }
 0x1d2   : > { %16095 = vmatprep.subr.bf16.mxu0 %v17225_v1 }
 0x1d4   : > { %15218 = vmatmul.mubr.f32.gmra.mrb[18].mxu0 %v19026_v4 }
 0x1d5   : > { %14698 = vmatmul.mubr.f32.vlgmr.msra.gmra.mrb[0].mxu1 %v17840_v11  ;;  %15220 = vmatprep.mubr.f32.mxu0 %v19027_v59 }
 0x1d6   : > { %15885 = vmatpush3.bf16.msra.mxu1 %v17867_v63  ;;  %14704 = vmatprep.mubr.f32.mxu1 %v19028_v40 }
 0x1d7   : > { %15887 = vmatprep.subr.bf16.mxu1 %v15886_v16 }
 0x1d8   : > { %15221 = vmatmul.mubr.f32.gmra.mrb[20].mxu0 %v19029_v0 }
 0x1d9   : > { %14705 = vmatmul.mubr.f32.vlgmr.msra.gmra.mrb[2].mxu1 %v17864_v24  ;;  %15223 = vmatprep.mubr.f32.mxu0 %v19030_v17  ;;  %v19049_v17 = vld [vmem:[#allocation15_spill] sm:$0xff] }
 0x1da   : > { %15889 = vmatpush3.bf16.msra.mxu1 %v15886_v16  ;;  %14711 = vmatprep.mubr.f32.mxu1 %v17492_v22 }
 0x1db   : > { %15891 = vmatprep.subr.bf16.mxu1 %v17874_v48 }
 0x1dc   : > { %15224 = vmatmul.mubr.f32.gmra.mrb[22].mxu0 %v19031_v42 }
 0x1dd   : > { %15226 = vmatprep.mubr.f32.mxu0 %v19032_v15 }
 0x1e0   : > { %15227 = vmatmul.mubr.f32.gmra.mrb[24].mxu0 %v19033_v32 }
 0x1e1   : > { %14712 = vmatmul.mubr.f32.vlgmr.msra.gmra.mrb[2].mxu1 %v17840_v11  ;;  %15229 = vmatprep.mubr.f32.mxu0 %v19034_v2  ;;  %v19050_v2 = vld [vmem:[#allocation16_spill] sm:$0xff] }
 0x1e2   : > { %15893 = vmatpush3.bf16.msra.mxu1 %v17874_v48  ;;  %14718 = vmatprep.mubr.f32.mxu1 %v19019_v3  ;;  %v19042_v48 = vand.u32 4294901760, %v17750_v26  ;;  %v19046_v26 = vand.u32 4294901760, %v17791_v19 }
 0x1e3   : > { %15895 = vmatprep.subr.bf16.mxu1 %v17867_v63 }
 0x1e4   : > { %15230 = vmatmul.mubr.f32.gmra.mrb[26].mxu0 %v19035_v39 }
 0x1e5   : > { %15232 = vmatprep.mubr.f32.mxu0 %v19036_v44 }
 0x1e8   : > { %15233 = vmatmul.mubr.f32.gmra.mrb[28].mxu0 %v19037_v57 }
 0x1e9   : > { %14719 = vmatmul.mubr.f32.vlgmr.msra.gmra.mrb[2].mxu1 %v17845_v31  ;;  %15235 = vmatprep.mubr.f32.mxu0 %v19038_v27 }
 0x1ea   : > { %15897 = vmatpush3.bf16.msra.mxu1 %v17867_v63  ;;  %14725 = vmatprep.mubr.f32.mxu1 %v19021_v5 }
 0x1eb   : > { %15899 = vmatprep.subr.bf16.mxu1 %v17880_v35 }
 0x1ec   : > { %15236 = vmatmul.mubr.f32.gmra.mrb[30].mxu0 %v19039_v30 }
 0x1ed   : > { %15238 = vmatprep.mubr.f32.mxu0 %v19040_v14 }
 0x1f0   : > { %15239 = vmatmul.mubr.f32.gmra.mrb[32].mxu0 %v19041_v33 }
 0x1f1   : > { %14726 = vmatmul.mubr.f32.vlgmr.msra.gmra.mrb[2].mxu1 %v17852_v62  ;;  %15241 = vmatprep.mubr.f32.mxu0 %v19042_v48 }
 0x1f2   : > { %15901 = vmatpush3.bf16.msra.mxu1 %v17880_v35  ;;  %14732 = vmatprep.mubr.f32.mxu1 %v17492_v22  ;;  %v19047_v35 = vand.u32 4294901760, %v17798_v50 }
 0x1f3   : > { %15903 = vmatprep.subr.bf16.mxu1 %v17867_v63 }
 0x1f4   : > { %15242 = vmatmul.mubr.f32.gmra.mrb[34].mxu0 %v19043_v10 }
 0x1f5   : > { %15244 = vmatprep.mubr.f32.mxu0 %v19044_v54 }
 0x1f8   : > { %15245 = vmatmul.mubr.f32.gmra.mrb[36].mxu0 %v19045_v28 }
 0x1f9   : > { %14733 = vmatmul.mubr.f32.vlgmr.msra.gmra.mrb[2].mxu1 %v17840_v11  ;;  %15247 = vmatprep.mubr.f32.mxu0 %v19046_v26 }
 0x1fa   : > { %15905 = vmatpush3.bf16.msra.mxu1 %v17867_v63  ;;  %14739 = vmatprep.mubr.f32.mxu1 %v17492_v22 }
 0x1fb   : > { %15907 = vmatprep.subr.bf16.mxu1 %v17877_v38 }
 0x1fc   : > { %15248 = vmatmul.mubr.f32.gmra.mrb[38].mxu0 %v19047_v35  ;;  %v19051_v35 = vld [vmem:[#allocation17_spill] sm:$0xff] }
 0x1fd   : > { %15254 = vmatprep.mubr.f32.mxu0 %v17520_v12 }
 0x200   : > { %15255 = vmatmul.mubr.f32.vlgmr.msra.gmra.mrb[16].mxu0 %v17527_v52 }
 0x201   : > { %14740 = vmatmul.mubr.f32.vlgmr.msra.gmra.mrb[2].mxu1 %v17840_v11  ;;  %15257 = vmatprep.mubr.f32.mxu0 %v17533_v58 }
 0x202   : > { %15909 = vmatpush3.bf16.msra.mxu1 %v17877_v38  ;;  %14746 = vmatprep.mubr.f32.mxu1 %v19028_v40 }
 0x203   : > { %15911 = vmatprep.subr.bf16.mxu1 %v17896_v36  ;;  %v14912_v13 = vpop.f32.mrb[8].mxu0  ;;  %16097 = vmatpush3.bf16.msra.mxu0 %v17225_v1 }
 0x204   : > { %v3910_v37 = vand.u32 4294901760, %v14912_v13  ;;  %v3860_v19 = vpop.f32.mrb[9].mxu0  ;;  %15258 = vmatmul.mubr.f32.gmra.mrb[18].mxu0 %v17542_v60 }
 0x205   : > { %v3907_v50 = vand.u32 4294901760, %v3860_v19  ;;  %14747 = vmatmul.mubr.f32.vlgmr.msra.gmra.mrb[4].mxu1 %v17864_v24  ;;  %15260 = vmatprep.mubr.f32.mxu0 %v17559_v7 }
 0x206   : > { %v4002_v63 = vsub.f32 %v14912_v13, %v3910_v37  ;;  %15913 = vmatpush3.bf16.msra.mxu1 %v17896_v36  ;;  %14753 = vmatprep.mubr.f32.mxu1 %v17492_v22 }
 0x207   : > { %v18010_v6 = vpack.c.bf16 %v3910_v37, %v3907_v50  ;;  %v3995_v16 = vsub.f32 %v3860_v19, %v3907_v50  ;;  %15915 = vmatprep.subr.bf16.mxu1 %v17883_v61  ;;  %v14915_v1 = vpop.f32.mrb[10].mxu0  ;;  %v19052_v50 = vld [vmem:[#allocation18_spill] sm:$0xff] }
 0x208   : > { %v4003_v43 = vand.u32 4294901760, %v4002_v63  ;;  %v4412_v8 = vand.u32 4294901760, %v14915_v1  ;;  %v3872_v46 = vpop.f32.mrb[11].mxu0  ;;  %15261 = vmatmul.mubr.f32.gmra.mrb[20].mxu0 %v17565_v23 }
 0x209   : > { %v3996_v20 = vand.u32 4294901760, %v3995_v16  ;;  %v4409_v21 = vand.u32 4294901760, %v3872_v46  ;;  %15263 = vmatprep.mubr.f32.mxu0 %v19048_v41  ;;  %v18015_v55 = vpack.c.bf16 %v4002_v63, %v3995_v16 }
 0x20a   : > { %v4004_v36 = vsub.f32 %v4002_v63, %v4003_v43  ;;  %v4504_v29 = vsub.f32 %v14915_v1, %v4412_v8 }
 0x20b   : > { %v3997_v18 = vsub.f32 %v3995_v16, %v3996_v20  ;;  %v18017_v25 = vpack.c.bf16 %v4412_v8, %v4409_v21  ;;  %v4497_v9 = vsub.f32 %v3872_v46, %v4409_v21  ;;  %v14918_v51 = vpop.f32.mrb[12].mxu0  ;;  %v18019_v47 = vpack.c.bf16 %v4003_v43, %v3996_v20 }
 0x20c   : > { %v4505_v4 = vand.u32 4294901760, %v4504_v29  ;;  %v4914_v59 = vand.u32 4294901760, %v14918_v51  ;;  %v3884_v0 = vpop.f32.mrb[13].mxu0  ;;  %15264 = vmatmul.mubr.f32.gmra.mrb[22].mxu0 %v19049_v17  ;;  %v4005_v42 = vand.u32 4294901760, %v4004_v36 }
 0x20d   : > { %v4498_v15 = vand.u32 4294901760, %v4497_v9  ;;  %v4911_v32 = vand.u32 4294901760, %v3884_v0  ;;  %14754 = vmatmul.mubr.f32.vlgmr.msra.gmra.mrb[4].mxu1 %v17840_v11  ;;  %15266 = vmatprep.mubr.f32.mxu0 %v19050_v2  ;;  %v3998_v39 = vand.u32 4294901760, %v3997_v18  ;;  %v18024_v44 = vpack.c.bf16 %v4504_v29, %v4497_v9 }
 0x20e   : > { %v4506_v57 = vsub.f32 %v4504_v29, %v4505_v4  ;;  %v5006_v27 = vsub.f32 %v14918_v51, %v4914_v59  ;;  %15917 = vmatpush3.bf16.msra.mxu1 %v17883_v61  ;;  %14760 = vmatprep.mubr.f32.mxu1 %v19019_v3  ;;  %v19053_v29 = vld [vmem:[#allocation19_spill] sm:$0xff] }
 0x20f   : > { %v4499_v30 = vsub.f32 %v4497_v9, %v4498_v15  ;;  %v18028_v14 = vpack.c.bf16 %v4914_v59, %v4911_v32  ;;  %v4999_v33 = vsub.f32 %v3884_v0, %v4911_v32  ;;  %15919 = vmatprep.subr.bf16.mxu1 %v17877_v38  ;;  %v14921_v48 = vpop.f32.mrb[14].mxu0  ;;  %v18031_v10 = vpack.c.bf16 %v4005_v42, %v3998_v39 }
 0x210   : > { %v5007_v54 = vand.u32 4294901760, %v5006_v27  ;;  %v5416_v28 = vand.u32 4294901760, %v14921_v48  ;;  %v3896_v26 = vpop.f32.mrb[15].mxu0  ;;  %15267 = vmatmul.mubr.f32.gmra.mrb[24].mxu0 %v19051_v35  ;;  %v4507_v13 = vand.u32 4294901760, %v4506_v57  ;;  %v18034_v37 = vpack.c.bf16 %v4505_v4, %v4498_v15  ;;  %v19054_v4 = vld [vmem:[#allocation20_spill] sm:$0xff]  ;;  %v19055_v57 = vld [vmem:[#allocation21_spill] sm:$0xff] }
 0x211   : > { %v5000_v61 = vand.u32 4294901760, %v4999_v33  ;;  %v5413_v19 = vand.u32 4294901760, %v3896_v26  ;;  %15269 = vmatprep.mubr.f32.mxu0 %v19052_v50  ;;  %v4500_v63 = vand.u32 4294901760, %v4499_v30  ;;  %v18037_v16 = vpack.c.bf16 %v5006_v27, %v4999_v33  ;;  %v19056_v30 = vld [vmem:[#allocation22_spill] sm:$0xff] }
 0x212   : > { %v5008_v1 = vsub.f32 %v5006_v27, %v5007_v54  ;;  %v5508_v43 = vsub.f32 %v14921_v48, %v5416_v28 }
 0x213   : > { %v5001_v8 = vsub.f32 %v4999_v33, %v5000_v61  ;;  %v18039_v46 = vpack.c.bf16 %v5416_v28, %v5413_v19  ;;  %v5501_v20 = vsub.f32 %v3896_v26, %v5413_v19  ;;  %v18041_v21 = vpack.c.bf16 %v4507_v13, %v4500_v63  ;;  %v19058_v28 = vld [vmem:[#allocation26_spill] sm:$0xff]  ;;  %v19059_v26 = vld [vmem:[#allocation27_spill] sm:$0xff]  ;;  %v19060_v13 = vld [vmem:[#allocation28_spill] sm:$0xff] }
 0x214   : > { %v5509_v36 = vand.u32 4294901760, %v5508_v43  ;;  %15270 = vmatmul.mubr.f32.gmra.mrb[26].mxu0 %v19053_v29  ;;  %v5009_v18 = vand.u32 4294901760, %v5008_v1  ;;  %v18044_v9 = vpack.c.bf16 %v5007_v54, %v5000_v61  ;;  %v19057_v54 = vld [vmem:[#allocation25_spill] sm:$0xff]  ;;  %v19062_v19 = vld [vmem:[#allocation30_spill] sm:$0xff] }
 0x215   : > { %v5502_v51 = vand.u32 4294901760, %v5501_v20  ;;  %14761 = vmatmul.mubr.f32.vlgmr.msra.gmra.mrb[4].mxu1 %v17845_v31  ;;  %15272 = vmatprep.mubr.f32.mxu0 %v19054_v4  ;;  %v5002_v59 = vand.u32 4294901760, %v5001_v8  ;;  %v18048_v0 = vpack.c.bf16 %v5508_v43, %v5501_v20  ;;  %v19061_v61 = vld [vmem:[#allocation29_spill] sm:$0xff]  ;;  %v19065_v1 = vld [vmem:[#allocation34_spill] sm:$0xff] }
 0x216   : > { %v5510_v42 = vsub.f32 %v5508_v43, %v5509_v36  ;;  %15921 = vmatpush3.bf16.msra.mxu1 %v17877_v38  ;;  %14767 = vmatprep.mubr.f32.mxu1 %v19021_v5  ;;  %v19064_v63 = vld [vmem:[#allocation33_spill] sm:$0xff] }
 0x217   : > { %v5503_v15 = vsub.f32 %v5501_v20, %v5502_v51  ;;  %15923 = vmatprep.subr.bf16.mxu1 %v17888_v56  ;;  %v18053_v32 = vpack.c.bf16 %v5009_v18, %v5002_v59  ;;  %v18055_v39 = vpack.c.bf16 %v5509_v36, %v5502_v51 }
 0x218   : > { %15273 = vmatmul.mubr.f32.gmra.mrb[28].mxu0 %v19055_v57  ;;  %v5511_v27 = vand.u32 4294901760, %v5510_v42 }
 0x219   : > { %15275 = vmatprep.mubr.f32.mxu0 %v19056_v30  ;;  %v5504_v33 = vand.u32 4294901760, %v5503_v15 }
 0x21b   : > { %v18059_v48 = vpack.c.bf16 %v5511_v27, %v5504_v33 }
 0x21c   : > { %15276 = vmatmul.mubr.f32.gmra.mrb[30].mxu0 %v19057_v54 }
 0x21d   : > { %14768 = vmatmul.mubr.f32.vlgmr.msra.gmra.mrb[4].mxu1 %v17852_v62  ;;  %15278 = vmatprep.mubr.f32.mxu0 %v19058_v28 }
 0x21e   : > { %15925 = vmatpush3.bf16.msra.mxu1 %v17888_v56  ;;  %14774 = vmatprep.mubr.f32.mxu1 %v17492_v22  ;;  %v19063_v56 = vld [vmem:[#allocation32_spill] sm:$0xff] }
 0x21f   : > { %15927 = vmatprep.subr.bf16.mxu1 %v17877_v38 }
 0x220   : > { %15279 = vmatmul.mubr.f32.gmra.mrb[32].mxu0 %v19059_v26 }
 0x221   : > { %15281 = vmatprep.mubr.f32.mxu0 %v19060_v13 }
 0x224   : > { %15282 = vmatmul.mubr.f32.gmra.mrb[34].mxu0 %v19061_v61 }
 0x225   : > { %14775 = vmatmul.mubr.f32.vlgmr.msra.gmra.mrb[4].mxu1 %v17840_v11  ;;  %15284 = vmatprep.mubr.f32.mxu0 %v19062_v19 }
 0x226   : > { %15929 = vmatpush3.bf16.msra.mxu1 %v17877_v38  ;;  %14781 = vmatprep.mubr.f32.mxu1 %v17492_v22 }
 0x227   : > { %15931 = vmatprep.subr.bf16.mxu1 %v17885_v45 }
 0x228   : > { %15285 = vmatmul.mubr.f32.gmra.mrb[36].mxu0 %v19063_v56 }
 0x229   : > { %15287 = vmatprep.mubr.f32.mxu0 %v19064_v63 }
 0x22c   : > { %15288 = vmatmul.mubr.f32.gmra.mrb[38].mxu0 %v19065_v1 }
 0x22d   : > { %14782 = vmatmul.mubr.f32.vlgmr.msra.gmra.mrb[4].mxu1 %v17840_v11  ;;  %15294 = vmatprep.mubr.f32.mxu0 %v17520_v12 }
 0x22e   : > { %15933 = vmatpush3.bf16.msra.mxu1 %v17885_v45  ;;  %14788 = vmatprep.mubr.f32.mxu1 %v19028_v40 }
 0x22f   : > { %15935 = vmatprep.subr.bf16.mxu1 %v17902_v49 }
 0x230   : > { %15295 = vmatmul.mubr.f32.vlgmr.msra.gmra.mrb[16].mxu0 %v17527_v52 }
 0x231   : > { %14789 = vmatmul.mubr.f32.vlgmr.msra.gmra.mrb[6].mxu1 %v17864_v24  ;;  %15297 = vmatprep.mubr.f32.mxu0 %v17533_v58 }
 0x232   : > { %15937 = vmatpush3.bf16.msra.mxu1 %v17902_v49  ;;  %14795 = vmatprep.mubr.f32.mxu1 %v17492_v22 }
 0x233   : > { %15939 = vmatprep.subr.bf16.mxu1 %v17892_v53 }
 0x234   : > { %15298 = vmatmul.mubr.f32.gmra.mrb[18].mxu0 %v17542_v60 }
 0x235   : > { %15300 = vmatprep.mubr.f32.mxu0 %v17559_v7 }
 0x238   : > { %15301 = vmatmul.mubr.f32.gmra.mrb[20].mxu0 %v17565_v23 }
 0x239   : > { %14796 = vmatmul.mubr.f32.vlgmr.msra.gmra.mrb[6].mxu1 %v17840_v11  ;;  %15303 = vmatprep.mubr.f32.mxu0 %v19048_v41 }
 0x23a   : > { %15941 = vmatpush3.bf16.msra.mxu1 %v17892_v53  ;;  %14802 = vmatprep.mubr.f32.mxu1 %v19019_v3 }
 0x23b   : > { %15943 = vmatprep.subr.bf16.mxu1 %v17885_v45 }
 0x23c   : > { %15304 = vmatmul.mubr.f32.gmra.mrb[22].mxu0 %v19049_v17 }
 0x23d   : > { %15306 = vmatprep.mubr.f32.mxu0 %v19050_v2 }
 0x240   : > { %15307 = vmatmul.mubr.f32.gmra.mrb[24].mxu0 %v19051_v35 }
 0x241   : > { %14803 = vmatmul.mubr.f32.vlgmr.msra.gmra.mrb[6].mxu1 %v17845_v31  ;;  %15309 = vmatprep.mubr.f32.mxu0 %v19052_v50 }
 0x242   : > { %15945 = vmatpush3.bf16.msra.mxu1 %v17885_v45  ;;  %14809 = vmatprep.mubr.f32.mxu1 %v19021_v5 }
 0x243   : > { %15947 = vmatprep.subr.bf16.mxu1 %v17898_v34 }
 0x244   : > { %15310 = vmatmul.mubr.f32.gmra.mrb[26].mxu0 %v19053_v29 }
 0x245   : > { %15312 = vmatprep.mubr.f32.mxu0 %v19054_v4 }
 0x248   : > { %15313 = vmatmul.mubr.f32.gmra.mrb[28].mxu0 %v19055_v57 }
 0x249   : > { %14810 = vmatmul.mubr.f32.vlgmr.msra.gmra.mrb[6].mxu1 %v17852_v62  ;;  %15315 = vmatprep.mubr.f32.mxu0 %v19056_v30 }
 0x24a   : > { %15949 = vmatpush3.bf16.msra.mxu1 %v17898_v34  ;;  %14816 = vmatprep.mubr.f32.mxu1 %v17492_v22 }
 0x24b   : > { %15951 = vmatprep.subr.bf16.mxu1 %v17885_v45 }
 0x24c   : > { %15316 = vmatmul.mubr.f32.gmra.mrb[30].mxu0 %v19057_v54 }
 0x24d   : > { %15318 = vmatprep.mubr.f32.mxu0 %v19058_v28 }
 0x250   : > { %15319 = vmatmul.mubr.f32.gmra.mrb[32].mxu0 %v19059_v26 }
 0x251   : > { %14817 = vmatmul.mubr.f32.vlgmr.msra.gmra.mrb[6].mxu1 %v17840_v11  ;;  %15321 = vmatprep.mubr.f32.mxu0 %v19060_v13 }
 0x252   : > { %15953 = vmatpush3.bf16.msra.mxu1 %v17885_v45  ;;  %14823 = vmatprep.mubr.f32.mxu1 %v17492_v22 }
 0x253   : > { %15979 = vmatprep.subr.bf16.mxu1 %v18010_v6 }
 0x254   : > { %15322 = vmatmul.mubr.f32.gmra.mrb[34].mxu0 %v19061_v61 }
 0x255   : > { %15324 = vmatprep.mubr.f32.mxu0 %v19062_v19 }
 0x258   : > { %15325 = vmatmul.mubr.f32.gmra.mrb[36].mxu0 %v19063_v56 }
 0x259   : > { %14824 = vmatmul.mubr.f32.vlgmr.msra.gmra.mrb[6].mxu1 %v17840_v11  ;;  %15327 = vmatprep.mubr.f32.mxu0 %v19064_v63 }
 0x25a   : > { %15981 = vmatpush3.bf16.msra.mxu1 %v18010_v6  ;;  %14926 = vmatprep.mubr.f32.mxu1 %v19028_v40 }
 0x25b   : > { %15983 = vmatprep.subr.bf16.mxu1 %v18031_v10 }
 0x25c   : > { %15328 = vmatmul.mubr.f32.gmra.mrb[38].mxu0 %v19065_v1 }
 0x25d   : > { %14927 = vmatmul.mubr.f32.vlgmr.msra.gmra.mrb[8].mxu1 %v17864_v24 }
 0x25e   : > { %15985 = vmatpush3.bf16.msra.mxu1 %v18031_v10  ;;  %14933 = vmatprep.mubr.f32.mxu1 %v17492_v22 }
 0x25f   : > { %15987 = vmatprep.subr.bf16.mxu1 %v18015_v55 }
 0x265   : > { %14934 = vmatmul.mubr.f32.vlgmr.msra.gmra.mrb[8].mxu1 %v17840_v11 }
 0x266   : > { %15989 = vmatpush3.bf16.msra.mxu1 %v18015_v55  ;;  %14940 = vmatprep.mubr.f32.mxu1 %v19019_v3 }
 0x267   : > { %15991 = vmatprep.subr.bf16.mxu1 %v18010_v6 }
 0x26d   : > { %14941 = vmatmul.mubr.f32.vlgmr.msra.gmra.mrb[8].mxu1 %v17845_v31 }
 0x26e   : > { %15993 = vmatpush3.bf16.msra.mxu1 %v18010_v6  ;;  %14947 = vmatprep.mubr.f32.mxu1 %v19021_v5 }
 0x26f   : > { %15995 = vmatprep.subr.bf16.mxu1 %v18019_v47 }
 0x275   : > { %14948 = vmatmul.mubr.f32.vlgmr.msra.gmra.mrb[8].mxu1 %v17852_v62 }
 0x276   : > { %15997 = vmatpush3.bf16.msra.mxu1 %v18019_v47  ;;  %14954 = vmatprep.mubr.f32.mxu1 %v17492_v22 }
 0x277   : > { %15999 = vmatprep.subr.bf16.mxu1 %v18010_v6 }
 0x27d   : > { %14955 = vmatmul.mubr.f32.vlgmr.msra.gmra.mrb[8].mxu1 %v17840_v11 }
 0x27e   : > { %16001 = vmatpush3.bf16.msra.mxu1 %v18010_v6  ;;  %14961 = vmatprep.mubr.f32.mxu1 %v17492_v22 }
 0x27f   : > { %16003 = vmatprep.subr.bf16.mxu1 %v18017_v25 }
 0x285   : > { %14962 = vmatmul.mubr.f32.vlgmr.msra.gmra.mrb[8].mxu1 %v17840_v11 }
 0x286   : > { %16005 = vmatpush3.bf16.msra.mxu1 %v18017_v25  ;;  %14968 = vmatprep.mubr.f32.mxu1 %v19028_v40 }
 0x287   : > { %16007 = vmatprep.subr.bf16.mxu1 %v18041_v21 }
 0x289   : > { %14969 = vmatmul.mubr.f32.vlgmr.msra.gmra.mrb[10].mxu1 %v17864_v24 }
 0x28a   : > { %16009 = vmatpush3.bf16.msra.mxu1 %v18041_v21  ;;  %14975 = vmatprep.mubr.f32.mxu1 %v17492_v22 }
 0x28b   : > { %16011 = vmatprep.subr.bf16.mxu1 %v18024_v44 }
 0x291   : > { %14976 = vmatmul.mubr.f32.vlgmr.msra.gmra.mrb[10].mxu1 %v17840_v11 }
 0x292   : > { %16013 = vmatpush3.bf16.msra.mxu1 %v18024_v44  ;;  %14982 = vmatprep.mubr.f32.mxu1 %v19019_v3 }
 0x293   : > { %16015 = vmatprep.subr.bf16.mxu1 %v18017_v25 }
 0x299   : > { %14983 = vmatmul.mubr.f32.vlgmr.msra.gmra.mrb[10].mxu1 %v17845_v31 }
 0x29a   : > { %16017 = vmatpush3.bf16.msra.mxu1 %v18017_v25  ;;  %14989 = vmatprep.mubr.f32.mxu1 %v19021_v5 }
 0x29b   : > { %16019 = vmatprep.subr.bf16.mxu1 %v18034_v37 }
 0x2a1   : > { %14990 = vmatmul.mubr.f32.vlgmr.msra.gmra.mrb[10].mxu1 %v17852_v62 }
 0x2a2   : > { %16021 = vmatpush3.bf16.msra.mxu1 %v18034_v37  ;;  %14996 = vmatprep.mubr.f32.mxu1 %v17492_v22 }
 0x2a3   : > { %16023 = vmatprep.subr.bf16.mxu1 %v18017_v25 }
 0x2a8   : > { %v18170_v12 = vpop.f32.mrb[0].mxu1 }
 0x2a9   : > { %v18172_v52 = vpop.f32.mrb[1].mxu1  ;;  %14997 = vmatmul.mubr.f32.vlgmr.msra.gmra.mrb[10].mxu1 %v17840_v11 }
 0x2aa   : > { %16025 = vmatpush3.bf16.msra.mxu1 %v18017_v25  ;;  %15003 = vmatprep.mubr.f32.mxu1 %v17492_v22 }
 0x2ab   : > { %16027 = vmatprep.subr.bf16.mxu1 %v18028_v14 }
 0x2b1   : > { %15004 = vmatmul.mubr.f32.vlgmr.msra.gmra.mrb[10].mxu1 %v17840_v11 }
 0x2b2   : > { %16029 = vmatpush3.bf16.msra.mxu1 %v18028_v14  ;;  %15010 = vmatprep.mubr.f32.mxu1 %v19028_v40 }
 0x2b3   : > { %16031 = vmatprep.subr.bf16.mxu1 %v18053_v32 }
 0x2b5   : > { %15011 = vmatmul.mubr.f32.vlgmr.msra.gmra.mrb[12].mxu1 %v17864_v24 }
 0x2b6   : > { %16033 = vmatpush3.bf16.msra.mxu1 %v18053_v32  ;;  %15017 = vmatprep.mubr.f32.mxu1 %v17492_v22 }
 0x2b7   : > { %16035 = vmatprep.subr.bf16.mxu1 %v18037_v16 }
 0x2bd   : > { %15018 = vmatmul.mubr.f32.vlgmr.msra.gmra.mrb[12].mxu1 %v17840_v11 }
 0x2be   : > { %16037 = vmatpush3.bf16.msra.mxu1 %v18037_v16  ;;  %15024 = vmatprep.mubr.f32.mxu1 %v19019_v3 }
 0x2bf   : > { %16039 = vmatprep.subr.bf16.mxu1 %v18028_v14 }
 0x2c5   : > { %15025 = vmatmul.mubr.f32.vlgmr.msra.gmra.mrb[12].mxu1 %v17845_v31 }
 0x2c6   : > { %16041 = vmatpush3.bf16.msra.mxu1 %v18028_v14  ;;  %15031 = vmatprep.mubr.f32.mxu1 %v19021_v5 }
 0x2c7   : > { %16043 = vmatprep.subr.bf16.mxu1 %v18044_v9 }
 0x2cd   : > { %15032 = vmatmul.mubr.f32.vlgmr.msra.gmra.mrb[12].mxu1 %v17852_v62 }
 0x2ce   : > { %16045 = vmatpush3.bf16.msra.mxu1 %v18044_v9  ;;  %15038 = vmatprep.mubr.f32.mxu1 %v17492_v22 }
 0x2cf   : > { %16047 = vmatprep.subr.bf16.mxu1 %v18028_v14 }
 0x2d4   : > { %v18198_v58 = vpop.f32.mrb[2].mxu1 }
 0x2d5   : > { %v18200_v60 = vpop.f32.mrb[3].mxu1  ;;  %15039 = vmatmul.mubr.f32.vlgmr.msra.gmra.mrb[12].mxu1 %v17840_v11 }
 0x2d6   : > { %16049 = vmatpush3.bf16.msra.mxu1 %v18028_v14  ;;  %15045 = vmatprep.mubr.f32.mxu1 %v17492_v22 }
 0x2d7   : > { %16051 = vmatprep.subr.bf16.mxu1 %v18039_v46 }
 0x2dd   : > { %15046 = vmatmul.mubr.f32.vlgmr.msra.gmra.mrb[12].mxu1 %v17840_v11 }
 0x2de   : > { %16053 = vmatpush3.bf16.msra.mxu1 %v18039_v46  ;;  %15052 = vmatprep.mubr.f32.mxu1 %v19028_v40 }
 0x2df   : > { %16055 = vmatprep.subr.bf16.mxu1 %v18059_v48 }
 0x2e1   : > { %15053 = vmatmul.mubr.f32.vlgmr.msra.gmra.mrb[14].mxu1 %v17864_v24 }
 0x2e2   : > { %16057 = vmatpush3.bf16.msra.mxu1 %v18059_v48  ;;  %15059 = vmatprep.mubr.f32.mxu1 %v17492_v22 }
 0x2e3   : > { %16059 = vmatprep.subr.bf16.mxu1 %v18048_v0 }
 0x2e9   : > { %15060 = vmatmul.mubr.f32.vlgmr.msra.gmra.mrb[14].mxu1 %v17840_v11 }
 0x2ea   : > { %16061 = vmatpush3.bf16.msra.mxu1 %v18048_v0  ;;  %15066 = vmatprep.mubr.f32.mxu1 %v19019_v3 }
 0x2eb   : > { %16063 = vmatprep.subr.bf16.mxu1 %v18039_v46 }
 0x2f1   : > { %15067 = vmatmul.mubr.f32.vlgmr.msra.gmra.mrb[14].mxu1 %v17845_v31 }
 0x2f2   : > { %16065 = vmatpush3.bf16.msra.mxu1 %v18039_v46  ;;  %15073 = vmatprep.mubr.f32.mxu1 %v19021_v5 }
 0x2f3   : > { %16067 = vmatprep.subr.bf16.mxu1 %v18055_v39 }
 0x2f9   : > { %15074 = vmatmul.mubr.f32.vlgmr.msra.gmra.mrb[14].mxu1 %v17852_v62 }
 0x2fa   : > { %16069 = vmatpush3.bf16.msra.mxu1 %v18055_v39  ;;  %15080 = vmatprep.mubr.f32.mxu1 %v17492_v22 }
 0x2fb   : > { %16071 = vmatprep.subr.bf16.mxu1 %v18039_v46 }
 0x300   : > { %v18226_v7 = vpop.f32.mrb[4].mxu1 }
 0x301   : > { %v18228_v23 = vpop.f32.mrb[5].mxu1  ;;  %15081 = vmatmul.mubr.f32.vlgmr.msra.gmra.mrb[14].mxu1 %v17840_v11 }
 0x302   : > { %16073 = vmatpush3.bf16.msra.mxu1 %v18039_v46  ;;  %15087 = vmatprep.mubr.f32.mxu1 %v17492_v22 }
 0x303   : > { %v15296_v38 = vpop.f32.mrb[16].mxu0 }
 0x304   : > { %v7462_v45 = vand.u32 4294901760, %v15296_v38  ;;  %v7316_v53 = vpop.f32.mrb[17].mxu0 }
 0x305   : > { %v7459_v34 = vand.u32 4294901760, %v7316_v53 }
 0x306   : > { %v7554_v49 = vsub.f32 %v15296_v38, %v7462_v45 }
 0x307   : > { %v18233_v6 = vpack.c.bf16 %v7462_v45, %v7459_v34  ;;  %v7547_v41 = vsub.f32 %v7316_v53, %v7459_v34  ;;  %v15299_v55 = vpop.f32.mrb[18].mxu0 }
 0x308   : > { %v7555_v25 = vand.u32 4294901760, %v7554_v49  ;;  %v7964_v47 = vand.u32 4294901760, %v15299_v55  ;;  %v7328_v17 = vpop.f32.mrb[19].mxu0 }
 0x309   : > { %v7548_v2 = vand.u32 4294901760, %v7547_v41  ;;  %v7961_v44 = vand.u32 4294901760, %v7328_v17  ;;  %15088 = vmatmul.mubr.f32.vlgmr.msra.gmra.mrb[14].mxu1 %v17840_v11  ;;  %16099 = vmatprep.subr.bf16.mxu1 %v18233_v6  ;;  %v16106_v14 = vpack.c.bf16 %v7554_v49, %v7547_v41 }
 0x30a   : > { %v7556_v10 = vsub.f32 %v7554_v49, %v7555_v25  ;;  %v8056_v35 = vsub.f32 %v15299_v55, %v7964_v47  ;;  %16101 = vmatpush3.bf16.msra.mxu1 %v18233_v6  ;;  %15334 = vmatprep.mubr.f32.mxu1 %v19028_v40 }
 0x30b   : > { %v7549_v37 = vsub.f32 %v7547_v41, %v7548_v2  ;;  %v18239_v50 = vpack.c.bf16 %v7964_v47, %v7961_v44  ;;  %v8049_v16 = vsub.f32 %v7328_v17, %v7961_v44  ;;  %v15302_v43 = vpop.f32.mrb[20].mxu0  ;;  %v18241_v8 = vpack.c.bf16 %v7555_v25, %v7548_v2 }
 0x30c   : > { %v8057_v46 = vand.u32 4294901760, %v8056_v35  ;;  %v8466_v20 = vand.u32 4294901760, %v15302_v43  ;;  %v7340_v21 = vpop.f32.mrb[21].mxu0  ;;  %v7557_v36 = vand.u32 4294901760, %v7556_v10 }
 0x30d   : > { %v8050_v29 = vand.u32 4294901760, %v8049_v16  ;;  %v8463_v18 = vand.u32 4294901760, %v7340_v21  ;;  %15335 = vmatmul.mubr.f32.vlgmr.msra.gmra.mrb[16].mxu1 %v17864_v24  ;;  %v7550_v9 = vand.u32 4294901760, %v7549_v37  ;;  %v18244_v51 = vpack.c.bf16 %v8056_v35, %v8049_v16 }
 0x30e   : > { %v8058_v4 = vsub.f32 %v8056_v35, %v8057_v46  ;;  %v8558_v59 = vsub.f32 %v15302_v43, %v8466_v20  ;;  %15341 = vmatprep.mubr.f32.mxu1 %v17492_v22 }
 0x30f   : > { %v8051_v0 = vsub.f32 %v8049_v16, %v8050_v29  ;;  %v18247_v42 = vpack.c.bf16 %v8466_v20, %v8463_v18  ;;  %v8551_v15 = vsub.f32 %v7340_v21, %v8463_v18  ;;  %v15305_v32 = vpop.f32.mrb[22].mxu0  ;;  %v16102_v39 = vpack.c.bf16 %v7557_v36, %v7550_v9 }
 0x310   : > { %v8559_v57 = vand.u32 4294901760, %v8558_v59  ;;  %v8968_v27 = vand.u32 4294901760, %v15305_v32  ;;  %v7352_v30 = vpop.f32.mrb[23].mxu0  ;;  %v8059_v33 = vand.u32 4294901760, %v8058_v4  ;;  %v18249_v48 = vpack.c.bf16 %v8057_v46, %v8050_v29 }
 0x311   : > { %v8552_v54 = vand.u32 4294901760, %v8551_v15  ;;  %v8965_v28 = vand.u32 4294901760, %v7352_v30  ;;  %16103 = vmatprep.subr.bf16.mxu1 %v16102_v39  ;;  %v8052_v26 = vand.u32 4294901760, %v8051_v0  ;;  %v18251_v13 = vpack.c.bf16 %v8558_v59, %v8551_v15 }
 0x312   : > { %v8560_v61 = vsub.f32 %v8558_v59, %v8559_v57  ;;  %v9060_v19 = vsub.f32 %v15305_v32, %v8968_v27  ;;  %16105 = vmatpush3.bf16.msra.mxu1 %v16102_v39 }
 0x313   : > { %v8553_v56 = vsub.f32 %v8551_v15, %v8552_v54  ;;  %v18253_v63 = vpack.c.bf16 %v8968_v27, %v8965_v28  ;;  %v9053_v1 = vsub.f32 %v7352_v30, %v8965_v28  ;;  %v15308_v38 = vpop.f32.mrb[24].mxu0  ;;  %16107 = vmatprep.subr.bf16.mxu1 %v16106_v14  ;;  %v18255_v45 = vpack.c.bf16 %v8059_v33, %v8052_v26 }
 0x314   : > { %v9061_v53 = vand.u32 4294901760, %v9060_v19  ;;  %v9470_v34 = vand.u32 4294901760, %v15308_v38  ;;  %v7364_v49 = vpop.f32.mrb[25].mxu0  ;;  %v8561_v41 = vand.u32 4294901760, %v8560_v61  ;;  %v18257_v55 = vpack.c.bf16 %v8559_v57, %v8552_v54 }
 0x315   : > { %v9054_v25 = vand.u32 4294901760, %v9053_v1  ;;  %v9467_v47 = vand.u32 4294901760, %v7364_v49  ;;  %15342 = vmatmul.mubr.f32.vlgmr.msra.gmra.mrb[16].mxu1 %v17840_v11  ;;  %v8554_v17 = vand.u32 4294901760, %v8553_v56  ;;  %v18260_v2 = vpack.c.bf16 %v9060_v19, %v9053_v1 }
 0x316   : > { %v9062_v44 = vsub.f32 %v9060_v19, %v9061_v53  ;;  %v9562_v10 = vsub.f32 %v15308_v38, %v9470_v34  ;;  %16109 = vmatpush3.bf16.msra.mxu1 %v16106_v14  ;;  %15348 = vmatprep.mubr.f32.mxu1 %v19019_v3 }
 0x317   : > { %v9055_v35 = vsub.f32 %v9053_v1, %v9054_v25  ;;  %v18263_v37 = vpack.c.bf16 %v9470_v34, %v9467_v47  ;;  %v9555_v16 = vsub.f32 %v7364_v49, %v9467_v47  ;;  %v15311_v43 = vpop.f32.mrb[26].mxu0  ;;  %16111 = vmatprep.subr.bf16.mxu1 %v18233_v6  ;;  %v18266_v46 = vpack.c.bf16 %v8561_v41, %v8554_v17 }
 0x318   : > { %v9563_v20 = vand.u32 4294901760, %v9562_v10  ;;  %v9972_v21 = vand.u32 4294901760, %v15311_v43  ;;  %v7376_v36 = vpop.f32.mrb[27].mxu0  ;;  %v9063_v29 = vand.u32 4294901760, %v9062_v44  ;;  %v18268_v18 = vpack.c.bf16 %v9061_v53, %v9054_v25 }
 0x319   : > { %v9556_v9 = vand.u32 4294901760, %v9555_v16  ;;  %v9969_v4 = vand.u32 4294901760, %v7376_v36  ;;  %v9056_v14 = vand.u32 4294901760, %v9055_v35  ;;  %v18270_v59 = vpack.c.bf16 %v9562_v10, %v9555_v16 }
 0x31a   : > { %v9564_v0 = vsub.f32 %v9562_v10, %v9563_v20  ;;  %v10064_v15 = vsub.f32 %v15311_v43, %v9972_v21 }
 0x31b   : > { %v9557_v32 = vsub.f32 %v9555_v16, %v9556_v9  ;;  %v18272_v39 = vpack.c.bf16 %v9972_v21, %v9969_v4  ;;  %v10057_v57 = vsub.f32 %v7376_v36, %v9969_v4  ;;  %v15314_v27 = vpop.f32.mrb[28].mxu0  ;;  %v18274_v30 = vpack.c.bf16 %v9063_v29, %v9056_v14 }
 0x31c   : > { %v10065_v33 = vand.u32 4294901760, %v10064_v15  ;;  %v10474_v54 = vand.u32 4294901760, %v15314_v27  ;;  %v7388_v28 = vpop.f32.mrb[29].mxu0  ;;  %v9565_v26 = vand.u32 4294901760, %v9564_v0  ;;  %v18276_v61 = vpack.c.bf16 %v9563_v20, %v9556_v9 }
 0x31d   : > { %v10058_v19 = vand.u32 4294901760, %v10057_v57  ;;  %v10471_v56 = vand.u32 4294901760, %v7388_v28  ;;  %15349 = vmatmul.mubr.f32.vlgmr.msra.gmra.mrb[16].mxu1 %v17845_v31  ;;  %v9558_v1 = vand.u32 4294901760, %v9557_v32  ;;  %v18279_v38 = vpack.c.bf16 %v10064_v15, %v10057_v57 }
 0x31e   : > { %v10066_v53 = vsub.f32 %v10064_v15, %v10065_v33  ;;  %v10566_v34 = vsub.f32 %v15314_v27, %v10474_v54  ;;  %16113 = vmatpush3.bf16.msra.mxu1 %v18233_v6  ;;  %15355 = vmatprep.mubr.f32.mxu1 %v19021_v5 }
 0x31f   : > { %v10059_v49 = vsub.f32 %v10057_v57, %v10058_v19  ;;  %v18283_v41 = vpack.c.bf16 %v10474_v54, %v10471_v56  ;;  %v10559_v25 = vsub.f32 %v7388_v28, %v10471_v56  ;;  %16115 = vmatprep.subr.bf16.mxu1 %v18241_v8  ;;  %v15317_v47 = vpop.f32.mrb[30].mxu0  ;;  %v18286_v17 = vpack.c.bf16 %v9565_v26, %v9558_v1 }
 0x320   : > { %v10567_v44 = vand.u32 4294901760, %v10566_v34  ;;  %v10976_v10 = vand.u32 4294901760, %v15317_v47  ;;  %v7400_v35 = vpop.f32.mrb[31].mxu0  ;;  %v10067_v16 = vand.u32 4294901760, %v10066_v53  ;;  %v18288_v43 = vpack.c.bf16 %v10065_v33, %v10058_v19 }
 0x321   : > { %v10560_v20 = vand.u32 4294901760, %v10559_v25  ;;  %v10973_v21 = vand.u32 4294901760, %v7400_v35  ;;  %v10060_v36 = vand.u32 4294901760, %v10059_v49  ;;  %v18290_v29 = vpack.c.bf16 %v10566_v34, %v10559_v25 }
 0x322   : > { %v10568_v9 = vsub.f32 %v10566_v34, %v10567_v44  ;;  %v11068_v4 = vsub.f32 %v15317_v47, %v10976_v10 }
 0x323   : > { %19066 = vst [vmem:[#allocation23_spill] sm:$0xff] %v18290_v29  ;;  %v10561_v14 = vsub.f32 %v10559_v25, %v10560_v20  ;;  %v18292_v0 = vpack.c.bf16 %v10976_v10, %v10973_v21  ;;  %v11061_v15 = vsub.f32 %v7400_v35, %v10973_v21  ;;  %v15320_v32 = vpop.f32.mrb[32].mxu0  ;;  %v18294_v57 = vpack.c.bf16 %v10067_v16, %v10060_v36 }
 0x324   : > { %v11069_v27 = vand.u32 4294901760, %v11068_v4  ;;  %v11478_v54 = vand.u32 4294901760, %v15320_v32  ;;  %v7412_v28 = vpop.f32.mrb[33].mxu0  ;;  %v10569_v26 = vand.u32 4294901760, %v10568_v9  ;;  %v18296_v33 = vpack.c.bf16 %v10567_v44, %v10560_v20 }
 0x325   : > { %19067 = vst [vmem:[#allocation11_spill] sm:$0xff] %v18292_v0  ;;  %v11062_v19 = vand.u32 4294901760, %v11061_v15  ;;  %v11475_v56 = vand.u32 4294901760, %v7412_v28  ;;  %15356 = vmatmul.mubr.f32.vlgmr.msra.gmra.mrb[16].mxu1 %v17852_v62  ;;  %v10562_v1 = vand.u32 4294901760, %v10561_v14  ;;  %v18299_v53 = vpack.c.bf16 %v11068_v4, %v11061_v15 }
 0x326   : > { %19068 = vst [vmem:[#allocation24_spill] sm:$0xff] %v18296_v33  ;;  %v11070_v34 = vsub.f32 %v11068_v4, %v11069_v27  ;;  %v11570_v49 = vsub.f32 %v15320_v32, %v11478_v54  ;;  %16117 = vmatpush3.bf16.msra.mxu1 %v18241_v8  ;;  %15362 = vmatprep.mubr.f32.mxu1 %v17492_v22 }
 0x327   : > { %19069 = vst [vmem:[#allocation12_spill] sm:$0xff] %v18299_v53  ;;  %v11063_v25 = vsub.f32 %v11061_v15, %v11062_v19  ;;  %v18303_v47 = vpack.c.bf16 %v11478_v54, %v11475_v56  ;;  %v11563_v10 = vsub.f32 %v7412_v28, %v11475_v56  ;;  %16119 = vmatprep.subr.bf16.mxu1 %v18233_v6  ;;  %v15323_v44 = vpop.f32.mrb[34].mxu0 }
 0x328   : > { %v18306_v35 = vpack.c.bf16 %v10569_v26, %v10562_v1  ;;  %v11571_v16 = vand.u32 4294901760, %v11570_v49  ;;  %v11980_v20 = vand.u32 4294901760, %v15323_v44  ;;  %v7424_v21 = vpop.f32.mrb[35].mxu0  ;;  %v11071_v36 = vand.u32 4294901760, %v11070_v34 }
 0x329   : > { %19070 = vst [vmem:[#allocation31_spill] sm:$0xff] %v18303_v47  ;;  %v18308_v9 = vpack.c.bf16 %v11069_v27, %v11062_v19  ;;  %v11564_v4 = vand.u32 4294901760, %v11563_v10  ;;  %v11977_v14 = vand.u32 4294901760, %v7424_v21  ;;  %v11064_v8 = vand.u32 4294901760, %v11063_v25 }
 0x32a   : > { %19071 = vst [vmem:[#allocation13_spill] sm:$0xff] %v18306_v35  ;;  %v18310_v32 = vpack.c.bf16 %v11570_v49, %v11563_v10  ;;  %v11572_v15 = vsub.f32 %v11570_v49, %v11571_v16  ;;  %v12072_v54 = vsub.f32 %v15323_v44, %v11980_v20 }
 0x32b   : > { %19072 = vst [vmem:[#allocation14_spill] sm:$0xff] %v18308_v9  ;;  %v11565_v47 = vsub.f32 %v11563_v10, %v11564_v4  ;;  %v18312_v28 = vpack.c.bf16 %v11980_v20, %v11977_v14  ;;  %v12065_v56 = vsub.f32 %v7424_v21, %v11977_v14  ;;  %v15326_v53 = vpop.f32.mrb[36].mxu0  ;;  %v18314_v26 = vpack.c.bf16 %v11071_v36, %v11064_v8 }
 0x32c   : > { %19073 = vst [vmem:[#allocation15_spill] sm:$0xff] %v18310_v32  ;;  %v12073_v1 = vand.u32 4294901760, %v12072_v54  ;;  %v12482_v0 = vand.u32 4294901760, %v15326_v53  ;;  %v18316_v33 = vpop.f32.mrb[6].mxu1  ;;  %v7436_v27 = vpop.f32.mrb[37].mxu0  ;;  %v11573_v19 = vand.u32 4294901760, %v11572_v15  ;;  %v18318_v34 = vpack.c.bf16 %v11571_v16, %v11564_v4 }
 0x32d   : > { %19074 = vst [vmem:[#allocation16_spill] sm:$0xff] %v18312_v28  ;;  %19075 = vst [vmem:[#allocation17_spill] sm:$0xff] %v18314_v26  ;;  %v12066_v25 = vand.u32 4294901760, %v12065_v56  ;;  %v12479_v9 = vand.u32 4294901760, %v7436_v27  ;;  %v18320_v32 = vpop.f32.mrb[7].mxu1  ;;  %15363 = vmatmul.mubr.f32.vlgmr.msra.gmra.mrb[16].mxu1 %v17840_v11  ;;  %v11566_v49 = vand.u32 4294901760, %v11565_v47  ;;  %v18330_v47 = vpack.c.bf16 %v12072_v54, %v12065_v56 }
 0x32e   : > { %19076 = vst [vmem:[#allocation18_spill] sm:$0xff] %v18318_v34  ;;  %v12074_v10 = vsub.f32 %v12072_v54, %v12073_v1  ;;  %v12574_v44 = vsub.f32 %v15326_v53, %v12482_v0  ;;  %16121 = vmatpush3.bf16.msra.mxu1 %v18233_v6  ;;  %15369 = vmatprep.mubr.f32.mxu1 %v17492_v22 }
 0x32f   : > { %v12067_v20 = vsub.f32 %v12065_v56, %v12066_v25  ;;  %v18325_v21 = vpack.c.bf16 %v12482_v0, %v12479_v9  ;;  %v12567_v36 = vsub.f32 %v7436_v27, %v12479_v9  ;;  %16123 = vmatprep.subr.bf16.mxu1 %v18239_v50  ;;  %v15329_v16 = vpop.f32.mrb[38].mxu0  ;;  %v18328_v4 = vpack.c.bf16 %v11573_v19, %v11566_v49 }
 0x330   : > { %v12575_v14 = vand.u32 4294901760, %v12574_v44  ;;  %v12984_v8 = vand.u32 4294901760, %v15329_v16  ;;  %v7448_v15 = vpop.f32.mrb[39].mxu0  ;;  %v12075_v28 = vand.u32 4294901760, %v12074_v10  ;;  %v18332_v26 = vpack.c.bf16 %v12073_v1, %v12066_v25 }
 0x331   : > { %19077 = vst [vmem:[#allocation19_spill] sm:$0xff] %v18325_v21  ;;  %19078 = vst [vmem:[#allocation20_spill] sm:$0xff] %v18328_v4  ;;  %v12568_v53 = vand.u32 4294901760, %v12567_v36  ;;  %v12981_v34 = vand.u32 4294901760, %v7448_v15  ;;  %v12068_v6 = vand.u32 4294901760, %v12067_v20  ;;  %v18334_v21 = vpack.c.bf16 %v12574_v44, %v12567_v36 }
 0x332   : > { %v12576_v29 = vsub.f32 %v12574_v44, %v12575_v14  ;;  %v13076_v0 = vsub.f32 %v15329_v16, %v12984_v8 }
 0x333   : > { %v12569_v9 = vsub.f32 %v12567_v36, %v12568_v53  ;;  %v18336_v27 = vpack.c.bf16 %v12984_v8, %v12981_v34  ;;  %v13069_v19 = vsub.f32 %v7448_v15, %v12981_v34  ;;  %v18338_v49 = vpack.c.bf16 %v12075_v28, %v12068_v6 }
 0x334   : > { %v13077_v4 = vand.u32 4294901760, %v13076_v0  ;;  %v12577_v35 = vand.u32 4294901760, %v12576_v29  ;;  %v18340_v10 = vpack.c.bf16 %v12575_v14, %v12568_v53 }
 0x335   : > { %v13070_v54 = vand.u32 4294901760, %v13069_v19  ;;  %15370 = vmatmul.mubr.f32.vlgmr.msra.gmra.mrb[16].mxu1 %v17840_v11  ;;  %v12570_v56 = vand.u32 4294901760, %v12569_v9  ;;  %v18343_v1 = vpack.c.bf16 %v13076_v0, %v13069_v19 }
 0x336   : > { %v13078_v25 = vsub.f32 %v13076_v0, %v13077_v4  ;;  %16125 = vmatpush3.bf16.msra.mxu1 %v18239_v50  ;;  %15376 = vmatprep.mubr.f32.mxu1 %v19028_v40 }
 0x337   : > { %v13071_v44 = vsub.f32 %v13069_v19, %v13070_v54  ;;  %16127 = vmatprep.subr.bf16.mxu1 %v18255_v45  ;;  %v18348_v28 = vpack.c.bf16 %v12577_v35, %v12570_v56  ;;  %v18350_v34 = vpack.c.bf16 %v13077_v4, %v13070_v54 }
 0x338   : > { %v13079_v29 = vand.u32 4294901760, %v13078_v25 }
 0x339   : > { %v13072_v20 = vand.u32 4294901760, %v13071_v44  ;;  %15377 = vmatmul.mubr.f32.vlgmr.msra.gmra.mrb[18].mxu1 %v17864_v24 }
 0x33a   : > { %16129 = vmatpush3.bf16.msra.mxu1 %v18255_v45  ;;  %15383 = vmatprep.mubr.f32.mxu1 %v17492_v22  ;;  %v18372_v45 = vmul.f32 %v18170_v12, %v18170_v12 }
 0x33b   : > { %16131 = vmatprep.subr.bf16.mxu1 %v18244_v51  ;;  %v18356_v36 = vpack.c.bf16 %v13079_v29, %v13072_v20 }
 0x341   : > { %15384 = vmatmul.mubr.f32.vlgmr.msra.gmra.mrb[18].mxu1 %v17840_v11 }
 0x342   : > { %16133 = vmatpush3.bf16.msra.mxu1 %v18244_v51  ;;  %15390 = vmatprep.mubr.f32.mxu1 %v19019_v3 }
 0x343   : > { %16135 = vmatprep.subr.bf16.mxu1 %v18239_v50 }
 0x349   : > { %15391 = vmatmul.mubr.f32.vlgmr.msra.gmra.mrb[18].mxu1 %v17845_v31 }
 0x34a   : > { %16137 = vmatpush3.bf16.msra.mxu1 %v18239_v50  ;;  %15397 = vmatprep.mubr.f32.mxu1 %v19021_v5 }
 0x34b   : > { %16139 = vmatprep.subr.bf16.mxu1 %v18249_v48 }
 0x351   : > { %15398 = vmatmul.mubr.f32.vlgmr.msra.gmra.mrb[18].mxu1 %v17852_v62 }
 0x352   : > { %16141 = vmatpush3.bf16.msra.mxu1 %v18249_v48  ;;  %15404 = vmatprep.mubr.f32.mxu1 %v17492_v22  ;;  %v18382_v48 = vmul.f32 %v18172_v52, %v18172_v52 }
 0x353   : > { %16143 = vmatprep.subr.bf16.mxu1 %v18239_v50 }
 0x358   : > { %v14963_v51 = vpop.f32.mrb[8].mxu1 }
 0x359   : > { %v18374_v35 = vmul.f32 %v14963_v51, %v14963_v51  ;;  %v18377_v16 = vmul.f32 %v14963_v51, %v18170_v12  ;;  %v4398_v4 = vpop.f32.mrb[9].mxu1  ;;  %15405 = vmatmul.mubr.f32.vlgmr.msra.gmra.mrb[18].mxu1 %v17840_v11 }
 0x35a   : > { %v18384_v14 = vmul.f32 %v4398_v4, %v4398_v4  ;;  %v18387_v8 = vmul.f32 %v4398_v4, %v18172_v52  ;;  %16145 = vmatpush3.bf16.msra.mxu1 %v18239_v50  ;;  %15411 = vmatprep.mubr.f32.mxu1 %v17492_v22  ;;  %v18422_v50 = vmul.f32 %v18198_v58, %v18198_v58  ;;  %v19082_v4 = vld [vmem:[#allocation23_spill] sm:$0xff] }
 0x35b   : > { %v18393_v12 = vadd.f32 %v18374_v35, %v18372_v45  ;;  %16147 = vmatprep.subr.bf16.mxu1 %v18247_v42 }
 0x35c   : > { %v18398_v15 = vadd.f32 %v18384_v14, %v18382_v48 }
 0x361   : > { %15412 = vmatmul.mubr.f32.vlgmr.msra.gmra.mrb[18].mxu1 %v17840_v11 }
 0x362   : > { %16149 = vmatpush3.bf16.msra.mxu1 %v18247_v42  ;;  %15418 = vmatprep.mubr.f32.mxu1 %v19028_v40 }
 0x363   : > { %16151 = vmatprep.subr.bf16.mxu1 %v18266_v46 }
 0x365   : > { %15419 = vmatmul.mubr.f32.vlgmr.msra.gmra.mrb[20].mxu1 %v17864_v24 }
 0x366   : > { %16153 = vmatpush3.bf16.msra.mxu1 %v18266_v46  ;;  %15425 = vmatprep.mubr.f32.mxu1 %v17492_v22 }
 0x367   : > { %16155 = vmatprep.subr.bf16.mxu1 %v18251_v13 }
 0x36d   : > { %15426 = vmatmul.mubr.f32.vlgmr.msra.gmra.mrb[20].mxu1 %v17840_v11 }
 0x36e   : > { %16157 = vmatpush3.bf16.msra.mxu1 %v18251_v13  ;;  %15432 = vmatprep.mubr.f32.mxu1 %v19019_v3 }
 0x36f   : > { %16159 = vmatprep.subr.bf16.mxu1 %v18247_v42 }
 0x375   : > { %15433 = vmatmul.mubr.f32.vlgmr.msra.gmra.mrb[20].mxu1 %v17845_v31 }
 0x376   : > { %16161 = vmatpush3.bf16.msra.mxu1 %v18247_v42  ;;  %15439 = vmatprep.mubr.f32.mxu1 %v19021_v5 }
 0x377   : > { %16163 = vmatprep.subr.bf16.mxu1 %v18257_v55 }
 0x37d   : > { %15440 = vmatmul.mubr.f32.vlgmr.msra.gmra.mrb[20].mxu1 %v17852_v62 }
 0x37e   : > { %16165 = vmatpush3.bf16.msra.mxu1 %v18257_v55  ;;  %15446 = vmatprep.mubr.f32.mxu1 %v17492_v22  ;;  %v18432_v55 = vmul.f32 %v18200_v60, %v18200_v60 }
 0x37f   : > { %16167 = vmatprep.subr.bf16.mxu1 %v18247_v42 }
 0x384   : > { %v15005_v52 = vpop.f32.mrb[10].mxu1 }
 0x385   : > { %v18424_v13 = vmul.f32 %v15005_v52, %v15005_v52  ;;  %v18427_v46 = vmul.f32 %v15005_v52, %v18198_v58  ;;  %v4900_v53 = vpop.f32.mrb[11].mxu1  ;;  %15447 = vmatmul.mubr.f32.vlgmr.msra.gmra.mrb[20].mxu1 %v17840_v11 }
 0x386   : > { %v18434_v6 = vmul.f32 %v4900_v53, %v4900_v53  ;;  %v18437_v0 = vmul.f32 %v4900_v53, %v18200_v60  ;;  %16169 = vmatpush3.bf16.msra.mxu1 %v18247_v42  ;;  %15453 = vmatprep.mubr.f32.mxu1 %v17492_v22  ;;  %v18472_v42 = vmul.f32 %v18226_v7, %v18226_v7 }
 0x387   : > { %v18443_v58 = vadd.f32 %v18424_v13, %v18422_v50  ;;  %16171 = vmatprep.subr.bf16.mxu1 %v18253_v63 }
 0x388   : > { %v18448_v9 = vadd.f32 %v18434_v6, %v18432_v55 }
 0x38d   : > { %15454 = vmatmul.mubr.f32.vlgmr.msra.gmra.mrb[20].mxu1 %v17840_v11 }
 0x38e   : > { %16173 = vmatpush3.bf16.msra.mxu1 %v18253_v63  ;;  %15460 = vmatprep.mubr.f32.mxu1 %v19028_v40 }
 0x38f   : > { %16175 = vmatprep.subr.bf16.mxu1 %v18274_v30 }
 0x391   : > { %15461 = vmatmul.mubr.f32.vlgmr.msra.gmra.mrb[22].mxu1 %v17864_v24 }
 0x392   : > { %16177 = vmatpush3.bf16.msra.mxu1 %v18274_v30  ;;  %15467 = vmatprep.mubr.f32.mxu1 %v17492_v22 }
 0x393   : > { %16179 = vmatprep.subr.bf16.mxu1 %v18260_v2 }
 0x399   : > { %15468 = vmatmul.mubr.f32.vlgmr.msra.gmra.mrb[22].mxu1 %v17840_v11 }
 0x39a   : > { %16181 = vmatpush3.bf16.msra.mxu1 %v18260_v2  ;;  %15474 = vmatprep.mubr.f32.mxu1 %v19019_v3 }
 0x39b   : > { %16183 = vmatprep.subr.bf16.mxu1 %v18253_v63 }
 0x3a1   : > { %15475 = vmatmul.mubr.f32.vlgmr.msra.gmra.mrb[22].mxu1 %v17845_v31 }
 0x3a2   : > { %16185 = vmatpush3.bf16.msra.mxu1 %v18253_v63  ;;  %15481 = vmatprep.mubr.f32.mxu1 %v19021_v5 }
 0x3a3   : > { %16187 = vmatprep.subr.bf16.mxu1 %v18268_v18 }
 0x3a9   : > { %15482 = vmatmul.mubr.f32.vlgmr.msra.gmra.mrb[22].mxu1 %v17852_v62 }
 0x3aa   : > { %16189 = vmatpush3.bf16.msra.mxu1 %v18268_v18  ;;  %15488 = vmatprep.mubr.f32.mxu1 %v17492_v22  ;;  %v18482_v18 = vmul.f32 %v18228_v23, %v18228_v23 }
 0x3ab   : > { %16191 = vmatprep.subr.bf16.mxu1 %v18253_v63 }
 0x3b0   : > { %v15047_v60 = vpop.f32.mrb[12].mxu1 }
 0x3b1   : > { %v18474_v2 = vmul.f32 %v15047_v60, %v15047_v60  ;;  %v18477_v30 = vmul.f32 %v15047_v60, %v18226_v7  ;;  %v5402_v19 = vpop.f32.mrb[13].mxu1  ;;  %15489 = vmatmul.mubr.f32.vlgmr.msra.gmra.mrb[22].mxu1 %v17840_v11 }
 0x3b2   : > { %v18484_v54 = vmul.f32 %v5402_v19, %v5402_v19  ;;  %v18487_v56 = vmul.f32 %v5402_v19, %v18228_v23  ;;  %16193 = vmatpush3.bf16.msra.mxu1 %v18253_v63  ;;  %15495 = vmatprep.mubr.f32.mxu1 %v17492_v22  ;;  %v18522_v63 = vmul.f32 %v18316_v33, %v18316_v33 }
 0x3b3   : > { %v18493_v7 = vadd.f32 %v18474_v2, %v18472_v42  ;;  %16195 = vmatprep.subr.bf16.mxu1 %v18263_v37 }
 0x3b4   : > { %v18498_v25 = vadd.f32 %v18484_v54, %v18482_v18 }
 0x3b9   : > { %15496 = vmatmul.mubr.f32.vlgmr.msra.gmra.mrb[22].mxu1 %v17840_v11 }
 0x3ba   : > { %16197 = vmatpush3.bf16.msra.mxu1 %v18263_v37  ;;  %15502 = vmatprep.mubr.f32.mxu1 %v19028_v40 }
 0x3bb   : > { %16199 = vmatprep.subr.bf16.mxu1 %v18286_v17 }
 0x3bd   : > { %15503 = vmatmul.mubr.f32.vlgmr.msra.gmra.mrb[24].mxu1 %v17864_v24 }
 0x3be   : > { %16201 = vmatpush3.bf16.msra.mxu1 %v18286_v17  ;;  %15509 = vmatprep.mubr.f32.mxu1 %v17492_v22 }
 0x3bf   : > { %16203 = vmatprep.subr.bf16.mxu1 %v18270_v59 }
 0x3c5   : > { %15510 = vmatmul.mubr.f32.vlgmr.msra.gmra.mrb[24].mxu1 %v17840_v11 }
 0x3c6   : > { %16205 = vmatpush3.bf16.msra.mxu1 %v18270_v59  ;;  %15516 = vmatprep.mubr.f32.mxu1 %v19019_v3 }
 0x3c7   : > { %16207 = vmatprep.subr.bf16.mxu1 %v18263_v37 }
 0x3cd   : > { %15517 = vmatmul.mubr.f32.vlgmr.msra.gmra.mrb[24].mxu1 %v17845_v31 }
 0x3ce   : > { %16209 = vmatpush3.bf16.msra.mxu1 %v18263_v37  ;;  %15523 = vmatprep.mubr.f32.mxu1 %v19021_v5 }
 0x3cf   : > { %16211 = vmatprep.subr.bf16.mxu1 %v18276_v61 }
 0x3d5   : > { %15524 = vmatmul.mubr.f32.vlgmr.msra.gmra.mrb[24].mxu1 %v17852_v62 }
 0x3d6   : > { %16213 = vmatpush3.bf16.msra.mxu1 %v18276_v61  ;;  %15530 = vmatprep.mubr.f32.mxu1 %v17492_v22  ;;  %v18532_v61 = vmul.f32 %v18320_v32, %v18320_v32 }
 0x3d7   : > { %16215 = vmatprep.subr.bf16.mxu1 %v18263_v37 }
 0x3dc   : > { %v15089_v23 = vpop.f32.mrb[14].mxu1 }
 0x3dd   : > { %v18524_v59 = vmul.f32 %v15089_v23, %v15089_v23  ;;  %v18527_v17 = vmul.f32 %v15089_v23, %v18316_v33  ;;  %v5904_v44 = vpop.f32.mrb[15].mxu1  ;;  %15531 = vmatmul.mubr.f32.vlgmr.msra.gmra.mrb[24].mxu1 %v17840_v11  ;;  %v19084_v23 = vld [vmem:[#allocation11_spill] sm:$0xff] }
 0x3de   : > { %v18534_v29 = vmul.f32 %v5904_v44, %v5904_v44  ;;  %v18537_v20 = vmul.f32 %v5904_v44, %v18320_v32  ;;  %16217 = vmatpush3.bf16.msra.mxu1 %v18263_v37  ;;  %15537 = vmatprep.mubr.f32.mxu1 %v17492_v22  ;;  %v19085_v44 = vld [vmem:[#allocation17_spill] sm:$0xff] }
 0x3df   : > { %19079 = vst [vmem:[#allocation21_spill] sm:$0xff] %v18527_v17  ;;  %v18543_v33 = vadd.f32 %v18524_v59, %v18522_v63  ;;  %16219 = vmatprep.subr.bf16.mxu1 %v18272_v39  ;;  %v13578_v17 = vadd.f32 0.0001, %v18398_v15 }
 0x3e0   : > { %19080 = vst [vmem:[#allocation22_spill] sm:$0xff] %v18537_v20  ;;  %v18548_v51 = vadd.f32 %v18534_v29, %v18532_v61 }
 0x3e5   : > { %15538 = vmatmul.mubr.f32.vlgmr.msra.gmra.mrb[24].mxu1 %v17840_v11 }
 0x3e6   : > { %16221 = vmatpush3.bf16.msra.mxu1 %v18272_v39  ;;  %15544 = vmatprep.mubr.f32.mxu1 %v19028_v40 }
 0x3e7   : > { %16223 = vmatprep.subr.bf16.mxu1 %v18294_v57 }
 0x3e9   : > { %15545 = vmatmul.mubr.f32.vlgmr.msra.gmra.mrb[26].mxu1 %v17864_v24 }
 0x3ea   : > { %16225 = vmatpush3.bf16.msra.mxu1 %v18294_v57  ;;  %15551 = vmatprep.mubr.f32.mxu1 %v17492_v22 }
 0x3eb   : > { %16227 = vmatprep.subr.bf16.mxu1 %v18279_v38 }
 0x3f1   : > { %15552 = vmatmul.mubr.f32.vlgmr.msra.gmra.mrb[26].mxu1 %v17840_v11 }
 0x3f2   : > { %16229 = vmatpush3.bf16.msra.mxu1 %v18279_v38  ;;  %15558 = vmatprep.mubr.f32.mxu1 %v19019_v3 }
 0x3f3   : > { %16231 = vmatprep.subr.bf16.mxu1 %v18272_v39 }
 0x3f9   : > { %15559 = vmatmul.mubr.f32.vlgmr.msra.gmra.mrb[26].mxu1 %v17845_v31 }
 0x3fa   : > { %16233 = vmatpush3.bf16.msra.mxu1 %v18272_v39  ;;  %15565 = vmatprep.mubr.f32.mxu1 %v19021_v5 }
 0x3fb   : > { %16235 = vmatprep.subr.bf16.mxu1 %v18288_v43 }
 0x401   : > { %15566 = vmatmul.mubr.f32.vlgmr.msra.gmra.mrb[26].mxu1 %v17852_v62 }
 0x402   : > { %16237 = vmatpush3.bf16.msra.mxu1 %v18288_v43  ;;  %15572 = vmatprep.mubr.f32.mxu1 %v17492_v22  ;;  %v19081_v43 = vld [vmem:[#allocation13_spill] sm:$0xff] }
 0x403   : > { %16239 = vmatprep.subr.bf16.mxu1 %v18272_v39 }
 0x408   : > { %v18570_v37 = vpop.f32.mrb[16].mxu1 }
 0x409   : > { %v13507_v38 = vsub.f32 %v18570_v37, %v18372_v45  ;;  %v18574_v57 = vpop.f32.mrb[17].mxu1  ;;  %15573 = vmatmul.mubr.f32.vlgmr.msra.gmra.mrb[26].mxu1 %v17840_v11  ;;  %v13580_v37 = vadd.f32 0.0001, %v18448_v9 }
 0x40a   : > { %v13506_v32 = vsub.f32 %v18574_v57, %v18382_v48  ;;  %16241 = vmatpush3.bf16.msra.mxu1 %v18272_v39  ;;  %15579 = vmatprep.mubr.f32.mxu1 %v17492_v22  ;;  %v19083_v39 = vld [vmem:[#allocation24_spill] sm:$0xff] }
 0x40b   : > { %16243 = vmatprep.subr.bf16.mxu1 %v18283_v41 }
 0x411   : > { %15580 = vmatmul.mubr.f32.vlgmr.msra.gmra.mrb[26].mxu1 %v17840_v11 }
 0x412   : > { %16245 = vmatpush3.bf16.msra.mxu1 %v18283_v41  ;;  %15586 = vmatprep.mubr.f32.mxu1 %v19028_v40 }
 0x413   : > { %16247 = vmatprep.subr.bf16.mxu1 %v19081_v43 }
 0x415   : > { %15587 = vmatmul.mubr.f32.vlgmr.msra.gmra.mrb[28].mxu1 %v17864_v24 }
 0x416   : > { %16249 = vmatpush3.bf16.msra.mxu1 %v19081_v43  ;;  %15593 = vmatprep.mubr.f32.mxu1 %v17492_v22  ;;  %v19086_v43 = vld [vmem:[#allocation12_spill] sm:$0xff] }
 0x417   : > { %16251 = vmatprep.subr.bf16.mxu1 %v19082_v4 }
 0x41d   : > { %15594 = vmatmul.mubr.f32.vlgmr.msra.gmra.mrb[28].mxu1 %v17840_v11 }
 0x41e   : > { %16253 = vmatpush3.bf16.msra.mxu1 %v19082_v4  ;;  %15600 = vmatprep.mubr.f32.mxu1 %v19019_v3 }
 0x41f   : > { %16255 = vmatprep.subr.bf16.mxu1 %v18283_v41 }
 0x425   : > { %15601 = vmatmul.mubr.f32.vlgmr.msra.gmra.mrb[28].mxu1 %v17845_v31 }
 0x426   : > { %16257 = vmatpush3.bf16.msra.mxu1 %v18283_v41  ;;  %15607 = vmatprep.mubr.f32.mxu1 %v19021_v5 }
 0x427   : > { %16259 = vmatprep.subr.bf16.mxu1 %v19083_v39 }
 0x42d   : > { %15608 = vmatmul.mubr.f32.vlgmr.msra.gmra.mrb[28].mxu1 %v17852_v62 }
 0x42e   : > { %16261 = vmatpush3.bf16.msra.mxu1 %v19083_v39  ;;  %15614 = vmatprep.mubr.f32.mxu1 %v17492_v22  ;;  %v19089_v39 = vld [vmem:[#allocation20_spill] sm:$0xff] }
 0x42f   : > { %16263 = vmatprep.subr.bf16.mxu1 %v18283_v41 }
 0x434   : > { %v18602_v52 = vpop.f32.mrb[18].mxu1 }
 0x435   : > { %v18606_v60 = vpop.f32.mrb[19].mxu1  ;;  %15615 = vmatmul.mubr.f32.vlgmr.msra.gmra.mrb[28].mxu1 %v17840_v11 }
 0x436   : > { %16265 = vmatpush3.bf16.msra.mxu1 %v18283_v41  ;;  %15621 = vmatprep.mubr.f32.mxu1 %v17492_v22  ;;  %v19087_v41 = vld [vmem:[#allocation14_spill] sm:$0xff]  ;;  %v19095_v15 = vsub.f32 %v18606_v60, %v18432_v55  ;;  %v13582_v55 = vadd.f32 0.0001, %v18498_v25  ;;  %v13584_v60 = vadd.f32 0.0001, %v18548_v51 }
 0x437   : > { %16267 = vmatprep.subr.bf16.mxu1 %v19084_v23 }
 0x43d   : > { %15622 = vmatmul.mubr.f32.vlgmr.msra.gmra.mrb[28].mxu1 %v17840_v11 }
 0x43e   : > { %16269 = vmatpush3.bf16.msra.mxu1 %v19084_v23  ;;  %15628 = vmatprep.mubr.f32.mxu1 %v19028_v40 }
 0x43f   : > { %16271 = vmatprep.subr.bf16.mxu1 %v19085_v44 }
 0x441   : > { %15629 = vmatmul.mubr.f32.vlgmr.msra.gmra.mrb[30].mxu1 %v17864_v24 }
 0x442   : > { %16273 = vmatpush3.bf16.msra.mxu1 %v19085_v44  ;;  %15635 = vmatprep.mubr.f32.mxu1 %v17492_v22 }
 0x443   : > { %16275 = vmatprep.subr.bf16.mxu1 %v19086_v43 }
 0x449   : > { %15636 = vmatmul.mubr.f32.vlgmr.msra.gmra.mrb[30].mxu1 %v17840_v11 }
 0x44a   : > { %16277 = vmatpush3.bf16.msra.mxu1 %v19086_v43  ;;  %15642 = vmatprep.mubr.f32.mxu1 %v19019_v3  ;;  %v19090_v43 = vld [vmem:[#allocation15_spill] sm:$0xff] }
 0x44b   : > { %16279 = vmatprep.subr.bf16.mxu1 %v19084_v23 }
 0x451   : > { %15643 = vmatmul.mubr.f32.vlgmr.msra.gmra.mrb[30].mxu1 %v17845_v31 }
 0x452   : > { %16281 = vmatpush3.bf16.msra.mxu1 %v19084_v23  ;;  %15649 = vmatprep.mubr.f32.mxu1 %v19021_v5 }
 0x453   : > { %16283 = vmatprep.subr.bf16.mxu1 %v19087_v41 }
 0x459   : > { %15650 = vmatmul.mubr.f32.vlgmr.msra.gmra.mrb[30].mxu1 %v17852_v62 }
 0x45a   : > { %16285 = vmatpush3.bf16.msra.mxu1 %v19087_v41  ;;  %15656 = vmatprep.mubr.f32.mxu1 %v17492_v22  ;;  %v19088_v41 = vld [vmem:[#allocation31_spill] sm:$0xff] }
 0x45b   : > { %16287 = vmatprep.subr.bf16.mxu1 %v19084_v23 }
 0x460   : > { %v18634_v4 = vpop.f32.mrb[20].mxu1 }
 0x461   : > { %v18638_v44 = vpop.f32.mrb[21].mxu1  ;;  %15657 = vmatmul.mubr.f32.vlgmr.msra.gmra.mrb[30].mxu1 %v17840_v11 }
 0x462   : > { %16289 = vmatpush3.bf16.msra.mxu1 %v19084_v23  ;;  %15663 = vmatprep.mubr.f32.mxu1 %v17492_v22  ;;  %v19091_v23 = vld [vmem:[#allocation18_spill] sm:$0xff] }
 0x463   : > { %16291 = vmatprep.subr.bf16.mxu1 %v19088_v41 }
 0x469   : > { %15664 = vmatmul.mubr.f32.vlgmr.msra.gmra.mrb[30].mxu1 %v17840_v11 }
 0x46a   : > { %16293 = vmatpush3.bf16.msra.mxu1 %v19088_v41  ;;  %15670 = vmatprep.mubr.f32.mxu1 %v19028_v40 }
 0x46b   : > { %16295 = vmatprep.subr.bf16.mxu1 %v19089_v39 }
 0x46d   : > { %15671 = vmatmul.mubr.f32.vlgmr.msra.gmra.mrb[32].mxu1 %v17864_v24 }
 0x46e   : > { %16297 = vmatpush3.bf16.msra.mxu1 %v19089_v39  ;;  %15677 = vmatprep.mubr.f32.mxu1 %v17492_v22 }
 0x46f   : > { %16299 = vmatprep.subr.bf16.mxu1 %v19090_v43 }
 0x475   : > { %15678 = vmatmul.mubr.f32.vlgmr.msra.gmra.mrb[32].mxu1 %v17840_v11 }
 0x476   : > { %16301 = vmatpush3.bf16.msra.mxu1 %v19090_v43  ;;  %15684 = vmatprep.mubr.f32.mxu1 %v19019_v3  ;;  %v19093_v43 = vld [vmem:[#allocation19_spill] sm:$0xff] }
 0x477   : > { %16303 = vmatprep.subr.bf16.mxu1 %v19088_v41 }
 0x47d   : > { %15685 = vmatmul.mubr.f32.vlgmr.msra.gmra.mrb[32].mxu1 %v17845_v31 }
 0x47e   : > { %16305 = vmatpush3.bf16.msra.mxu1 %v19088_v41  ;;  %15691 = vmatprep.mubr.f32.mxu1 %v19021_v5 }
 0x47f   : > { %16307 = vmatprep.subr.bf16.mxu1 %v19091_v23 }
 0x485   : > { %15692 = vmatmul.mubr.f32.vlgmr.msra.gmra.mrb[32].mxu1 %v17852_v62 }
 0x486   : > { %16309 = vmatpush3.bf16.msra.mxu1 %v19091_v23  ;;  %15698 = vmatprep.mubr.f32.mxu1 %v17492_v22  ;;  %v19092_v23 = vld [vmem:[#allocation16_spill] sm:$0xff] }
 0x487   : > { %16311 = vmatprep.subr.bf16.mxu1 %v19088_v41 }
 0x48c   : > { %v18666_v39 = vpop.f32.mrb[22].mxu1 }
 0x48d   : > { %v18670_v19 = vpop.f32.mrb[23].mxu1  ;;  %15699 = vmatmul.mubr.f32.vlgmr.msra.gmra.mrb[32].mxu1 %v17840_v11 }
 0x48e   : > { %16313 = vmatpush3.bf16.msra.mxu1 %v19088_v41  ;;  %15705 = vmatprep.mubr.f32.mxu1 %v17492_v22  ;;  %v19099_v25 = vsub.f32 %v18670_v19, %v18532_v61 }
 0x48f   : > { %16315 = vmatprep.subr.bf16.mxu1 %v19092_v23 }
 0x495   : > { %15706 = vmatmul.mubr.f32.vlgmr.msra.gmra.mrb[32].mxu1 %v17840_v11 }
 0x496   : > { %16317 = vmatpush3.bf16.msra.mxu1 %v19092_v23  ;;  %15712 = vmatprep.mubr.f32.mxu1 %v19028_v40 }
 0x497   : > { %16319 = vmatprep.subr.bf16.mxu1 %v18338_v49 }
 0x499   : > { %15713 = vmatmul.mubr.f32.vlgmr.msra.gmra.mrb[34].mxu1 %v17864_v24 }
 0x49a   : > { %16321 = vmatpush3.bf16.msra.mxu1 %v18338_v49  ;;  %15719 = vmatprep.mubr.f32.mxu1 %v17492_v22 }
 0x49b   : > { %16323 = vmatprep.subr.bf16.mxu1 %v18330_v47 }
 0x4a1   : > { %15720 = vmatmul.mubr.f32.vlgmr.msra.gmra.mrb[34].mxu1 %v17840_v11 }
 0x4a2   : > { %16325 = vmatpush3.bf16.msra.mxu1 %v18330_v47  ;;  %15726 = vmatprep.mubr.f32.mxu1 %v19019_v3 }
 0x4a3   : > { %16327 = vmatprep.subr.bf16.mxu1 %v19092_v23 }
 0x4a9   : > { %15727 = vmatmul.mubr.f32.vlgmr.msra.gmra.mrb[34].mxu1 %v17845_v31 }
 0x4aa   : > { %16329 = vmatpush3.bf16.msra.mxu1 %v19092_v23  ;;  %15733 = vmatprep.mubr.f32.mxu1 %v19021_v5 }
 0x4ab   : > { %16331 = vmatprep.subr.bf16.mxu1 %v18332_v26 }
 0x4b1   : > { %15734 = vmatmul.mubr.f32.vlgmr.msra.gmra.mrb[34].mxu1 %v17852_v62 }
 0x4b2   : > { %16333 = vmatpush3.bf16.msra.mxu1 %v18332_v26  ;;  %15740 = vmatprep.mubr.f32.mxu1 %v17492_v22 }
 0x4b3   : > { %16335 = vmatprep.subr.bf16.mxu1 %v19092_v23 }
 0x4b8   : > { %v15539_v47 = vpop.f32.mrb[24].mxu1 }
 0x4b9   : > { %v13515_v49 = vsub.f32 %v15539_v47, %v18374_v35  ;;  %v9958_v41 = vpop.f32.mrb[25].mxu1  ;;  %15741 = vmatmul.mubr.f32.vlgmr.msra.gmra.mrb[34].mxu1 %v17840_v11  ;;  %v13579_v35 = vadd.f32 0.0001, %v18393_v12  ;;  %v19094_v12 = vsub.f32 %v18602_v52, %v18422_v50  ;;  %v13585_v52 = vadd.f32 0.0001, %v18543_v33 }
 0x4ba   : > { %v13514_v53 = vsub.f32 %v9958_v41, %v18384_v14  ;;  %16337 = vmatpush3.bf16.msra.mxu1 %v19092_v23  ;;  %15747 = vmatprep.mubr.f32.mxu1 %v17492_v22  ;;  %v13531_v33 = vmul.f32 2.0, %v18377_v16 }
 0x4bb   : > { %v13587_v26 = vadd.f32 %v13515_v49, %v13507_v38  ;;  %16339 = vmatprep.subr.bf16.mxu1 %v19093_v43 }
 0x4bc   : > { %v13586_v20 = vadd.f32 %v13514_v53, %v13506_v32 }
 0x4bd   : > { %v13595_v47 = vadd.f32 0.0009, %v13587_v26 }
 0x4be   : > { %v13594_v14 = vadd.f32 0.0009, %v13586_v20 }
 0x4bf   : > { %v18712_v41 = vmul.f32 %v13595_v47, %v13579_v35 }
 0x4c0   : > { %v18714_v23 = vmul.f32 %v13594_v14, %v13578_v17 }
 0x4c1   : > { %15748 = vmatmul.mubr.f32.vlgmr.msra.gmra.mrb[34].mxu1 %v17840_v11  ;;  %16842 = vrcp.f32 %v18712_v41 }
 0x4c2   : > { %16341 = vmatpush3.bf16.msra.mxu1 %v19093_v43  ;;  %15754 = vmatprep.mubr.f32.mxu1 %v19028_v40  ;;  %16844 = vrcp.f32 %v18714_v23 }
 0x4c3   : > { %16343 = vmatprep.subr.bf16.mxu1 %v18348_v28 }
 0x4c5   : > { %15755 = vmatmul.mubr.f32.vlgmr.msra.gmra.mrb[36].mxu1 %v17864_v24 }
 0x4c6   : > { %16345 = vmatpush3.bf16.msra.mxu1 %v18348_v28  ;;  %15761 = vmatprep.mubr.f32.mxu1 %v17492_v22 }
 0x4c7   : > { %16347 = vmatprep.subr.bf16.mxu1 %v18334_v21 }
 0x4cd   : > { %15762 = vmatmul.mubr.f32.vlgmr.msra.gmra.mrb[36].mxu1 %v17840_v11 }
 0x4ce   : > { %16349 = vmatpush3.bf16.msra.mxu1 %v18334_v21  ;;  %15768 = vmatprep.mubr.f32.mxu1 %v19019_v3 }
 0x4cf   : > { %16351 = vmatprep.subr.bf16.mxu1 %v19093_v43 }
 0x4d5   : > { %15769 = vmatmul.mubr.f32.vlgmr.msra.gmra.mrb[36].mxu1 %v17845_v31 }
 0x4d6   : > { %16353 = vmatpush3.bf16.msra.mxu1 %v19093_v43  ;;  %15775 = vmatprep.mubr.f32.mxu1 %v19021_v5 }
 0x4d7   : > { %16355 = vmatprep.subr.bf16.mxu1 %v18340_v10 }
 0x4dd   : > { %15776 = vmatmul.mubr.f32.vlgmr.msra.gmra.mrb[36].mxu1 %v17852_v62 }
 0x4de   : > { %16357 = vmatpush3.bf16.msra.mxu1 %v18340_v10  ;;  %15782 = vmatprep.mubr.f32.mxu1 %v17492_v22 }
 0x4df   : > { %16359 = vmatprep.subr.bf16.mxu1 %v19093_v43 }
 0x4e4   : > { %v15581_v21 = vpop.f32.mrb[26].mxu1 }
 0x4e5   : > { %v13517_v28 = vsub.f32 %v15581_v21, %v18424_v13  ;;  %v10460_v45 = vpop.f32.mrb[27].mxu1  ;;  %15783 = vmatmul.mubr.f32.vlgmr.msra.gmra.mrb[36].mxu1 %v17840_v11  ;;  %v13581_v13 = vadd.f32 0.0001, %v18443_v58  ;;  %v13539_v21 = vadd.f32 0.0001, %v13531_v33  ;;  %v13534_v33 = vmul.f32 2.0, %v18487_v56 }
 0x4e6   : > { %v13516_v48 = vsub.f32 %v10460_v45, %v18434_v6  ;;  %16361 = vmatpush3.bf16.msra.mxu1 %v19093_v43  ;;  %15789 = vmatprep.mubr.f32.mxu1 %v17492_v22  ;;  %v13530_v43 = vmul.f32 2.0, %v18387_v8 }
 0x4e7   : > { %v13589_v10 = vadd.f32 %v13517_v28, %v19094_v12  ;;  %16363 = vmatprep.subr.bf16.mxu1 %v18336_v27 }
 0x4e8   : > { %v13588_v17 = vadd.f32 %v13516_v48, %v19095_v15  ;;  %v13538_v45 = vadd.f32 0.0001, %v13530_v43 }
 0x4e9   : > { %v13597_v20 = vadd.f32 0.0009, %v13589_v10 }
 0x4ea   : > { %v13596_v6 = vadd.f32 0.0009, %v13588_v17 }
 0x4eb   : > { %v18750_v38 = vmul.f32 %v13597_v20, %v13581_v13 }
 0x4ec   : > { %v18752_v57 = vmul.f32 %v13596_v6, %v13580_v37 }
 0x4ed   : > { %15790 = vmatmul.mubr.f32.vlgmr.msra.gmra.mrb[36].mxu1 %v17840_v11  ;;  %16846 = vrcp.f32 %v18750_v38 }
 0x4ee   : > { %16365 = vmatpush3.bf16.msra.mxu1 %v18336_v27  ;;  %15796 = vmatprep.mubr.f32.mxu1 %v19028_v40  ;;  %16848 = vrcp.f32 %v18752_v57 }
 0x4ef   : > { %16367 = vmatprep.subr.bf16.mxu1 %v18356_v36 }
 0x4f1   : > { %15797 = vmatmul.mubr.f32.vlgmr.msra.gmra.mrb[38].mxu1 %v17864_v24 }
 0x4f2   : > { %16369 = vmatpush3.bf16.msra.mxu1 %v18356_v36  ;;  %15803 = vmatprep.mubr.f32.mxu1 %v17492_v22  ;;  %v13583_v36 = vadd.f32 0.0001, %v18493_v7 }
 0x4f3   : > { %16371 = vmatprep.subr.bf16.mxu1 %v18343_v1 }
 0x4f9   : > { %15804 = vmatmul.mubr.f32.vlgmr.msra.gmra.mrb[38].mxu1 %v17840_v11 }
 0x4fa   : > { %16373 = vmatpush3.bf16.msra.mxu1 %v18343_v1  ;;  %15810 = vmatprep.mubr.f32.mxu1 %v19019_v3  ;;  %v19097_v1 = vsub.f32 %v18638_v44, %v18482_v18  ;;  %v19098_v18 = vsub.f32 %v18666_v39, %v18522_v63  ;;  %v16843_v63 = vpop.eup %16842 }
 0x4fb   : > { %16375 = vmatprep.subr.bf16.mxu1 %v18336_v27  ;;  %v13619_v44 = vmul.f32 %v16843_v63, %v18712_v41 }
 0x4fd   : > { %v13627_v26 = vsub.f32 2.0, %v13619_v44  ;;  %v13535_v44 = vmul.f32 2.0, %v18477_v30 }
 0x501   : > { %15811 = vmatmul.mubr.f32.vlgmr.msra.gmra.mrb[38].mxu1 %v17845_v31 }
 0x502   : > { %16377 = vmatpush3.bf16.msra.mxu1 %v18336_v27  ;;  %15817 = vmatprep.mubr.f32.mxu1 %v19021_v5 }
 0x503   : > { %16379 = vmatprep.subr.bf16.mxu1 %v18350_v34 }
 0x509   : > { %15818 = vmatmul.mubr.f32.vlgmr.msra.gmra.mrb[38].mxu1 %v17852_v62  ;;  %v19096_v62 = vsub.f32 %v18634_v4, %v18472_v42 }
 0x50a   : > { %16381 = vmatpush3.bf16.msra.mxu1 %v18350_v34  ;;  %15824 = vmatprep.mubr.f32.mxu1 %v17492_v22 }
 0x50b   : > { %16383 = vmatprep.subr.bf16.mxu1 %v18336_v27 }
 0x510   : > { %v15623_v24 = vpop.f32.mrb[28].mxu1 }
 0x511   : > { %v13519_v3 = vsub.f32 %v15623_v24, %v18474_v2  ;;  %v10962_v40 = vpop.f32.mrb[29].mxu1  ;;  %15825 = vmatmul.mubr.f32.vlgmr.msra.gmra.mrb[38].mxu1 %v17840_v11 }
 0x512   : > { %v13518_v31 = vsub.f32 %v10962_v40, %v18484_v54  ;;  %16385 = vmatpush3.bf16.msra.mxu1 %v18336_v27  ;;  %15831 = vmatprep.mubr.f32.mxu1 %v17492_v22  ;;  %v13533_v40 = vmul.f32 2.0, %v18427_v46 }
 0x513   : > { %v13591_v5 = vadd.f32 %v13519_v3, %v19096_v62 }
 0x514   : > { %v13590_v34 = vadd.f32 %v13518_v31, %v19097_v1 }
 0x515   : > { %v13599_v50 = vadd.f32 0.0009, %v13591_v5  ;;  %v13532_v5 = vmul.f32 2.0, %v18437_v0 }
 0x516   : > { %v13598_v58 = vadd.f32 0.0009, %v13590_v34 }
 0x517   : > { %v18787_v9 = vmul.f32 %v13599_v50, %v13583_v36 }
 0x518   : > { %v18789_v2 = vmul.f32 %v13598_v58, %v13582_v55  ;;  %v13541_v58 = vadd.f32 0.0001, %v13533_v40 }
 0x519   : > { %15832 = vmatmul.mubr.f32.vlgmr.msra.gmra.mrb[38].mxu1 %v17840_v11  ;;  %16850 = vrcp.f32 %v18787_v9 }
 0x51a   : > { %16852 = vrcp.f32 %v18789_v2 }
 0x53c   : > { %v15665_v22 = vpop.f32.mrb[30].mxu1 }
 0x53d   : > { %v13521_v27 = vsub.f32 %v15665_v22, %v18524_v59  ;;  %v11464_v42 = vpop.f32.mrb[31].mxu1 }
 0x53e   : > { %v13520_v54 = vsub.f32 %v11464_v42, %v18534_v29  ;;  %v16845_v29 = vpop.eup %16844 }
 0x53f   : > { %v13593_v7 = vadd.f32 %v13521_v27, %v19098_v18  ;;  %v13618_v61 = vmul.f32 %v16845_v29, %v18714_v23  ;;  %v13635_v23 = vmul.f32 %v16843_v63, %v13627_v26  ;;  %v13540_v27 = vadd.f32 0.0001, %v13532_v5 }
 0x540   : > { %v13592_v32 = vadd.f32 %v13520_v54, %v19099_v25 }
 0x541   : > { %v13601_v53 = vadd.f32 0.0009, %v13593_v7  ;;  %v13626_v47 = vsub.f32 2.0, %v13618_v61 }
 0x542   : > { %v13600_v11 = vadd.f32 0.0009, %v13592_v32 }
 0x543   : > { %v18802_v4 = vmul.f32 %v13601_v53, %v13585_v52  ;;  %v13634_v10 = vmul.f32 %v16845_v29, %v13626_v47 }
 0x544   : > { %v18804_v59 = vmul.f32 %v13600_v11, %v13584_v60 }
 0x545   : > { %16854 = vrcp.f32 %v18802_v4 }
 0x546   : > { %16856 = vrcp.f32 %v18804_v59 }
 0x568   : > { %v15707_v19 = vpop.f32.mrb[32].mxu1 }
 0x569   : > { %v13523_v51 = vsub.f32 %v15707_v19, %v18377_v16  ;;  %v11966_v39 = vpop.f32.mrb[33].mxu1 }
 0x56a   : > { %v13522_v49 = vsub.f32 %v11966_v39, %v18387_v8  ;;  %v16847_v8 = vpop.eup %16846 }
 0x56b   : > { %v13547_v35 = vmul.f32 2.0, %v13523_v51  ;;  %v16849_v37 = vpop.eup %16848  ;;  %v13621_v6 = vmul.f32 %v16847_v8, %v18750_v38 }
 0x56c   : > { %v13546_v14 = vmul.f32 2.0, %v13522_v49  ;;  %v13620_v24 = vmul.f32 %v16849_v37, %v18752_v57  ;;  %v16851_v53 = vpop.eup %16850 }
 0x56d   : > { %v13555_v28 = vadd.f32 0.0009, %v13547_v35  ;;  %v13629_v34 = vsub.f32 2.0, %v13621_v6  ;;  %v16853_v60 = vpop.eup %16852  ;;  %v13623_v11 = vmul.f32 %v16851_v53, %v18787_v9  ;;  %v13543_v35 = vadd.f32 0.0001, %v13535_v44 }
 0x56e   : > { %v13554_v41 = vadd.f32 0.0009, %v13546_v14  ;;  %v13628_v50 = vsub.f32 2.0, %v13620_v24  ;;  %v13622_v63 = vmul.f32 %v16853_v60, %v18789_v2  ;;  %v13542_v14 = vadd.f32 0.0001, %v13534_v33  ;;  %v19101_v24 = vld [vmem:[#allocation22_spill] sm:$0xff] }
 0x56f   : > { %v13563_v48 = vmul.f32 %v13555_v28, %v13539_v21  ;;  %v13637_v57 = vmul.f32 %v16847_v8, %v13629_v34  ;;  %v13631_v39 = vsub.f32 2.0, %v13623_v11 }
 0x570   : > { %v13562_v12 = vmul.f32 %v13554_v41, %v13538_v45  ;;  %v13636_v18 = vmul.f32 %v16849_v37, %v13628_v50  ;;  %v13630_v49 = vsub.f32 2.0, %v13622_v63 }
 0x571   : > { %v13643_v15 = vmul.f32 %v13635_v23, %v13563_v48  ;;  %v13639_v2 = vmul.f32 %v16851_v53, %v13631_v39 }
 0x572   : > { %v13642_v17 = vmul.f32 %v13634_v10, %v13562_v12  ;;  %v13638_v45 = vmul.f32 %v16853_v60, %v13630_v49  ;;  %v16855_v10 = vpop.eup %16854 }
 0x573   : > { %v13651_v16 = vsel %vm323_vm10, %v13643_v15, 0.0  ;;  %v16857_v15 = vpop.eup %16856 }
 0x574   : > { %v13650_v13 = vsel %vm323_vm10, %v13642_v17, 0.0  ;;  %v13625_v17 = vmul.f32 %v16855_v10, %v18802_v4 }
 0x575   : > { %v13652_v20 = vadd.f32 %v13651_v16, %v13650_v13  ;;  %v13624_v16 = vmul.f32 %v16857_v15, %v18804_v59 }
 0x577   : > { %v13632_v5 = vsub.f32 2.0, %v13624_v16 }
 0x594   : > { %v15749_v3 = vpop.f32.mrb[34].mxu1 }
 0x595   : > { %v13525_v31 = vsub.f32 %v15749_v3, %v18427_v46  ;;  %v12468_v62 = vpop.f32.mrb[35].mxu1  ;;  %v13536_v3 = vmul.f32 2.0, %v19101_v24 }
 0x596   : > { %v13524_v1 = vsub.f32 %v12468_v62, %v18437_v0  ;;  %v13633_v62 = vsub.f32 2.0, %v13625_v17 }
 0x597   : > { %v13549_v36 = vmul.f32 2.0, %v13525_v31  ;;  %v13544_v50 = vadd.f32 0.0001, %v13536_v3 }
 0x598   : > { %v13548_v55 = vmul.f32 2.0, %v13524_v1  ;;  %v13641_v59 = vmul.f32 %v16855_v10, %v13633_v62 }
 0x599   : > { %v13557_v22 = vadd.f32 0.0009, %v13549_v36 }
 0x59a   : > { %v13556_v38 = vadd.f32 0.0009, %v13548_v55 }
 0x59b   : > { %v13565_v42 = vmul.f32 %v13557_v22, %v13541_v58  ;;  %v13640_v22 = vmul.f32 %v16857_v15, %v13632_v5 }
 0x59c   : > { %v13564_v54 = vmul.f32 %v13556_v38, %v13540_v27 }
 0x59d   : > { %v13645_v7 = vmul.f32 %v13637_v57, %v13565_v42 }
 0x59e   : > { %v13644_v25 = vmul.f32 %v13636_v18, %v13564_v54 }
 0x59f   : > { %v13655_v52 = vsel %vm323_vm10, %v13645_v7, 0.0 }
 0x5a0   : > { %v13653_v46 = vsel %vm323_vm10, %v13644_v25, 0.0 }
 0x5a1   : > { %v13654_v32 = vadd.f32 %v13653_v46, %v13652_v20  ;;  %v19100_v20 = vld [vmem:[#allocation21_spill] sm:$0xff] }
 0x5a2   : > { %v13537_v8 = vmul.f32 2.0, %v19100_v20 }
 0x5a3   : > { %v13656_v0 = vadd.f32 %v13655_v52, %v13654_v32 }
 0x5a4   : > { %v13545_v34 = vadd.f32 0.0001, %v13537_v8 }
 0x5c0   : > { %v15791_v29 = vpop.f32.mrb[36].mxu1 }
 0x5c1   : > { %v13527_v61 = vsub.f32 %v15791_v29, %v18477_v30  ;;  %v12970_v19 = vpop.f32.mrb[37].mxu1 }
 0x5c2   : > { %v13526_v51 = vsub.f32 %v12970_v19, %v18487_v56 }
 0x5c3   : > { %v13551_v43 = vmul.f32 2.0, %v13527_v61 }
 0x5c4   : > { %v13550_v26 = vmul.f32 2.0, %v13526_v51 }
 0x5c5   : > { %v13559_v47 = vadd.f32 0.0009, %v13551_v43 }
 0x5c6   : > { %v13558_v9 = vadd.f32 0.0009, %v13550_v26 }
 0x5c7   : > { %v13567_v21 = vmul.f32 %v13559_v47, %v13543_v35 }
 0x5c8   : > { %v13566_v28 = vmul.f32 %v13558_v9, %v13542_v14 }
 0x5c9   : > { %v13647_v41 = vmul.f32 %v13639_v2, %v13567_v21 }
 0x5ca   : > { %v13646_v48 = vmul.f32 %v13638_v45, %v13566_v28 }
 0x5cb   : > { %v13659_v12 = vsel %vm323_vm10, %v13647_v41, 0.0 }
 0x5cc   : > { %v13657_v30 = vsel %vm323_vm10, %v13646_v48, 0.0 }
 0x5cd   : > { %v13658_v23 = vadd.f32 %v13657_v30, %v13656_v0 }
 0x5cf   : > { %v13660_v56 = vadd.f32 %v13659_v12, %v13658_v23 }
 0x5ec   : > { %v15833_v13 = vpop.f32.mrb[38].mxu1 }
 0x5ed   : > { %v13529_v37 = vsub.f32 %v15833_v13, %v19100_v20  ;;  %v13472_v6 = vpop.f32.mrb[39].mxu1 }
 0x5ee   : > { %v13528_v40 = vsub.f32 %v13472_v6, %v19101_v24 }
 0x5ef   : > { %v13553_v31 = vmul.f32 2.0, %v13529_v37 }
 0x5f0   : > { %v13552_v1 = vmul.f32 2.0, %v13528_v40 }
 0x5f1   : > { %v13561_v36 = vadd.f32 0.0009, %v13553_v31 }
 0x5f2   : > { %v13560_v4 = vadd.f32 0.0009, %v13552_v1 }
 0x5f3   : > { %v13569_v55 = vmul.f32 %v13561_v36, %v13545_v34 }
 0x5f4   : > { %v13568_v58 = vmul.f32 %v13560_v4, %v13544_v50 }
 0x5f5   : > { %v13649_v27 = vmul.f32 %v13641_v59, %v13569_v55 }
 0x5f6   : > { %v13648_v38 = vmul.f32 %v13640_v22, %v13568_v58 }
 0x5f7   : > { %v13663_v54 = vsel %vm323_vm10, %v13649_v27, 0.0 }
 0x5f8   : > { %v13661_v42 = vsel %vm323_vm10, %v13648_v38, 0.0 }
 0x5f9   : > { %v13662_v57 = vadd.f32 %v13661_v42, %v13660_v56 }
 0x5fb   : > { %v13664_v18 = vadd.f32 %v13663_v54, %v13662_v57 }
 0x5fd   : > { %13665 = vadd.xlane.f32.xlu0 %v13664_v18 }
 0x68a   : > { %v13666_v7 = vpop.xlane.xlu0 %13665 }
 0x68b   : > { %v13667_v25 = vrot.slane %v13666_v7, 4 }
 0x68d   : > { %v13668_v46 = vadd.f32 %v13667_v25, %v13666_v7 }
 0x68f   : > { %v13669_v32 = vrot.slane %v13668_v46, 2 }
 0x691   : > { %v13670_v52 = vadd.f32 %v13669_v32, %v13668_v46 }
 0x693   : > { %v13671_v0 = vrot.slane %v13670_v52, 1 }
 0x695   : > { %v13672_v53 = vadd.f32 %v13671_v0, %v13670_v52 }
 0x697   : > { %16786 = vpush %v13672_v53 }
 0x6c8   : > { %s16787_s17 = spop %16786 }
 0x6c9   : > { %v13674_v60 = vstv %s16787_s17 }
 0x6ca   : > { %13675 = vst [vmem:[%s203_s5] sm:$0xff] %v13674_v60 }
 0x6cb   : > { %16931 = shalt.err (!%p16928_p11)
}
 0x6cc   : > { %s16932_s16 = scalar_lea.hbm %s18853_s26, 128  ;;  %s16936_s19 = scalar_lea.hbm %s18897_s2, 256 }
 0x6cd   : > { %p16933_p3 = scmp.ne.s32.totalorder %s18853_s26, %s16932_s16  ;;  %p16937_p2 = scmp.lt.u32.totalorder %s18853_s26, %s18897_s2 }
 0x6ce   : > { %p16938_p4 = scmp.lt.u32.totalorder %s16936_s19, %s16932_s16  ;;  %p16940_p13 = scmp.lt.u32.totalorder %s16932_s16, %s18853_s26 }
 0x6cf   : > { %p16934_p8 = pnand %p16933_p3, %p19102_p1 }
 0x6d0   : > { %p16939_p6 = por %p16938_p4, %p16937_p2 }
 0x6d1   : > { %p16935_p0 = pneg %p16934_p8 }
 0x6d2   : > { %p16941_p12 = por %p16940_p13, %p16939_p6 }
 0x6d4   : > { %p16942_p10 = pnand %p16941_p12, %p16935_p0 }
 0x6d6   : > { %16945 = shalt.err (!%p16942_p10)
}
 0x6d7   : > { %16792 = dma.vmem_to_hbm [thread:$0]  (%p19102_p1), %s18848_s6, 128, %s18853_s26, %s13677_s27  }
 0x6d8 PF: > { %s13702_s29 = sand.u32 1, %s16976_s9   ;;  %p19103_p5 = scmp.ne.s32.totalorder %s18985_s22, 0 }
 0x6d9   : > { %p19104_p7 = scmp.ge.s32.totalorder %s16988_s12, 2  ;;  %s13703_s20 = scalar_lea.sflag [#allocation4], %s13702_s29 }
 0x6db   : > { %p16802_p9 = pnand %p19104_p7, %p19103_p5 }
 0x6dd   : > { %16971 = dma.done.wait (!%p16802_p9), %s13703_s20, 128  }
 0x6de   : > { %16973 = vsyncadd (!%p16802_p9), %s13703_s20, 4294967168  ;;  %p18_p11 = scmp.ge.s32.totalorder %s17036_s15, 4   ;;  %s19105_s9 = smov %s16980_s10 }
 0x6df   : > { %s19106_s10 = smov %s16984_s11  ;;  %s19107_s11 = smov %s17048_s18 }
 0x6e0   : > { %s19108_s12 = smov %s17036_s15  ;;  %20 = sbr.rel (!%p18_p11) target bundleno = 7 (0x7), region = 86 }
 0x6e7   :  { %13708 = vsyncpa [#allocation3], 1 }
 0x6e8   :  { %13710 = vsyncpa [#allocation3 + $0x1], 1 }
 0x6e9   :  { %13711 = vsyncpa [#allocation6], 1 }
 0x6ea   :  { %13713 = vsyncpa [#allocation6 + $0x1], 1 }
 0x6eb   :  { %13714 = vsyncpa [#allocation4], 1 }
 0x6ec   :  { %13716 = vsyncpa [#allocation4 + $0x1], 1 }

</bundles_post_ra>
